<compile_context>
chip_gen: v6e
topology: v6e:2x2x1
jax: 0.10.0
libtpu: 0.0.40
codegen_flags: <defaults>
</compile_context>

<pallas_src>
import random

import jax
import jax.numpy as jnp
from jax.experimental import pallas as pl
from jax.experimental.pallas import tpu as pltpu

# ----------------------------- model dimensions ------------------------------
SRC_LEN = 8
TRG_LEN = 8
BATCH = 2
B_PAD = 8            # batch padded to one full sublane group
INPUT_DIM = 64       # source vocab size
OUTPUT_DIM = 64      # target vocab size (decoder.output_dim)
ENC_EMB = 32
DEC_EMB = 32
ENC_HID = 32
DEC_HID = 32
OUT_PAD = 128        # lane-dense output width (logits in cols 0..63)

f32 = jnp.float32
_VMEM = pl.BlockSpec(memory_space=pltpu.MemorySpace.VMEM)
_SMEM = pl.BlockSpec(memory_space=pltpu.MemorySpace.SMEM)


# ------------------------------ shared GRU gates ------------------------------
def _gru_gates(gi, gh, h, hid):
    """PyTorch GRU cell semantics (gate order r, z, n); gi/gh already biased."""
    i_r, i_z, i_n = gi[:, :hid], gi[:, hid:2 * hid], gi[:, 2 * hid:3 * hid]
    h_r, h_z, h_n = gh[:, :hid], gh[:, hid:2 * hid], gh[:, 2 * hid:3 * hid]
    r = jax.nn.sigmoid(i_r + h_r)
    z = jax.nn.sigmoid(i_z + h_z)
    n = jnp.tanh(i_n + r * h_n)
    return (1.0 - z) * n + z * h


# --------------------------- fully fused Seq2Seq kernel ------------------------
def seq2seq_kernel(tf_ref, src_ref, trg_ref,
                   enc_emb_ref, dec_emb_ref,
                   wih_cat_ref, whh_f_ref, whh_b_ref,
                   bih_f_ref, bhh_f_ref, bih_b_ref, bhh_b_ref,
                   wfc_ref, bfc_ref,
                   wattn_e_ref, battn_ref, wattn_h_ref, vattn_ref,
                   w_block_ref, dbih_ref, dbhh_ref,
                   wout_comb_ref, bout_pad_ref,
                   out_ref,
                   inp_scratch):
    S, B, T = SRC_LEN, B_PAD, TRG_LEN
    Eh, Dh = ENC_HID, DEC_HID
    V = OUTPUT_DIM

    # ---------------- in-kernel embedding lookups (one-hot @ table) ----------------
    src_i = src_ref[...]                                                    # [S, B] int32
    src_oh = (jax.lax.broadcasted_iota(jnp.int32, (S, B, INPUT_DIM), 2)
              == src_i[:, :, None]).astype(f32)                            # [S, B, Vin]
    emb_src = jnp.dot(src_oh.reshape(S * B, INPUT_DIM), enc_emb_ref[...],
                      preferred_element_type=f32)                          # [S*B, Ee]

    dec_emb_tbl = dec_emb_ref[...]                                         # [V, De]
    trg_i = trg_ref[...]                                                   # [T, B] int32
    trg_oh = (jax.lax.broadcasted_iota(jnp.int32, (T, B, V), 2)
              == trg_i[:, :, None]).astype(f32)                            # [T, B, V]
    trg_emb_all = jnp.dot(trg_oh.reshape(T * B, V), dec_emb_tbl,
                          preferred_element_type=f32)                      # [T*B, De]

    # ------------------------------- encoder (biGRU) -------------------------------
    # Hoisted + 256-lane packed input-side gate projections for BOTH directions:
    # fwd gates live in lanes 0..95, bwd gates in lanes 128..223.
    gi_all = jnp.dot(emb_src, wih_cat_ref[...], preferred_element_type=f32)  # [S*B, 256]

    whh_f = whh_f_ref[...]; bih_f = bih_f_ref[...]; bhh_f = bhh_f_ref[...]
    whh_b = whh_b_ref[...]; bih_b = bih_b_ref[...]; bhh_b = bhh_b_ref[...]

    h_f = jnp.zeros((B, Eh), dtype=f32)
    fwd = []
    for t in range(S):                                       # static unroll, S=8
        gi = gi_all[t * B:(t + 1) * B, 0:3 * Eh] + bih_f
        gh = jnp.dot(h_f, whh_f, preferred_element_type=f32) + bhh_f
        h_f = _gru_gates(gi, gh, h_f, Eh)
        fwd.append(h_f)

    h_b = jnp.zeros((B, Eh), dtype=f32)
    bwd = [None] * S
    for t in reversed(range(S)):
        gi = gi_all[t * B:(t + 1) * B, 128:128 + 3 * Eh] + bih_b
        gh = jnp.dot(h_b, whh_b, preferred_element_type=f32) + bhh_b
        h_b = _gru_gates(gi, gh, h_b, Eh)
        bwd[t] = h_b

    # B-major encoder context [B, S, 2H] (one concat + one stack, stays in VMEM).
    enc_ctx = jnp.stack(
        [jnp.concatenate([fwd[t], bwd[t]], axis=1) for t in range(S)], axis=1)
    enc_flat = enc_ctx.reshape(B * S, 2 * Eh)                               # [B*S, 2H]

    # Step-invariant attention key projection (hoisted out of the decode loop).
    enc_proj = (jnp.dot(enc_flat, wattn_e_ref[...], preferred_element_type=f32)
                + battn_ref[...]).reshape(B, S, Dh)                          # [B, S, Dh]

    # Decoder initial hidden + its attention-query projection.
    hid = jnp.tanh(jnp.dot(jnp.concatenate([h_f, h_b], axis=1), wfc_ref[...],
                           preferred_element_type=f32) + bfc_ref[...])       # [B, Dh]
    hid_part = jnp.dot(hid, wattn_h_ref[...], preferred_element_type=f32)    # [B, Dh]

    # ---------------------- decoder: fused autoregressive loop --------------------
    w_block = w_block_ref[...]
    dbih = dbih_ref[...]; dbhh = dbhh_ref[...]
    wout_comb = wout_comb_ref[...]; bout_pad = bout_pad_ref[...]

    # Hoisted broadcasts / constants (not re-materialized per step).
    vattn_b = jnp.broadcast_to(vattn_ref[...].reshape(1, 1, Dh), (B, S, Dh))
    iota_v = jax.lax.broadcasted_iota(jnp.int32, (B, V), 1).astype(f32)
    col = jax.lax.broadcasted_iota(jnp.int32, (B, B * S), 1)
    row = jax.lax.broadcasted_iota(jnp.int32, (B, B * S), 0)
    neg_mask = jnp.where((col >= row * S) & (col < (row + 1) * S), 0.0, -1e30)

    out_ref[0] = jnp.zeros((B, OUT_PAD), dtype=f32)          # outputs[0] stays zeros
    inp_emb = trg_emb_all[0:B, :]                            # first input = embed(trg[0])

    for t in range(1, T):                                    # static unroll, T=8
        # --- Bahdanau attention; weighted sum over S done on the MXU via a
        #     block-masked softmax + one [B, B*S] @ [B*S, 2H] matmul. ---
        energy = jnp.tanh(enc_proj + hid_part[:, None, :])                   # [B, S, Dh]
        scores = jnp.sum(energy * vattn_b, axis=-1)                          # [B, S]
        s_blk = jnp.concatenate([scores] * B, axis=1) + neg_mask             # [B, B*S]
        s_blk = s_blk - jnp.max(s_blk, axis=-1, keepdims=True)
        p_blk = jnp.exp(s_blk)
        a_blk = p_blk / jnp.sum(p_blk, axis=-1, keepdims=True)
        weighted = jnp.dot(a_blk, enc_flat, preferred_element_type=f32)      # [B, 2H]

        # --- GRU cell: gi/gh packed into one [B,128]@[128,256] block-diag matmul,
        #     lane-aligned so the gi/gh slices stay within a single vreg each. ---
        xh = jnp.concatenate([inp_emb, weighted, hid], axis=1)               # [B, 128]
        gigh = jnp.dot(xh, w_block, preferred_element_type=f32)              # [B, 256]
        gi = gigh[:, 0:3 * Dh] + dbih
        gh = gigh[:, 128:128 + 3 * Dh] + dbhh
        h_new = _gru_gates(gi, gh, hid, Dh)

        # --- combined projection: logits (cols 0..63) AND next-step attention
        #     query h_new @ W_attn_h (cols 64..95) in one MXU op; lane-dense store.
        feat = jnp.concatenate([h_new, weighted, inp_emb], axis=1)           # [B, 128]
        proj = jnp.dot(feat, wout_comb, preferred_element_type=f32) + bout_pad
        out_ref[t] = proj                                                    # [B, 128]
        hid = h_new
        hid_part = proj[:, V:V + Dh]                                         # = h_new @ W_attn_h

        # --- next input: teacher forcing vs greedy argmax, pl.when-gated so the
        #     argmax + one-hot @ embedding matmul only runs on non-forced steps.
        if t < T - 1:
            @pl.when(tf_ref[t] != 0)
            def _teacher():
                inp_scratch[...] = trg_emb_all[t * B:(t + 1) * B, :]

            @pl.when(tf_ref[t] == 0)
            def _greedy():
                logits = proj[:, :V]                        # padded cols excluded
                mx = jnp.max(logits, axis=-1, keepdims=True)
                cand = jnp.where(logits == mx, iota_v, float(V))
                first = jnp.min(cand, axis=-1, keepdims=True)                # [B, 1]
                onehot = (iota_v == first).astype(f32)                       # [B, V]
                inp_scratch[...] = jnp.dot(onehot, dec_emb_tbl,
                                           preferred_element_type=f32)

            inp_emb = inp_scratch[...]


# ------------------------------ Seq2Seq forward -------------------------------
def _forward_core(src, trg, p, tf_mask):
    # pad batch to one full sublane group; padded columns compute garbage that
    # is sliced off at the end (all row-wise math is batch-independent).
    src_p = jnp.pad(src, ((0, 0), (0, B_PAD - src.shape[1])))
    trg_p = jnp.pad(trg, ((0, 0), (0, B_PAD - trg.shape[1])))

    out_pad = pl.pallas_call(
        seq2seq_kernel,
        out_shape=jax.ShapeDtypeStruct((TRG_LEN, B_PAD, OUT_PAD), f32),
        in_specs=[_SMEM] + [_VMEM] * 22,
        out_specs=_VMEM,
        scratch_shapes=[pltpu.VMEM((B_PAD, DEC_EMB), f32)],
    )(tf_mask, src_p, trg_p,
      p['enc_embedding'], p['dec_embedding'],
      p['enc_wih_cat'], p['enc_whh_f'], p['enc_whh_b'],
      p['enc_bih_f'], p['enc_bhh_f'], p['enc_bih_b'], p['enc_bhh_b'],
      p['enc_fc_w'], p['enc_fc_b'],
      p['attn_w_e'], p['attn_b'], p['attn_w_h'], p['attn_v'],
      p['dec_w_block'], p['dec_bih'], p['dec_bhh'],
      p['dec_wout_comb'], p['dec_bout_pad'])
    return out_pad[:, :BATCH, :OUTPUT_DIM]


_forward_jit = jax.jit(_forward_core)


def seq2seq_forward(src, trg, packed_params, teacher_forcing_ratio=0.5):
    # deterministic local RNG (does not clobber global random state); same
    # consumption pattern as the PyTorch per-step coin flips.
    rng = random.Random(0)
    flips = [0] + [1 if rng.random() < teacher_forcing_ratio else 0
                   for _ in range(1, TRG_LEN)]
    tf_mask = jnp.asarray(flips, dtype=jnp.int32)
    return _forward_jit(src, trg, packed_params, tf_mask)


# ----------------------------- deterministic params ---------------------------
def init_params(key):
    shapes = {
        'enc_embedding': (INPUT_DIM, ENC_EMB),
        'enc_wih_f': (ENC_EMB, 3 * ENC_HID), 'enc_whh_f': (ENC_HID, 3 * ENC_HID),
        'enc_bih_f': (1, 3 * ENC_HID), 'enc_bhh_f': (1, 3 * ENC_HID),
        'enc_wih_b': (ENC_EMB, 3 * ENC_HID), 'enc_whh_b': (ENC_HID, 3 * ENC_HID),
        'enc_bih_b': (1, 3 * ENC_HID), 'enc_bhh_b': (1, 3 * ENC_HID),
        'enc_fc_w': (2 * ENC_HID, DEC_HID), 'enc_fc_b': (1, DEC_HID),
        'dec_embedding': (OUTPUT_DIM, DEC_EMB),
        'attn_w_h': (DEC_HID, DEC_HID), 'attn_w_e': (2 * ENC_HID, DEC_HID),
        'attn_b': (1, DEC_HID), 'attn_v': (1, DEC_HID),
        'dec_wih': (DEC_EMB + 2 * ENC_HID, 3 * DEC_HID),
        'dec_whh': (DEC_HID, 3 * DEC_HID),
        'dec_bih': (1, 3 * DEC_HID), 'dec_bhh': (1, 3 * DEC_HID),
        'dec_out_w': (DEC_HID + 2 * ENC_HID + DEC_EMB, OUTPUT_DIM),
        'dec_out_b': (1, OUTPUT_DIM),
    }
    keys = jax.random.split(key, len(shapes))
    return {name: 0.1 * jax.random.normal(k, shape, dtype=f32)
            for (name, shape), k in zip(shapes.items(), keys)}


def pack_params(p):
    """One-time packing of kernel-ready weights (hoisted out of the forward)."""
    q = dict(p)

    # encoder input-gate weights: fwd gates in lanes 0..95, bwd in lanes 128..223
    wih_cat = jnp.zeros((ENC_EMB, 256), dtype=f32)
    wih_cat = wih_cat.at[:, 0:3 * ENC_HID].set(p['enc_wih_f'])
    wih_cat = wih_cat.at[:, 128:128 + 3 * ENC_HID].set(p['enc_wih_b'])
    q['enc_wih_cat'] = wih_cat

    # decoder block-diagonal gate weights, 256-lane aligned
    xh_dim = DEC_EMB + 2 * ENC_HID + DEC_HID                 # 128
    w_block = jnp.zeros((xh_dim, 256), dtype=f32)
    w_block = w_block.at[:DEC_EMB + 2 * ENC_HID, 0:3 * DEC_HID].set(p['dec_wih'])
    w_block = w_block.at[DEC_EMB + 2 * ENC_HID:, 128:128 + 3 * DEC_HID].set(p['dec_whh'])
    q['dec_w_block'] = w_block

    # combined vocab + next-step attention-query projection (128 lanes)
    wout_comb = jnp.zeros((xh_dim, OUT_PAD), dtype=f32)
    wout_comb = wout_comb.at[:, :OUTPUT_DIM].set(p['dec_out_w'])
    wout_comb = wout_comb.at[:DEC_HID, OUTPUT_DIM:OUTPUT_DIM + DEC_HID].set(p['attn_w_h'])
    q['dec_wout_comb'] = wout_comb

    bout_pad = jnp.zeros((1, OUT_PAD), dtype=f32)
    bout_pad = bout_pad.at[:, :OUTPUT_DIM].set(p['dec_out_b'])
    q['dec_bout_pad'] = bout_pad
    return q


# ------------------------------------ main ------------------------------------
if __name__ == "__main__":
    key = jax.random.PRNGKey(0)
    k_param, k_src, k_trg = jax.random.split(key, 3)

    params = pack_params(init_params(k_param))
    src = jax.random.randint(k_src, (SRC_LEN, BATCH), 0, INPUT_DIM, dtype=jnp.int32)
    trg = jax.random.randint(k_trg, (TRG_LEN, BATCH), 0, OUTPUT_DIM, dtype=jnp.int32)

    outputs = seq2seq_forward(src, trg, params, teacher_forcing_ratio=0.5)
    outputs = jax.block_until_ready(outputs)
    assert outputs.shape == (TRG_LEN, BATCH, OUTPUT_DIM)
    assert outputs.dtype == jnp.float32
    print("KERNEL_OK")
</pallas_src>

<mosaic_0001>
module attributes {stable_mosaic.version = 11 : i64} {
  func.func @seq2seq_kernel(%arg0: memref<8xi32, #tpu.memory_space<smem>>, %arg1: memref<8x8xi32, #tpu.memory_space<vmem>>, %arg2: memref<8x8xi32, #tpu.memory_space<vmem>>, %arg3: memref<64x32xf32, #tpu.memory_space<vmem>>, %arg4: memref<64x32xf32, #tpu.memory_space<vmem>>, %arg5: memref<32x256xf32, #tpu.memory_space<vmem>>, %arg6: memref<32x96xf32, #tpu.memory_space<vmem>>, %arg7: memref<32x96xf32, #tpu.memory_space<vmem>>, %arg8: memref<1x96xf32, #tpu.memory_space<vmem>>, %arg9: memref<1x96xf32, #tpu.memory_space<vmem>>, %arg10: memref<1x96xf32, #tpu.memory_space<vmem>>, %arg11: memref<1x96xf32, #tpu.memory_space<vmem>>, %arg12: memref<64x32xf32, #tpu.memory_space<vmem>>, %arg13: memref<1x32xf32, #tpu.memory_space<vmem>>, %arg14: memref<64x32xf32, #tpu.memory_space<vmem>>, %arg15: memref<1x32xf32, #tpu.memory_space<vmem>>, %arg16: memref<32x32xf32, #tpu.memory_space<vmem>>, %arg17: memref<1x32xf32, #tpu.memory_space<vmem>>, %arg18: memref<128x256xf32, #tpu.memory_space<vmem>>, %arg19: memref<1x96xf32, #tpu.memory_space<vmem>>, %arg20: memref<1x96xf32, #tpu.memory_space<vmem>>, %arg21: memref<128x128xf32, #tpu.memory_space<vmem>>, %arg22: memref<1x128xf32, #tpu.memory_space<vmem>>, %arg23: memref<8x8x128xf32, #tpu.memory_space<vmem>>, %arg24: memref<8x32xf32, #tpu.memory_space<vmem>>) attributes {dimension_semantics = [], scalar_prefetch = 0 : i64, scratch_operands = 1 : i64, tpu.core_type = #tpu.core_type<tc>} {
    %c0 = arith.constant 0 : index
    %c0_0 = arith.constant 0 : index
    %0 = vector.load %arg1[%c0, %c0_0] : memref<8x8xi32, #tpu.memory_space<vmem>>, vector<8x8xi32>
    %1 = tpu.iota {dimensions = array<i32: 2>} : vector<8x8x64xi32>
    %2 = vector.shape_cast %0 : vector<8x8xi32> to vector<8x8x1xi32>
    %3 = vector.broadcast %2 : vector<8x8x1xi32> to vector<8x8x64xi32>
    %4 = arith.cmpi eq, %1, %3 : vector<8x8x64xi32>
    %5 = arith.extui %4 : vector<8x8x64xi1> to vector<8x8x64xi32>
    %6 = arith.sitofp %5 : vector<8x8x64xi32> to vector<8x8x64xf32>
    %7 = vector.shape_cast %6 : vector<8x8x64xf32> to vector<64x64xf32>
    %c0_1 = arith.constant 0 : index
    %c0_2 = arith.constant 0 : index
    %8 = vector.load %arg3[%c0_1, %c0_2] : memref<64x32xf32, #tpu.memory_space<vmem>>, vector<64x32xf32>
    %cst = arith.constant dense<0.000000e+00> : vector<64x32xf32>
    %9 = tpu.matmul %7, %8, %cst {dimension_numbers = #tpu.dot_dimension_numbers<[1], [0], [0], [1], [0, 0, 1, 1], [], []>} : vector<64x64xf32>, vector<64x32xf32>, vector<64x32xf32> -> vector<64x32xf32>
    %c0_3 = arith.constant 0 : index
    %c0_4 = arith.constant 0 : index
    %10 = vector.load %arg4[%c0_3, %c0_4] : memref<64x32xf32, #tpu.memory_space<vmem>>, vector<64x32xf32>
    %c0_5 = arith.constant 0 : index
    %c0_6 = arith.constant 0 : index
    %11 = vector.load %arg2[%c0_5, %c0_6] : memref<8x8xi32, #tpu.memory_space<vmem>>, vector<8x8xi32>
    %12 = tpu.iota {dimensions = array<i32: 2>} : vector<8x8x64xi32>
    %13 = vector.shape_cast %11 : vector<8x8xi32> to vector<8x8x1xi32>
    %14 = vector.broadcast %13 : vector<8x8x1xi32> to vector<8x8x64xi32>
    %15 = arith.cmpi eq, %12, %14 : vector<8x8x64xi32>
    %16 = arith.extui %15 : vector<8x8x64xi1> to vector<8x8x64xi32>
    %17 = arith.sitofp %16 : vector<8x8x64xi32> to vector<8x8x64xf32>
    %18 = vector.shape_cast %17 : vector<8x8x64xf32> to vector<64x64xf32>
    %cst_7 = arith.constant dense<0.000000e+00> : vector<64x32xf32>
    %19 = tpu.matmul %18, %10, %cst_7 {dimension_numbers = #tpu.dot_dimension_numbers<[1], [0], [0], [1], [0, 0, 1, 1], [], []>} : vector<64x64xf32>, vector<64x32xf32>, vector<64x32xf32> -> vector<64x32xf32>
    %c0_8 = arith.constant 0 : index
    %c0_9 = arith.constant 0 : index
    %20 = vector.load %arg5[%c0_8, %c0_9] : memref<32x256xf32, #tpu.memory_space<vmem>>, vector<32x256xf32>
    %cst_10 = arith.constant dense<0.000000e+00> : vector<64x256xf32>
    %21 = tpu.matmul %9, %20, %cst_10 {dimension_numbers = #tpu.dot_dimension_numbers<[1], [0], [0], [1], [0, 0, 1, 1], [], []>} : vector<64x32xf32>, vector<32x256xf32>, vector<64x256xf32> -> vector<64x256xf32>
    %c0_11 = arith.constant 0 : index
    %c0_12 = arith.constant 0 : index
    %22 = vector.load %arg6[%c0_11, %c0_12] : memref<32x96xf32, #tpu.memory_space<vmem>>, vector<32x96xf32>
    %c0_13 = arith.constant 0 : index
    %c0_14 = arith.constant 0 : index
    %23 = vector.load %arg8[%c0_13, %c0_14] : memref<1x96xf32, #tpu.memory_space<vmem>>, vector<1x96xf32>
    %c0_15 = arith.constant 0 : index
    %c0_16 = arith.constant 0 : index
    %24 = vector.load %arg9[%c0_15, %c0_16] : memref<1x96xf32, #tpu.memory_space<vmem>>, vector<1x96xf32>
    %c0_17 = arith.constant 0 : index
    %c0_18 = arith.constant 0 : index
    %25 = vector.load %arg7[%c0_17, %c0_18] : memref<32x96xf32, #tpu.memory_space<vmem>>, vector<32x96xf32>
    %c0_19 = arith.constant 0 : index
    %c0_20 = arith.constant 0 : index
    %26 = vector.load %arg10[%c0_19, %c0_20] : memref<1x96xf32, #tpu.memory_space<vmem>>, vector<1x96xf32>
    %c0_21 = arith.constant 0 : index
    %c0_22 = arith.constant 0 : index
    %27 = vector.load %arg11[%c0_21, %c0_22] : memref<1x96xf32, #tpu.memory_space<vmem>>, vector<1x96xf32>
    %cst_23 = arith.constant 0.000000e+00 : f32
    %28 = vector.broadcast %cst_23 : f32 to vector<8x32xf32>
    %29 = vector.extract_strided_slice %21 {offsets = [0, 0], sizes = [8, 96], strides = [1, 1]} : vector<64x256xf32> to vector<8x96xf32>
    %30 = vector.broadcast %23 : vector<1x96xf32> to vector<8x96xf32>
    %31 = arith.addf %29, %30 : vector<8x96xf32>
    %cst_24 = arith.constant dense<0.000000e+00> : vector<8x96xf32>
    %32 = tpu.matmul %28, %22, %cst_24 {dimension_numbers = #tpu.dot_dimension_numbers<[1], [0], [0], [1], [0, 0, 1, 1], [], []>} : vector<8x32xf32>, vector<32x96xf32>, vector<8x96xf32> -> vector<8x96xf32>
    %33 = vector.broadcast %24 : vector<1x96xf32> to vector<8x96xf32>
    %34 = arith.addf %32, %33 : vector<8x96xf32>
    %35 = vector.extract_strided_slice %31 {offsets = [0, 0], sizes = [8, 32], strides = [1, 1]} : vector<8x96xf32> to vector<8x32xf32>
    %36 = vector.extract_strided_slice %31 {offsets = [0, 32], sizes = [8, 32], strides = [1, 1]} : vector<8x96xf32> to vector<8x32xf32>
    %37 = vector.extract_strided_slice %31 {offsets = [0, 64], sizes = [8, 32], strides = [1, 1]} : vector<8x96xf32> to vector<8x32xf32>
    %38 = vector.extract_strided_slice %34 {offsets = [0, 0], sizes = [8, 32], strides = [1, 1]} : vector<8x96xf32> to vector<8x32xf32>
    %39 = vector.extract_strided_slice %34 {offsets = [0, 32], sizes = [8, 32], strides = [1, 1]} : vector<8x96xf32> to vector<8x32xf32>
    %40 = vector.extract_strided_slice %34 {offsets = [0, 64], sizes = [8, 32], strides = [1, 1]} : vector<8x96xf32> to vector<8x32xf32>
    %41 = arith.addf %35, %38 : vector<8x32xf32>
    %42 = arith.negf %41 : vector<8x32xf32>
    %43 = math.exp %42 : vector<8x32xf32>
    %cst_25 = arith.constant 1.000000e+00 : f32
    %44 = vector.broadcast %cst_25 : f32 to vector<8x32xf32>
    %45 = arith.addf %44, %43 : vector<8x32xf32>
    %46 = arith.divf %44, %45 : vector<8x32xf32>
    %47 = arith.addf %36, %39 : vector<8x32xf32>
    %48 = arith.negf %47 : vector<8x32xf32>
    %49 = math.exp %48 : vector<8x32xf32>
    %cst_26 = arith.constant 1.000000e+00 : f32
    %50 = vector.broadcast %cst_26 : f32 to vector<8x32xf32>
    %51 = arith.addf %50, %49 : vector<8x32xf32>
    %52 = arith.divf %50, %51 : vector<8x32xf32>
    %53 = arith.mulf %46, %40 : vector<8x32xf32>
    %54 = arith.addf %37, %53 : vector<8x32xf32>
    %55 = math.tanh %54 : vector<8x32xf32>
    %cst_27 = arith.constant 1.000000e+00 : f32
    %56 = vector.broadcast %cst_27 : f32 to vector<8x32xf32>
    %57 = arith.subf %56, %52 : vector<8x32xf32>
    %58 = arith.mulf %57, %55 : vector<8x32xf32>
    %59 = arith.mulf %52, %28 : vector<8x32xf32>
    %60 = arith.addf %58, %59 : vector<8x32xf32>
    %61 = vector.extract_strided_slice %21 {offsets = [8, 0], sizes = [8, 96], strides = [1, 1]} : vector<64x256xf32> to vector<8x96xf32>
    %62 = vector.broadcast %23 : vector<1x96xf32> to vector<8x96xf32>
    %63 = arith.addf %61, %62 : vector<8x96xf32>
    %cst_28 = arith.constant dense<0.000000e+00> : vector<8x96xf32>
    %64 = tpu.matmul %60, %22, %cst_28 {dimension_numbers = #tpu.dot_dimension_numbers<[1], [0], [0], [1], [0, 0, 1, 1], [], []>} : vector<8x32xf32>, vector<32x96xf32>, vector<8x96xf32> -> vector<8x96xf32>
    %65 = vector.broadcast %24 : vector<1x96xf32> to vector<8x96xf32>
    %66 = arith.addf %64, %65 : vector<8x96xf32>
    %67 = vector.extract_strided_slice %63 {offsets = [0, 0], sizes = [8, 32], strides = [1, 1]} : vector<8x96xf32> to vector<8x32xf32>
    %68 = vector.extract_strided_slice %63 {offsets = [0, 32], sizes = [8, 32], strides = [1, 1]} : vector<8x96xf32> to vector<8x32xf32>
    %69 = vector.extract_strided_slice %63 {offsets = [0, 64], sizes = [8, 32], strides = [1, 1]} : vector<8x96xf32> to vector<8x32xf32>
    %70 = vector.extract_strided_slice %66 {offsets = [0, 0], sizes = [8, 32], strides = [1, 1]} : vector<8x96xf32> to vector<8x32xf32>
    %71 = vector.extract_strided_slice %66 {offsets = [0, 32], sizes = [8, 32], strides = [1, 1]} : vector<8x96xf32> to vector<8x32xf32>
    %72 = vector.extract_strided_slice %66 {offsets = [0, 64], sizes = [8, 32], strides = [1, 1]} : vector<8x96xf32> to vector<8x32xf32>
    %73 = arith.addf %67, %70 : vector<8x32xf32>
    %74 = arith.negf %73 : vector<8x32xf32>
    %75 = math.exp %74 : vector<8x32xf32>
    %cst_29 = arith.constant 1.000000e+00 : f32
    %76 = vector.broadcast %cst_29 : f32 to vector<8x32xf32>
    %77 = arith.addf %76, %75 : vector<8x32xf32>
    %78 = arith.divf %76, %77 : vector<8x32xf32>
    %79 = arith.addf %68, %71 : vector<8x32xf32>
    %80 = arith.negf %79 : vector<8x32xf32>
    %81 = math.exp %80 : vector<8x32xf32>
    %cst_30 = arith.constant 1.000000e+00 : f32
    %82 = vector.broadcast %cst_30 : f32 to vector<8x32xf32>
    %83 = arith.addf %82, %81 : vector<8x32xf32>
    %84 = arith.divf %82, %83 : vector<8x32xf32>
    %85 = arith.mulf %78, %72 : vector<8x32xf32>
    %86 = arith.addf %69, %85 : vector<8x32xf32>
    %87 = math.tanh %86 : vector<8x32xf32>
    %cst_31 = arith.constant 1.000000e+00 : f32
    %88 = vector.broadcast %cst_31 : f32 to vector<8x32xf32>
    %89 = arith.subf %88, %84 : vector<8x32xf32>
    %90 = arith.mulf %89, %87 : vector<8x32xf32>
    %91 = arith.mulf %84, %60 : vector<8x32xf32>
    %92 = arith.addf %90, %91 : vector<8x32xf32>
    %93 = vector.extract_strided_slice %21 {offsets = [16, 0], sizes = [8, 96], strides = [1, 1]} : vector<64x256xf32> to vector<8x96xf32>
    %94 = vector.broadcast %23 : vector<1x96xf32> to vector<8x96xf32>
    %95 = arith.addf %93, %94 : vector<8x96xf32>
    %cst_32 = arith.constant dense<0.000000e+00> : vector<8x96xf32>
    %96 = tpu.matmul %92, %22, %cst_32 {dimension_numbers = #tpu.dot_dimension_numbers<[1], [0], [0], [1], [0, 0, 1, 1], [], []>} : vector<8x32xf32>, vector<32x96xf32>, vector<8x96xf32> -> vector<8x96xf32>
    %97 = vector.broadcast %24 : vector<1x96xf32> to vector<8x96xf32>
    %98 = arith.addf %96, %97 : vector<8x96xf32>
    %99 = vector.extract_strided_slice %95 {offsets = [0, 0], sizes = [8, 32], strides = [1, 1]} : vector<8x96xf32> to vector<8x32xf32>
    %100 = vector.extract_strided_slice %95 {offsets = [0, 32], sizes = [8, 32], strides = [1, 1]} : vector<8x96xf32> to vector<8x32xf32>
    %101 = vector.extract_strided_slice %95 {offsets = [0, 64], sizes = [8, 32], strides = [1, 1]} : vector<8x96xf32> to vector<8x32xf32>
    %102 = vector.extract_strided_slice %98 {offsets = [0, 0], sizes = [8, 32], strides = [1, 1]} : vector<8x96xf32> to vector<8x32xf32>
    %103 = vector.extract_strided_slice %98 {offsets = [0, 32], sizes = [8, 32], strides = [1, 1]} : vector<8x96xf32> to vector<8x32xf32>
    %104 = vector.extract_strided_slice %98 {offsets = [0, 64], sizes = [8, 32], strides = [1, 1]} : vector<8x96xf32> to vector<8x32xf32>
    %105 = arith.addf %99, %102 : vector<8x32xf32>
    %106 = arith.negf %105 : vector<8x32xf32>
    %107 = math.exp %106 : vector<8x32xf32>
    %cst_33 = arith.constant 1.000000e+00 : f32
    %108 = vector.broadcast %cst_33 : f32 to vector<8x32xf32>
    %109 = arith.addf %108, %107 : vector<8x32xf32>
    %110 = arith.divf %108, %109 : vector<8x32xf32>
    %111 = arith.addf %100, %103 : vector<8x32xf32>
    %112 = arith.negf %111 : vector<8x32xf32>
    %113 = math.exp %112 : vector<8x32xf32>
    %cst_34 = arith.constant 1.000000e+00 : f32
    %114 = vector.broadcast %cst_34 : f32 to vector<8x32xf32>
    %115 = arith.addf %114, %113 : vector<8x32xf32>
    %116 = arith.divf %114, %115 : vector<8x32xf32>
    %117 = arith.mulf %110, %104 : vector<8x32xf32>
    %118 = arith.addf %101, %117 : vector<8x32xf32>
    %119 = math.tanh %118 : vector<8x32xf32>
    %cst_35 = arith.constant 1.000000e+00 : f32
    %120 = vector.broadcast %cst_35 : f32 to vector<8x32xf32>
    %121 = arith.subf %120, %116 : vector<8x32xf32>
    %122 = arith.mulf %121, %119 : vector<8x32xf32>
    %123 = arith.mulf %116, %92 : vector<8x32xf32>
    %124 = arith.addf %122, %123 : vector<8x32xf32>
    %125 = vector.extract_strided_slice %21 {offsets = [24, 0], sizes = [8, 96], strides = [1, 1]} : vector<64x256xf32> to vector<8x96xf32>
    %126 = vector.broadcast %23 : vector<1x96xf32> to vector<8x96xf32>
    %127 = arith.addf %125, %126 : vector<8x96xf32>
    %cst_36 = arith.constant dense<0.000000e+00> : vector<8x96xf32>
    %128 = tpu.matmul %124, %22, %cst_36 {dimension_numbers = #tpu.dot_dimension_numbers<[1], [0], [0], [1], [0, 0, 1, 1], [], []>} : vector<8x32xf32>, vector<32x96xf32>, vector<8x96xf32> -> vector<8x96xf32>
    %129 = vector.broadcast %24 : vector<1x96xf32> to vector<8x96xf32>
    %130 = arith.addf %128, %129 : vector<8x96xf32>
    %131 = vector.extract_strided_slice %127 {offsets = [0, 0], sizes = [8, 32], strides = [1, 1]} : vector<8x96xf32> to vector<8x32xf32>
    %132 = vector.extract_strided_slice %127 {offsets = [0, 32], sizes = [8, 32], strides = [1, 1]} : vector<8x96xf32> to vector<8x32xf32>
    %133 = vector.extract_strided_slice %127 {offsets = [0, 64], sizes = [8, 32], strides = [1, 1]} : vector<8x96xf32> to vector<8x32xf32>
    %134 = vector.extract_strided_slice %130 {offsets = [0, 0], sizes = [8, 32], strides = [1, 1]} : vector<8x96xf32> to vector<8x32xf32>
    %135 = vector.extract_strided_slice %130 {offsets = [0, 32], sizes = [8, 32], strides = [1, 1]} : vector<8x96xf32> to vector<8x32xf32>
    %136 = vector.extract_strided_slice %130 {offsets = [0, 64], sizes = [8, 32], strides = [1, 1]} : vector<8x96xf32> to vector<8x32xf32>
    %137 = arith.addf %131, %134 : vector<8x32xf32>
    %138 = arith.negf %137 : vector<8x32xf32>
    %139 = math.exp %138 : vector<8x32xf32>
    %cst_37 = arith.constant 1.000000e+00 : f32
    %140 = vector.broadcast %cst_37 : f32 to vector<8x32xf32>
    %141 = arith.addf %140, %139 : vector<8x32xf32>
    %142 = arith.divf %140, %141 : vector<8x32xf32>
    %143 = arith.addf %132, %135 : vector<8x32xf32>
    %144 = arith.negf %143 : vector<8x32xf32>
    %145 = math.exp %144 : vector<8x32xf32>
    %cst_38 = arith.constant 1.000000e+00 : f32
    %146 = vector.broadcast %cst_38 : f32 to vector<8x32xf32>
    %147 = arith.addf %146, %145 : vector<8x32xf32>
    %148 = arith.divf %146, %147 : vector<8x32xf32>
    %149 = arith.mulf %142, %136 : vector<8x32xf32>
    %150 = arith.addf %133, %149 : vector<8x32xf32>
    %151 = math.tanh %150 : vector<8x32xf32>
    %cst_39 = arith.constant 1.000000e+00 : f32
    %152 = vector.broadcast %cst_39 : f32 to vector<8x32xf32>
    %153 = arith.subf %152, %148 : vector<8x32xf32>
    %154 = arith.mulf %153, %151 : vector<8x32xf32>
    %155 = arith.mulf %148, %124 : vector<8x32xf32>
    %156 = arith.addf %154, %155 : vector<8x32xf32>
    %157 = vector.extract_strided_slice %21 {offsets = [32, 0], sizes = [8, 96], strides = [1, 1]} : vector<64x256xf32> to vector<8x96xf32>
    %158 = vector.broadcast %23 : vector<1x96xf32> to vector<8x96xf32>
    %159 = arith.addf %157, %158 : vector<8x96xf32>
    %cst_40 = arith.constant dense<0.000000e+00> : vector<8x96xf32>
    %160 = tpu.matmul %156, %22, %cst_40 {dimension_numbers = #tpu.dot_dimension_numbers<[1], [0], [0], [1], [0, 0, 1, 1], [], []>} : vector<8x32xf32>, vector<32x96xf32>, vector<8x96xf32> -> vector<8x96xf32>
    %161 = vector.broadcast %24 : vector<1x96xf32> to vector<8x96xf32>
    %162 = arith.addf %160, %161 : vector<8x96xf32>
    %163 = vector.extract_strided_slice %159 {offsets = [0, 0], sizes = [8, 32], strides = [1, 1]} : vector<8x96xf32> to vector<8x32xf32>
    %164 = vector.extract_strided_slice %159 {offsets = [0, 32], sizes = [8, 32], strides = [1, 1]} : vector<8x96xf32> to vector<8x32xf32>
    %165 = vector.extract_strided_slice %159 {offsets = [0, 64], sizes = [8, 32], strides = [1, 1]} : vector<8x96xf32> to vector<8x32xf32>
    %166 = vector.extract_strided_slice %162 {offsets = [0, 0], sizes = [8, 32], strides = [1, 1]} : vector<8x96xf32> to vector<8x32xf32>
    %167 = vector.extract_strided_slice %162 {offsets = [0, 32], sizes = [8, 32], strides = [1, 1]} : vector<8x96xf32> to vector<8x32xf32>
    %168 = vector.extract_strided_slice %162 {offsets = [0, 64], sizes = [8, 32], strides = [1, 1]} : vector<8x96xf32> to vector<8x32xf32>
    %169 = arith.addf %163, %166 : vector<8x32xf32>
    %170 = arith.negf %169 : vector<8x32xf32>
    %171 = math.exp %170 : vector<8x32xf32>
    %cst_41 = arith.constant 1.000000e+00 : f32
    %172 = vector.broadcast %cst_41 : f32 to vector<8x32xf32>
    %173 = arith.addf %172, %171 : vector<8x32xf32>
    %174 = arith.divf %172, %173 : vector<8x32xf32>
    %175 = arith.addf %164, %167 : vector<8x32xf32>
    %176 = arith.negf %175 : vector<8x32xf32>
    %177 = math.exp %176 : vector<8x32xf32>
    %cst_42 = arith.constant 1.000000e+00 : f32
    %178 = vector.broadcast %cst_42 : f32 to vector<8x32xf32>
    %179 = arith.addf %178, %177 : vector<8x32xf32>
    %180 = arith.divf %178, %179 : vector<8x32xf32>
    %181 = arith.mulf %174, %168 : vector<8x32xf32>
    %182 = arith.addf %165, %181 : vector<8x32xf32>
    %183 = math.tanh %182 : vector<8x32xf32>
    %cst_43 = arith.constant 1.000000e+00 : f32
    %184 = vector.broadcast %cst_43 : f32 to vector<8x32xf32>
    %185 = arith.subf %184, %180 : vector<8x32xf32>
    %186 = arith.mulf %185, %183 : vector<8x32xf32>
    %187 = arith.mulf %180, %156 : vector<8x32xf32>
    %188 = arith.addf %186, %187 : vector<8x32xf32>
    %189 = vector.extract_strided_slice %21 {offsets = [40, 0], sizes = [8, 96], strides = [1, 1]} : vector<64x256xf32> to vector<8x96xf32>
    %190 = vector.broadcast %23 : vector<1x96xf32> to vector<8x96xf32>
    %191 = arith.addf %189, %190 : vector<8x96xf32>
    %cst_44 = arith.constant dense<0.000000e+00> : vector<8x96xf32>
    %192 = tpu.matmul %188, %22, %cst_44 {dimension_numbers = #tpu.dot_dimension_numbers<[1], [0], [0], [1], [0, 0, 1, 1], [], []>} : vector<8x32xf32>, vector<32x96xf32>, vector<8x96xf32> -> vector<8x96xf32>
    %193 = vector.broadcast %24 : vector<1x96xf32> to vector<8x96xf32>
    %194 = arith.addf %192, %193 : vector<8x96xf32>
    %195 = vector.extract_strided_slice %191 {offsets = [0, 0], sizes = [8, 32], strides = [1, 1]} : vector<8x96xf32> to vector<8x32xf32>
    %196 = vector.extract_strided_slice %191 {offsets = [0, 32], sizes = [8, 32], strides = [1, 1]} : vector<8x96xf32> to vector<8x32xf32>
    %197 = vector.extract_strided_slice %191 {offsets = [0, 64], sizes = [8, 32], strides = [1, 1]} : vector<8x96xf32> to vector<8x32xf32>
    %198 = vector.extract_strided_slice %194 {offsets = [0, 0], sizes = [8, 32], strides = [1, 1]} : vector<8x96xf32> to vector<8x32xf32>
    %199 = vector.extract_strided_slice %194 {offsets = [0, 32], sizes = [8, 32], strides = [1, 1]} : vector<8x96xf32> to vector<8x32xf32>
    %200 = vector.extract_strided_slice %194 {offsets = [0, 64], sizes = [8, 32], strides = [1, 1]} : vector<8x96xf32> to vector<8x32xf32>
    %201 = arith.addf %195, %198 : vector<8x32xf32>
    %202 = arith.negf %201 : vector<8x32xf32>
    %203 = math.exp %202 : vector<8x32xf32>
    %cst_45 = arith.constant 1.000000e+00 : f32
    %204 = vector.broadcast %cst_45 : f32 to vector<8x32xf32>
    %205 = arith.addf %204, %203 : vector<8x32xf32>
    %206 = arith.divf %204, %205 : vector<8x32xf32>
    %207 = arith.addf %196, %199 : vector<8x32xf32>
    %208 = arith.negf %207 : vector<8x32xf32>
    %209 = math.exp %208 : vector<8x32xf32>
    %cst_46 = arith.constant 1.000000e+00 : f32
    %210 = vector.broadcast %cst_46 : f32 to vector<8x32xf32>
    %211 = arith.addf %210, %209 : vector<8x32xf32>
    %212 = arith.divf %210, %211 : vector<8x32xf32>
    %213 = arith.mulf %206, %200 : vector<8x32xf32>
    %214 = arith.addf %197, %213 : vector<8x32xf32>
    %215 = math.tanh %214 : vector<8x32xf32>
    %cst_47 = arith.constant 1.000000e+00 : f32
    %216 = vector.broadcast %cst_47 : f32 to vector<8x32xf32>
    %217 = arith.subf %216, %212 : vector<8x32xf32>
    %218 = arith.mulf %217, %215 : vector<8x32xf32>
    %219 = arith.mulf %212, %188 : vector<8x32xf32>
    %220 = arith.addf %218, %219 : vector<8x32xf32>
    %221 = vector.extract_strided_slice %21 {offsets = [48, 0], sizes = [8, 96], strides = [1, 1]} : vector<64x256xf32> to vector<8x96xf32>
    %222 = vector.broadcast %23 : vector<1x96xf32> to vector<8x96xf32>
    %223 = arith.addf %221, %222 : vector<8x96xf32>
    %cst_48 = arith.constant dense<0.000000e+00> : vector<8x96xf32>
    %224 = tpu.matmul %220, %22, %cst_48 {dimension_numbers = #tpu.dot_dimension_numbers<[1], [0], [0], [1], [0, 0, 1, 1], [], []>} : vector<8x32xf32>, vector<32x96xf32>, vector<8x96xf32> -> vector<8x96xf32>
    %225 = vector.broadcast %24 : vector<1x96xf32> to vector<8x96xf32>
    %226 = arith.addf %224, %225 : vector<8x96xf32>
    %227 = vector.extract_strided_slice %223 {offsets = [0, 0], sizes = [8, 32], strides = [1, 1]} : vector<8x96xf32> to vector<8x32xf32>
    %228 = vector.extract_strided_slice %223 {offsets = [0, 32], sizes = [8, 32], strides = [1, 1]} : vector<8x96xf32> to vector<8x32xf32>
    %229 = vector.extract_strided_slice %223 {offsets = [0, 64], sizes = [8, 32], strides = [1, 1]} : vector<8x96xf32> to vector<8x32xf32>
    %230 = vector.extract_strided_slice %226 {offsets = [0, 0], sizes = [8, 32], strides = [1, 1]} : vector<8x96xf32> to vector<8x32xf32>
    %231 = vector.extract_strided_slice %226 {offsets = [0, 32], sizes = [8, 32], strides = [1, 1]} : vector<8x96xf32> to vector<8x32xf32>
    %232 = vector.extract_strided_slice %226 {offsets = [0, 64], sizes = [8, 32], strides = [1, 1]} : vector<8x96xf32> to vector<8x32xf32>
    %233 = arith.addf %227, %230 : vector<8x32xf32>
    %234 = arith.negf %233 : vector<8x32xf32>
    %235 = math.exp %234 : vector<8x32xf32>
    %cst_49 = arith.constant 1.000000e+00 : f32
    %236 = vector.broadcast %cst_49 : f32 to vector<8x32xf32>
    %237 = arith.addf %236, %235 : vector<8x32xf32>
    %238 = arith.divf %236, %237 : vector<8x32xf32>
    %239 = arith.addf %228, %231 : vector<8x32xf32>
    %240 = arith.negf %239 : vector<8x32xf32>
    %241 = math.exp %240 : vector<8x32xf32>
    %cst_50 = arith.constant 1.000000e+00 : f32
    %242 = vector.broadcast %cst_50 : f32 to vector<8x32xf32>
    %243 = arith.addf %242, %241 : vector<8x32xf32>
    %244 = arith.divf %242, %243 : vector<8x32xf32>
    %245 = arith.mulf %238, %232 : vector<8x32xf32>
    %246 = arith.addf %229, %245 : vector<8x32xf32>
    %247 = math.tanh %246 : vector<8x32xf32>
    %cst_51 = arith.constant 1.000000e+00 : f32
    %248 = vector.broadcast %cst_51 : f32 to vector<8x32xf32>
    %249 = arith.subf %248, %244 : vector<8x32xf32>
    %250 = arith.mulf %249, %247 : vector<8x32xf32>
    %251 = arith.mulf %244, %220 : vector<8x32xf32>
    %252 = arith.addf %250, %251 : vector<8x32xf32>
    %253 = vector.extract_strided_slice %21 {offsets = [56, 0], sizes = [8, 96], strides = [1, 1]} : vector<64x256xf32> to vector<8x96xf32>
    %254 = vector.broadcast %23 : vector<1x96xf32> to vector<8x96xf32>
    %255 = arith.addf %253, %254 : vector<8x96xf32>
    %cst_52 = arith.constant dense<0.000000e+00> : vector<8x96xf32>
    %256 = tpu.matmul %252, %22, %cst_52 {dimension_numbers = #tpu.dot_dimension_numbers<[1], [0], [0], [1], [0, 0, 1, 1], [], []>} : vector<8x32xf32>, vector<32x96xf32>, vector<8x96xf32> -> vector<8x96xf32>
    %257 = vector.broadcast %24 : vector<1x96xf32> to vector<8x96xf32>
    %258 = arith.addf %256, %257 : vector<8x96xf32>
    %259 = vector.extract_strided_slice %255 {offsets = [0, 0], sizes = [8, 32], strides = [1, 1]} : vector<8x96xf32> to vector<8x32xf32>
    %260 = vector.extract_strided_slice %255 {offsets = [0, 32], sizes = [8, 32], strides = [1, 1]} : vector<8x96xf32> to vector<8x32xf32>
    %261 = vector.extract_strided_slice %255 {offsets = [0, 64], sizes = [8, 32], strides = [1, 1]} : vector<8x96xf32> to vector<8x32xf32>
    %262 = vector.extract_strided_slice %258 {offsets = [0, 0], sizes = [8, 32], strides = [1, 1]} : vector<8x96xf32> to vector<8x32xf32>
    %263 = vector.extract_strided_slice %258 {offsets = [0, 32], sizes = [8, 32], strides = [1, 1]} : vector<8x96xf32> to vector<8x32xf32>
    %264 = vector.extract_strided_slice %258 {offsets = [0, 64], sizes = [8, 32], strides = [1, 1]} : vector<8x96xf32> to vector<8x32xf32>
    %265 = arith.addf %259, %262 : vector<8x32xf32>
    %266 = arith.negf %265 : vector<8x32xf32>
    %267 = math.exp %266 : vector<8x32xf32>
    %cst_53 = arith.constant 1.000000e+00 : f32
    %268 = vector.broadcast %cst_53 : f32 to vector<8x32xf32>
    %269 = arith.addf %268, %267 : vector<8x32xf32>
    %270 = arith.divf %268, %269 : vector<8x32xf32>
    %271 = arith.addf %260, %263 : vector<8x32xf32>
    %272 = arith.negf %271 : vector<8x32xf32>
    %273 = math.exp %272 : vector<8x32xf32>
    %cst_54 = arith.constant 1.000000e+00 : f32
    %274 = vector.broadcast %cst_54 : f32 to vector<8x32xf32>
    %275 = arith.addf %274, %273 : vector<8x32xf32>
    %276 = arith.divf %274, %275 : vector<8x32xf32>
    %277 = arith.mulf %270, %264 : vector<8x32xf32>
    %278 = arith.addf %261, %277 : vector<8x32xf32>
    %279 = math.tanh %278 : vector<8x32xf32>
    %cst_55 = arith.constant 1.000000e+00 : f32
    %280 = vector.broadcast %cst_55 : f32 to vector<8x32xf32>
    %281 = arith.subf %280, %276 : vector<8x32xf32>
    %282 = arith.mulf %281, %279 : vector<8x32xf32>
    %283 = arith.mulf %276, %252 : vector<8x32xf32>
    %284 = arith.addf %282, %283 : vector<8x32xf32>
    %cst_56 = arith.constant 0.000000e+00 : f32
    %285 = vector.broadcast %cst_56 : f32 to vector<8x32xf32>
    %286 = vector.extract_strided_slice %21 {offsets = [56, 128], sizes = [8, 96], strides = [1, 1]} : vector<64x256xf32> to vector<8x96xf32>
    %287 = vector.broadcast %26 : vector<1x96xf32> to vector<8x96xf32>
    %288 = arith.addf %286, %287 : vector<8x96xf32>
    %cst_57 = arith.constant dense<0.000000e+00> : vector<8x96xf32>
    %289 = tpu.matmul %285, %25, %cst_57 {dimension_numbers = #tpu.dot_dimension_numbers<[1], [0], [0], [1], [0, 0, 1, 1], [], []>} : vector<8x32xf32>, vector<32x96xf32>, vector<8x96xf32> -> vector<8x96xf32>
    %290 = vector.broadcast %27 : vector<1x96xf32> to vector<8x96xf32>
    %291 = arith.addf %289, %290 : vector<8x96xf32>
    %292 = vector.extract_strided_slice %288 {offsets = [0, 0], sizes = [8, 32], strides = [1, 1]} : vector<8x96xf32> to vector<8x32xf32>
    %293 = vector.extract_strided_slice %288 {offsets = [0, 32], sizes = [8, 32], strides = [1, 1]} : vector<8x96xf32> to vector<8x32xf32>
    %294 = vector.extract_strided_slice %288 {offsets = [0, 64], sizes = [8, 32], strides = [1, 1]} : vector<8x96xf32> to vector<8x32xf32>
    %295 = vector.extract_strided_slice %291 {offsets = [0, 0], sizes = [8, 32], strides = [1, 1]} : vector<8x96xf32> to vector<8x32xf32>
    %296 = vector.extract_strided_slice %291 {offsets = [0, 32], sizes = [8, 32], strides = [1, 1]} : vector<8x96xf32> to vector<8x32xf32>
    %297 = vector.extract_strided_slice %291 {offsets = [0, 64], sizes = [8, 32], strides = [1, 1]} : vector<8x96xf32> to vector<8x32xf32>
    %298 = arith.addf %292, %295 : vector<8x32xf32>
    %299 = arith.negf %298 : vector<8x32xf32>
    %300 = math.exp %299 : vector<8x32xf32>
    %cst_58 = arith.constant 1.000000e+00 : f32
    %301 = vector.broadcast %cst_58 : f32 to vector<8x32xf32>
    %302 = arith.addf %301, %300 : vector<8x32xf32>
    %303 = arith.divf %301, %302 : vector<8x32xf32>
    %304 = arith.addf %293, %296 : vector<8x32xf32>
    %305 = arith.negf %304 : vector<8x32xf32>
    %306 = math.exp %305 : vector<8x32xf32>
    %cst_59 = arith.constant 1.000000e+00 : f32
    %307 = vector.broadcast %cst_59 : f32 to vector<8x32xf32>
    %308 = arith.addf %307, %306 : vector<8x32xf32>
    %309 = arith.divf %307, %308 : vector<8x32xf32>
    %310 = arith.mulf %303, %297 : vector<8x32xf32>
    %311 = arith.addf %294, %310 : vector<8x32xf32>
    %312 = math.tanh %311 : vector<8x32xf32>
    %cst_60 = arith.constant 1.000000e+00 : f32
    %313 = vector.broadcast %cst_60 : f32 to vector<8x32xf32>
    %314 = arith.subf %313, %309 : vector<8x32xf32>
    %315 = arith.mulf %314, %312 : vector<8x32xf32>
    %316 = arith.mulf %309, %285 : vector<8x32xf32>
    %317 = arith.addf %315, %316 : vector<8x32xf32>
    %318 = vector.extract_strided_slice %21 {offsets = [48, 128], sizes = [8, 96], strides = [1, 1]} : vector<64x256xf32> to vector<8x96xf32>
    %319 = vector.broadcast %26 : vector<1x96xf32> to vector<8x96xf32>
    %320 = arith.addf %318, %319 : vector<8x96xf32>
    %cst_61 = arith.constant dense<0.000000e+00> : vector<8x96xf32>
    %321 = tpu.matmul %317, %25, %cst_61 {dimension_numbers = #tpu.dot_dimension_numbers<[1], [0], [0], [1], [0, 0, 1, 1], [], []>} : vector<8x32xf32>, vector<32x96xf32>, vector<8x96xf32> -> vector<8x96xf32>
    %322 = vector.broadcast %27 : vector<1x96xf32> to vector<8x96xf32>
    %323 = arith.addf %321, %322 : vector<8x96xf32>
    %324 = vector.extract_strided_slice %320 {offsets = [0, 0], sizes = [8, 32], strides = [1, 1]} : vector<8x96xf32> to vector<8x32xf32>
    %325 = vector.extract_strided_slice %320 {offsets = [0, 32], sizes = [8, 32], strides = [1, 1]} : vector<8x96xf32> to vector<8x32xf32>
    %326 = vector.extract_strided_slice %320 {offsets = [0, 64], sizes = [8, 32], strides = [1, 1]} : vector<8x96xf32> to vector<8x32xf32>
    %327 = vector.extract_strided_slice %323 {offsets = [0, 0], sizes = [8, 32], strides = [1, 1]} : vector<8x96xf32> to vector<8x32xf32>
    %328 = vector.extract_strided_slice %323 {offsets = [0, 32], sizes = [8, 32], strides = [1, 1]} : vector<8x96xf32> to vector<8x32xf32>
    %329 = vector.extract_strided_slice %323 {offsets = [0, 64], sizes = [8, 32], strides = [1, 1]} : vector<8x96xf32> to vector<8x32xf32>
    %330 = arith.addf %324, %327 : vector<8x32xf32>
    %331 = arith.negf %330 : vector<8x32xf32>
    %332 = math.exp %331 : vector<8x32xf32>
    %cst_62 = arith.constant 1.000000e+00 : f32
    %333 = vector.broadcast %cst_62 : f32 to vector<8x32xf32>
    %334 = arith.addf %333, %332 : vector<8x32xf32>
    %335 = arith.divf %333, %334 : vector<8x32xf32>
    %336 = arith.addf %325, %328 : vector<8x32xf32>
    %337 = arith.negf %336 : vector<8x32xf32>
    %338 = math.exp %337 : vector<8x32xf32>
    %cst_63 = arith.constant 1.000000e+00 : f32
    %339 = vector.broadcast %cst_63 : f32 to vector<8x32xf32>
    %340 = arith.addf %339, %338 : vector<8x32xf32>
    %341 = arith.divf %339, %340 : vector<8x32xf32>
    %342 = arith.mulf %335, %329 : vector<8x32xf32>
    %343 = arith.addf %326, %342 : vector<8x32xf32>
    %344 = math.tanh %343 : vector<8x32xf32>
    %cst_64 = arith.constant 1.000000e+00 : f32
    %345 = vector.broadcast %cst_64 : f32 to vector<8x32xf32>
    %346 = arith.subf %345, %341 : vector<8x32xf32>
    %347 = arith.mulf %346, %344 : vector<8x32xf32>
    %348 = arith.mulf %341, %317 : vector<8x32xf32>
    %349 = arith.addf %347, %348 : vector<8x32xf32>
    %350 = vector.extract_strided_slice %21 {offsets = [40, 128], sizes = [8, 96], strides = [1, 1]} : vector<64x256xf32> to vector<8x96xf32>
    %351 = vector.broadcast %26 : vector<1x96xf32> to vector<8x96xf32>
    %352 = arith.addf %350, %351 : vector<8x96xf32>
    %cst_65 = arith.constant dense<0.000000e+00> : vector<8x96xf32>
    %353 = tpu.matmul %349, %25, %cst_65 {dimension_numbers = #tpu.dot_dimension_numbers<[1], [0], [0], [1], [0, 0, 1, 1], [], []>} : vector<8x32xf32>, vector<32x96xf32>, vector<8x96xf32> -> vector<8x96xf32>
    %354 = vector.broadcast %27 : vector<1x96xf32> to vector<8x96xf32>
    %355 = arith.addf %353, %354 : vector<8x96xf32>
    %356 = vector.extract_strided_slice %352 {offsets = [0, 0], sizes = [8, 32], strides = [1, 1]} : vector<8x96xf32> to vector<8x32xf32>
    %357 = vector.extract_strided_slice %352 {offsets = [0, 32], sizes = [8, 32], strides = [1, 1]} : vector<8x96xf32> to vector<8x32xf32>
    %358 = vector.extract_strided_slice %352 {offsets = [0, 64], sizes = [8, 32], strides = [1, 1]} : vector<8x96xf32> to vector<8x32xf32>
    %359 = vector.extract_strided_slice %355 {offsets = [0, 0], sizes = [8, 32], strides = [1, 1]} : vector<8x96xf32> to vector<8x32xf32>
    %360 = vector.extract_strided_slice %355 {offsets = [0, 32], sizes = [8, 32], strides = [1, 1]} : vector<8x96xf32> to vector<8x32xf32>
    %361 = vector.extract_strided_slice %355 {offsets = [0, 64], sizes = [8, 32], strides = [1, 1]} : vector<8x96xf32> to vector<8x32xf32>
    %362 = arith.addf %356, %359 : vector<8x32xf32>
    %363 = arith.negf %362 : vector<8x32xf32>
    %364 = math.exp %363 : vector<8x32xf32>
    %cst_66 = arith.constant 1.000000e+00 : f32
    %365 = vector.broadcast %cst_66 : f32 to vector<8x32xf32>
    %366 = arith.addf %365, %364 : vector<8x32xf32>
    %367 = arith.divf %365, %366 : vector<8x32xf32>
    %368 = arith.addf %357, %360 : vector<8x32xf32>
    %369 = arith.negf %368 : vector<8x32xf32>
    %370 = math.exp %369 : vector<8x32xf32>
    %cst_67 = arith.constant 1.000000e+00 : f32
    %371 = vector.broadcast %cst_67 : f32 to vector<8x32xf32>
    %372 = arith.addf %371, %370 : vector<8x32xf32>
    %373 = arith.divf %371, %372 : vector<8x32xf32>
    %374 = arith.mulf %367, %361 : vector<8x32xf32>
    %375 = arith.addf %358, %374 : vector<8x32xf32>
    %376 = math.tanh %375 : vector<8x32xf32>
    %cst_68 = arith.constant 1.000000e+00 : f32
    %377 = vector.broadcast %cst_68 : f32 to vector<8x32xf32>
    %378 = arith.subf %377, %373 : vector<8x32xf32>
    %379 = arith.mulf %378, %376 : vector<8x32xf32>
    %380 = arith.mulf %373, %349 : vector<8x32xf32>
    %381 = arith.addf %379, %380 : vector<8x32xf32>
    %382 = vector.extract_strided_slice %21 {offsets = [32, 128], sizes = [8, 96], strides = [1, 1]} : vector<64x256xf32> to vector<8x96xf32>
    %383 = vector.broadcast %26 : vector<1x96xf32> to vector<8x96xf32>
    %384 = arith.addf %382, %383 : vector<8x96xf32>
    %cst_69 = arith.constant dense<0.000000e+00> : vector<8x96xf32>
    %385 = tpu.matmul %381, %25, %cst_69 {dimension_numbers = #tpu.dot_dimension_numbers<[1], [0], [0], [1], [0, 0, 1, 1], [], []>} : vector<8x32xf32>, vector<32x96xf32>, vector<8x96xf32> -> vector<8x96xf32>
    %386 = vector.broadcast %27 : vector<1x96xf32> to vector<8x96xf32>
    %387 = arith.addf %385, %386 : vector<8x96xf32>
    %388 = vector.extract_strided_slice %384 {offsets = [0, 0], sizes = [8, 32], strides = [1, 1]} : vector<8x96xf32> to vector<8x32xf32>
    %389 = vector.extract_strided_slice %384 {offsets = [0, 32], sizes = [8, 32], strides = [1, 1]} : vector<8x96xf32> to vector<8x32xf32>
    %390 = vector.extract_strided_slice %384 {offsets = [0, 64], sizes = [8, 32], strides = [1, 1]} : vector<8x96xf32> to vector<8x32xf32>
    %391 = vector.extract_strided_slice %387 {offsets = [0, 0], sizes = [8, 32], strides = [1, 1]} : vector<8x96xf32> to vector<8x32xf32>
    %392 = vector.extract_strided_slice %387 {offsets = [0, 32], sizes = [8, 32], strides = [1, 1]} : vector<8x96xf32> to vector<8x32xf32>
    %393 = vector.extract_strided_slice %387 {offsets = [0, 64], sizes = [8, 32], strides = [1, 1]} : vector<8x96xf32> to vector<8x32xf32>
    %394 = arith.addf %388, %391 : vector<8x32xf32>
    %395 = arith.negf %394 : vector<8x32xf32>
    %396 = math.exp %395 : vector<8x32xf32>
    %cst_70 = arith.constant 1.000000e+00 : f32
    %397 = vector.broadcast %cst_70 : f32 to vector<8x32xf32>
    %398 = arith.addf %397, %396 : vector<8x32xf32>
    %399 = arith.divf %397, %398 : vector<8x32xf32>
    %400 = arith.addf %389, %392 : vector<8x32xf32>
    %401 = arith.negf %400 : vector<8x32xf32>
    %402 = math.exp %401 : vector<8x32xf32>
    %cst_71 = arith.constant 1.000000e+00 : f32
    %403 = vector.broadcast %cst_71 : f32 to vector<8x32xf32>
    %404 = arith.addf %403, %402 : vector<8x32xf32>
    %405 = arith.divf %403, %404 : vector<8x32xf32>
    %406 = arith.mulf %399, %393 : vector<8x32xf32>
    %407 = arith.addf %390, %406 : vector<8x32xf32>
    %408 = math.tanh %407 : vector<8x32xf32>
    %cst_72 = arith.constant 1.000000e+00 : f32
    %409 = vector.broadcast %cst_72 : f32 to vector<8x32xf32>
    %410 = arith.subf %409, %405 : vector<8x32xf32>
    %411 = arith.mulf %410, %408 : vector<8x32xf32>
    %412 = arith.mulf %405, %381 : vector<8x32xf32>
    %413 = arith.addf %411, %412 : vector<8x32xf32>
    %414 = vector.extract_strided_slice %21 {offsets = [24, 128], sizes = [8, 96], strides = [1, 1]} : vector<64x256xf32> to vector<8x96xf32>
    %415 = vector.broadcast %26 : vector<1x96xf32> to vector<8x96xf32>
    %416 = arith.addf %414, %415 : vector<8x96xf32>
    %cst_73 = arith.constant dense<0.000000e+00> : vector<8x96xf32>
    %417 = tpu.matmul %413, %25, %cst_73 {dimension_numbers = #tpu.dot_dimension_numbers<[1], [0], [0], [1], [0, 0, 1, 1], [], []>} : vector<8x32xf32>, vector<32x96xf32>, vector<8x96xf32> -> vector<8x96xf32>
    %418 = vector.broadcast %27 : vector<1x96xf32> to vector<8x96xf32>
    %419 = arith.addf %417, %418 : vector<8x96xf32>
    %420 = vector.extract_strided_slice %416 {offsets = [0, 0], sizes = [8, 32], strides = [1, 1]} : vector<8x96xf32> to vector<8x32xf32>
    %421 = vector.extract_strided_slice %416 {offsets = [0, 32], sizes = [8, 32], strides = [1, 1]} : vector<8x96xf32> to vector<8x32xf32>
    %422 = vector.extract_strided_slice %416 {offsets = [0, 64], sizes = [8, 32], strides = [1, 1]} : vector<8x96xf32> to vector<8x32xf32>
    %423 = vector.extract_strided_slice %419 {offsets = [0, 0], sizes = [8, 32], strides = [1, 1]} : vector<8x96xf32> to vector<8x32xf32>
    %424 = vector.extract_strided_slice %419 {offsets = [0, 32], sizes = [8, 32], strides = [1, 1]} : vector<8x96xf32> to vector<8x32xf32>
    %425 = vector.extract_strided_slice %419 {offsets = [0, 64], sizes = [8, 32], strides = [1, 1]} : vector<8x96xf32> to vector<8x32xf32>
    %426 = arith.addf %420, %423 : vector<8x32xf32>
    %427 = arith.negf %426 : vector<8x32xf32>
    %428 = math.exp %427 : vector<8x32xf32>
    %cst_74 = arith.constant 1.000000e+00 : f32
    %429 = vector.broadcast %cst_74 : f32 to vector<8x32xf32>
    %430 = arith.addf %429, %428 : vector<8x32xf32>
    %431 = arith.divf %429, %430 : vector<8x32xf32>
    %432 = arith.addf %421, %424 : vector<8x32xf32>
    %433 = arith.negf %432 : vector<8x32xf32>
    %434 = math.exp %433 : vector<8x32xf32>
    %cst_75 = arith.constant 1.000000e+00 : f32
    %435 = vector.broadcast %cst_75 : f32 to vector<8x32xf32>
    %436 = arith.addf %435, %434 : vector<8x32xf32>
    %437 = arith.divf %435, %436 : vector<8x32xf32>
    %438 = arith.mulf %431, %425 : vector<8x32xf32>
    %439 = arith.addf %422, %438 : vector<8x32xf32>
    %440 = math.tanh %439 : vector<8x32xf32>
    %cst_76 = arith.constant 1.000000e+00 : f32
    %441 = vector.broadcast %cst_76 : f32 to vector<8x32xf32>
    %442 = arith.subf %441, %437 : vector<8x32xf32>
    %443 = arith.mulf %442, %440 : vector<8x32xf32>
    %444 = arith.mulf %437, %413 : vector<8x32xf32>
    %445 = arith.addf %443, %444 : vector<8x32xf32>
    %446 = vector.extract_strided_slice %21 {offsets = [16, 128], sizes = [8, 96], strides = [1, 1]} : vector<64x256xf32> to vector<8x96xf32>
    %447 = vector.broadcast %26 : vector<1x96xf32> to vector<8x96xf32>
    %448 = arith.addf %446, %447 : vector<8x96xf32>
    %cst_77 = arith.constant dense<0.000000e+00> : vector<8x96xf32>
    %449 = tpu.matmul %445, %25, %cst_77 {dimension_numbers = #tpu.dot_dimension_numbers<[1], [0], [0], [1], [0, 0, 1, 1], [], []>} : vector<8x32xf32>, vector<32x96xf32>, vector<8x96xf32> -> vector<8x96xf32>
    %450 = vector.broadcast %27 : vector<1x96xf32> to vector<8x96xf32>
    %451 = arith.addf %449, %450 : vector<8x96xf32>
    %452 = vector.extract_strided_slice %448 {offsets = [0, 0], sizes = [8, 32], strides = [1, 1]} : vector<8x96xf32> to vector<8x32xf32>
    %453 = vector.extract_strided_slice %448 {offsets = [0, 32], sizes = [8, 32], strides = [1, 1]} : vector<8x96xf32> to vector<8x32xf32>
    %454 = vector.extract_strided_slice %448 {offsets = [0, 64], sizes = [8, 32], strides = [1, 1]} : vector<8x96xf32> to vector<8x32xf32>
    %455 = vector.extract_strided_slice %451 {offsets = [0, 0], sizes = [8, 32], strides = [1, 1]} : vector<8x96xf32> to vector<8x32xf32>
    %456 = vector.extract_strided_slice %451 {offsets = [0, 32], sizes = [8, 32], strides = [1, 1]} : vector<8x96xf32> to vector<8x32xf32>
    %457 = vector.extract_strided_slice %451 {offsets = [0, 64], sizes = [8, 32], strides = [1, 1]} : vector<8x96xf32> to vector<8x32xf32>
    %458 = arith.addf %452, %455 : vector<8x32xf32>
    %459 = arith.negf %458 : vector<8x32xf32>
    %460 = math.exp %459 : vector<8x32xf32>
    %cst_78 = arith.constant 1.000000e+00 : f32
    %461 = vector.broadcast %cst_78 : f32 to vector<8x32xf32>
    %462 = arith.addf %461, %460 : vector<8x32xf32>
    %463 = arith.divf %461, %462 : vector<8x32xf32>
    %464 = arith.addf %453, %456 : vector<8x32xf32>
    %465 = arith.negf %464 : vector<8x32xf32>
    %466 = math.exp %465 : vector<8x32xf32>
    %cst_79 = arith.constant 1.000000e+00 : f32
    %467 = vector.broadcast %cst_79 : f32 to vector<8x32xf32>
    %468 = arith.addf %467, %466 : vector<8x32xf32>
    %469 = arith.divf %467, %468 : vector<8x32xf32>
    %470 = arith.mulf %463, %457 : vector<8x32xf32>
    %471 = arith.addf %454, %470 : vector<8x32xf32>
    %472 = math.tanh %471 : vector<8x32xf32>
    %cst_80 = arith.constant 1.000000e+00 : f32
    %473 = vector.broadcast %cst_80 : f32 to vector<8x32xf32>
    %474 = arith.subf %473, %469 : vector<8x32xf32>
    %475 = arith.mulf %474, %472 : vector<8x32xf32>
    %476 = arith.mulf %469, %445 : vector<8x32xf32>
    %477 = arith.addf %475, %476 : vector<8x32xf32>
    %478 = vector.extract_strided_slice %21 {offsets = [8, 128], sizes = [8, 96], strides = [1, 1]} : vector<64x256xf32> to vector<8x96xf32>
    %479 = vector.broadcast %26 : vector<1x96xf32> to vector<8x96xf32>
    %480 = arith.addf %478, %479 : vector<8x96xf32>
    %cst_81 = arith.constant dense<0.000000e+00> : vector<8x96xf32>
    %481 = tpu.matmul %477, %25, %cst_81 {dimension_numbers = #tpu.dot_dimension_numbers<[1], [0], [0], [1], [0, 0, 1, 1], [], []>} : vector<8x32xf32>, vector<32x96xf32>, vector<8x96xf32> -> vector<8x96xf32>
    %482 = vector.broadcast %27 : vector<1x96xf32> to vector<8x96xf32>
    %483 = arith.addf %481, %482 : vector<8x96xf32>
    %484 = vector.extract_strided_slice %480 {offsets = [0, 0], sizes = [8, 32], strides = [1, 1]} : vector<8x96xf32> to vector<8x32xf32>
    %485 = vector.extract_strided_slice %480 {offsets = [0, 32], sizes = [8, 32], strides = [1, 1]} : vector<8x96xf32> to vector<8x32xf32>
    %486 = vector.extract_strided_slice %480 {offsets = [0, 64], sizes = [8, 32], strides = [1, 1]} : vector<8x96xf32> to vector<8x32xf32>
    %487 = vector.extract_strided_slice %483 {offsets = [0, 0], sizes = [8, 32], strides = [1, 1]} : vector<8x96xf32> to vector<8x32xf32>
    %488 = vector.extract_strided_slice %483 {offsets = [0, 32], sizes = [8, 32], strides = [1, 1]} : vector<8x96xf32> to vector<8x32xf32>
    %489 = vector.extract_strided_slice %483 {offsets = [0, 64], sizes = [8, 32], strides = [1, 1]} : vector<8x96xf32> to vector<8x32xf32>
    %490 = arith.addf %484, %487 : vector<8x32xf32>
    %491 = arith.negf %490 : vector<8x32xf32>
    %492 = math.exp %491 : vector<8x32xf32>
    %cst_82 = arith.constant 1.000000e+00 : f32
    %493 = vector.broadcast %cst_82 : f32 to vector<8x32xf32>
    %494 = arith.addf %493, %492 : vector<8x32xf32>
    %495 = arith.divf %493, %494 : vector<8x32xf32>
    %496 = arith.addf %485, %488 : vector<8x32xf32>
    %497 = arith.negf %496 : vector<8x32xf32>
    %498 = math.exp %497 : vector<8x32xf32>
    %cst_83 = arith.constant 1.000000e+00 : f32
    %499 = vector.broadcast %cst_83 : f32 to vector<8x32xf32>
    %500 = arith.addf %499, %498 : vector<8x32xf32>
    %501 = arith.divf %499, %500 : vector<8x32xf32>
    %502 = arith.mulf %495, %489 : vector<8x32xf32>
    %503 = arith.addf %486, %502 : vector<8x32xf32>
    %504 = math.tanh %503 : vector<8x32xf32>
    %cst_84 = arith.constant 1.000000e+00 : f32
    %505 = vector.broadcast %cst_84 : f32 to vector<8x32xf32>
    %506 = arith.subf %505, %501 : vector<8x32xf32>
    %507 = arith.mulf %506, %504 : vector<8x32xf32>
    %508 = arith.mulf %501, %477 : vector<8x32xf32>
    %509 = arith.addf %507, %508 : vector<8x32xf32>
    %510 = vector.extract_strided_slice %21 {offsets = [0, 128], sizes = [8, 96], strides = [1, 1]} : vector<64x256xf32> to vector<8x96xf32>
    %511 = vector.broadcast %26 : vector<1x96xf32> to vector<8x96xf32>
    %512 = arith.addf %510, %511 : vector<8x96xf32>
    %cst_85 = arith.constant dense<0.000000e+00> : vector<8x96xf32>
    %513 = tpu.matmul %509, %25, %cst_85 {dimension_numbers = #tpu.dot_dimension_numbers<[1], [0], [0], [1], [0, 0, 1, 1], [], []>} : vector<8x32xf32>, vector<32x96xf32>, vector<8x96xf32> -> vector<8x96xf32>
    %514 = vector.broadcast %27 : vector<1x96xf32> to vector<8x96xf32>
    %515 = arith.addf %513, %514 : vector<8x96xf32>
    %516 = vector.extract_strided_slice %512 {offsets = [0, 0], sizes = [8, 32], strides = [1, 1]} : vector<8x96xf32> to vector<8x32xf32>
    %517 = vector.extract_strided_slice %512 {offsets = [0, 32], sizes = [8, 32], strides = [1, 1]} : vector<8x96xf32> to vector<8x32xf32>
    %518 = vector.extract_strided_slice %512 {offsets = [0, 64], sizes = [8, 32], strides = [1, 1]} : vector<8x96xf32> to vector<8x32xf32>
    %519 = vector.extract_strided_slice %515 {offsets = [0, 0], sizes = [8, 32], strides = [1, 1]} : vector<8x96xf32> to vector<8x32xf32>
    %520 = vector.extract_strided_slice %515 {offsets = [0, 32], sizes = [8, 32], strides = [1, 1]} : vector<8x96xf32> to vector<8x32xf32>
    %521 = vector.extract_strided_slice %515 {offsets = [0, 64], sizes = [8, 32], strides = [1, 1]} : vector<8x96xf32> to vector<8x32xf32>
    %522 = arith.addf %516, %519 : vector<8x32xf32>
    %523 = arith.negf %522 : vector<8x32xf32>
    %524 = math.exp %523 : vector<8x32xf32>
    %cst_86 = arith.constant 1.000000e+00 : f32
    %525 = vector.broadcast %cst_86 : f32 to vector<8x32xf32>
    %526 = arith.addf %525, %524 : vector<8x32xf32>
    %527 = arith.divf %525, %526 : vector<8x32xf32>
    %528 = arith.addf %517, %520 : vector<8x32xf32>
    %529 = arith.negf %528 : vector<8x32xf32>
    %530 = math.exp %529 : vector<8x32xf32>
    %cst_87 = arith.constant 1.000000e+00 : f32
    %531 = vector.broadcast %cst_87 : f32 to vector<8x32xf32>
    %532 = arith.addf %531, %530 : vector<8x32xf32>
    %533 = arith.divf %531, %532 : vector<8x32xf32>
    %534 = arith.mulf %527, %521 : vector<8x32xf32>
    %535 = arith.addf %518, %534 : vector<8x32xf32>
    %536 = math.tanh %535 : vector<8x32xf32>
    %cst_88 = arith.constant 1.000000e+00 : f32
    %537 = vector.broadcast %cst_88 : f32 to vector<8x32xf32>
    %538 = arith.subf %537, %533 : vector<8x32xf32>
    %539 = arith.mulf %538, %536 : vector<8x32xf32>
    %540 = arith.mulf %533, %509 : vector<8x32xf32>
    %541 = arith.addf %539, %540 : vector<8x32xf32>
    %542 = tpu.concatenate %60, %541 in 1 : vector<8x32xf32>, vector<8x32xf32> -> vector<8x64xf32>
    %543 = tpu.concatenate %92, %509 in 1 : vector<8x32xf32>, vector<8x32xf32> -> vector<8x64xf32>
    %544 = tpu.concatenate %124, %477 in 1 : vector<8x32xf32>, vector<8x32xf32> -> vector<8x64xf32>
    %545 = tpu.concatenate %156, %445 in 1 : vector<8x32xf32>, vector<8x32xf32> -> vector<8x64xf32>
    %546 = tpu.concatenate %188, %413 in 1 : vector<8x32xf32>, vector<8x32xf32> -> vector<8x64xf32>
    %547 = tpu.concatenate %220, %381 in 1 : vector<8x32xf32>, vector<8x32xf32> -> vector<8x64xf32>
    %548 = tpu.concatenate %252, %349 in 1 : vector<8x32xf32>, vector<8x32xf32> -> vector<8x64xf32>
    %549 = tpu.concatenate %284, %317 in 1 : vector<8x32xf32>, vector<8x32xf32> -> vector<8x64xf32>
    %550 = vector.shape_cast %542 : vector<8x64xf32> to vector<8x1x64xf32>
    %551 = vector.shape_cast %543 : vector<8x64xf32> to vector<8x1x64xf32>
    %552 = vector.shape_cast %544 : vector<8x64xf32> to vector<8x1x64xf32>
    %553 = vector.shape_cast %545 : vector<8x64xf32> to vector<8x1x64xf32>
    %554 = vector.shape_cast %546 : vector<8x64xf32> to vector<8x1x64xf32>
    %555 = vector.shape_cast %547 : vector<8x64xf32> to vector<8x1x64xf32>
    %556 = vector.shape_cast %548 : vector<8x64xf32> to vector<8x1x64xf32>
    %557 = vector.shape_cast %549 : vector<8x64xf32> to vector<8x1x64xf32>
    %558 = tpu.concatenate %550, %551, %552, %553, %554, %555, %556, %557 in 1 : vector<8x1x64xf32>, vector<8x1x64xf32>, vector<8x1x64xf32>, vector<8x1x64xf32>, vector<8x1x64xf32>, vector<8x1x64xf32>, vector<8x1x64xf32>, vector<8x1x64xf32> -> vector<8x8x64xf32>
    %559 = vector.shape_cast %558 : vector<8x8x64xf32> to vector<64x64xf32>
    %c0_89 = arith.constant 0 : index
    %c0_90 = arith.constant 0 : index
    %560 = vector.load %arg14[%c0_89, %c0_90] : memref<64x32xf32, #tpu.memory_space<vmem>>, vector<64x32xf32>
    %cst_91 = arith.constant dense<0.000000e+00> : vector<64x32xf32>
    %561 = tpu.matmul %559, %560, %cst_91 {dimension_numbers = #tpu.dot_dimension_numbers<[1], [0], [0], [1], [0, 0, 1, 1], [], []>} : vector<64x64xf32>, vector<64x32xf32>, vector<64x32xf32> -> vector<64x32xf32>
    %c0_92 = arith.constant 0 : index
    %c0_93 = arith.constant 0 : index
    %562 = vector.load %arg15[%c0_92, %c0_93] : memref<1x32xf32, #tpu.memory_space<vmem>>, vector<1x32xf32>
    %563 = vector.broadcast %562 : vector<1x32xf32> to vector<64x32xf32>
    %564 = arith.addf %561, %563 : vector<64x32xf32>
    %565 = vector.shape_cast %564 : vector<64x32xf32> to vector<8x8x32xf32>
    %566 = tpu.concatenate %284, %541 in 1 : vector<8x32xf32>, vector<8x32xf32> -> vector<8x64xf32>
    %c0_94 = arith.constant 0 : index
    %c0_95 = arith.constant 0 : index
    %567 = vector.load %arg12[%c0_94, %c0_95] : memref<64x32xf32, #tpu.memory_space<vmem>>, vector<64x32xf32>
    %cst_96 = arith.constant dense<0.000000e+00> : vector<8x32xf32>
    %568 = tpu.matmul %566, %567, %cst_96 {dimension_numbers = #tpu.dot_dimension_numbers<[1], [0], [0], [1], [0, 0, 1, 1], [], []>} : vector<8x64xf32>, vector<64x32xf32>, vector<8x32xf32> -> vector<8x32xf32>
    %c0_97 = arith.constant 0 : index
    %c0_98 = arith.constant 0 : index
    %569 = vector.load %arg13[%c0_97, %c0_98] : memref<1x32xf32, #tpu.memory_space<vmem>>, vector<1x32xf32>
    %570 = vector.broadcast %569 : vector<1x32xf32> to vector<8x32xf32>
    %571 = arith.addf %568, %570 : vector<8x32xf32>
    %572 = math.tanh %571 : vector<8x32xf32>
    %c0_99 = arith.constant 0 : index
    %c0_100 = arith.constant 0 : index
    %573 = vector.load %arg16[%c0_99, %c0_100] : memref<32x32xf32, #tpu.memory_space<vmem>>, vector<32x32xf32>
    %cst_101 = arith.constant dense<0.000000e+00> : vector<8x32xf32>
    %574 = tpu.matmul %572, %573, %cst_101 {dimension_numbers = #tpu.dot_dimension_numbers<[1], [0], [0], [1], [0, 0, 1, 1], [], []>} : vector<8x32xf32>, vector<32x32xf32>, vector<8x32xf32> -> vector<8x32xf32>
    %c0_102 = arith.constant 0 : index
    %c0_103 = arith.constant 0 : index
    %575 = vector.load %arg18[%c0_102, %c0_103] : memref<128x256xf32, #tpu.memory_space<vmem>>, vector<128x256xf32>
    %c0_104 = arith.constant 0 : index
    %c0_105 = arith.constant 0 : index
    %576 = vector.load %arg19[%c0_104, %c0_105] : memref<1x96xf32, #tpu.memory_space<vmem>>, vector<1x96xf32>
    %c0_106 = arith.constant 0 : index
    %c0_107 = arith.constant 0 : index
    %577 = vector.load %arg20[%c0_106, %c0_107] : memref<1x96xf32, #tpu.memory_space<vmem>>, vector<1x96xf32>
    %c0_108 = arith.constant 0 : index
    %c0_109 = arith.constant 0 : index
    %578 = vector.load %arg21[%c0_108, %c0_109] : memref<128x128xf32, #tpu.memory_space<vmem>>, vector<128x128xf32>
    %c0_110 = arith.constant 0 : index
    %c0_111 = arith.constant 0 : index
    %579 = vector.load %arg22[%c0_110, %c0_111] : memref<1x128xf32, #tpu.memory_space<vmem>>, vector<1x128xf32>
    %c0_112 = arith.constant 0 : index
    %c0_113 = arith.constant 0 : index
    %580 = vector.load %arg17[%c0_112, %c0_113] : memref<1x32xf32, #tpu.memory_space<vmem>>, vector<1x32xf32>
    %581 = vector.shape_cast %580 : vector<1x32xf32> to vector<1x1x32xf32>
    %582 = vector.shape_cast %581 : vector<1x1x32xf32> to vector<1x1x32xf32>
    %583 = vector.broadcast %582 : vector<1x1x32xf32> to vector<8x8x32xf32>
    %584 = tpu.iota {dimensions = array<i32: 1>} : vector<8x64xi32>
    %585 = arith.sitofp %584 : vector<8x64xi32> to vector<8x64xf32>
    %586 = tpu.iota {dimensions = array<i32: 1>} : vector<8x64xi32>
    %587 = tpu.iota {dimensions = array<i32: 0>} : vector<8x64xi32>
    %c8_i32 = arith.constant 8 : i32
    %588 = vector.broadcast %c8_i32 : i32 to vector<8x64xi32>
    %589 = arith.muli %587, %588 : vector<8x64xi32>
    %590 = arith.cmpi sge, %586, %589 : vector<8x64xi32>
    %c1_i32 = arith.constant 1 : i32
    %591 = vector.broadcast %c1_i32 : i32 to vector<8x64xi32>
    %592 = arith.addi %587, %591 : vector<8x64xi32>
    %c8_i32_114 = arith.constant 8 : i32
    %593 = vector.broadcast %c8_i32_114 : i32 to vector<8x64xi32>
    %594 = arith.muli %592, %593 : vector<8x64xi32>
    %595 = arith.cmpi slt, %586, %594 : vector<8x64xi32>
    %596 = arith.andi %590, %595 : vector<8x64xi1>
    %cst_115 = arith.constant 0.000000e+00 : f32
    %cst_116 = arith.constant -1.000000e+30 : f32
    %597 = vector.broadcast %cst_115 : f32 to vector<8x64xf32>
    %598 = vector.broadcast %cst_116 : f32 to vector<8x64xf32>
    %599 = arith.select %596, %597, %598 : vector<8x64xi1>, vector<8x64xf32>
    %cst_117 = arith.constant 0.000000e+00 : f32
    %600 = vector.broadcast %cst_117 : f32 to vector<8x128xf32>
    %c0_118 = arith.constant 0 : index
    %c0_119 = arith.constant 0 : index
    %c0_120 = arith.constant 0 : index
    %601 = vector.load %arg23[%c0_118, %c0_119, %c0_120] : memref<8x8x128xf32, #tpu.memory_space<vmem>>, vector<1x8x128xf32>
    %602 = vector.shape_cast %601 : vector<1x8x128xf32> to vector<8x128xf32>
    %603 = vector.shape_cast %600 : vector<8x128xf32> to vector<1x8x128xf32>
    tpu.vector_store %arg23[%c0_118, %c0_119, %c0_120], %603 {strides = array<i32>} : memref<8x8x128xf32, #tpu.memory_space<vmem>>, vector<1x8x128xf32>,
    %604 = vector.extract_strided_slice %19 {offsets = [0, 0], sizes = [8, 32], strides = [1, 1]} : vector<64x32xf32> to vector<8x32xf32>
    %605 = vector.shape_cast %574 : vector<8x32xf32> to vector<8x1x32xf32>
    %606 = vector.broadcast %605 : vector<8x1x32xf32> to vector<8x8x32xf32>
    %607 = arith.addf %565, %606 : vector<8x8x32xf32>
    %608 = math.tanh %607 : vector<8x8x32xf32>
    %609 = arith.mulf %608, %583 : vector<8x8x32xf32>
    %cst_121 = arith.constant dense<0.000000e+00> : vector<8x8xf32>
    %610 = vector.multi_reduction <add>, %609, %cst_121 [2] : vector<8x8x32xf32> to vector<8x8xf32>
    %611 = tpu.concatenate %610, %610, %610, %610, %610, %610, %610, %610 in 1 : vector<8x8xf32>, vector<8x8xf32>, vector<8x8xf32>, vector<8x8xf32>, vector<8x8xf32>, vector<8x8xf32>, vector<8x8xf32>, vector<8x8xf32> -> vector<8x64xf32>
    %612 = arith.addf %611, %599 : vector<8x64xf32>
    %cst_122 = arith.constant dense<0xFF800000> : vector<8xf32>
    %613 = vector.multi_reduction <maximumf>, %612, %cst_122 [1] : vector<8x64xf32> to vector<8xf32>
    %614 = vector.shape_cast %613 : vector<8xf32> to vector<8x1xf32>
    %615 = vector.broadcast %614 : vector<8x1xf32> to vector<8x64xf32>
    %616 = arith.subf %612, %615 : vector<8x64xf32>
    %617 = math.exp %616 : vector<8x64xf32>
    %cst_123 = arith.constant dense<0.000000e+00> : vector<8xf32>
    %618 = vector.multi_reduction <add>, %617, %cst_123 [1] : vector<8x64xf32> to vector<8xf32>
    %619 = vector.shape_cast %618 : vector<8xf32> to vector<8x1xf32>
    %620 = vector.broadcast %619 : vector<8x1xf32> to vector<8x64xf32>
    %621 = arith.divf %617, %620 : vector<8x64xf32>
    %cst_124 = arith.constant dense<0.000000e+00> : vector<8x64xf32>
    %622 = tpu.matmul %621, %559, %cst_124 {dimension_numbers = #tpu.dot_dimension_numbers<[1], [0], [0], [1], [0, 0, 1, 1], [], []>} : vector<8x64xf32>, vector<64x64xf32>, vector<8x64xf32> -> vector<8x64xf32>
    %623 = tpu.concatenate %604, %622, %572 in 1 : vector<8x32xf32>, vector<8x64xf32>, vector<8x32xf32> -> vector<8x128xf32>
    %cst_125 = arith.constant dense<0.000000e+00> : vector<8x256xf32>
    %624 = tpu.matmul %623, %575, %cst_125 {dimension_numbers = #tpu.dot_dimension_numbers<[1], [0], [0], [1], [0, 0, 1, 1], [], []>} : vector<8x128xf32>, vector<128x256xf32>, vector<8x256xf32> -> vector<8x256xf32>
    %625 = vector.extract_strided_slice %624 {offsets = [0, 0], sizes = [8, 96], strides = [1, 1]} : vector<8x256xf32> to vector<8x96xf32>
    %626 = vector.broadcast %576 : vector<1x96xf32> to vector<8x96xf32>
    %627 = arith.addf %625, %626 : vector<8x96xf32>
    %628 = vector.extract_strided_slice %624 {offsets = [0, 128], sizes = [8, 96], strides = [1, 1]} : vector<8x256xf32> to vector<8x96xf32>
    %629 = vector.broadcast %577 : vector<1x96xf32> to vector<8x96xf32>
    %630 = arith.addf %628, %629 : vector<8x96xf32>
    %631 = vector.extract_strided_slice %627 {offsets = [0, 0], sizes = [8, 32], strides = [1, 1]} : vector<8x96xf32> to vector<8x32xf32>
    %632 = vector.extract_strided_slice %627 {offsets = [0, 32], sizes = [8, 32], strides = [1, 1]} : vector<8x96xf32> to vector<8x32xf32>
    %633 = vector.extract_strided_slice %627 {offsets = [0, 64], sizes = [8, 32], strides = [1, 1]} : vector<8x96xf32> to vector<8x32xf32>
    %634 = vector.extract_strided_slice %630 {offsets = [0, 0], sizes = [8, 32], strides = [1, 1]} : vector<8x96xf32> to vector<8x32xf32>
    %635 = vector.extract_strided_slice %630 {offsets = [0, 32], sizes = [8, 32], strides = [1, 1]} : vector<8x96xf32> to vector<8x32xf32>
    %636 = vector.extract_strided_slice %630 {offsets = [0, 64], sizes = [8, 32], strides = [1, 1]} : vector<8x96xf32> to vector<8x32xf32>
    %637 = arith.addf %631, %634 : vector<8x32xf32>
    %638 = arith.negf %637 : vector<8x32xf32>
    %639 = math.exp %638 : vector<8x32xf32>
    %cst_126 = arith.constant 1.000000e+00 : f32
    %640 = vector.broadcast %cst_126 : f32 to vector<8x32xf32>
    %641 = arith.addf %640, %639 : vector<8x32xf32>
    %642 = arith.divf %640, %641 : vector<8x32xf32>
    %643 = arith.addf %632, %635 : vector<8x32xf32>
    %644 = arith.negf %643 : vector<8x32xf32>
    %645 = math.exp %644 : vector<8x32xf32>
    %cst_127 = arith.constant 1.000000e+00 : f32
    %646 = vector.broadcast %cst_127 : f32 to vector<8x32xf32>
    %647 = arith.addf %646, %645 : vector<8x32xf32>
    %648 = arith.divf %646, %647 : vector<8x32xf32>
    %649 = arith.mulf %642, %636 : vector<8x32xf32>
    %650 = arith.addf %633, %649 : vector<8x32xf32>
    %651 = math.tanh %650 : vector<8x32xf32>
    %cst_128 = arith.constant 1.000000e+00 : f32
    %652 = vector.broadcast %cst_128 : f32 to vector<8x32xf32>
    %653 = arith.subf %652, %648 : vector<8x32xf32>
    %654 = arith.mulf %653, %651 : vector<8x32xf32>
    %655 = arith.mulf %648, %572 : vector<8x32xf32>
    %656 = arith.addf %654, %655 : vector<8x32xf32>
    %657 = tpu.concatenate %656, %622, %604 in 1 : vector<8x32xf32>, vector<8x64xf32>, vector<8x32xf32> -> vector<8x128xf32>
    %cst_129 = arith.constant dense<0.000000e+00> : vector<8x128xf32>
    %658 = tpu.matmul %657, %578, %cst_129 {dimension_numbers = #tpu.dot_dimension_numbers<[1], [0], [0], [1], [0, 0, 1, 1], [], []>} : vector<8x128xf32>, vector<128x128xf32>, vector<8x128xf32> -> vector<8x128xf32>
    %659 = vector.broadcast %579 : vector<1x128xf32> to vector<8x128xf32>
    %660 = arith.addf %658, %659 : vector<8x128xf32>
    %c1 = arith.constant 1 : index
    %c0_130 = arith.constant 0 : index
    %c0_131 = arith.constant 0 : index
    %661 = vector.load %arg23[%c1, %c0_130, %c0_131] : memref<8x8x128xf32, #tpu.memory_space<vmem>>, vector<1x8x128xf32>
    %662 = vector.shape_cast %661 : vector<1x8x128xf32> to vector<8x128xf32>
    %663 = vector.shape_cast %660 : vector<8x128xf32> to vector<1x8x128xf32>
    tpu.vector_store %arg23[%c1, %c0_130, %c0_131], %663 {strides = array<i32>} : memref<8x8x128xf32, #tpu.memory_space<vmem>>, vector<1x8x128xf32>,
    %664 = vector.extract_strided_slice %660 {offsets = [0, 64], sizes = [8, 32], strides = [1, 1]} : vector<8x128xf32> to vector<8x32xf32>
    %c1_132 = arith.constant 1 : index
    %665 = memref.load %arg0[%c1_132] : memref<8xi32, #tpu.memory_space<smem>>
    %c0_i32 = arith.constant 0 : i32
    %666 = arith.cmpi ne, %665, %c0_i32 : i32
    %667 = arith.extui %666 : i1 to i32
    %c0_i32_133 = arith.constant 0 : i32
    %668 = arith.cmpi ne, %667, %c0_i32_133 : i32
    scf.if %668 {
      %1078 = vector.extract_strided_slice %19 {offsets = [8, 0], sizes = [8, 32], strides = [1, 1]} : vector<64x32xf32> to vector<8x32xf32>
      %c0_245 = arith.constant 0 : index
      %c0_246 = arith.constant 0 : index
      %1079 = vector.load %arg24[%c0_245, %c0_246] : memref<8x32xf32, #tpu.memory_space<vmem>>, vector<8x32xf32>
      tpu.vector_store %arg24[%c0_245, %c0_246], %1078 {strides = array<i32>} : memref<8x32xf32, #tpu.memory_space<vmem>>, vector<8x32xf32>,
    } else {
    }
    %c1_134 = arith.constant 1 : index
    %669 = memref.load %arg0[%c1_134] : memref<8xi32, #tpu.memory_space<smem>>
    %c0_i32_135 = arith.constant 0 : i32
    %670 = arith.cmpi eq, %669, %c0_i32_135 : i32
    %671 = arith.extui %670 : i1 to i32
    %c0_i32_136 = arith.constant 0 : i32
    %672 = arith.cmpi ne, %671, %c0_i32_136 : i32
    scf.if %672 {
      %1078 = vector.extract_strided_slice %660 {offsets = [0, 0], sizes = [8, 64], strides = [1, 1]} : vector<8x128xf32> to vector<8x64xf32>
      %cst_245 = arith.constant dense<0xFF800000> : vector<8xf32>
      %1079 = vector.multi_reduction <maximumf>, %1078, %cst_245 [1] : vector<8x64xf32> to vector<8xf32>
      %1080 = vector.shape_cast %1079 : vector<8xf32> to vector<8x1xf32>
      %1081 = vector.broadcast %1080 : vector<8x1xf32> to vector<8x64xf32>
      %1082 = arith.cmpf oeq, %1078, %1081 : vector<8x64xf32>
      %cst_246 = arith.constant 6.400000e+01 : f32
      %1083 = vector.broadcast %cst_246 : f32 to vector<8x64xf32>
      %1084 = arith.select %1082, %585, %1083 : vector<8x64xi1>, vector<8x64xf32>
      %cst_247 = arith.constant dense<0x7F800000> : vector<8xf32>
      %1085 = vector.multi_reduction <minimumf>, %1084, %cst_247 [1] : vector<8x64xf32> to vector<8xf32>
      %1086 = vector.shape_cast %1085 : vector<8xf32> to vector<8x1xf32>
      %1087 = vector.broadcast %1086 : vector<8x1xf32> to vector<8x64xf32>
      %1088 = arith.cmpf oeq, %585, %1087 : vector<8x64xf32>
      %1089 = arith.extui %1088 : vector<8x64xi1> to vector<8x64xi32>
      %1090 = arith.sitofp %1089 : vector<8x64xi32> to vector<8x64xf32>
      %cst_248 = arith.constant dense<0.000000e+00> : vector<8x32xf32>
      %1091 = tpu.matmul %1090, %10, %cst_248 {dimension_numbers = #tpu.dot_dimension_numbers<[1], [0], [0], [1], [0, 0, 1, 1], [], []>} : vector<8x64xf32>, vector<64x32xf32>, vector<8x32xf32> -> vector<8x32xf32>
      %c0_249 = arith.constant 0 : index
      %c0_250 = arith.constant 0 : index
      %1092 = vector.load %arg24[%c0_249, %c0_250] : memref<8x32xf32, #tpu.memory_space<vmem>>, vector<8x32xf32>
      tpu.vector_store %arg24[%c0_249, %c0_250], %1091 {strides = array<i32>} : memref<8x32xf32, #tpu.memory_space<vmem>>, vector<8x32xf32>,
    } else {
    }
    %c0_137 = arith.constant 0 : index
    %c0_138 = arith.constant 0 : index
    %673 = vector.load %arg24[%c0_137, %c0_138] : memref<8x32xf32, #tpu.memory_space<vmem>>, vector<8x32xf32>
    %674 = vector.shape_cast %664 : vector<8x32xf32> to vector<8x1x32xf32>
    %675 = vector.broadcast %674 : vector<8x1x32xf32> to vector<8x8x32xf32>
    %676 = arith.addf %565, %675 : vector<8x8x32xf32>
    %677 = math.tanh %676 : vector<8x8x32xf32>
    %678 = arith.mulf %677, %583 : vector<8x8x32xf32>
    %cst_139 = arith.constant dense<0.000000e+00> : vector<8x8xf32>
    %679 = vector.multi_reduction <add>, %678, %cst_139 [2] : vector<8x8x32xf32> to vector<8x8xf32>
    %680 = tpu.concatenate %679, %679, %679, %679, %679, %679, %679, %679 in 1 : vector<8x8xf32>, vector<8x8xf32>, vector<8x8xf32>, vector<8x8xf32>, vector<8x8xf32>, vector<8x8xf32>, vector<8x8xf32>, vector<8x8xf32> -> vector<8x64xf32>
    %681 = arith.addf %680, %599 : vector<8x64xf32>
    %cst_140 = arith.constant dense<0xFF800000> : vector<8xf32>
    %682 = vector.multi_reduction <maximumf>, %681, %cst_140 [1] : vector<8x64xf32> to vector<8xf32>
    %683 = vector.shape_cast %682 : vector<8xf32> to vector<8x1xf32>
    %684 = vector.broadcast %683 : vector<8x1xf32> to vector<8x64xf32>
    %685 = arith.subf %681, %684 : vector<8x64xf32>
    %686 = math.exp %685 : vector<8x64xf32>
    %cst_141 = arith.constant dense<0.000000e+00> : vector<8xf32>
    %687 = vector.multi_reduction <add>, %686, %cst_141 [1] : vector<8x64xf32> to vector<8xf32>
    %688 = vector.shape_cast %687 : vector<8xf32> to vector<8x1xf32>
    %689 = vector.broadcast %688 : vector<8x1xf32> to vector<8x64xf32>
    %690 = arith.divf %686, %689 : vector<8x64xf32>
    %cst_142 = arith.constant dense<0.000000e+00> : vector<8x64xf32>
    %691 = tpu.matmul %690, %559, %cst_142 {dimension_numbers = #tpu.dot_dimension_numbers<[1], [0], [0], [1], [0, 0, 1, 1], [], []>} : vector<8x64xf32>, vector<64x64xf32>, vector<8x64xf32> -> vector<8x64xf32>
    %692 = tpu.concatenate %673, %691, %656 in 1 : vector<8x32xf32>, vector<8x64xf32>, vector<8x32xf32> -> vector<8x128xf32>
    %cst_143 = arith.constant dense<0.000000e+00> : vector<8x256xf32>
    %693 = tpu.matmul %692, %575, %cst_143 {dimension_numbers = #tpu.dot_dimension_numbers<[1], [0], [0], [1], [0, 0, 1, 1], [], []>} : vector<8x128xf32>, vector<128x256xf32>, vector<8x256xf32> -> vector<8x256xf32>
    %694 = vector.extract_strided_slice %693 {offsets = [0, 0], sizes = [8, 96], strides = [1, 1]} : vector<8x256xf32> to vector<8x96xf32>
    %695 = vector.broadcast %576 : vector<1x96xf32> to vector<8x96xf32>
    %696 = arith.addf %694, %695 : vector<8x96xf32>
    %697 = vector.extract_strided_slice %693 {offsets = [0, 128], sizes = [8, 96], strides = [1, 1]} : vector<8x256xf32> to vector<8x96xf32>
    %698 = vector.broadcast %577 : vector<1x96xf32> to vector<8x96xf32>
    %699 = arith.addf %697, %698 : vector<8x96xf32>
    %700 = vector.extract_strided_slice %696 {offsets = [0, 0], sizes = [8, 32], strides = [1, 1]} : vector<8x96xf32> to vector<8x32xf32>
    %701 = vector.extract_strided_slice %696 {offsets = [0, 32], sizes = [8, 32], strides = [1, 1]} : vector<8x96xf32> to vector<8x32xf32>
    %702 = vector.extract_strided_slice %696 {offsets = [0, 64], sizes = [8, 32], strides = [1, 1]} : vector<8x96xf32> to vector<8x32xf32>
    %703 = vector.extract_strided_slice %699 {offsets = [0, 0], sizes = [8, 32], strides = [1, 1]} : vector<8x96xf32> to vector<8x32xf32>
    %704 = vector.extract_strided_slice %699 {offsets = [0, 32], sizes = [8, 32], strides = [1, 1]} : vector<8x96xf32> to vector<8x32xf32>
    %705 = vector.extract_strided_slice %699 {offsets = [0, 64], sizes = [8, 32], strides = [1, 1]} : vector<8x96xf32> to vector<8x32xf32>
    %706 = arith.addf %700, %703 : vector<8x32xf32>
    %707 = arith.negf %706 : vector<8x32xf32>
    %708 = math.exp %707 : vector<8x32xf32>
    %cst_144 = arith.constant 1.000000e+00 : f32
    %709 = vector.broadcast %cst_144 : f32 to vector<8x32xf32>
    %710 = arith.addf %709, %708 : vector<8x32xf32>
    %711 = arith.divf %709, %710 : vector<8x32xf32>
    %712 = arith.addf %701, %704 : vector<8x32xf32>
    %713 = arith.negf %712 : vector<8x32xf32>
    %714 = math.exp %713 : vector<8x32xf32>
    %cst_145 = arith.constant 1.000000e+00 : f32
    %715 = vector.broadcast %cst_145 : f32 to vector<8x32xf32>
    %716 = arith.addf %715, %714 : vector<8x32xf32>
    %717 = arith.divf %715, %716 : vector<8x32xf32>
    %718 = arith.mulf %711, %705 : vector<8x32xf32>
    %719 = arith.addf %702, %718 : vector<8x32xf32>
    %720 = math.tanh %719 : vector<8x32xf32>
    %cst_146 = arith.constant 1.000000e+00 : f32
    %721 = vector.broadcast %cst_146 : f32 to vector<8x32xf32>
    %722 = arith.subf %721, %717 : vector<8x32xf32>
    %723 = arith.mulf %722, %720 : vector<8x32xf32>
    %724 = arith.mulf %717, %656 : vector<8x32xf32>
    %725 = arith.addf %723, %724 : vector<8x32xf32>
    %726 = tpu.concatenate %725, %691, %673 in 1 : vector<8x32xf32>, vector<8x64xf32>, vector<8x32xf32> -> vector<8x128xf32>
    %cst_147 = arith.constant dense<0.000000e+00> : vector<8x128xf32>
    %727 = tpu.matmul %726, %578, %cst_147 {dimension_numbers = #tpu.dot_dimension_numbers<[1], [0], [0], [1], [0, 0, 1, 1], [], []>} : vector<8x128xf32>, vector<128x128xf32>, vector<8x128xf32> -> vector<8x128xf32>
    %728 = vector.broadcast %579 : vector<1x128xf32> to vector<8x128xf32>
    %729 = arith.addf %727, %728 : vector<8x128xf32>
    %c2 = arith.constant 2 : index
    %c0_148 = arith.constant 0 : index
    %c0_149 = arith.constant 0 : index
    %730 = vector.load %arg23[%c2, %c0_148, %c0_149] : memref<8x8x128xf32, #tpu.memory_space<vmem>>, vector<1x8x128xf32>
    %731 = vector.shape_cast %730 : vector<1x8x128xf32> to vector<8x128xf32>
    %732 = vector.shape_cast %729 : vector<8x128xf32> to vector<1x8x128xf32>
    tpu.vector_store %arg23[%c2, %c0_148, %c0_149], %732 {strides = array<i32>} : memref<8x8x128xf32, #tpu.memory_space<vmem>>, vector<1x8x128xf32>,
    %733 = vector.extract_strided_slice %729 {offsets = [0, 64], sizes = [8, 32], strides = [1, 1]} : vector<8x128xf32> to vector<8x32xf32>
    %c2_150 = arith.constant 2 : index
    %734 = memref.load %arg0[%c2_150] : memref<8xi32, #tpu.memory_space<smem>>
    %c0_i32_151 = arith.constant 0 : i32
    %735 = arith.cmpi ne, %734, %c0_i32_151 : i32
    %736 = arith.extui %735 : i1 to i32
    %c0_i32_152 = arith.constant 0 : i32
    %737 = arith.cmpi ne, %736, %c0_i32_152 : i32
    scf.if %737 {
      %1078 = vector.extract_strided_slice %19 {offsets = [16, 0], sizes = [8, 32], strides = [1, 1]} : vector<64x32xf32> to vector<8x32xf32>
      %c0_245 = arith.constant 0 : index
      %c0_246 = arith.constant 0 : index
      %1079 = vector.load %arg24[%c0_245, %c0_246] : memref<8x32xf32, #tpu.memory_space<vmem>>, vector<8x32xf32>
      tpu.vector_store %arg24[%c0_245, %c0_246], %1078 {strides = array<i32>} : memref<8x32xf32, #tpu.memory_space<vmem>>, vector<8x32xf32>,
    } else {
    }
    %c2_153 = arith.constant 2 : index
    %738 = memref.load %arg0[%c2_153] : memref<8xi32, #tpu.memory_space<smem>>
    %c0_i32_154 = arith.constant 0 : i32
    %739 = arith.cmpi eq, %738, %c0_i32_154 : i32
    %740 = arith.extui %739 : i1 to i32
    %c0_i32_155 = arith.constant 0 : i32
    %741 = arith.cmpi ne, %740, %c0_i32_155 : i32
    scf.if %741 {
      %1078 = vector.extract_strided_slice %729 {offsets = [0, 0], sizes = [8, 64], strides = [1, 1]} : vector<8x128xf32> to vector<8x64xf32>
      %cst_245 = arith.constant dense<0xFF800000> : vector<8xf32>
      %1079 = vector.multi_reduction <maximumf>, %1078, %cst_245 [1] : vector<8x64xf32> to vector<8xf32>
      %1080 = vector.shape_cast %1079 : vector<8xf32> to vector<8x1xf32>
      %1081 = vector.broadcast %1080 : vector<8x1xf32> to vector<8x64xf32>
      %1082 = arith.cmpf oeq, %1078, %1081 : vector<8x64xf32>
      %cst_246 = arith.constant 6.400000e+01 : f32
      %1083 = vector.broadcast %cst_246 : f32 to vector<8x64xf32>
      %1084 = arith.select %1082, %585, %1083 : vector<8x64xi1>, vector<8x64xf32>
      %cst_247 = arith.constant dense<0x7F800000> : vector<8xf32>
      %1085 = vector.multi_reduction <minimumf>, %1084, %cst_247 [1] : vector<8x64xf32> to vector<8xf32>
      %1086 = vector.shape_cast %1085 : vector<8xf32> to vector<8x1xf32>
      %1087 = vector.broadcast %1086 : vector<8x1xf32> to vector<8x64xf32>
      %1088 = arith.cmpf oeq, %585, %1087 : vector<8x64xf32>
      %1089 = arith.extui %1088 : vector<8x64xi1> to vector<8x64xi32>
      %1090 = arith.sitofp %1089 : vector<8x64xi32> to vector<8x64xf32>
      %cst_248 = arith.constant dense<0.000000e+00> : vector<8x32xf32>
      %1091 = tpu.matmul %1090, %10, %cst_248 {dimension_numbers = #tpu.dot_dimension_numbers<[1], [0], [0], [1], [0, 0, 1, 1], [], []>} : vector<8x64xf32>, vector<64x32xf32>, vector<8x32xf32> -> vector<8x32xf32>
      %c0_249 = arith.constant 0 : index
      %c0_250 = arith.constant 0 : index
      %1092 = vector.load %arg24[%c0_249, %c0_250] : memref<8x32xf32, #tpu.memory_space<vmem>>, vector<8x32xf32>
      tpu.vector_store %arg24[%c0_249, %c0_250], %1091 {strides = array<i32>} : memref<8x32xf32, #tpu.memory_space<vmem>>, vector<8x32xf32>,
    } else {
    }
    %c0_156 = arith.constant 0 : index
    %c0_157 = arith.constant 0 : index
    %742 = vector.load %arg24[%c0_156, %c0_157] : memref<8x32xf32, #tpu.memory_space<vmem>>, vector<8x32xf32>
    %743 = vector.shape_cast %733 : vector<8x32xf32> to vector<8x1x32xf32>
    %744 = vector.broadcast %743 : vector<8x1x32xf32> to vector<8x8x32xf32>
    %745 = arith.addf %565, %744 : vector<8x8x32xf32>
    %746 = math.tanh %745 : vector<8x8x32xf32>
    %747 = arith.mulf %746, %583 : vector<8x8x32xf32>
    %cst_158 = arith.constant dense<0.000000e+00> : vector<8x8xf32>
    %748 = vector.multi_reduction <add>, %747, %cst_158 [2] : vector<8x8x32xf32> to vector<8x8xf32>
    %749 = tpu.concatenate %748, %748, %748, %748, %748, %748, %748, %748 in 1 : vector<8x8xf32>, vector<8x8xf32>, vector<8x8xf32>, vector<8x8xf32>, vector<8x8xf32>, vector<8x8xf32>, vector<8x8xf32>, vector<8x8xf32> -> vector<8x64xf32>
    %750 = arith.addf %749, %599 : vector<8x64xf32>
    %cst_159 = arith.constant dense<0xFF800000> : vector<8xf32>
    %751 = vector.multi_reduction <maximumf>, %750, %cst_159 [1] : vector<8x64xf32> to vector<8xf32>
    %752 = vector.shape_cast %751 : vector<8xf32> to vector<8x1xf32>
    %753 = vector.broadcast %752 : vector<8x1xf32> to vector<8x64xf32>
    %754 = arith.subf %750, %753 : vector<8x64xf32>
    %755 = math.exp %754 : vector<8x64xf32>
    %cst_160 = arith.constant dense<0.000000e+00> : vector<8xf32>
    %756 = vector.multi_reduction <add>, %755, %cst_160 [1] : vector<8x64xf32> to vector<8xf32>
    %757 = vector.shape_cast %756 : vector<8xf32> to vector<8x1xf32>
    %758 = vector.broadcast %757 : vector<8x1xf32> to vector<8x64xf32>
    %759 = arith.divf %755, %758 : vector<8x64xf32>
    %cst_161 = arith.constant dense<0.000000e+00> : vector<8x64xf32>
    %760 = tpu.matmul %759, %559, %cst_161 {dimension_numbers = #tpu.dot_dimension_numbers<[1], [0], [0], [1], [0, 0, 1, 1], [], []>} : vector<8x64xf32>, vector<64x64xf32>, vector<8x64xf32> -> vector<8x64xf32>
    %761 = tpu.concatenate %742, %760, %725 in 1 : vector<8x32xf32>, vector<8x64xf32>, vector<8x32xf32> -> vector<8x128xf32>
    %cst_162 = arith.constant dense<0.000000e+00> : vector<8x256xf32>
    %762 = tpu.matmul %761, %575, %cst_162 {dimension_numbers = #tpu.dot_dimension_numbers<[1], [0], [0], [1], [0, 0, 1, 1], [], []>} : vector<8x128xf32>, vector<128x256xf32>, vector<8x256xf32> -> vector<8x256xf32>
    %763 = vector.extract_strided_slice %762 {offsets = [0, 0], sizes = [8, 96], strides = [1, 1]} : vector<8x256xf32> to vector<8x96xf32>
    %764 = vector.broadcast %576 : vector<1x96xf32> to vector<8x96xf32>
    %765 = arith.addf %763, %764 : vector<8x96xf32>
    %766 = vector.extract_strided_slice %762 {offsets = [0, 128], sizes = [8, 96], strides = [1, 1]} : vector<8x256xf32> to vector<8x96xf32>
    %767 = vector.broadcast %577 : vector<1x96xf32> to vector<8x96xf32>
    %768 = arith.addf %766, %767 : vector<8x96xf32>
    %769 = vector.extract_strided_slice %765 {offsets = [0, 0], sizes = [8, 32], strides = [1, 1]} : vector<8x96xf32> to vector<8x32xf32>
    %770 = vector.extract_strided_slice %765 {offsets = [0, 32], sizes = [8, 32], strides = [1, 1]} : vector<8x96xf32> to vector<8x32xf32>
    %771 = vector.extract_strided_slice %765 {offsets = [0, 64], sizes = [8, 32], strides = [1, 1]} : vector<8x96xf32> to vector<8x32xf32>
    %772 = vector.extract_strided_slice %768 {offsets = [0, 0], sizes = [8, 32], strides = [1, 1]} : vector<8x96xf32> to vector<8x32xf32>
    %773 = vector.extract_strided_slice %768 {offsets = [0, 32], sizes = [8, 32], strides = [1, 1]} : vector<8x96xf32> to vector<8x32xf32>
    %774 = vector.extract_strided_slice %768 {offsets = [0, 64], sizes = [8, 32], strides = [1, 1]} : vector<8x96xf32> to vector<8x32xf32>
    %775 = arith.addf %769, %772 : vector<8x32xf32>
    %776 = arith.negf %775 : vector<8x32xf32>
    %777 = math.exp %776 : vector<8x32xf32>
    %cst_163 = arith.constant 1.000000e+00 : f32
    %778 = vector.broadcast %cst_163 : f32 to vector<8x32xf32>
    %779 = arith.addf %778, %777 : vector<8x32xf32>
    %780 = arith.divf %778, %779 : vector<8x32xf32>
    %781 = arith.addf %770, %773 : vector<8x32xf32>
    %782 = arith.negf %781 : vector<8x32xf32>
    %783 = math.exp %782 : vector<8x32xf32>
    %cst_164 = arith.constant 1.000000e+00 : f32
    %784 = vector.broadcast %cst_164 : f32 to vector<8x32xf32>
    %785 = arith.addf %784, %783 : vector<8x32xf32>
    %786 = arith.divf %784, %785 : vector<8x32xf32>
    %787 = arith.mulf %780, %774 : vector<8x32xf32>
    %788 = arith.addf %771, %787 : vector<8x32xf32>
    %789 = math.tanh %788 : vector<8x32xf32>
    %cst_165 = arith.constant 1.000000e+00 : f32
    %790 = vector.broadcast %cst_165 : f32 to vector<8x32xf32>
    %791 = arith.subf %790, %786 : vector<8x32xf32>
    %792 = arith.mulf %791, %789 : vector<8x32xf32>
    %793 = arith.mulf %786, %725 : vector<8x32xf32>
    %794 = arith.addf %792, %793 : vector<8x32xf32>
    %795 = tpu.concatenate %794, %760, %742 in 1 : vector<8x32xf32>, vector<8x64xf32>, vector<8x32xf32> -> vector<8x128xf32>
    %cst_166 = arith.constant dense<0.000000e+00> : vector<8x128xf32>
    %796 = tpu.matmul %795, %578, %cst_166 {dimension_numbers = #tpu.dot_dimension_numbers<[1], [0], [0], [1], [0, 0, 1, 1], [], []>} : vector<8x128xf32>, vector<128x128xf32>, vector<8x128xf32> -> vector<8x128xf32>
    %797 = vector.broadcast %579 : vector<1x128xf32> to vector<8x128xf32>
    %798 = arith.addf %796, %797 : vector<8x128xf32>
    %c3 = arith.constant 3 : index
    %c0_167 = arith.constant 0 : index
    %c0_168 = arith.constant 0 : index
    %799 = vector.load %arg23[%c3, %c0_167, %c0_168] : memref<8x8x128xf32, #tpu.memory_space<vmem>>, vector<1x8x128xf32>
    %800 = vector.shape_cast %799 : vector<1x8x128xf32> to vector<8x128xf32>
    %801 = vector.shape_cast %798 : vector<8x128xf32> to vector<1x8x128xf32>
    tpu.vector_store %arg23[%c3, %c0_167, %c0_168], %801 {strides = array<i32>} : memref<8x8x128xf32, #tpu.memory_space<vmem>>, vector<1x8x128xf32>,
    %802 = vector.extract_strided_slice %798 {offsets = [0, 64], sizes = [8, 32], strides = [1, 1]} : vector<8x128xf32> to vector<8x32xf32>
    %c3_169 = arith.constant 3 : index
    %803 = memref.load %arg0[%c3_169] : memref<8xi32, #tpu.memory_space<smem>>
    %c0_i32_170 = arith.constant 0 : i32
    %804 = arith.cmpi ne, %803, %c0_i32_170 : i32
    %805 = arith.extui %804 : i1 to i32
    %c0_i32_171 = arith.constant 0 : i32
    %806 = arith.cmpi ne, %805, %c0_i32_171 : i32
    scf.if %806 {
      %1078 = vector.extract_strided_slice %19 {offsets = [24, 0], sizes = [8, 32], strides = [1, 1]} : vector<64x32xf32> to vector<8x32xf32>
      %c0_245 = arith.constant 0 : index
      %c0_246 = arith.constant 0 : index
      %1079 = vector.load %arg24[%c0_245, %c0_246] : memref<8x32xf32, #tpu.memory_space<vmem>>, vector<8x32xf32>
      tpu.vector_store %arg24[%c0_245, %c0_246], %1078 {strides = array<i32>} : memref<8x32xf32, #tpu.memory_space<vmem>>, vector<8x32xf32>,
    } else {
    }
    %c3_172 = arith.constant 3 : index
    %807 = memref.load %arg0[%c3_172] : memref<8xi32, #tpu.memory_space<smem>>
    %c0_i32_173 = arith.constant 0 : i32
    %808 = arith.cmpi eq, %807, %c0_i32_173 : i32
    %809 = arith.extui %808 : i1 to i32
    %c0_i32_174 = arith.constant 0 : i32
    %810 = arith.cmpi ne, %809, %c0_i32_174 : i32
    scf.if %810 {
      %1078 = vector.extract_strided_slice %798 {offsets = [0, 0], sizes = [8, 64], strides = [1, 1]} : vector<8x128xf32> to vector<8x64xf32>
      %cst_245 = arith.constant dense<0xFF800000> : vector<8xf32>
      %1079 = vector.multi_reduction <maximumf>, %1078, %cst_245 [1] : vector<8x64xf32> to vector<8xf32>
      %1080 = vector.shape_cast %1079 : vector<8xf32> to vector<8x1xf32>
      %1081 = vector.broadcast %1080 : vector<8x1xf32> to vector<8x64xf32>
      %1082 = arith.cmpf oeq, %1078, %1081 : vector<8x64xf32>
      %cst_246 = arith.constant 6.400000e+01 : f32
      %1083 = vector.broadcast %cst_246 : f32 to vector<8x64xf32>
      %1084 = arith.select %1082, %585, %1083 : vector<8x64xi1>, vector<8x64xf32>
      %cst_247 = arith.constant dense<0x7F800000> : vector<8xf32>
      %1085 = vector.multi_reduction <minimumf>, %1084, %cst_247 [1] : vector<8x64xf32> to vector<8xf32>
      %1086 = vector.shape_cast %1085 : vector<8xf32> to vector<8x1xf32>
      %1087 = vector.broadcast %1086 : vector<8x1xf32> to vector<8x64xf32>
      %1088 = arith.cmpf oeq, %585, %1087 : vector<8x64xf32>
      %1089 = arith.extui %1088 : vector<8x64xi1> to vector<8x64xi32>
      %1090 = arith.sitofp %1089 : vector<8x64xi32> to vector<8x64xf32>
      %cst_248 = arith.constant dense<0.000000e+00> : vector<8x32xf32>
      %1091 = tpu.matmul %1090, %10, %cst_248 {dimension_numbers = #tpu.dot_dimension_numbers<[1], [0], [0], [1], [0, 0, 1, 1], [], []>} : vector<8x64xf32>, vector<64x32xf32>, vector<8x32xf32> -> vector<8x32xf32>
      %c0_249 = arith.constant 0 : index
      %c0_250 = arith.constant 0 : index
      %1092 = vector.load %arg24[%c0_249, %c0_250] : memref<8x32xf32, #tpu.memory_space<vmem>>, vector<8x32xf32>
      tpu.vector_store %arg24[%c0_249, %c0_250], %1091 {strides = array<i32>} : memref<8x32xf32, #tpu.memory_space<vmem>>, vector<8x32xf32>,
    } else {
    }
    %c0_175 = arith.constant 0 : index
    %c0_176 = arith.constant 0 : index
    %811 = vector.load %arg24[%c0_175, %c0_176] : memref<8x32xf32, #tpu.memory_space<vmem>>, vector<8x32xf32>
    %812 = vector.shape_cast %802 : vector<8x32xf32> to vector<8x1x32xf32>
    %813 = vector.broadcast %812 : vector<8x1x32xf32> to vector<8x8x32xf32>
    %814 = arith.addf %565, %813 : vector<8x8x32xf32>
    %815 = math.tanh %814 : vector<8x8x32xf32>
    %816 = arith.mulf %815, %583 : vector<8x8x32xf32>
    %cst_177 = arith.constant dense<0.000000e+00> : vector<8x8xf32>
    %817 = vector.multi_reduction <add>, %816, %cst_177 [2] : vector<8x8x32xf32> to vector<8x8xf32>
    %818 = tpu.concatenate %817, %817, %817, %817, %817, %817, %817, %817 in 1 : vector<8x8xf32>, vector<8x8xf32>, vector<8x8xf32>, vector<8x8xf32>, vector<8x8xf32>, vector<8x8xf32>, vector<8x8xf32>, vector<8x8xf32> -> vector<8x64xf32>
    %819 = arith.addf %818, %599 : vector<8x64xf32>
    %cst_178 = arith.constant dense<0xFF800000> : vector<8xf32>
    %820 = vector.multi_reduction <maximumf>, %819, %cst_178 [1] : vector<8x64xf32> to vector<8xf32>
    %821 = vector.shape_cast %820 : vector<8xf32> to vector<8x1xf32>
    %822 = vector.broadcast %821 : vector<8x1xf32> to vector<8x64xf32>
    %823 = arith.subf %819, %822 : vector<8x64xf32>
    %824 = math.exp %823 : vector<8x64xf32>
    %cst_179 = arith.constant dense<0.000000e+00> : vector<8xf32>
    %825 = vector.multi_reduction <add>, %824, %cst_179 [1] : vector<8x64xf32> to vector<8xf32>
    %826 = vector.shape_cast %825 : vector<8xf32> to vector<8x1xf32>
    %827 = vector.broadcast %826 : vector<8x1xf32> to vector<8x64xf32>
    %828 = arith.divf %824, %827 : vector<8x64xf32>
    %cst_180 = arith.constant dense<0.000000e+00> : vector<8x64xf32>
    %829 = tpu.matmul %828, %559, %cst_180 {dimension_numbers = #tpu.dot_dimension_numbers<[1], [0], [0], [1], [0, 0, 1, 1], [], []>} : vector<8x64xf32>, vector<64x64xf32>, vector<8x64xf32> -> vector<8x64xf32>
    %830 = tpu.concatenate %811, %829, %794 in 1 : vector<8x32xf32>, vector<8x64xf32>, vector<8x32xf32> -> vector<8x128xf32>
    %cst_181 = arith.constant dense<0.000000e+00> : vector<8x256xf32>
    %831 = tpu.matmul %830, %575, %cst_181 {dimension_numbers = #tpu.dot_dimension_numbers<[1], [0], [0], [1], [0, 0, 1, 1], [], []>} : vector<8x128xf32>, vector<128x256xf32>, vector<8x256xf32> -> vector<8x256xf32>
    %832 = vector.extract_strided_slice %831 {offsets = [0, 0], sizes = [8, 96], strides = [1, 1]} : vector<8x256xf32> to vector<8x96xf32>
    %833 = vector.broadcast %576 : vector<1x96xf32> to vector<8x96xf32>
    %834 = arith.addf %832, %833 : vector<8x96xf32>
    %835 = vector.extract_strided_slice %831 {offsets = [0, 128], sizes = [8, 96], strides = [1, 1]} : vector<8x256xf32> to vector<8x96xf32>
    %836 = vector.broadcast %577 : vector<1x96xf32> to vector<8x96xf32>
    %837 = arith.addf %835, %836 : vector<8x96xf32>
    %838 = vector.extract_strided_slice %834 {offsets = [0, 0], sizes = [8, 32], strides = [1, 1]} : vector<8x96xf32> to vector<8x32xf32>
    %839 = vector.extract_strided_slice %834 {offsets = [0, 32], sizes = [8, 32], strides = [1, 1]} : vector<8x96xf32> to vector<8x32xf32>
    %840 = vector.extract_strided_slice %834 {offsets = [0, 64], sizes = [8, 32], strides = [1, 1]} : vector<8x96xf32> to vector<8x32xf32>
    %841 = vector.extract_strided_slice %837 {offsets = [0, 0], sizes = [8, 32], strides = [1, 1]} : vector<8x96xf32> to vector<8x32xf32>
    %842 = vector.extract_strided_slice %837 {offsets = [0, 32], sizes = [8, 32], strides = [1, 1]} : vector<8x96xf32> to vector<8x32xf32>
    %843 = vector.extract_strided_slice %837 {offsets = [0, 64], sizes = [8, 32], strides = [1, 1]} : vector<8x96xf32> to vector<8x32xf32>
    %844 = arith.addf %838, %841 : vector<8x32xf32>
    %845 = arith.negf %844 : vector<8x32xf32>
    %846 = math.exp %845 : vector<8x32xf32>
    %cst_182 = arith.constant 1.000000e+00 : f32
    %847 = vector.broadcast %cst_182 : f32 to vector<8x32xf32>
    %848 = arith.addf %847, %846 : vector<8x32xf32>
    %849 = arith.divf %847, %848 : vector<8x32xf32>
    %850 = arith.addf %839, %842 : vector<8x32xf32>
    %851 = arith.negf %850 : vector<8x32xf32>
    %852 = math.exp %851 : vector<8x32xf32>
    %cst_183 = arith.constant 1.000000e+00 : f32
    %853 = vector.broadcast %cst_183 : f32 to vector<8x32xf32>
    %854 = arith.addf %853, %852 : vector<8x32xf32>
    %855 = arith.divf %853, %854 : vector<8x32xf32>
    %856 = arith.mulf %849, %843 : vector<8x32xf32>
    %857 = arith.addf %840, %856 : vector<8x32xf32>
    %858 = math.tanh %857 : vector<8x32xf32>
    %cst_184 = arith.constant 1.000000e+00 : f32
    %859 = vector.broadcast %cst_184 : f32 to vector<8x32xf32>
    %860 = arith.subf %859, %855 : vector<8x32xf32>
    %861 = arith.mulf %860, %858 : vector<8x32xf32>
    %862 = arith.mulf %855, %794 : vector<8x32xf32>
    %863 = arith.addf %861, %862 : vector<8x32xf32>
    %864 = tpu.concatenate %863, %829, %811 in 1 : vector<8x32xf32>, vector<8x64xf32>, vector<8x32xf32> -> vector<8x128xf32>
    %cst_185 = arith.constant dense<0.000000e+00> : vector<8x128xf32>
    %865 = tpu.matmul %864, %578, %cst_185 {dimension_numbers = #tpu.dot_dimension_numbers<[1], [0], [0], [1], [0, 0, 1, 1], [], []>} : vector<8x128xf32>, vector<128x128xf32>, vector<8x128xf32> -> vector<8x128xf32>
    %866 = vector.broadcast %579 : vector<1x128xf32> to vector<8x128xf32>
    %867 = arith.addf %865, %866 : vector<8x128xf32>
    %c4 = arith.constant 4 : index
    %c0_186 = arith.constant 0 : index
    %c0_187 = arith.constant 0 : index
    %868 = vector.load %arg23[%c4, %c0_186, %c0_187] : memref<8x8x128xf32, #tpu.memory_space<vmem>>, vector<1x8x128xf32>
    %869 = vector.shape_cast %868 : vector<1x8x128xf32> to vector<8x128xf32>
    %870 = vector.shape_cast %867 : vector<8x128xf32> to vector<1x8x128xf32>
    tpu.vector_store %arg23[%c4, %c0_186, %c0_187], %870 {strides = array<i32>} : memref<8x8x128xf32, #tpu.memory_space<vmem>>, vector<1x8x128xf32>,
    %871 = vector.extract_strided_slice %867 {offsets = [0, 64], sizes = [8, 32], strides = [1, 1]} : vector<8x128xf32> to vector<8x32xf32>
    %c4_188 = arith.constant 4 : index
    %872 = memref.load %arg0[%c4_188] : memref<8xi32, #tpu.memory_space<smem>>
    %c0_i32_189 = arith.constant 0 : i32
    %873 = arith.cmpi ne, %872, %c0_i32_189 : i32
    %874 = arith.extui %873 : i1 to i32
    %c0_i32_190 = arith.constant 0 : i32
    %875 = arith.cmpi ne, %874, %c0_i32_190 : i32
    scf.if %875 {
      %1078 = vector.extract_strided_slice %19 {offsets = [32, 0], sizes = [8, 32], strides = [1, 1]} : vector<64x32xf32> to vector<8x32xf32>
      %c0_245 = arith.constant 0 : index
      %c0_246 = arith.constant 0 : index
      %1079 = vector.load %arg24[%c0_245, %c0_246] : memref<8x32xf32, #tpu.memory_space<vmem>>, vector<8x32xf32>
      tpu.vector_store %arg24[%c0_245, %c0_246], %1078 {strides = array<i32>} : memref<8x32xf32, #tpu.memory_space<vmem>>, vector<8x32xf32>,
    } else {
    }
    %c4_191 = arith.constant 4 : index
    %876 = memref.load %arg0[%c4_191] : memref<8xi32, #tpu.memory_space<smem>>
    %c0_i32_192 = arith.constant 0 : i32
    %877 = arith.cmpi eq, %876, %c0_i32_192 : i32
    %878 = arith.extui %877 : i1 to i32
    %c0_i32_193 = arith.constant 0 : i32
    %879 = arith.cmpi ne, %878, %c0_i32_193 : i32
    scf.if %879 {
      %1078 = vector.extract_strided_slice %867 {offsets = [0, 0], sizes = [8, 64], strides = [1, 1]} : vector<8x128xf32> to vector<8x64xf32>
      %cst_245 = arith.constant dense<0xFF800000> : vector<8xf32>
      %1079 = vector.multi_reduction <maximumf>, %1078, %cst_245 [1] : vector<8x64xf32> to vector<8xf32>
      %1080 = vector.shape_cast %1079 : vector<8xf32> to vector<8x1xf32>
      %1081 = vector.broadcast %1080 : vector<8x1xf32> to vector<8x64xf32>
      %1082 = arith.cmpf oeq, %1078, %1081 : vector<8x64xf32>
      %cst_246 = arith.constant 6.400000e+01 : f32
      %1083 = vector.broadcast %cst_246 : f32 to vector<8x64xf32>
      %1084 = arith.select %1082, %585, %1083 : vector<8x64xi1>, vector<8x64xf32>
      %cst_247 = arith.constant dense<0x7F800000> : vector<8xf32>
      %1085 = vector.multi_reduction <minimumf>, %1084, %cst_247 [1] : vector<8x64xf32> to vector<8xf32>
      %1086 = vector.shape_cast %1085 : vector<8xf32> to vector<8x1xf32>
      %1087 = vector.broadcast %1086 : vector<8x1xf32> to vector<8x64xf32>
      %1088 = arith.cmpf oeq, %585, %1087 : vector<8x64xf32>
      %1089 = arith.extui %1088 : vector<8x64xi1> to vector<8x64xi32>
      %1090 = arith.sitofp %1089 : vector<8x64xi32> to vector<8x64xf32>
      %cst_248 = arith.constant dense<0.000000e+00> : vector<8x32xf32>
      %1091 = tpu.matmul %1090, %10, %cst_248 {dimension_numbers = #tpu.dot_dimension_numbers<[1], [0], [0], [1], [0, 0, 1, 1], [], []>} : vector<8x64xf32>, vector<64x32xf32>, vector<8x32xf32> -> vector<8x32xf32>
      %c0_249 = arith.constant 0 : index
      %c0_250 = arith.constant 0 : index
      %1092 = vector.load %arg24[%c0_249, %c0_250] : memref<8x32xf32, #tpu.memory_space<vmem>>, vector<8x32xf32>
      tpu.vector_store %arg24[%c0_249, %c0_250], %1091 {strides = array<i32>} : memref<8x32xf32, #tpu.memory_space<vmem>>, vector<8x32xf32>,
    } else {
    }
    %c0_194 = arith.constant 0 : index
    %c0_195 = arith.constant 0 : index
    %880 = vector.load %arg24[%c0_194, %c0_195] : memref<8x32xf32, #tpu.memory_space<vmem>>, vector<8x32xf32>
    %881 = vector.shape_cast %871 : vector<8x32xf32> to vector<8x1x32xf32>
    %882 = vector.broadcast %881 : vector<8x1x32xf32> to vector<8x8x32xf32>
    %883 = arith.addf %565, %882 : vector<8x8x32xf32>
    %884 = math.tanh %883 : vector<8x8x32xf32>
    %885 = arith.mulf %884, %583 : vector<8x8x32xf32>
    %cst_196 = arith.constant dense<0.000000e+00> : vector<8x8xf32>
    %886 = vector.multi_reduction <add>, %885, %cst_196 [2] : vector<8x8x32xf32> to vector<8x8xf32>
    %887 = tpu.concatenate %886, %886, %886, %886, %886, %886, %886, %886 in 1 : vector<8x8xf32>, vector<8x8xf32>, vector<8x8xf32>, vector<8x8xf32>, vector<8x8xf32>, vector<8x8xf32>, vector<8x8xf32>, vector<8x8xf32> -> vector<8x64xf32>
    %888 = arith.addf %887, %599 : vector<8x64xf32>
    %cst_197 = arith.constant dense<0xFF800000> : vector<8xf32>
    %889 = vector.multi_reduction <maximumf>, %888, %cst_197 [1] : vector<8x64xf32> to vector<8xf32>
    %890 = vector.shape_cast %889 : vector<8xf32> to vector<8x1xf32>
    %891 = vector.broadcast %890 : vector<8x1xf32> to vector<8x64xf32>
    %892 = arith.subf %888, %891 : vector<8x64xf32>
    %893 = math.exp %892 : vector<8x64xf32>
    %cst_198 = arith.constant dense<0.000000e+00> : vector<8xf32>
    %894 = vector.multi_reduction <add>, %893, %cst_198 [1] : vector<8x64xf32> to vector<8xf32>
    %895 = vector.shape_cast %894 : vector<8xf32> to vector<8x1xf32>
    %896 = vector.broadcast %895 : vector<8x1xf32> to vector<8x64xf32>
    %897 = arith.divf %893, %896 : vector<8x64xf32>
    %cst_199 = arith.constant dense<0.000000e+00> : vector<8x64xf32>
    %898 = tpu.matmul %897, %559, %cst_199 {dimension_numbers = #tpu.dot_dimension_numbers<[1], [0], [0], [1], [0, 0, 1, 1], [], []>} : vector<8x64xf32>, vector<64x64xf32>, vector<8x64xf32> -> vector<8x64xf32>
    %899 = tpu.concatenate %880, %898, %863 in 1 : vector<8x32xf32>, vector<8x64xf32>, vector<8x32xf32> -> vector<8x128xf32>
    %cst_200 = arith.constant dense<0.000000e+00> : vector<8x256xf32>
    %900 = tpu.matmul %899, %575, %cst_200 {dimension_numbers = #tpu.dot_dimension_numbers<[1], [0], [0], [1], [0, 0, 1, 1], [], []>} : vector<8x128xf32>, vector<128x256xf32>, vector<8x256xf32> -> vector<8x256xf32>
    %901 = vector.extract_strided_slice %900 {offsets = [0, 0], sizes = [8, 96], strides = [1, 1]} : vector<8x256xf32> to vector<8x96xf32>
    %902 = vector.broadcast %576 : vector<1x96xf32> to vector<8x96xf32>
    %903 = arith.addf %901, %902 : vector<8x96xf32>
    %904 = vector.extract_strided_slice %900 {offsets = [0, 128], sizes = [8, 96], strides = [1, 1]} : vector<8x256xf32> to vector<8x96xf32>
    %905 = vector.broadcast %577 : vector<1x96xf32> to vector<8x96xf32>
    %906 = arith.addf %904, %905 : vector<8x96xf32>
    %907 = vector.extract_strided_slice %903 {offsets = [0, 0], sizes = [8, 32], strides = [1, 1]} : vector<8x96xf32> to vector<8x32xf32>
    %908 = vector.extract_strided_slice %903 {offsets = [0, 32], sizes = [8, 32], strides = [1, 1]} : vector<8x96xf32> to vector<8x32xf32>
    %909 = vector.extract_strided_slice %903 {offsets = [0, 64], sizes = [8, 32], strides = [1, 1]} : vector<8x96xf32> to vector<8x32xf32>
    %910 = vector.extract_strided_slice %906 {offsets = [0, 0], sizes = [8, 32], strides = [1, 1]} : vector<8x96xf32> to vector<8x32xf32>
    %911 = vector.extract_strided_slice %906 {offsets = [0, 32], sizes = [8, 32], strides = [1, 1]} : vector<8x96xf32> to vector<8x32xf32>
    %912 = vector.extract_strided_slice %906 {offsets = [0, 64], sizes = [8, 32], strides = [1, 1]} : vector<8x96xf32> to vector<8x32xf32>
    %913 = arith.addf %907, %910 : vector<8x32xf32>
    %914 = arith.negf %913 : vector<8x32xf32>
    %915 = math.exp %914 : vector<8x32xf32>
    %cst_201 = arith.constant 1.000000e+00 : f32
    %916 = vector.broadcast %cst_201 : f32 to vector<8x32xf32>
    %917 = arith.addf %916, %915 : vector<8x32xf32>
    %918 = arith.divf %916, %917 : vector<8x32xf32>
    %919 = arith.addf %908, %911 : vector<8x32xf32>
    %920 = arith.negf %919 : vector<8x32xf32>
    %921 = math.exp %920 : vector<8x32xf32>
    %cst_202 = arith.constant 1.000000e+00 : f32
    %922 = vector.broadcast %cst_202 : f32 to vector<8x32xf32>
    %923 = arith.addf %922, %921 : vector<8x32xf32>
    %924 = arith.divf %922, %923 : vector<8x32xf32>
    %925 = arith.mulf %918, %912 : vector<8x32xf32>
    %926 = arith.addf %909, %925 : vector<8x32xf32>
    %927 = math.tanh %926 : vector<8x32xf32>
    %cst_203 = arith.constant 1.000000e+00 : f32
    %928 = vector.broadcast %cst_203 : f32 to vector<8x32xf32>
    %929 = arith.subf %928, %924 : vector<8x32xf32>
    %930 = arith.mulf %929, %927 : vector<8x32xf32>
    %931 = arith.mulf %924, %863 : vector<8x32xf32>
    %932 = arith.addf %930, %931 : vector<8x32xf32>
    %933 = tpu.concatenate %932, %898, %880 in 1 : vector<8x32xf32>, vector<8x64xf32>, vector<8x32xf32> -> vector<8x128xf32>
    %cst_204 = arith.constant dense<0.000000e+00> : vector<8x128xf32>
    %934 = tpu.matmul %933, %578, %cst_204 {dimension_numbers = #tpu.dot_dimension_numbers<[1], [0], [0], [1], [0, 0, 1, 1], [], []>} : vector<8x128xf32>, vector<128x128xf32>, vector<8x128xf32> -> vector<8x128xf32>
    %935 = vector.broadcast %579 : vector<1x128xf32> to vector<8x128xf32>
    %936 = arith.addf %934, %935 : vector<8x128xf32>
    %c5 = arith.constant 5 : index
    %c0_205 = arith.constant 0 : index
    %c0_206 = arith.constant 0 : index
    %937 = vector.load %arg23[%c5, %c0_205, %c0_206] : memref<8x8x128xf32, #tpu.memory_space<vmem>>, vector<1x8x128xf32>
    %938 = vector.shape_cast %937 : vector<1x8x128xf32> to vector<8x128xf32>
    %939 = vector.shape_cast %936 : vector<8x128xf32> to vector<1x8x128xf32>
    tpu.vector_store %arg23[%c5, %c0_205, %c0_206], %939 {strides = array<i32>} : memref<8x8x128xf32, #tpu.memory_space<vmem>>, vector<1x8x128xf32>,
    %940 = vector.extract_strided_slice %936 {offsets = [0, 64], sizes = [8, 32], strides = [1, 1]} : vector<8x128xf32> to vector<8x32xf32>
    %c5_207 = arith.constant 5 : index
    %941 = memref.load %arg0[%c5_207] : memref<8xi32, #tpu.memory_space<smem>>
    %c0_i32_208 = arith.constant 0 : i32
    %942 = arith.cmpi ne, %941, %c0_i32_208 : i32
    %943 = arith.extui %942 : i1 to i32
    %c0_i32_209 = arith.constant 0 : i32
    %944 = arith.cmpi ne, %943, %c0_i32_209 : i32
    scf.if %944 {
      %1078 = vector.extract_strided_slice %19 {offsets = [40, 0], sizes = [8, 32], strides = [1, 1]} : vector<64x32xf32> to vector<8x32xf32>
      %c0_245 = arith.constant 0 : index
      %c0_246 = arith.constant 0 : index
      %1079 = vector.load %arg24[%c0_245, %c0_246] : memref<8x32xf32, #tpu.memory_space<vmem>>, vector<8x32xf32>
      tpu.vector_store %arg24[%c0_245, %c0_246], %1078 {strides = array<i32>} : memref<8x32xf32, #tpu.memory_space<vmem>>, vector<8x32xf32>,
    } else {
    }
    %c5_210 = arith.constant 5 : index
    %945 = memref.load %arg0[%c5_210] : memref<8xi32, #tpu.memory_space<smem>>
    %c0_i32_211 = arith.constant 0 : i32
    %946 = arith.cmpi eq, %945, %c0_i32_211 : i32
    %947 = arith.extui %946 : i1 to i32
    %c0_i32_212 = arith.constant 0 : i32
    %948 = arith.cmpi ne, %947, %c0_i32_212 : i32
    scf.if %948 {
      %1078 = vector.extract_strided_slice %936 {offsets = [0, 0], sizes = [8, 64], strides = [1, 1]} : vector<8x128xf32> to vector<8x64xf32>
      %cst_245 = arith.constant dense<0xFF800000> : vector<8xf32>
      %1079 = vector.multi_reduction <maximumf>, %1078, %cst_245 [1] : vector<8x64xf32> to vector<8xf32>
      %1080 = vector.shape_cast %1079 : vector<8xf32> to vector<8x1xf32>
      %1081 = vector.broadcast %1080 : vector<8x1xf32> to vector<8x64xf32>
      %1082 = arith.cmpf oeq, %1078, %1081 : vector<8x64xf32>
      %cst_246 = arith.constant 6.400000e+01 : f32
      %1083 = vector.broadcast %cst_246 : f32 to vector<8x64xf32>
      %1084 = arith.select %1082, %585, %1083 : vector<8x64xi1>, vector<8x64xf32>
      %cst_247 = arith.constant dense<0x7F800000> : vector<8xf32>
      %1085 = vector.multi_reduction <minimumf>, %1084, %cst_247 [1] : vector<8x64xf32> to vector<8xf32>
      %1086 = vector.shape_cast %1085 : vector<8xf32> to vector<8x1xf32>
      %1087 = vector.broadcast %1086 : vector<8x1xf32> to vector<8x64xf32>
      %1088 = arith.cmpf oeq, %585, %1087 : vector<8x64xf32>
      %1089 = arith.extui %1088 : vector<8x64xi1> to vector<8x64xi32>
      %1090 = arith.sitofp %1089 : vector<8x64xi32> to vector<8x64xf32>
      %cst_248 = arith.constant dense<0.000000e+00> : vector<8x32xf32>
      %1091 = tpu.matmul %1090, %10, %cst_248 {dimension_numbers = #tpu.dot_dimension_numbers<[1], [0], [0], [1], [0, 0, 1, 1], [], []>} : vector<8x64xf32>, vector<64x32xf32>, vector<8x32xf32> -> vector<8x32xf32>
      %c0_249 = arith.constant 0 : index
      %c0_250 = arith.constant 0 : index
      %1092 = vector.load %arg24[%c0_249, %c0_250] : memref<8x32xf32, #tpu.memory_space<vmem>>, vector<8x32xf32>
      tpu.vector_store %arg24[%c0_249, %c0_250], %1091 {strides = array<i32>} : memref<8x32xf32, #tpu.memory_space<vmem>>, vector<8x32xf32>,
    } else {
    }
    %c0_213 = arith.constant 0 : index
    %c0_214 = arith.constant 0 : index
    %949 = vector.load %arg24[%c0_213, %c0_214] : memref<8x32xf32, #tpu.memory_space<vmem>>, vector<8x32xf32>
    %950 = vector.shape_cast %940 : vector<8x32xf32> to vector<8x1x32xf32>
    %951 = vector.broadcast %950 : vector<8x1x32xf32> to vector<8x8x32xf32>
    %952 = arith.addf %565, %951 : vector<8x8x32xf32>
    %953 = math.tanh %952 : vector<8x8x32xf32>
    %954 = arith.mulf %953, %583 : vector<8x8x32xf32>
    %cst_215 = arith.constant dense<0.000000e+00> : vector<8x8xf32>
    %955 = vector.multi_reduction <add>, %954, %cst_215 [2] : vector<8x8x32xf32> to vector<8x8xf32>
    %956 = tpu.concatenate %955, %955, %955, %955, %955, %955, %955, %955 in 1 : vector<8x8xf32>, vector<8x8xf32>, vector<8x8xf32>, vector<8x8xf32>, vector<8x8xf32>, vector<8x8xf32>, vector<8x8xf32>, vector<8x8xf32> -> vector<8x64xf32>
    %957 = arith.addf %956, %599 : vector<8x64xf32>
    %cst_216 = arith.constant dense<0xFF800000> : vector<8xf32>
    %958 = vector.multi_reduction <maximumf>, %957, %cst_216 [1] : vector<8x64xf32> to vector<8xf32>
    %959 = vector.shape_cast %958 : vector<8xf32> to vector<8x1xf32>
    %960 = vector.broadcast %959 : vector<8x1xf32> to vector<8x64xf32>
    %961 = arith.subf %957, %960 : vector<8x64xf32>
    %962 = math.exp %961 : vector<8x64xf32>
    %cst_217 = arith.constant dense<0.000000e+00> : vector<8xf32>
    %963 = vector.multi_reduction <add>, %962, %cst_217 [1] : vector<8x64xf32> to vector<8xf32>
    %964 = vector.shape_cast %963 : vector<8xf32> to vector<8x1xf32>
    %965 = vector.broadcast %964 : vector<8x1xf32> to vector<8x64xf32>
    %966 = arith.divf %962, %965 : vector<8x64xf32>
    %cst_218 = arith.constant dense<0.000000e+00> : vector<8x64xf32>
    %967 = tpu.matmul %966, %559, %cst_218 {dimension_numbers = #tpu.dot_dimension_numbers<[1], [0], [0], [1], [0, 0, 1, 1], [], []>} : vector<8x64xf32>, vector<64x64xf32>, vector<8x64xf32> -> vector<8x64xf32>
    %968 = tpu.concatenate %949, %967, %932 in 1 : vector<8x32xf32>, vector<8x64xf32>, vector<8x32xf32> -> vector<8x128xf32>
    %cst_219 = arith.constant dense<0.000000e+00> : vector<8x256xf32>
    %969 = tpu.matmul %968, %575, %cst_219 {dimension_numbers = #tpu.dot_dimension_numbers<[1], [0], [0], [1], [0, 0, 1, 1], [], []>} : vector<8x128xf32>, vector<128x256xf32>, vector<8x256xf32> -> vector<8x256xf32>
    %970 = vector.extract_strided_slice %969 {offsets = [0, 0], sizes = [8, 96], strides = [1, 1]} : vector<8x256xf32> to vector<8x96xf32>
    %971 = vector.broadcast %576 : vector<1x96xf32> to vector<8x96xf32>
    %972 = arith.addf %970, %971 : vector<8x96xf32>
    %973 = vector.extract_strided_slice %969 {offsets = [0, 128], sizes = [8, 96], strides = [1, 1]} : vector<8x256xf32> to vector<8x96xf32>
    %974 = vector.broadcast %577 : vector<1x96xf32> to vector<8x96xf32>
    %975 = arith.addf %973, %974 : vector<8x96xf32>
    %976 = vector.extract_strided_slice %972 {offsets = [0, 0], sizes = [8, 32], strides = [1, 1]} : vector<8x96xf32> to vector<8x32xf32>
    %977 = vector.extract_strided_slice %972 {offsets = [0, 32], sizes = [8, 32], strides = [1, 1]} : vector<8x96xf32> to vector<8x32xf32>
    %978 = vector.extract_strided_slice %972 {offsets = [0, 64], sizes = [8, 32], strides = [1, 1]} : vector<8x96xf32> to vector<8x32xf32>
    %979 = vector.extract_strided_slice %975 {offsets = [0, 0], sizes = [8, 32], strides = [1, 1]} : vector<8x96xf32> to vector<8x32xf32>
    %980 = vector.extract_strided_slice %975 {offsets = [0, 32], sizes = [8, 32], strides = [1, 1]} : vector<8x96xf32> to vector<8x32xf32>
    %981 = vector.extract_strided_slice %975 {offsets = [0, 64], sizes = [8, 32], strides = [1, 1]} : vector<8x96xf32> to vector<8x32xf32>
    %982 = arith.addf %976, %979 : vector<8x32xf32>
    %983 = arith.negf %982 : vector<8x32xf32>
    %984 = math.exp %983 : vector<8x32xf32>
    %cst_220 = arith.constant 1.000000e+00 : f32
    %985 = vector.broadcast %cst_220 : f32 to vector<8x32xf32>
    %986 = arith.addf %985, %984 : vector<8x32xf32>
    %987 = arith.divf %985, %986 : vector<8x32xf32>
    %988 = arith.addf %977, %980 : vector<8x32xf32>
    %989 = arith.negf %988 : vector<8x32xf32>
    %990 = math.exp %989 : vector<8x32xf32>
    %cst_221 = arith.constant 1.000000e+00 : f32
    %991 = vector.broadcast %cst_221 : f32 to vector<8x32xf32>
    %992 = arith.addf %991, %990 : vector<8x32xf32>
    %993 = arith.divf %991, %992 : vector<8x32xf32>
    %994 = arith.mulf %987, %981 : vector<8x32xf32>
    %995 = arith.addf %978, %994 : vector<8x32xf32>
    %996 = math.tanh %995 : vector<8x32xf32>
    %cst_222 = arith.constant 1.000000e+00 : f32
    %997 = vector.broadcast %cst_222 : f32 to vector<8x32xf32>
    %998 = arith.subf %997, %993 : vector<8x32xf32>
    %999 = arith.mulf %998, %996 : vector<8x32xf32>
    %1000 = arith.mulf %993, %932 : vector<8x32xf32>
    %1001 = arith.addf %999, %1000 : vector<8x32xf32>
    %1002 = tpu.concatenate %1001, %967, %949 in 1 : vector<8x32xf32>, vector<8x64xf32>, vector<8x32xf32> -> vector<8x128xf32>
    %cst_223 = arith.constant dense<0.000000e+00> : vector<8x128xf32>
    %1003 = tpu.matmul %1002, %578, %cst_223 {dimension_numbers = #tpu.dot_dimension_numbers<[1], [0], [0], [1], [0, 0, 1, 1], [], []>} : vector<8x128xf32>, vector<128x128xf32>, vector<8x128xf32> -> vector<8x128xf32>
    %1004 = vector.broadcast %579 : vector<1x128xf32> to vector<8x128xf32>
    %1005 = arith.addf %1003, %1004 : vector<8x128xf32>
    %c6 = arith.constant 6 : index
    %c0_224 = arith.constant 0 : index
    %c0_225 = arith.constant 0 : index
    %1006 = vector.load %arg23[%c6, %c0_224, %c0_225] : memref<8x8x128xf32, #tpu.memory_space<vmem>>, vector<1x8x128xf32>
    %1007 = vector.shape_cast %1006 : vector<1x8x128xf32> to vector<8x128xf32>
    %1008 = vector.shape_cast %1005 : vector<8x128xf32> to vector<1x8x128xf32>
    tpu.vector_store %arg23[%c6, %c0_224, %c0_225], %1008 {strides = array<i32>} : memref<8x8x128xf32, #tpu.memory_space<vmem>>, vector<1x8x128xf32>,
    %1009 = vector.extract_strided_slice %1005 {offsets = [0, 64], sizes = [8, 32], strides = [1, 1]} : vector<8x128xf32> to vector<8x32xf32>
    %c6_226 = arith.constant 6 : index
    %1010 = memref.load %arg0[%c6_226] : memref<8xi32, #tpu.memory_space<smem>>
    %c0_i32_227 = arith.constant 0 : i32
    %1011 = arith.cmpi ne, %1010, %c0_i32_227 : i32
    %1012 = arith.extui %1011 : i1 to i32
    %c0_i32_228 = arith.constant 0 : i32
    %1013 = arith.cmpi ne, %1012, %c0_i32_228 : i32
    scf.if %1013 {
      %1078 = vector.extract_strided_slice %19 {offsets = [48, 0], sizes = [8, 32], strides = [1, 1]} : vector<64x32xf32> to vector<8x32xf32>
      %c0_245 = arith.constant 0 : index
      %c0_246 = arith.constant 0 : index
      %1079 = vector.load %arg24[%c0_245, %c0_246] : memref<8x32xf32, #tpu.memory_space<vmem>>, vector<8x32xf32>
      tpu.vector_store %arg24[%c0_245, %c0_246], %1078 {strides = array<i32>} : memref<8x32xf32, #tpu.memory_space<vmem>>, vector<8x32xf32>,
    } else {
    }
    %c6_229 = arith.constant 6 : index
    %1014 = memref.load %arg0[%c6_229] : memref<8xi32, #tpu.memory_space<smem>>
    %c0_i32_230 = arith.constant 0 : i32
    %1015 = arith.cmpi eq, %1014, %c0_i32_230 : i32
    %1016 = arith.extui %1015 : i1 to i32
    %c0_i32_231 = arith.constant 0 : i32
    %1017 = arith.cmpi ne, %1016, %c0_i32_231 : i32
    scf.if %1017 {
      %1078 = vector.extract_strided_slice %1005 {offsets = [0, 0], sizes = [8, 64], strides = [1, 1]} : vector<8x128xf32> to vector<8x64xf32>
      %cst_245 = arith.constant dense<0xFF800000> : vector<8xf32>
      %1079 = vector.multi_reduction <maximumf>, %1078, %cst_245 [1] : vector<8x64xf32> to vector<8xf32>
      %1080 = vector.shape_cast %1079 : vector<8xf32> to vector<8x1xf32>
      %1081 = vector.broadcast %1080 : vector<8x1xf32> to vector<8x64xf32>
      %1082 = arith.cmpf oeq, %1078, %1081 : vector<8x64xf32>
      %cst_246 = arith.constant 6.400000e+01 : f32
      %1083 = vector.broadcast %cst_246 : f32 to vector<8x64xf32>
      %1084 = arith.select %1082, %585, %1083 : vector<8x64xi1>, vector<8x64xf32>
      %cst_247 = arith.constant dense<0x7F800000> : vector<8xf32>
      %1085 = vector.multi_reduction <minimumf>, %1084, %cst_247 [1] : vector<8x64xf32> to vector<8xf32>
      %1086 = vector.shape_cast %1085 : vector<8xf32> to vector<8x1xf32>
      %1087 = vector.broadcast %1086 : vector<8x1xf32> to vector<8x64xf32>
      %1088 = arith.cmpf oeq, %585, %1087 : vector<8x64xf32>
      %1089 = arith.extui %1088 : vector<8x64xi1> to vector<8x64xi32>
      %1090 = arith.sitofp %1089 : vector<8x64xi32> to vector<8x64xf32>
      %cst_248 = arith.constant dense<0.000000e+00> : vector<8x32xf32>
      %1091 = tpu.matmul %1090, %10, %cst_248 {dimension_numbers = #tpu.dot_dimension_numbers<[1], [0], [0], [1], [0, 0, 1, 1], [], []>} : vector<8x64xf32>, vector<64x32xf32>, vector<8x32xf32> -> vector<8x32xf32>
      %c0_249 = arith.constant 0 : index
      %c0_250 = arith.constant 0 : index
      %1092 = vector.load %arg24[%c0_249, %c0_250] : memref<8x32xf32, #tpu.memory_space<vmem>>, vector<8x32xf32>
      tpu.vector_store %arg24[%c0_249, %c0_250], %1091 {strides = array<i32>} : memref<8x32xf32, #tpu.memory_space<vmem>>, vector<8x32xf32>,
    } else {
    }
    %c0_232 = arith.constant 0 : index
    %c0_233 = arith.constant 0 : index
    %1018 = vector.load %arg24[%c0_232, %c0_233] : memref<8x32xf32, #tpu.memory_space<vmem>>, vector<8x32xf32>
    %1019 = vector.shape_cast %1009 : vector<8x32xf32> to vector<8x1x32xf32>
    %1020 = vector.broadcast %1019 : vector<8x1x32xf32> to vector<8x8x32xf32>
    %1021 = arith.addf %565, %1020 : vector<8x8x32xf32>
    %1022 = math.tanh %1021 : vector<8x8x32xf32>
    %1023 = arith.mulf %1022, %583 : vector<8x8x32xf32>
    %cst_234 = arith.constant dense<0.000000e+00> : vector<8x8xf32>
    %1024 = vector.multi_reduction <add>, %1023, %cst_234 [2] : vector<8x8x32xf32> to vector<8x8xf32>
    %1025 = tpu.concatenate %1024, %1024, %1024, %1024, %1024, %1024, %1024, %1024 in 1 : vector<8x8xf32>, vector<8x8xf32>, vector<8x8xf32>, vector<8x8xf32>, vector<8x8xf32>, vector<8x8xf32>, vector<8x8xf32>, vector<8x8xf32> -> vector<8x64xf32>
    %1026 = arith.addf %1025, %599 : vector<8x64xf32>
    %cst_235 = arith.constant dense<0xFF800000> : vector<8xf32>
    %1027 = vector.multi_reduction <maximumf>, %1026, %cst_235 [1] : vector<8x64xf32> to vector<8xf32>
    %1028 = vector.shape_cast %1027 : vector<8xf32> to vector<8x1xf32>
    %1029 = vector.broadcast %1028 : vector<8x1xf32> to vector<8x64xf32>
    %1030 = arith.subf %1026, %1029 : vector<8x64xf32>
    %1031 = math.exp %1030 : vector<8x64xf32>
    %cst_236 = arith.constant dense<0.000000e+00> : vector<8xf32>
    %1032 = vector.multi_reduction <add>, %1031, %cst_236 [1] : vector<8x64xf32> to vector<8xf32>
    %1033 = vector.shape_cast %1032 : vector<8xf32> to vector<8x1xf32>
    %1034 = vector.broadcast %1033 : vector<8x1xf32> to vector<8x64xf32>
    %1035 = arith.divf %1031, %1034 : vector<8x64xf32>
    %cst_237 = arith.constant dense<0.000000e+00> : vector<8x64xf32>
    %1036 = tpu.matmul %1035, %559, %cst_237 {dimension_numbers = #tpu.dot_dimension_numbers<[1], [0], [0], [1], [0, 0, 1, 1], [], []>} : vector<8x64xf32>, vector<64x64xf32>, vector<8x64xf32> -> vector<8x64xf32>
    %1037 = tpu.concatenate %1018, %1036, %1001 in 1 : vector<8x32xf32>, vector<8x64xf32>, vector<8x32xf32> -> vector<8x128xf32>
    %cst_238 = arith.constant dense<0.000000e+00> : vector<8x256xf32>
    %1038 = tpu.matmul %1037, %575, %cst_238 {dimension_numbers = #tpu.dot_dimension_numbers<[1], [0], [0], [1], [0, 0, 1, 1], [], []>} : vector<8x128xf32>, vector<128x256xf32>, vector<8x256xf32> -> vector<8x256xf32>
    %1039 = vector.extract_strided_slice %1038 {offsets = [0, 0], sizes = [8, 96], strides = [1, 1]} : vector<8x256xf32> to vector<8x96xf32>
    %1040 = vector.broadcast %576 : vector<1x96xf32> to vector<8x96xf32>
    %1041 = arith.addf %1039, %1040 : vector<8x96xf32>
    %1042 = vector.extract_strided_slice %1038 {offsets = [0, 128], sizes = [8, 96], strides = [1, 1]} : vector<8x256xf32> to vector<8x96xf32>
    %1043 = vector.broadcast %577 : vector<1x96xf32> to vector<8x96xf32>
    %1044 = arith.addf %1042, %1043 : vector<8x96xf32>
    %1045 = vector.extract_strided_slice %1041 {offsets = [0, 0], sizes = [8, 32], strides = [1, 1]} : vector<8x96xf32> to vector<8x32xf32>
    %1046 = vector.extract_strided_slice %1041 {offsets = [0, 32], sizes = [8, 32], strides = [1, 1]} : vector<8x96xf32> to vector<8x32xf32>
    %1047 = vector.extract_strided_slice %1041 {offsets = [0, 64], sizes = [8, 32], strides = [1, 1]} : vector<8x96xf32> to vector<8x32xf32>
    %1048 = vector.extract_strided_slice %1044 {offsets = [0, 0], sizes = [8, 32], strides = [1, 1]} : vector<8x96xf32> to vector<8x32xf32>
    %1049 = vector.extract_strided_slice %1044 {offsets = [0, 32], sizes = [8, 32], strides = [1, 1]} : vector<8x96xf32> to vector<8x32xf32>
    %1050 = vector.extract_strided_slice %1044 {offsets = [0, 64], sizes = [8, 32], strides = [1, 1]} : vector<8x96xf32> to vector<8x32xf32>
    %1051 = arith.addf %1045, %1048 : vector<8x32xf32>
    %1052 = arith.negf %1051 : vector<8x32xf32>
    %1053 = math.exp %1052 : vector<8x32xf32>
    %cst_239 = arith.constant 1.000000e+00 : f32
    %1054 = vector.broadcast %cst_239 : f32 to vector<8x32xf32>
    %1055 = arith.addf %1054, %1053 : vector<8x32xf32>
    %1056 = arith.divf %1054, %1055 : vector<8x32xf32>
    %1057 = arith.addf %1046, %1049 : vector<8x32xf32>
    %1058 = arith.negf %1057 : vector<8x32xf32>
    %1059 = math.exp %1058 : vector<8x32xf32>
    %cst_240 = arith.constant 1.000000e+00 : f32
    %1060 = vector.broadcast %cst_240 : f32 to vector<8x32xf32>
    %1061 = arith.addf %1060, %1059 : vector<8x32xf32>
    %1062 = arith.divf %1060, %1061 : vector<8x32xf32>
    %1063 = arith.mulf %1056, %1050 : vector<8x32xf32>
    %1064 = arith.addf %1047, %1063 : vector<8x32xf32>
    %1065 = math.tanh %1064 : vector<8x32xf32>
    %cst_241 = arith.constant 1.000000e+00 : f32
    %1066 = vector.broadcast %cst_241 : f32 to vector<8x32xf32>
    %1067 = arith.subf %1066, %1062 : vector<8x32xf32>
    %1068 = arith.mulf %1067, %1065 : vector<8x32xf32>
    %1069 = arith.mulf %1062, %1001 : vector<8x32xf32>
    %1070 = arith.addf %1068, %1069 : vector<8x32xf32>
    %1071 = tpu.concatenate %1070, %1036, %1018 in 1 : vector<8x32xf32>, vector<8x64xf32>, vector<8x32xf32> -> vector<8x128xf32>
    %cst_242 = arith.constant dense<0.000000e+00> : vector<8x128xf32>
    %1072 = tpu.matmul %1071, %578, %cst_242 {dimension_numbers = #tpu.dot_dimension_numbers<[1], [0], [0], [1], [0, 0, 1, 1], [], []>} : vector<8x128xf32>, vector<128x128xf32>, vector<8x128xf32> -> vector<8x128xf32>
    %1073 = vector.broadcast %579 : vector<1x128xf32> to vector<8x128xf32>
    %1074 = arith.addf %1072, %1073 : vector<8x128xf32>
    %c7 = arith.constant 7 : index
    %c0_243 = arith.constant 0 : index
    %c0_244 = arith.constant 0 : index
    %1075 = vector.load %arg23[%c7, %c0_243, %c0_244] : memref<8x8x128xf32, #tpu.memory_space<vmem>>, vector<1x8x128xf32>
    %1076 = vector.shape_cast %1075 : vector<1x8x128xf32> to vector<8x128xf32>
    %1077 = vector.shape_cast %1074 : vector<8x128xf32> to vector<1x8x128xf32>
    tpu.vector_store %arg23[%c7, %c0_243, %c0_244], %1077 {strides = array<i32>} : memref<8x8x128xf32, #tpu.memory_space<vmem>>, vector<1x8x128xf32>,
    return
  }
}

</mosaic_0001>

<bundles_post_ra>
// kernel: _forward_core.1
= control target key start
LH: loop header
LB: loop body
LE: loop exit
PB: predicated region body
PF: predicated region fallthrough
CT: control target
= control target key end

     0   :  { %s15739_s0 = inlined_call_operand.vmem [shape: s32[8], index: 0, kind: input, shape index: {}]   ;;  %s15740_s1 = inlined_call_operand.vmem [shape: s32[8,8], index: 1, kind: input, shape index: {}]   ;;  %s15741_s2 = inlined_call_operand.vmem [shape: s32[8,8], index: 2, kind: input, shape index: {}]   ;;  %s15742_s3 = inlined_call_operand.vmem [shape: f32[64,32], index: 3, kind: input, shape index: {}]   ;;  %s15743_s4 = inlined_call_operand.vmem [shape: f32[64,32], index: 4, kind: input, shape index: {}]   ;;  %s15744_s5 = inlined_call_operand.vmem [shape: f32[32,256], index: 5, kind: input, shape index: {}]   ;;  %s15745_s6 = inlined_call_operand.hbm [shape: f32[32,96], index: 6, kind: input, shape index: {}]   ;;  %s15746_s7 = inlined_call_operand.hbm [shape: f32[32,96], index: 7, kind: input, shape index: {}]   ;;  %s15747_s8 = inlined_call_operand.vmem [shape: f32[1,96], index: 8, kind: input, shape index: {}]   ;;  %s15748_s9 = inlined_call_operand.vmem [shape: f32[1,96], index: 9, kind: input, shape index: {}]   ;;  %s15749_s10 = inlined_call_operand.vmem [shape: f32[1,96], index: 10, kind: input, shape index: {}]   ;;  %s15750_s11 = inlined_call_operand.vmem [shape: f32[1,96], index: 11, kind: input, shape index: {}]   ;;  %s15751_s12 = inlined_call_operand.vmem [shape: f32[64,32], index: 12, kind: input, shape index: {}]   ;;  %s15752_s13 = inlined_call_operand.vmem [shape: f32[1,32], index: 13, kind: input, shape index: {}]   ;;  %s15753_s14 = inlined_call_operand.vmem [shape: f32[64,32], index: 14, kind: input, shape index: {}]   ;;  %s15754_s15 = inlined_call_operand.vmem [shape: f32[1,32], index: 15, kind: input, shape index: {}]   ;;  %s15755_s16 = inlined_call_operand.hbm [shape: f32[32,32], index: 16, kind: input, shape index: {}]   ;;  %s15756_s17 = inlined_call_operand.vmem [shape: f32[1,32], index: 17, kind: input, shape index: {}]   ;;  %s15757_s18 = inlined_call_operand.vmem [shape: f32[128,256], index: 18, kind: input, shape index: {}]   ;;  %s15758_s19 = inlined_call_operand.hbm [shape: f32[1,96], index: 19, kind: input, shape index: {}]   ;;  %s15759_s20 = inlined_call_operand.hbm [shape: f32[1,96], index: 20, kind: input, shape index: {}]   ;;  %s15760_s21 = inlined_call_operand.vmem [shape: f32[128,128], index: 21, kind: input, shape index: {}]   ;;  %s15761_s22 = inlined_call_operand.hbm [shape: f32[1,128], index: 22, kind: input, shape index: {}]   ;;  %s15762_s23 = inlined_call_operand.vmem [shape: f32[8,8,128], index: 23, kind: output, shape index: {}]  }
   0x1   :  { %15910 = sst [smem:[#allocation89_spill]] %s15739_s0 }
   0x2   :  { %15911 = sst [smem:[#allocation90_spill]] %s15740_s1 }
   0x3   :  { %15912 = sst [smem:[#allocation91_spill]] %s15741_s2 }
   0x4   :  { %15913 = sst [smem:[#allocation92_spill]] %s15742_s3 }
   0x5   :  { %15914 = sst [smem:[#allocation93_spill]] %s15743_s4 }
   0x6   :  { %15915 = sst [smem:[#allocation94_spill]] %s15744_s5 }
   0x7   :  { %15916 = sst [smem:[#allocation95_spill]] %s15745_s6 }
   0x8   :  { %15917 = sst [smem:[#allocation96_spill]] %s15746_s7 }
   0x9   :  { %15918 = sst [smem:[#allocation97_spill]] %s15760_s21 }
   0xa   :  { %28 = vsyncpa [#allocation5], 0 }
   0xb   :  { %29 = vsyncpa [#allocation4], 0 }
   0xc   :  { %30 = vsyncpa [#allocation8], 0 }
   0xd   :  { %31 = vsyncpa [#allocation11], 0 }
   0xe   :  { %32 = vsyncpa [#allocation14], 0  ;;  %s11318_s4 = smov [#allocation7]   ;;  %s11319_s24 = smov [#allocation10]  }
   0xf   :  { %s70_s30 = sshll.u32 %s11318_s4, 4  ;;  %s115_s25 = sshll.u32 %s11319_s24, 4  ;;  %s71_s30 = int_to_ptr.vmem [resolvable:$true] %s70_s30  ;;  %s116_s25 = int_to_ptr.vmem [resolvable:$true] %s115_s25 }
  0x10   :  { %s11184_s5 = scalar_lea.vmem %s71_s30, 512  ;;  %p11189_p1 = scmp.lt.s32.totalorder %s71_s30, %s71_s30 }
  0x11   :  { %p11185_p0 = scmp.ne.s32.totalorder %s71_s30, %s11184_s5  ;;  %p11190_p2 = scmp.lt.s32.totalorder %s11184_s5, %s11184_s5 }
  0x13   :  { %p11191_p3 = por %p11190_p2, %p11189_p1 }
  0x15   :  { %p11192_p4 = pnand %p11191_p3, %p11185_p0 }
  0x17   :  { %11195 = shalt.err (!%p11192_p4)
}
  0x18   :  { %s11320_s1 = smov 128   ;;  %s11321_s26 = smov 8  }
  0x19   :  { %s15919_s27 = sld [smem:[#allocation96_spill]]  ;;  %s11204_s7 = scalar_lea.vmem %s116_s25, 16 }
  0x1a   :  { %p11205_p5 = scmp.ne.s32.totalorder %s116_s25, %s11204_s7  ;;  %s11208_s28 = scalar_lea.vmem %s116_s25, 32 }
  0x1b   :  { %p11209_p6 = scmp.lt.s32.totalorder %s116_s25, %s116_s25  ;;  %p11210_p7 = scmp.lt.s32.totalorder %s11208_s28, %s11204_s7 }
  0x1d   :  { %p11211_p8 = por %p11210_p7, %p11209_p6 }
  0x1f   :  { %76 = dma.hbm_to_vmem [thread:$0]  %s15919_s27, 512, %s71_s30, [#allocation8], %s11320_s1, %s11320_s1, %s11321_s26  }
  0x20   :  { %p11212_p9 = pnand %p11211_p8, %p11205_p5 }
  0x22   :  { %11215 = shalt.err (!%p11212_p9)
}
  0x23   :  { %118 = dma.hbm_to_vmem [thread:$0]  %s15758_s19, 16, %s116_s25, [#allocation11]  }
  0x24   :  { %s15920_s24 = sld [smem:[#allocation89_spill]] }
  0x2a   :  { %s39_s5 = sshll.u32 %s15920_s24, 4  ;;  %s40_s5 = int_to_ptr.vmem [resolvable:$true] %s39_s5 }
  0x2b   :  { %s11216_s21 = scalar_lea.vmem %s40_s5, 16  ;;  %p11221_p11 = scmp.lt.s32.totalorder %s40_s5, %s40_s5 }
  0x2c   :  { %p11217_p10 = scmp.ne.s32.totalorder %s40_s5, %s11216_s21  ;;  %p11222_p12 = scmp.lt.s32.totalorder %s11216_s21, %s11216_s21 }
  0x2e   :  { %p11223_p13 = por %p11222_p12, %p11221_p11 }
  0x30   :  { %p11224_p0 = pnand %p11223_p13, %p11217_p10 }
  0x32   :  { %11227 = shalt.err (!%p11224_p0)
}
  0x33   :  { %s11322_s30 = smov [#allocation3]   ;;  %s11323_s2 = smov [#allocation6]  }
  0x34   :  { %42 = dma.vmem_to_smem %s40_s5, 16, %s11322_s30, [#allocation5]  }
  0x35   :  { %s58_s6 = sshll.u32 %s11323_s2, 4  ;;  %s11324_s27 = smov [#allocation9]   ;;  %s59_s6 = int_to_ptr.vmem [resolvable:$true] %s58_s6 }
  0x36   :  { %s98_s7 = sshll.u32 %s11324_s27, 4  ;;  %s11236_s19 = scalar_lea.vmem %s59_s6, 512  ;;  %s99_s7 = int_to_ptr.vmem [resolvable:$true] %s98_s7 }
  0x37   :  { %p11237_p1 = scmp.ne.s32.totalorder %s59_s6, %s11236_s19  ;;  %p11241_p2 = scmp.lt.s32.totalorder %s59_s6, %s59_s6 }
  0x38   :  { %p11242_p3 = scmp.lt.s32.totalorder %s11236_s19, %s11236_s19 }
  0x3a   :  { %p11243_p4 = por %p11242_p3, %p11241_p2 }
  0x3c   :  { %p11244_p5 = pnand %p11243_p4, %p11237_p1 }
  0x3e   :  { %11247 = shalt.err (!%p11244_p5)
}
  0x3f   :  { %s15921_s28 = sld [smem:[#allocation95_spill]]  ;;  %s11256_s29 = scalar_lea.vmem %s99_s7, 512 }
  0x40   :  { %p11257_p6 = scmp.ne.s32.totalorder %s99_s7, %s11256_s29  ;;  %p11261_p7 = scmp.lt.s32.totalorder %s99_s7, %s99_s7 }
  0x41   :  { %p11262_p8 = scmp.lt.s32.totalorder %s11256_s29, %s11256_s29 }
  0x43   :  { %p11263_p9 = por %p11262_p8, %p11261_p7 }
  0x45   :  { %64 = dma.hbm_to_vmem [thread:$0]  %s15921_s28, 512, %s59_s6, [#allocation4], %s11320_s1, %s11320_s1, %s11321_s26  }
  0x46   :  { %p11264_p10 = pnand %p11263_p9, %p11257_p6 }
  0x48   :  { %11267 = shalt.err (!%p11264_p10)
}
  0x49   :  { %104 = dma.hbm_to_vmem [thread:$0]  %s15755_s16, 512, %s99_s7, [#allocation8], %s11320_s1, %s11320_s1, %s11321_s26  }
  0x4a   :  { %s11325_s4 = smov [#allocation12]   ;;  %s11326_s5 = smov [#allocation13]  }
  0x4b   :  { %s125_s24 = sshll.u32 %s11325_s4, 4  ;;  %s137_s30 = sshll.u32 %s11326_s5, 4  ;;  %s126_s24 = int_to_ptr.vmem [resolvable:$true] %s125_s24  ;;  %s138_s30 = int_to_ptr.vmem [resolvable:$true] %s137_s30 }
  0x4c   :  { %s11276_s2 = scalar_lea.vmem %s126_s24, 16  ;;  %s11280_s6 = scalar_lea.vmem %s126_s24, 32 }
  0x4d   :  { %p11277_p11 = scmp.ne.s32.totalorder %s126_s24, %s11276_s2  ;;  %p11281_p12 = scmp.lt.s32.totalorder %s126_s24, %s126_s24 }
  0x4e   :  { %p11282_p13 = scmp.lt.s32.totalorder %s11280_s6, %s11276_s2 }
  0x50   :  { %p11283_p0 = por %p11282_p13, %p11281_p12 }
  0x52   :  { %p11284_p1 = pnand %p11283_p0, %p11277_p11 }
  0x54   :  { %11287 = shalt.err (!%p11284_p1)
}
  0x55   :  { %128 = dma.hbm_to_vmem [thread:$0]  %s15759_s20, 16, %s126_s24, [#allocation11]  }
  0x56   :  { %s11296_s21 = scalar_lea.vmem %s138_s30, 16  ;;  %s11300_s16 = scalar_lea.vmem %s138_s30, 32 }
  0x57   :  { %p11297_p2 = scmp.ne.s32.totalorder %s138_s30, %s11296_s21  ;;  %p11301_p3 = scmp.lt.s32.totalorder %s138_s30, %s138_s30 }
  0x58   :  { %p11302_p4 = scmp.lt.s32.totalorder %s11300_s16, %s11296_s21 }
  0x5a   :  { %p11303_p5 = por %p11302_p4, %p11301_p3 }
  0x5c   :  { %p11304_p6 = pnand %p11303_p5, %p11297_p2 }
  0x5e   :  { %11307 = shalt.err (!%p11304_p6)
}
  0x5f   :  { %140 = dma.hbm_to_vmem [thread:$0]  %s15761_s22, 16, %s138_s30, [#allocation14]  }
  0x60   :  { %11308 = dma.done.wait [#allocation5], 16  }
  0x61   :  { %11309 = vsyncadd [#allocation5], 4294967280 }
  0x62   :  { %11310 = dma.done.wait [#allocation4], 512  }
  0x63   :  { %11311 = vsyncadd [#allocation4], 4294966784 }
  0x64   :  { %11312 = dma.done.wait [#allocation8], 1024  }
  0x65   :  { %11313 = vsyncadd [#allocation8], 4294966272 }
  0x66   :  { %11314 = dma.done.wait [#allocation11], 32  }
  0x67   :  { %11315 = vsyncadd [#allocation11], 4294967264 }
  0x68   :  { %11316 = dma.done.wait [#allocation14], 16  }
  0x69   :  { %11317 = vsyncadd [#allocation14], 4294967280 }
  0x6a   :  { %162 = sfence }
  0x6b   :  { %v164_v0 = vlaneseq  ;;  %s15922_s25 = sld [smem:[#allocation92_spill]]  ;;  %v15767_v3 = vmov 0.0   ;;  %vm15832_vm0 = vcmask 523264   ;;  %v11626_v53 = vld [vmem:[#allocation6 + $0x18] sm:$0xff]  ;;  %v11638_v58 = vld [vmem:[#allocation6 + $0x10] sm:$0xff]  ;;  %vm15825_vm11 = vmmov 0  }
  0x6c   :  { %3557 = vst [vmem:[%s15762_s23] sm:$0xff] %v15767_v3  ;;  %s15924_s30 = sld [smem:[#allocation90_spill]]  ;;  %s11329_s28 = smov 64  }
  0x6d   :  { %v11507_v4 = vshrl.u32 %v164_v0, 7  ;;  %s15925_s27 = sld [smem:[#allocation91_spill]]  ;;  %v11616_v46 = vand.u32 127, %v164_v0 }
  0x6e   :  { %s15926_s16 = sld [smem:[#allocation93_spill]] }
  0x6f   :  { %15923 = vst [vmem:[#allocation20_spill] sm:$0xff] %v11507_v4  ;;  %v11526_v9 = vsub.s32 0, %v11507_v4  ;;  %v175_v10 = vsub.s32 1, %v11507_v4  ;;  %v182_v18 = vsub.s32 2, %v11507_v4  ;;  %v189_v19 = vsub.s32 3, %v11507_v4  ;;  %s15934_s29 = sld [smem:[#allocation94_spill]] }
  0x70   :  { %v196_v24 = vsub.s32 4, %v11507_v4  ;;  %v203_v25 = vsub.s32 5, %v11507_v4  ;;  %v210_v32 = vsub.s32 6, %v11507_v4  ;;  %v217_v33 = vsub.s32 7, %v11507_v4  ;;  %15936 = vst [vmem:[#allocation29_spill] sm:$0xff] %v11616_v46  ;;  %s16047_s6 = sld [smem:[#allocation97_spill]] }
  0x71   :  { %v253_v1 = vld [vmem:[%s15922_s25 + $0x38] sm:$0xff]  ;;  %v252_v2 = vld [vmem:[%s15922_s25 + $0x30] sm:$0xff]  ;;  %v251_v5 = vld [vmem:[%s15922_s25 + $0x28] sm:$0xff] }
  0x72   :  { %10048 = vmatprep.subr.mxu0 %v253_v1  ;;  %v11515_v6 = vld [vmem:[%s15924_s30] sm:$0xff]  ;;  %v249_v14 = vld [vmem:[%s15922_s25 + $0x18] sm:$0xff]  ;;  %v248_v20 = vld [vmem:[%s15922_s25 + $0x10] sm:$0xff]  ;;  %s11333_s30 = smov 32  }
  0x73   :  { %10049 = vmatpush3.msra.mxu0 %v253_v1  ;;  %v392_v7 = vld [vmem:[%s15925_s27] sm:$0xff]  ;;  %v169_v12 = vrot.slane %v11515_v6, %v11526_v9  ;;  %v176_v16 = vrot.slane %v11515_v6, %v175_v10  ;;  %v247_v26 = vld [vmem:[%s15922_s25 + $0x8] sm:$0xff]  ;;  %v183_v40 = vrot.slane %v11515_v6, %v182_v18  ;;  %v190_v41 = vrot.slane %v11515_v6, %v189_v19  ;;  %v11653_v1 = vld [vmem:[#allocation6 + $0x8] sm:$0xff] }
  0x74   :  { %10050 = vmatprep.subr.mxu0 %v252_v2  ;;  %v11523_v8 = vld [vmem:[%s15926_s16 + $0x38] sm:$0xff]  ;;  %v250_v11 = vld [vmem:[%s15922_s25 + $0x20] sm:$0xff]  ;;  %v396_v13 = vrot.slane %v392_v7, %v11526_v9  ;;  %v11543_v15 = vld [vmem:[%s15926_s16 + $0x30] sm:$0xff]  ;;  %v403_v17 = vrot.slane %v392_v7, %v175_v10  ;;  %v410_v22 = vrot.slane %v392_v7, %v182_v18  ;;  %v417_v23 = vrot.slane %v392_v7, %v189_v19 }
  0x75   :  { %15927 = vst [vmem:[#allocation21_spill] sm:$0xff] %v11523_v8  ;;  %10051 = vmatpush3.msra.mxu0 %v252_v2  ;;  %10076 = vmatprep.subr.mxu1 %v11523_v8  ;;  %15928 = vst [vmem:[#allocation22_spill] sm:$0xff] %v11543_v15  ;;  %v11555_v21 = vld [vmem:[%s15926_s16 + $0x28] sm:$0xff]  ;;  %v11566_v27 = vld [vmem:[%s15926_s16 + $0x20] sm:$0xff]  ;;  %v424_v30 = vrot.slane %v392_v7, %v196_v24  ;;  %v431_v31 = vrot.slane %v392_v7, %v203_v25 }
  0x76   :  { %10052 = vmatprep.subr.mxu0 %v251_v5  ;;  %10077 = vmatpush3.msra.mxu1 %v11523_v8  ;;  %15929 = vst [vmem:[#allocation23_spill] sm:$0xff] %v11555_v21  ;;  %15930 = vst [vmem:[#allocation24_spill] sm:$0xff] %v11566_v27  ;;  %v246_v28 = vld [vmem:[%s15922_s25] sm:$0xff]  ;;  %v11577_v29 = vld [vmem:[%s15926_s16 + $0x18] sm:$0xff]  ;;  %v438_v35 = vrot.slane %v392_v7, %v210_v32  ;;  %v445_v36 = vrot.slane %v392_v7, %v217_v33 }
  0x77   :  { %10053 = vmatpush3.msra.mxu0 %v251_v5  ;;  %171 = vbcast.lane.b32.xlu0 %v169_v12, 256  ;;  %15931 = vst [vmem:[#allocation25_spill] sm:$0xff] %v11577_v29  ;;  %v11586_v34 = vld [vmem:[%s15926_s16 + $0x10] sm:$0xff]  ;;  %v11592_v37 = vld [vmem:[%s15926_s16 + $0x8] sm:$0xff]  ;;  %v608_v38 = vld [vmem:[%s15934_s29 + $0x38] sm:$0xff]  ;;  %v197_v42 = vrot.slane %v11515_v6, %v196_v24  ;;  %v204_v43 = vrot.slane %v11515_v6, %v203_v25 }
  0x78   :  { %10054 = vmatprep.subr.mxu0 %v250_v11  ;;  %398 = vbcast.lane.b32.xlu1 %v396_v13, 256  ;;  %15932 = vst [vmem:[#allocation26_spill] sm:$0xff] %v11586_v34  ;;  %15933 = vst [vmem:[#allocation27_spill] sm:$0xff] %v11592_v37  ;;  %v11603_v39 = vld [vmem:[%s15926_s16] sm:$0xff]  ;;  %v211_v44 = vrot.slane %v11515_v6, %v210_v32  ;;  %v218_v45 = vrot.slane %v11515_v6, %v217_v33  ;;  %v607_v54 = vld [vmem:[%s15934_s29 + $0x30] sm:$0xff] }
  0x79   :  { %10055 = vmatpush3.msra.mxu0 %v250_v11  ;;  %10078 = vmatprep.subr.mxu1 %v11543_v15  ;;  %15935 = vst [vmem:[#allocation28_spill] sm:$0xff] %v11603_v39  ;;  %v606_v57 = vld [vmem:[%s15934_s29 + $0x28] sm:$0xff]  ;;  %v605_v59 = vld [vmem:[%s15934_s29 + $0x20] sm:$0xff]  ;;  %v604_v62 = vld [vmem:[%s15934_s29 + $0x18] sm:$0xff] }
  0x7a   :  { %10056 = vmatprep.subr.mxu0 %v249_v14  ;;  %10079 = vmatpush3.msra.mxu1 %v11543_v15  ;;  %v603_v2 = vld [vmem:[%s15934_s29 + $0x10] sm:$0xff]  ;;  %v602_v5 = vld [vmem:[%s15934_s29 + $0x8] sm:$0xff]  ;;  %v601_v11 = vld [vmem:[%s15934_s29] sm:$0xff] }
  0x7b   :  { %10057 = vmatpush3.msra.mxu0 %v249_v14  ;;  %178 = vbcast.lane.b32.xlu0 %v176_v16, 256  ;;  %v11664_v10 = vld [vmem:[#allocation6] sm:$0xff] }
  0x7c   :  { %405 = vbcast.lane.b32.xlu1 %v403_v17, 256  ;;  %10058 = vmatprep.subr.mxu0 %v248_v20 }
  0x7d   :  { %10080 = vmatprep.subr.mxu1 %v11555_v21  ;;  %10059 = vmatpush3.msra.mxu0 %v248_v20 }
  0x7e   :  { %10081 = vmatpush3.msra.mxu1 %v11555_v21  ;;  %10060 = vmatprep.subr.mxu0 %v247_v26 }
  0x7f   :  { %10082 = vmatprep.subr.mxu1 %v11566_v27  ;;  %412 = vbcast.lane.b32.xlu0 %v410_v22, 256 }
  0x80   :  { %419 = vbcast.lane.b32.xlu1 %v417_v23, 256  ;;  %10061 = vmatpush3.msra.mxu0 %v247_v26 }
  0x81   :  { %10083 = vmatpush3.msra.mxu1 %v11566_v27  ;;  %10062 = vmatprep.subr.mxu0 %v246_v28 }
  0x82   :  { %10084 = vmatprep.subr.mxu1 %v11577_v29  ;;  %10063 = vmatpush3.msra.mxu0 %v246_v28 }
  0x83   :  { %10085 = vmatpush3.msra.mxu1 %v11577_v29  ;;  %426 = vbcast.lane.b32.xlu0 %v424_v30, 256 }
  0x84   :  { %433 = vbcast.lane.b32.xlu1 %v431_v31, 256  ;;  %10086 = vmatprep.subr.mxu1 %v11586_v34 }
  0x85   :  { %10087 = vmatpush3.msra.mxu1 %v11586_v34  ;;  %658 = vmatprep.subr.mxu0 %v608_v38 }
  0x86   :  { %10088 = vmatprep.subr.mxu1 %v11592_v37 }
  0x87   :  { %440 = vbcast.lane.b32.xlu0 %v438_v35, 256  ;;  %10089 = vmatpush3.msra.mxu1 %v11592_v37 }
  0x88   :  { %447 = vbcast.lane.b32.xlu1 %v445_v36, 256  ;;  %10090 = vmatprep.subr.mxu1 %v11603_v39 }
  0x89   :  { %10091 = vmatpush3.msra.mxu1 %v11603_v39 }
  0x8a   :  { %10104 = vmatprep.subr.mxu1 %v15767_v3 }
  0x8b   :  { %185 = vbcast.lane.b32.xlu0 %v183_v40, 256 }
  0x8c   :  { %192 = vbcast.lane.b32.xlu1 %v190_v41, 256 }
  0x8f   :  { %199 = vbcast.lane.b32.xlu0 %v197_v42, 256 }
  0x90   :  { %206 = vbcast.lane.b32.xlu1 %v204_v43, 256 }
  0x93   :  { %213 = vbcast.lane.b32.xlu0 %v211_v44, 256 }
  0x94   :  { %220 = vbcast.lane.b32.xlu1 %v218_v45, 256 }
  0xe9   :  { %v172_v47 = vpop.permute.xlu0 %171 }
  0xea   :  { %v399_v48 = vpop.permute.xlu1 %398  ;;  %vm222_vm1 = vcmp.eq.s32.totalorder %v11616_v46, %v172_v47 }
  0xeb   :  { %vm449_vm2 = vcmp.eq.s32.totalorder %v11616_v46, %v399_v48  ;;  %v9523_v49 = vsel %vm222_vm1, 1.0, %v15767_v3  ;;  %v11747_v48 = vld [vmem:[%s15748_s9] ss:$0 sm:$0xff] }
  0xec   :  { %v9539_v50 = vsel %vm449_vm2, 1.0, %v15767_v3  ;;  %10064 = vmatprep.mubr.msk.f32.mxu0 %vm15832_vm0, %v9523_v49 }
  0xed   :  { %10092 = vmatprep.mubr.msk.f32.mxu1 %vm15832_vm0, %v9539_v50  ;;  %v179_v51 = vpop.permute.xlu0 %178 }
  0xee   :  { %v406_v52 = vpop.permute.xlu1 %405  ;;  %vm223_vm3 = vcmp.eq.s32.totalorder %v11616_v46, %v179_v51 }
  0xef   :  { %vm450_vm4 = vcmp.eq.s32.totalorder %v11616_v46, %v406_v52  ;;  %v9524_v55 = vsel %vm223_vm3, 1.0, %v15767_v3  ;;  %vm609_vm3 = vcmask 261120  }
  0xf0   :  { %v9540_v56 = vsel %vm450_vm4, 1.0, %v15767_v3  ;;  %10065 = vmatmul.mubr.msk.f32.vlgmr.msra.gmra.mxu0 %vm15832_vm0, %v9524_v55  ;;  %vm3115_vm4 = vcmask 1040384  }
  0xf1   :  { %10093 = vmatmul.mubr.msk.f32.vlgmr.msra.gmra.mxu1 %vm15832_vm0, %v9540_v56  ;;  %v413_v60 = vpop.permute.xlu0 %412  ;;  %659 = vmatpush1.msra.mxu0 %v607_v54 }
  0xf2   :  { %v420_v61 = vpop.permute.xlu1 %419  ;;  %10105 = vmatpush3.msra.mxu1 %v11626_v53  ;;  %vm451_vm5 = vcmp.eq.s32.totalorder %v11616_v46, %v413_v60  ;;  %660 = vmatprep.subr.mxu0 %v606_v57  ;;  %v11767_v60 = vld [vmem:[%s15747_s8] ss:$0 sm:$0xff]  ;;  %s11330_s8 = smov 96  }
  0xf3   :  { %vm452_vm6 = vcmp.eq.s32.totalorder %v11616_v46, %v420_v61  ;;  %10106 = vmatprep.subr.mxu1 %v15767_v3  ;;  %v9541_v63 = vsel %vm451_vm5, 1.0, %v15767_v3  ;;  %661 = vmatpush1.msra.mxu0 %v605_v59  ;;  %vm3124_vm5 = vcmask 1041408  }
  0xf4   :  { %v9542_v0 = vsel %vm452_vm6, 1.0, %v15767_v3  ;;  %10107 = vmatpush3.msra.mxu1 %v11638_v58  ;;  %10095 = vmatprep.mubr.msk.f32.mxu1 %vm15832_vm0, %v9541_v63  ;;  %vm3133_vm6 = vcmask 1042432  }
  0xf5   :  { %10108 = vmatprep.subr.mxu1 %v15767_v3  ;;  %10096 = vmatmul.mubr.msk.f32.gmra.mxu1 %vm15832_vm0, %v9542_v0  ;;  %v427_v6 = vpop.permute.xlu0 %426 }
  0xf6   :  { %v434_v7 = vpop.permute.xlu1 %433  ;;  %662 = vmatprep.subr.mxu0 %v604_v62  ;;  %vm453_vm7 = vcmp.eq.s32.totalorder %v11616_v46, %v427_v6  ;;  %10109 = vmatpush3.msra.mxu1 %v11653_v1  ;;  %v11772_v62 = vld [vmem:[%s15749_s10] ss:$0 sm:$0xff] }
  0xf7   :  { %vm454_vm8 = vcmp.eq.s32.totalorder %v11616_v46, %v434_v7  ;;  %663 = vmatpush1.msra.mxu0 %v603_v2  ;;  %v9543_v12 = vsel %vm453_vm7, 1.0, %v15767_v3  ;;  %10110 = vmatprep.subr.mxu1 %v15767_v3  ;;  %vm3142_vm7 = vcmask 1043456  }
  0xf8   :  { %v9544_v13 = vsel %vm454_vm8, 1.0, %v15767_v3  ;;  %664 = vmatprep.subr.mxu0 %v602_v5  ;;  %10098 = vmatprep.mubr.msk.f32.mxu1 %vm15832_vm0, %v9543_v12  ;;  %vm3151_vm8 = vcmask 1044480  }
  0xf9   :  { %10111 = vmatpush3.msra.mxu1 %v11664_v10  ;;  %v441_v14 = vpop.permute.xlu0 %440  ;;  %665 = vmatpush1.msra.mxu0 %v601_v11 }
  0xfa   :  { %10099 = vmatmul.mubr.msk.f32.gmra.mxu1 %vm15832_vm0, %v9544_v13  ;;  %v448_v16 = vpop.permute.xlu1 %447  ;;  %vm455_vm9 = vcmp.eq.s32.totalorder %v11616_v46, %v441_v14  ;;  %10115 = vmatprep.subr.mxu1 %v15767_v3 }
  0xfb   :  { %vm456_vm10 = vcmp.eq.s32.totalorder %v11616_v46, %v448_v16  ;;  %10148 = vmatprep.subr.mxu0 %v15767_v3  ;;  %v9545_v17 = vsel %vm455_vm9, 1.0, %v15767_v3  ;;  %vm3160_vm9 = vcmask 1045504  }
  0xfc   :  { %v9546_v18 = vsel %vm456_vm10, 1.0, %v15767_v3  ;;  %10101 = vmatprep.mubr.msk.f32.mxu1 %vm15832_vm0, %v9545_v17  ;;  %vm3169_vm10 = vcmask 1046528  }
  0xfd   :  { %v186_v19 = vpop.permute.xlu0 %185 }
  0xfe   :  { %10102 = vmatmul.mubr.msk.f32.gmra.mxu1 %vm15832_vm0, %v9546_v18  ;;  %v193_v20 = vpop.permute.xlu1 %192  ;;  %vm224_vm12 = vcmp.eq.s32.totalorder %v11616_v46, %v186_v19 }
  0xff   :  { %10112 = vmatprep.mubr.msk.f32.mxu1 %vm15825_vm11, %v15767_v3  ;;  %vm225_vm13 = vcmp.eq.s32.totalorder %v11616_v46, %v193_v20  ;;  %v9525_v22 = vsel %vm224_vm12, 1.0, %v15767_v3  ;;  %vm3736_vm12 = vcmask 1041409  }
 0x100   :  { %v9526_v23 = vsel %vm225_vm13, 1.0, %v15767_v3  ;;  %10067 = vmatprep.mubr.msk.f32.mxu0 %vm15832_vm0, %v9525_v22  ;;  %vm3738_vm13 = vcmask 1042434  }
 0x101   :  { %10068 = vmatmul.mubr.msk.f32.gmra.mxu0 %vm15832_vm0, %v9526_v23  ;;  %v200_v24 = vpop.permute.xlu0 %199 }
 0x102   :  { %10113 = vmatmul.mubr.f32.vlgmr.msra.gmra.mxu1 %v15767_v3  ;;  %v207_v25 = vpop.permute.xlu1 %206  ;;  %vm226_vm14 = vcmp.eq.s32.totalorder %v11616_v46, %v200_v24 }
 0x103   :  { %vm227_vm15 = vcmp.eq.s32.totalorder %v11616_v46, %v207_v25  ;;  %10116 = vmatpush3.msra.mxu1 %v11626_v53  ;;  %10123 = vmatprep.mubr.msk.f32.mxu1 %vm15825_vm11, %v15767_v3  ;;  %v9527_v26 = vsel %vm226_vm14, 1.0, %v15767_v3  ;;  %vm3740_vm14 = vcmask 1043459  }
 0x104   :  { %v9528_v28 = vsel %vm227_vm15, 1.0, %v15767_v3  ;;  %10117 = vmatprep.subr.mxu1 %v15767_v3  ;;  %10070 = vmatprep.mubr.msk.f32.mxu0 %vm15832_vm0, %v9527_v26  ;;  %vm3742_vm15 = vcmask 1044484  }
 0x105   :  { %10118 = vmatpush3.msra.mxu1 %v11638_v58  ;;  %10071 = vmatmul.mubr.msk.f32.gmra.mxu0 %vm15832_vm0, %v9528_v28  ;;  %v214_v30 = vpop.permute.xlu0 %213 }
 0x106   :  { %v221_v31 = vpop.permute.xlu1 %220  ;;  %10119 = vmatprep.subr.mxu1 %v15767_v3  ;;  %vm228_vm1 = vcmp.eq.s32.totalorder %v11616_v46, %v214_v30 }
 0x107   :  { %vm229_vm2 = vcmp.eq.s32.totalorder %v11616_v46, %v221_v31  ;;  %10120 = vmatpush3.msra.mxu1 %v11653_v1  ;;  %v9529_v32 = vsel %vm228_vm1, 1.0, %v15767_v3  ;;  %vm3744_vm1 = vcmask 1045509  }
 0x108   :  { %v9530_v33 = vsel %vm229_vm2, 1.0, %v15767_v3  ;;  %10121 = vmatprep.subr.mxu1 %v15767_v3  ;;  %10073 = vmatprep.mubr.msk.f32.mxu0 %vm15832_vm0, %v9529_v32  ;;  %vm3746_vm2 = vcmask 1046534  }
 0x109   :  { %10122 = vmatpush3.msra.mxu1 %v11664_v10  ;;  %10074 = vmatmul.mubr.msk.f32.gmra.mxu0 %vm15832_vm0, %v9530_v33 }
 0x10a   :  { %10126 = vmatprep.subr.mxu1 %v15767_v3  ;;  %698 = vmatprep.mubr.f32.mxu0 %v15767_v3 }
 0x1b0   :  { %v10066_v35 = vpop.f32.mrf.mxu0 }
 0x1b1   :  { %v11718_v36 = vpop.f32.mrf.mxu1 }
 0x1b2   :  { %15937 = vst [vmem:[#allocation30_spill] sm:$0xff] %v11718_v36  ;;  %v345_v38 = vpop.f32.mrf.mxu0 }
 0x1b3   :  { %v11720_v40 = vpop.f32.mrf.mxu1  ;;  %9555 = vmatmul.mubr.msk.f32.vlgmr.msra.gmra.mxu0 %vm609_vm3, %v345_v38 }
 0x1b4   :  { %15938 = vst [vmem:[#allocation31_spill] sm:$0xff] %v11720_v40  ;;  %704 = vmatprep.mubr.f32.mxu0 %v15767_v3  ;;  %10149 = vmatpush3.msra.mxu0 %v11626_v53 }
 0x1b5   :  { %v11725_v41 = vpop.f32.mrf.mxu1  ;;  %10150 = vmatprep.subr.mxu0 %v15767_v3 }
 0x1b6   :  { %15939 = vst [vmem:[#allocation32_spill] sm:$0xff] %v11725_v41  ;;  %10151 = vmatpush3.msra.mxu0 %v11638_v58 }
 0x1b7   :  { %9556 = vmatmul.mubr.msk.f32.gmra.mxu0 %vm609_vm3, %v10066_v35  ;;  %v11730_v42 = vpop.f32.mrf.mxu1  ;;  %10152 = vmatprep.subr.mxu0 %v15767_v3 }
 0x1b8   :  { %15940 = vst [vmem:[#allocation33_spill] sm:$0xff] %v11730_v42  ;;  %710 = vmatprep.mubr.f32.mxu0 %v15767_v3  ;;  %10153 = vmatpush3.msra.mxu0 %v11653_v1 }
 0x1b9   :  { %10154 = vmatprep.subr.mxu0 %v15767_v3 }
 0x1ba   :  { %v11735_v43 = vpop.f32.mrf.mxu1  ;;  %10155 = vmatpush3.msra.mxu0 %v11664_v10 }
 0x1bb   :  { %15941 = vst [vmem:[#allocation34_spill] sm:$0xff] %v11735_v43  ;;  %10170 = vmatprep.subr.mxu0 %v15767_v3 }
 0x1bc   :  { %v11739_v44 = vpop.f32.mrf.mxu1 }
 0x1bd   :  { %15942 = vst [vmem:[#allocation35_spill] sm:$0xff] %v11739_v44 }
 0x1be   :  { %v10103_v45 = vpop.f32.mrf.mxu1 }
 0x1c0   :  { %v11742_v47 = vpop.f32.mrf.mxu1 }
 0x1c1   :  { %15943 = vst [vmem:[#allocation36_spill] sm:$0xff] %v11742_v47  ;;  %v10069_v50 = vpop.f32.mrf.mxu0 }
 0x1c2   :  { %v841_v49 = vpop.f32.mrf.mxu1 }
 0x1c3   :  { %v842_v51 = vadd.f32 %v11747_v48, %v841_v49  ;;  %v355_v54 = vpop.f32.mrf.mxu0 }
 0x1c4   :  { %v10114_v52 = vpop.f32.mrf.mxu1  ;;  %9557 = vmatmul.mubr.msk.f32.gmra.mxu0 %vm609_vm3, %v355_v54 }
 0x1c5   :  { %853 = vrot.lane.b32.xlu0 %v842_v51, %s11329_s28  ;;  %716 = vmatprep.mubr.f32.mxu0 %v15767_v3  ;;  %v10072_v55 = vpop.f32.mrf.mxu0 }
 0x1c7   :  { %v365_v56 = vpop.f32.mrf.mxu0 }
 0x1c8   :  { %9558 = vmatmul.mubr.msk.f32.gmra.mxu0 %vm609_vm3, %v10069_v50 }
 0x1c9   :  { %722 = vmatprep.mubr.f32.mxu0 %v15767_v3  ;;  %v10075_v57 = vpop.f32.mrf.mxu0 }
 0x1cb   :  { %v375_v59 = vpop.f32.mrf.mxu0 }
 0x1cc   :  { %9559 = vmatmul.mubr.msk.f32.gmra.mxu0 %vm609_vm3, %v365_v56 }
 0x1cd   :  { %728 = vmatprep.mubr.f32.mxu0 %v15767_v3 }
 0x1d0   :  { %9560 = vmatmul.mubr.msk.f32.gmra.mxu0 %vm609_vm3, %v10072_v55 }
 0x1d1   :  { %734 = vmatprep.mubr.f32.mxu0 %v15767_v3 }
 0x1d4   :  { %9561 = vmatmul.mubr.msk.f32.gmra.mxu0 %vm609_vm3, %v375_v59 }
 0x1d5   :  { %740 = vmatprep.mubr.f32.mxu0 %v15767_v3 }
 0x1d8   :  { %9562 = vmatmul.mubr.msk.f32.gmra.mxu0 %vm609_vm3, %v10075_v57 }
 0x1d9   :  { %10156 = vmatprep.mubr.msk.f32.mxu0 %vm15825_vm11, %v15767_v3 }
 0x237   :  { %v854_v19 = vpop.permute.xlu0 %853 }
 0x273   :  { %v700_v61 = vpop.f32.mrf.mxu0 }
 0x274   :  { %v765_v63 = vadd.f32 %v11767_v60, %v700_v61 }
 0x275   :  { %v702_v0 = vpop.f32.mrf.mxu0 }
 0x276   :  { %v845_v2 = vadd.f32 %v842_v51, %v765_v63  ;;  %v11776_v5 = vadd.f32 %v11772_v62, %v702_v0 }
 0x277   :  { %v706_v6 = vpop.f32.mrf.mxu0 }
 0x278   :  { %v9565_v7 = vmul.f32 -1.442695, %v845_v2 }
 0x279   :  { %v708_v11 = vpop.f32.mrf.mxu0 }
 0x27a   :  { %10863 = vpow2.f32 %v9565_v7  ;;  %v11779_v12 = vadd.f32 %v11772_v62, %v708_v11 }
 0x284   :  { %v11781_v16 = vpop.f32.mrf.mxu0 }
 0x286   :  { %v714_v17 = vpop.f32.mrf.mxu0 }
 0x287   :  { %v10864_v13 = vpop.eup %10863  ;;  %v11784_v18 = vadd.f32 %v11772_v62, %v714_v17  ;;  %v871_v17 = vadd.f32 %v11767_v60, %v706_v6 }
 0x288   :  { %v849_v14 = vadd.f32 1.0, %v10864_v13  ;;  %v11787_v23 = vpop.f32.mrf.mxu0 }
 0x28a   :  { %10865 = vrcp.f32 %v849_v14  ;;  %v720_v24 = vpop.f32.mrf.mxu0 }
 0x28b   :  { %v11790_v25 = vadd.f32 %v11772_v62, %v720_v24 }
 0x28c   :  { %v724_v26 = vpop.f32.mrf.mxu0 }
 0x28d   :  { %v11793_v28 = vadd.f32 %v11767_v60, %v724_v26 }
 0x28e   :  { %v726_v30 = vpop.f32.mrf.mxu0 }
 0x28f   :  { %v11796_v31 = vadd.f32 %v11772_v62, %v726_v30 }
 0x290   :  { %v730_v32 = vpop.f32.mrf.mxu0 }
 0x291   :  { %v11799_v33 = vadd.f32 %v11767_v60, %v730_v32 }
 0x292   :  { %v732_v35 = vpop.f32.mrf.mxu0 }
 0x293   :  { %v11802_v38 = vadd.f32 %v11772_v62, %v732_v35 }
 0x294   :  { %v736_v45 = vpop.f32.mrf.mxu0 }
 0x295   :  { %v11805_v49 = vadd.f32 %v11767_v60, %v736_v45 }
 0x296   :  { %v738_v50 = vpop.f32.mrf.mxu0 }
 0x297   :  { %v10866_v20 = vpop.eup %10865  ;;  %v11808_v51 = vadd.f32 %v11772_v62, %v738_v50 }
 0x298   :  { %v856_v22 = vmul.f32 %v10866_v20, %v854_v19  ;;  %v742_v52 = vpop.f32.mrf.mxu0  ;;  %v863_v59 = vsub.f32 1.0, %v10866_v20  ;;  %v869_v0 = vmul.f32 0.0, %v10866_v20 }
 0x299   :  { %v11811_v54 = vadd.f32 %v11767_v60, %v742_v52 }
 0x29a   :  { %858 = vrot.lane.b32.xlu1 %v856_v22, %s11329_s28 }
 0x30c   :  { %v859_v55 = vpop.permute.xlu1 %858 }
 0x30d   :  { %v861_v56 = vadd.f32 %v859_v55, %v765_v63 }
 0x30f   :  { %10867 = vtanh.f32 %v861_v56 }
 0x31c   :  { %v10868_v57 = vpop.eup %10867 }
 0x31d   :  { %865 = vrot.lane.b32.xlu0 %v10868_v57, %s11330_s8 }
 0x38f   :  { %v866_v61 = vpop.permute.xlu0 %865 }
 0x390   :  { %v868_v2 = vmul.f32 %v866_v61, %v863_v59 }
 0x392   :  { %v870_v7 = vadd.f32 %v869_v0, %v868_v2 }
 0x394   :  { %873 = vrot.lane.b32.xlu1 %v870_v7, %s11330_s8 }
 0x406   :  { %v11815_v11 = vpop.permute.xlu1 %873 }
 0x407   :  { %10124 = vmatmul.mubr.msk.f32.vlgmr.msra.gmra.mxu1 %vm609_vm3, %v11815_v11 }
 0x408   :  { %10127 = vmatpush3.msra.mxu1 %v11626_v53  ;;  %10134 = vmatprep.mubr.msk.f32.mxu1 %vm15825_vm11, %v15767_v3 }
 0x409   :  { %10128 = vmatprep.subr.mxu1 %v15767_v3 }
 0x40a   :  { %10129 = vmatpush3.msra.mxu1 %v11638_v58 }
 0x40b   :  { %10130 = vmatprep.subr.mxu1 %v15767_v3 }
 0x40c   :  { %10131 = vmatpush3.msra.mxu1 %v11653_v1 }
 0x40d   :  { %10132 = vmatprep.subr.mxu1 %v15767_v3 }
 0x40e   :  { %10133 = vmatpush3.msra.mxu1 %v11664_v10 }
 0x40f   :  { %10137 = vmatprep.subr.mxu1 %v15767_v3 }
 0x4c7   :  { %v943_v63 = vpop.f32.mrf.mxu1 }
 0x4c8   :  { %v944_v13 = vadd.f32 %v11747_v48, %v943_v63 }
 0x4c9   :  { %v10125_v14 = vpop.f32.mrf.mxu1 }
 0x4ca   :  { %955 = vrot.lane.b32.xlu0 %v944_v13, %s11329_s28  ;;  %v947_v19 = vadd.f32 %v944_v13, %v871_v17 }
 0x4cc   :  { %v9567_v20 = vmul.f32 -1.442695, %v947_v19 }
 0x4ce   :  { %10869 = vpow2.f32 %v9567_v20 }
 0x4db   :  { %v10870_v22 = vpop.eup %10869 }
 0x4dc   :  { %v951_v24 = vadd.f32 1.0, %v10870_v22 }
 0x4de   :  { %10871 = vrcp.f32 %v951_v24 }
 0x4eb   :  { %v10872_v26 = vpop.eup %10871 }
 0x4ec   :  { %v965_v52 = vsub.f32 1.0, %v10872_v26  ;;  %v971_v6 = vmul.f32 %v10872_v26, %v870_v7  ;;  %v973_v7 = vadd.f32 %v11767_v60, %v11781_v16 }
 0x53c   :  { %v956_v30 = vpop.permute.xlu0 %955 }
 0x53d   :  { %v958_v32 = vmul.f32 %v10872_v26, %v956_v30 }
 0x53f   :  { %960 = vrot.lane.b32.xlu1 %v958_v32, %s11329_s28 }
 0x5b1   :  { %v961_v35 = vpop.permute.xlu1 %960 }
 0x5b2   :  { %v963_v45 = vadd.f32 %v961_v35, %v871_v17 }
 0x5b4   :  { %10873 = vtanh.f32 %v963_v45 }
 0x5c1   :  { %v10874_v50 = vpop.eup %10873 }
 0x5c2   :  { %967 = vrot.lane.b32.xlu0 %v10874_v50, %s11330_s8 }
 0x634   :  { %v968_v55 = vpop.permute.xlu0 %967 }
 0x635   :  { %v970_v56 = vmul.f32 %v968_v55, %v965_v52 }
 0x637   :  { %v972_v57 = vadd.f32 %v971_v6, %v970_v56 }
 0x639   :  { %975 = vrot.lane.b32.xlu1 %v972_v57, %s11330_s8 }
 0x6ab   :  { %v11835_v59 = vpop.permute.xlu1 %975 }
 0x6ac   :  { %10135 = vmatmul.mubr.msk.f32.vlgmr.msra.gmra.mxu1 %vm609_vm3, %v11835_v59 }
 0x6ad   :  { %10138 = vmatpush3.msra.mxu1 %v11626_v53  ;;  %10145 = vmatprep.mubr.msk.f32.mxu1 %vm15825_vm11, %v15767_v3 }
 0x6ae   :  { %10139 = vmatprep.subr.mxu1 %v15767_v3 }
 0x6af   :  { %10140 = vmatpush3.msra.mxu1 %v11638_v58 }
 0x6b0   :  { %10141 = vmatprep.subr.mxu1 %v15767_v3 }
 0x6b1   :  { %10142 = vmatpush3.msra.mxu1 %v11653_v1 }
 0x6b2   :  { %10143 = vmatprep.subr.mxu1 %v15767_v3 }
 0x6b3   :  { %10144 = vmatpush3.msra.mxu1 %v11664_v10 }
 0x6b4   :  { %10159 = vmatprep.subr.mxu1 %v15767_v3 }
 0x76c   :  { %v1045_v61 = vpop.f32.mrf.mxu1 }
 0x76d   :  { %v1046_v0 = vadd.f32 %v11747_v48, %v1045_v61 }
 0x76e   :  { %v10136_v2 = vpop.f32.mrf.mxu1 }
 0x76f   :  { %1057 = vrot.lane.b32.xlu0 %v1046_v0, %s11329_s28  ;;  %v1049_v63 = vadd.f32 %v1046_v0, %v973_v7 }
 0x771   :  { %v9569_v13 = vmul.f32 -1.442695, %v1049_v63 }
 0x773   :  { %10875 = vpow2.f32 %v9569_v13 }
 0x780   :  { %v10876_v14 = vpop.eup %10875 }
 0x781   :  { %v1053_v17 = vadd.f32 1.0, %v10876_v14 }
 0x783   :  { %10877 = vrcp.f32 %v1053_v17 }
 0x790   :  { %v10878_v19 = vpop.eup %10877 }
 0x791   :  { %v1067_v32 = vsub.f32 1.0, %v10878_v19  ;;  %v1073_v16 = vmul.f32 %v10878_v19, %v972_v57  ;;  %v1075_v57 = vadd.f32 %v11767_v60, %v11787_v23 }
 0x7e1   :  { %v1058_v20 = vpop.permute.xlu0 %1057 }
 0x7e2   :  { %v1060_v22 = vmul.f32 %v10878_v19, %v1058_v20 }
 0x7e4   :  { %1062 = vrot.lane.b32.xlu1 %v1060_v22, %s11329_s28 }
 0x856   :  { %v1063_v24 = vpop.permute.xlu1 %1062 }
 0x857   :  { %v1065_v26 = vadd.f32 %v1063_v24, %v973_v7 }
 0x859   :  { %10879 = vtanh.f32 %v1065_v26 }
 0x866   :  { %v10880_v30 = vpop.eup %10879 }
 0x867   :  { %1069 = vrot.lane.b32.xlu0 %v10880_v30, %s11330_s8 }
 0x8d9   :  { %v1070_v35 = vpop.permute.xlu0 %1069 }
 0x8da   :  { %v1072_v45 = vmul.f32 %v1070_v35, %v1067_v32  ;;  %v11891_v32 = vpop.f32.mrf.mxu0 }
 0x8dc   :  { %v1074_v50 = vadd.f32 %v1073_v16, %v1072_v45 }
 0x8de   :  { %1077 = vrot.lane.b32.xlu1 %v1074_v50, %s11330_s8 }
 0x950   :  { %v11856_v52 = vpop.permute.xlu1 %1077 }
 0x951   :  { %10146 = vmatmul.mubr.msk.f32.vlgmr.msra.gmra.mxu1 %vm609_vm3, %v11856_v52 }
 0x952   :  { %10160 = vmatpush3.msra.mxu1 %v11626_v53  ;;  %10167 = vmatprep.mubr.msk.f32.mxu1 %vm15825_vm11, %v15767_v3 }
 0x953   :  { %10161 = vmatprep.subr.mxu1 %v15767_v3 }
 0x954   :  { %10162 = vmatpush3.msra.mxu1 %v11638_v58 }
 0x955   :  { %10163 = vmatprep.subr.mxu1 %v15767_v3 }
 0x956   :  { %10164 = vmatpush3.msra.mxu1 %v11653_v1 }
 0x957   :  { %10165 = vmatprep.subr.mxu1 %v15767_v3 }
 0x958   :  { %10166 = vmatpush3.msra.mxu1 %v11664_v10 }
 0x959   :  { %10181 = vmatprep.subr.mxu1 %v15767_v3 }
 0xa11   :  { %v1147_v55 = vpop.f32.mrf.mxu1 }
 0xa12   :  { %v1148_v6 = vadd.f32 %v11747_v48, %v1147_v55 }
 0xa13   :  { %v10147_v56 = vpop.f32.mrf.mxu1 }
 0xa14   :  { %1159 = vrot.lane.b32.xlu0 %v1148_v6, %s11329_s28  ;;  %v1151_v61 = vadd.f32 %v1148_v6, %v1075_v57 }
 0xa16   :  { %v9571_v0 = vmul.f32 -1.442695, %v1151_v61 }
 0xa18   :  { %10881 = vpow2.f32 %v9571_v0 }
 0xa25   :  { %v10882_v2 = vpop.eup %10881 }
 0xa26   :  { %v1155_v7 = vadd.f32 1.0, %v10882_v2 }
 0xa28   :  { %10883 = vrcp.f32 %v1155_v7 }
 0xa35   :  { %v10884_v63 = vpop.eup %10883 }
 0xa36   :  { %v1169_v22 = vsub.f32 1.0, %v10884_v63  ;;  %v1175_v60 = vmul.f32 %v10884_v63, %v1074_v50 }
 0xa86   :  { %v1160_v13 = vpop.permute.xlu0 %1159 }
 0xa87   :  { %v1162_v14 = vmul.f32 %v10884_v63, %v1160_v13 }
 0xa89   :  { %1164 = vrot.lane.b32.xlu1 %v1162_v14, %s11329_s28 }
 0xafb   :  { %v1165_v17 = vpop.permute.xlu1 %1164 }
 0xafc   :  { %v1167_v19 = vadd.f32 %v1165_v17, %v1075_v57 }
 0xafe   :  { %10885 = vtanh.f32 %v1167_v19 }
 0xb0b   :  { %v10886_v20 = vpop.eup %10885 }
 0xb0c   :  { %1171 = vrot.lane.b32.xlu0 %v10886_v20, %s11330_s8 }
 0xb7e   :  { %v1172_v24 = vpop.permute.xlu0 %1171 }
 0xb7f   :  { %v1174_v23 = vmul.f32 %v1172_v24, %v1169_v22 }
 0xb81   :  { %v1176_v26 = vadd.f32 %v1175_v60, %v1174_v23 }
 0xb83   :  { %1179 = vrot.lane.b32.xlu1 %v1176_v26, %s11330_s8 }
 0xbf5   :  { %v11877_v30 = vpop.permute.xlu1 %1179 }
 0xbf6   :  { %10157 = vmatmul.mubr.msk.f32.vlgmr.msra.gmra.mxu0 %vm609_vm3, %v11877_v30 }
 0xbf7   :  { %10171 = vmatpush3.msra.mxu0 %v11626_v53  ;;  %10178 = vmatprep.mubr.msk.f32.mxu0 %vm15825_vm11, %v15767_v3 }
 0xbf8   :  { %10172 = vmatprep.subr.mxu0 %v15767_v3 }
 0xbf9   :  { %10173 = vmatpush3.msra.mxu0 %v11638_v58 }
 0xbfa   :  { %10174 = vmatprep.subr.mxu0 %v15767_v3 }
 0xbfb   :  { %10175 = vmatpush3.msra.mxu0 %v11653_v1 }
 0xbfc   :  { %10176 = vmatprep.subr.mxu0 %v15767_v3 }
 0xbfd   :  { %10177 = vmatpush3.msra.mxu0 %v11664_v10 }
 0xbfe   :  { %10192 = vmatprep.subr.mxu0 %v15767_v3 }
 0xcb6   :  { %v1249_v35 = vpop.f32.mrf.mxu0 }
 0xcb7   :  { %v1250_v16 = vadd.f32 %v11747_v48, %v1249_v35 }
 0xcb8   :  { %v10158_v45 = vpop.f32.mrf.mxu0 }
 0xcb9   :  { %1261 = vrot.lane.b32.xlu0 %v1250_v16, %s11329_s28  ;;  %v1253_v50 = vadd.f32 %v1250_v16, %v11793_v28 }
 0xcbb   :  { %v9573_v55 = vmul.f32 -1.442695, %v1253_v50 }
 0xcbd   :  { %10887 = vpow2.f32 %v9573_v55 }
 0xcca   :  { %v10888_v6 = vpop.eup %10887 }
 0xccb   :  { %v1257_v56 = vadd.f32 1.0, %v10888_v6 }
 0xccd   :  { %10889 = vrcp.f32 %v1257_v56 }
 0xcda   :  { %v10890_v57 = vpop.eup %10889 }
 0xcdb   :  { %v1271_v13 = vsub.f32 1.0, %v10890_v57  ;;  %v1277_v17 = vmul.f32 %v10890_v57, %v1176_v26 }
 0xd2b   :  { %v1262_v61 = vpop.permute.xlu0 %1261 }
 0xd2c   :  { %v1264_v0 = vmul.f32 %v10890_v57, %v1262_v61 }
 0xd2e   :  { %1266 = vrot.lane.b32.xlu1 %v1264_v0, %s11329_s28  ;;  %v11924_v0 = vld [vmem:[#allocation7 + $0x18] sm:$0xff] }
 0xda0   :  { %v1267_v2 = vpop.permute.xlu1 %1266 }
 0xda1   :  { %v1269_v7 = vadd.f32 %v1267_v2, %v11793_v28 }
 0xda3   :  { %10891 = vtanh.f32 %v1269_v7  ;;  %v11936_v7 = vld [vmem:[#allocation7 + $0x8] sm:$0xff] }
 0xdb0   :  { %v10892_v63 = vpop.eup %10891 }
 0xdb1   :  { %1273 = vrot.lane.b32.xlu0 %v10892_v63, %s11330_s8  ;;  %v11940_v63 = vld [vmem:[#allocation7] sm:$0xff] }
 0xe23   :  { %v1274_v14 = vpop.permute.xlu0 %1273 }
 0xe24   :  { %v1276_v19 = vmul.f32 %v1274_v14, %v1271_v13 }
 0xe26   :  { %v1278_v20 = vadd.f32 %v1277_v17, %v1276_v19  ;;  %v11962_v19 = vld [vmem:[%s15750_s11] ss:$0 sm:$0xff] }
 0xe28   :  { %1281 = vrot.lane.b32.xlu1 %v1278_v20, %s11330_s8 }
 0xe9a   :  { %v11900_v22 = vpop.permute.xlu1 %1281 }
 0xe9b   :  { %10168 = vmatmul.mubr.msk.f32.vlgmr.msra.gmra.mxu1 %vm609_vm3, %v11900_v22 }
 0xe9c   :  { %10182 = vmatpush3.msra.mxu1 %v11626_v53  ;;  %10189 = vmatprep.mubr.msk.f32.mxu1 %vm15825_vm11, %v15767_v3 }
 0xe9d   :  { %10183 = vmatprep.subr.mxu1 %v15767_v3 }
 0xe9e   :  { %10184 = vmatpush3.msra.mxu1 %v11638_v58 }
 0xe9f   :  { %10185 = vmatprep.subr.mxu1 %v15767_v3 }
 0xea0   :  { %10186 = vmatpush3.msra.mxu1 %v11653_v1 }
 0xea1   :  { %10187 = vmatprep.subr.mxu1 %v15767_v3 }
 0xea2   :  { %10188 = vmatpush3.msra.mxu1 %v11664_v10 }
 0xea3   :  { %10203 = vmatprep.subr.mxu1 %v15767_v3 }
 0xf5b   :  { %v1351_v28 = vpop.f32.mrf.mxu1 }
 0xf5c   :  { %v1352_v53 = vadd.f32 %v11747_v48, %v1351_v28 }
 0xf5d   :  { %v10169_v24 = vpop.f32.mrf.mxu1 }
 0xf5e   :  { %1363 = vrot.lane.b32.xlu0 %v1352_v53, %s11329_s28  ;;  %v1355_v60 = vadd.f32 %v1352_v53, %v11799_v33 }
 0xf60   :  { %v9575_v23 = vmul.f32 -1.442695, %v1355_v60 }
 0xf62   :  { %10893 = vpow2.f32 %v9575_v23 }
 0xf6f   :  { %v10894_v58 = vpop.eup %10893 }
 0xf70   :  { %v1359_v26 = vadd.f32 1.0, %v10894_v58 }
 0xf72   :  { %10895 = vrcp.f32 %v1359_v26 }
 0xf7f   :  { %v10896_v1 = vpop.eup %10895 }
 0xf80   :  { %v1373_v55 = vsub.f32 1.0, %v10896_v1  ;;  %v1379_v56 = vmul.f32 %v10896_v1, %v1278_v20 }
 0xfd0   :  { %v1364_v35 = vpop.permute.xlu0 %1363 }
 0xfd1   :  { %v1366_v16 = vmul.f32 %v10896_v1, %v1364_v35 }
 0xfd3   :  { %1368 = vrot.lane.b32.xlu1 %v1366_v16, %s11329_s28 }
0x1045   :  { %v1369_v10 = vpop.permute.xlu1 %1368 }
0x1046   :  { %v1371_v45 = vadd.f32 %v1369_v10, %v11799_v33  ;;  %v11930_v33 = vld [vmem:[#allocation7 + $0x10] sm:$0xff] }
0x1048   :  { %10897 = vtanh.f32 %v1371_v45 }
0x1055   :  { %v10898_v50 = vpop.eup %10897 }
0x1056   :  { %1375 = vrot.lane.b32.xlu0 %v10898_v50, %s11330_s8 }
0x10c8   :  { %v1376_v6 = vpop.permute.xlu0 %1375 }
0x10c9   :  { %v1378_v57 = vmul.f32 %v1376_v6, %v1373_v55 }
0x10cb   :  { %v11920_v61 = vadd.f32 %v1379_v56, %v1378_v57 }
0x10cd   :  { %1383 = vrot.lane.b32.xlu1 %v11920_v61, %s11330_s8 }
0x113f   :  { %v11926_v2 = vpop.permute.xlu1 %1383 }
0x1140   :  { %10179 = vmatmul.mubr.msk.f32.vlgmr.msra.gmra.mxu0 %vm609_vm3, %v11926_v2 }
0x1141   :  { %10193 = vmatpush3.msra.mxu0 %v11924_v0  ;;  %10200 = vmatprep.mubr.msk.f32.mxu0 %vm15825_vm11, %v15767_v3 }
0x1142   :  { %10194 = vmatprep.subr.mxu0 %v15767_v3 }
0x1143   :  { %10195 = vmatpush3.msra.mxu0 %v11930_v33 }
0x1144   :  { %10196 = vmatprep.subr.mxu0 %v15767_v3 }
0x1145   :  { %10197 = vmatpush3.msra.mxu0 %v11936_v7 }
0x1146   :  { %10198 = vmatprep.subr.mxu0 %v15767_v3 }
0x1147   :  { %10199 = vmatpush3.msra.mxu0 %v11940_v63 }
0x1148   :  { %10201 = vmatmul.mubr.f32.vlgmr.msra.gmra.mxu0 %v15767_v3  ;;  %10214 = vmatprep.subr.mxu0 %v15767_v3 }
0x1149   :  { %10215 = vmatpush3.msra.mxu0 %v11924_v0  ;;  %10222 = vmatprep.mubr.msk.f32.mxu0 %vm15825_vm11, %v15767_v3 }
0x114a   :  { %10216 = vmatprep.subr.mxu0 %v15767_v3 }
0x114b   :  { %10217 = vmatpush3.msra.mxu0 %v11930_v33 }
0x114c   :  { %10218 = vmatprep.subr.mxu0 %v15767_v3 }
0x114d   :  { %10219 = vmatpush3.msra.mxu0 %v11936_v7 }
0x114e   :  { %10220 = vmatprep.subr.mxu0 %v15767_v3 }
0x114f   :  { %10221 = vmatpush3.msra.mxu0 %v11940_v63 }
0x1150   :  { %10236 = vmatprep.subr.mxu0 %v15767_v3 }
0x1200   :  { %v1453_v13 = vpop.f32.mrf.mxu0 }
0x1201   :  { %v1454_v14 = vadd.f32 %v11747_v48, %v1453_v13  ;;  %v1591_v48 = vadd.f32 %v11772_v62, %v11891_v32 }
0x1202   :  { %v10180_v17 = vpop.f32.mrf.mxu0 }
0x1203   :  { %1465 = vrot.lane.b32.xlu0 %v1454_v14, %s11329_s28  ;;  %v1457_v24 = vadd.f32 %v1454_v14, %v11805_v49 }
0x1205   :  { %v9577_v60 = vmul.f32 -1.442695, %v1457_v24 }
0x1207   :  { %10899 = vpow2.f32 %v9577_v60 }
0x1208   :  { %v1664_v20 = vpop.f32.mrf.mxu0 }
0x1209   :  { %v1665_v28 = vadd.f32 %v11962_v19, %v1664_v20 }
0x120a   :  { %v10202_v53 = vpop.f32.mrf.mxu0 }
0x120b   :  { %1676 = vrot.lane.b32.xlu1 %v1665_v28, %s11329_s28  ;;  %v1668_v23 = vadd.f32 %v1665_v28, %v1591_v48 }
0x120d   :  { %v9582_v58 = vmul.f32 -1.442695, %v1668_v23 }
0x120f   :  { %10901 = vpow2.f32 %v9582_v58 }
0x1214   :  { %v10900_v26 = vpop.eup %10899 }
0x1215   :  { %v1461_v1 = vadd.f32 1.0, %v10900_v26 }
0x1217   :  { %10903 = vrcp.f32 %v1461_v1 }
0x121c   :  { %v10902_v35 = vpop.eup %10901 }
0x121d   :  { %v1672_v16 = vadd.f32 1.0, %v10902_v35 }
0x121f   :  { %10905 = vrcp.f32 %v1672_v16 }
0x1224   :  { %v10904_v10 = vpop.eup %10903 }
0x1225   :  { %v1475_v20 = vsub.f32 1.0, %v10904_v10  ;;  %v1481_v53 = vmul.f32 %v10904_v10, %v11920_v61  ;;  %v11991_v61 = vld [vmem:[%s15762_s23] sm:$0xff] }
0x122c   :  { %v10906_v55 = vpop.eup %10905 }
0x1275   :  { %v1466_v45 = vpop.permute.xlu0 %1465 }
0x1276   :  { %v1468_v50 = vmul.f32 %v10904_v10, %v1466_v45 }
0x1278   :  { %1470 = vrot.lane.b32.xlu0 %v1468_v50, %s11329_s28 }
0x127d   :  { %v1677_v6 = vpop.permute.xlu1 %1676 }
0x127e   :  { %v1679_v56 = vmul.f32 %v10906_v55, %v1677_v6 }
0x1280   :  { %1681 = vrot.lane.b32.xlu1 %v1679_v56, %s11329_s28 }
0x12ea   :  { %v1471_v62 = vpop.permute.xlu0 %1470 }
0x12eb   :  { %v1473_v32 = vadd.f32 %v1471_v62, %v11805_v49  ;;  %v1686_v49 = vsub.f32 1.0, %v10906_v55 }
0x12ed   :  { %10907 = vtanh.f32 %v1473_v32 }
0x12f2   :  { %v1682_v57 = vpop.permute.xlu1 %1681 }
0x12f3   :  { %v1684_v13 = vadd.f32 %v1682_v57, %v1591_v48  ;;  %v1692_v48 = vmul.f32 0.0, %v10906_v55 }
0x12f5   :  { %10909 = vtanh.f32 %v1684_v13 }
0x12fa   :  { %v10908_v14 = vpop.eup %10907 }
0x12fb   :  { %1477 = vrot.lane.b32.xlu0 %v10908_v14, %s11330_s8 }
0x1302   :  { %v10910_v17 = vpop.eup %10909 }
0x1303   :  { %1688 = vrot.lane.b32.xlu1 %v10910_v17, %s11330_s8 }
0x136d   :  { %v1478_v28 = vpop.permute.xlu0 %1477 }
0x136e   :  { %v1480_v24 = vmul.f32 %v1478_v28, %v1475_v20 }
0x1370   :  { %v11975_v60 = vadd.f32 %v1481_v53, %v1480_v24 }
0x1372   :  { %1485 = vrot.lane.b32.xlu0 %v11975_v60, %s11330_s8 }
0x1375   :  { %v1689_v23 = vpop.permute.xlu1 %1688 }
0x1376   :  { %v1691_v58 = vmul.f32 %v1689_v23, %v1686_v49 }
0x1378   :  { %v11979_v26 = vadd.f32 %v1692_v48, %v1691_v58 }
0x137a   :  { %1696 = vrot.lane.b32.xlu1 %v11979_v26, %s11330_s8 }
0x13e4   :  { %v11983_v1 = vpop.permute.xlu0 %1485 }
0x13e5   :  { %10190 = vmatmul.mubr.msk.f32.vlgmr.msra.gmra.mxu1 %vm609_vm3, %v11983_v1 }
0x13e6   :  { %10204 = vmatpush3.msra.mxu1 %v11924_v0  ;;  %10211 = vmatprep.mubr.msk.f32.mxu1 %vm15825_vm11, %v11991_v61 }
0x13e7   :  { %10205 = vmatprep.subr.mxu1 %v11991_v61 }
0x13e8   :  { %10206 = vmatpush3.msra.mxu1 %v11930_v33 }
0x13e9   :  { %10207 = vmatprep.subr.mxu1 %v11991_v61 }
0x13ea   :  { %10208 = vmatpush3.msra.mxu1 %v11936_v7 }
0x13eb   :  { %10209 = vmatprep.subr.mxu1 %v11991_v61 }
0x13ec   :  { %10210 = vmatpush3.msra.mxu1 %v11940_v63  ;;  %v1697_v35 = vpop.permute.xlu1 %1696 }
0x13ed   :  { %10212 = vmatmul.mubr.msk.f32.vlgmr.msra.gmra.mxu1 %vm609_vm3, %v1697_v35  ;;  %10225 = vmatprep.subr.mxu1 %v11991_v61 }
0x13ee   :  { %10226 = vmatpush3.msra.mxu1 %v11924_v0  ;;  %10233 = vmatprep.mubr.msk.f32.mxu1 %vm15825_vm11, %v11991_v61 }
0x13ef   :  { %10227 = vmatprep.subr.mxu1 %v11991_v61 }
0x13f0   :  { %10228 = vmatpush3.msra.mxu1 %v11930_v33 }
0x13f1   :  { %10229 = vmatprep.subr.mxu1 %v11991_v61 }
0x13f2   :  { %10230 = vmatpush3.msra.mxu1 %v11936_v7 }
0x13f3   :  { %10231 = vmatprep.subr.mxu1 %v11991_v61 }
0x13f4   :  { %10232 = vmatpush3.msra.mxu1 %v11940_v63 }
0x13f5   :  { %10247 = vmatprep.subr.mxu1 %v11991_v61 }
0x14a5   :  { %v12013_v16 = vpop.f32.mrf.mxu1 }
0x14a7   :  { %v10191_v10 = vpop.f32.mrf.mxu1 }
0x14ad   :  { %v1766_v45 = vpop.f32.mrf.mxu1 }
0x14ae   :  { %v1767_v50 = vadd.f32 %v11962_v19, %v1766_v45 }
0x14af   :  { %v10213_v55 = vpop.f32.mrf.mxu1 }
0x14b0   :  { %1778 = vrot.lane.b32.xlu0 %v1767_v50, %s11329_s28  ;;  %v1770_v6 = vadd.f32 %v1767_v50, %v11808_v51 }
0x14b2   :  { %v9584_v56 = vmul.f32 -1.442695, %v1770_v6 }
0x14b4   :  { %10911 = vpow2.f32 %v9584_v56 }
0x14c1   :  { %v10912_v62 = vpop.eup %10911 }
0x14c2   :  { %v1774_v32 = vadd.f32 1.0, %v10912_v62 }
0x14c4   :  { %10913 = vrcp.f32 %v1774_v32 }
0x14d1   :  { %v10914_v57 = vpop.eup %10913 }
0x14d2   :  { %v1788_v53 = vsub.f32 1.0, %v10914_v57  ;;  %v1794_v49 = vmul.f32 %v10914_v57, %v11979_v26 }
0x1522   :  { %v1779_v13 = vpop.permute.xlu0 %1778 }
0x1523   :  { %v1781_v14 = vmul.f32 %v10914_v57, %v1779_v13 }
0x1525   :  { %1783 = vrot.lane.b32.xlu1 %v1781_v14, %s11329_s28 }
0x1597   :  { %v1784_v17 = vpop.permute.xlu1 %1783 }
0x1598   :  { %v1786_v20 = vadd.f32 %v1784_v17, %v11808_v51 }
0x159a   :  { %10915 = vtanh.f32 %v1786_v20 }
0x15a7   :  { %v10916_v28 = vpop.eup %10915 }
0x15a8   :  { %1790 = vrot.lane.b32.xlu0 %v10916_v28, %s11330_s8 }
0x161a   :  { %v1791_v24 = vpop.permute.xlu0 %1790 }
0x161b   :  { %v1793_v23 = vmul.f32 %v1791_v24, %v1788_v53 }
0x161d   :  { %v12022_v48 = vadd.f32 %v1794_v49, %v1793_v23 }
0x161f   :  { %1798 = vrot.lane.b32.xlu1 %v12022_v48, %s11330_s8 }
0x1691   :  { %v1799_v58 = vpop.permute.xlu1 %1798 }
0x1692   :  { %10223 = vmatmul.mubr.msk.f32.vlgmr.msra.gmra.mxu0 %vm609_vm3, %v1799_v58 }
0x1693   :  { %10237 = vmatpush3.msra.mxu0 %v11924_v0  ;;  %10244 = vmatprep.mubr.msk.f32.mxu0 %vm15825_vm11, %v11991_v61 }
0x1694   :  { %10238 = vmatprep.subr.mxu0 %v11991_v61 }
0x1695   :  { %10239 = vmatpush3.msra.mxu0 %v11930_v33 }
0x1696   :  { %10240 = vmatprep.subr.mxu0 %v11991_v61 }
0x1697   :  { %10241 = vmatpush3.msra.mxu0 %v11936_v7 }
0x1698   :  { %10242 = vmatprep.subr.mxu0 %v11991_v61 }
0x1699   :  { %10243 = vmatpush3.msra.mxu0 %v11940_v63 }
0x169a   :  { %10258 = vmatprep.subr.mxu0 %v11991_v61 }
0x1752   :  { %v1868_v51 = vpop.f32.mrf.mxu0 }
0x1753   :  { %v1869_v35 = vadd.f32 %v11962_v19, %v1868_v51 }
0x1754   :  { %v10224_v10 = vpop.f32.mrf.mxu0 }
0x1755   :  { %1880 = vrot.lane.b32.xlu0 %v1869_v35, %s11329_s28  ;;  %v1872_v45 = vadd.f32 %v1869_v35, %v11802_v38 }
0x1757   :  { %v9586_v50 = vmul.f32 -1.442695, %v1872_v45 }
0x1759   :  { %10917 = vpow2.f32 %v9586_v50 }
0x1766   :  { %v10918_v55 = vpop.eup %10917 }
0x1767   :  { %v1876_v6 = vadd.f32 1.0, %v10918_v55 }
0x1769   :  { %10919 = vrcp.f32 %v1876_v6 }
0x1776   :  { %v10920_v56 = vpop.eup %10919 }
0x1777   :  { %v1890_v17 = vsub.f32 1.0, %v10920_v56  ;;  %v1896_v28 = vmul.f32 %v10920_v56, %v12022_v48 }
0x17c7   :  { %v1881_v62 = vpop.permute.xlu0 %1880 }
0x17c8   :  { %v1883_v32 = vmul.f32 %v10920_v56, %v1881_v62 }
0x17ca   :  { %1885 = vrot.lane.b32.xlu1 %v1883_v32, %s11329_s28 }
0x183c   :  { %v1886_v57 = vpop.permute.xlu1 %1885 }
0x183d   :  { %v1888_v13 = vadd.f32 %v1886_v57, %v11802_v38 }
0x183f   :  { %10921 = vtanh.f32 %v1888_v13 }
0x184c   :  { %v10922_v14 = vpop.eup %10921 }
0x184d   :  { %1892 = vrot.lane.b32.xlu0 %v10922_v14, %s11330_s8 }
0x18bf   :  { %v1893_v20 = vpop.permute.xlu0 %1892 }
0x18c0   :  { %v1895_v53 = vmul.f32 %v1893_v20, %v1890_v17 }
0x18c2   :  { %v12044_v24 = vadd.f32 %v1896_v28, %v1895_v53 }
0x18c4   :  { %1900 = vrot.lane.b32.xlu1 %v12044_v24, %s11330_s8 }
0x1936   :  { %v1901_v49 = vpop.permute.xlu1 %1900 }
0x1937   :  { %10234 = vmatmul.mubr.msk.f32.vlgmr.msra.gmra.mxu1 %vm609_vm3, %v1901_v49 }
0x1938   :  { %10248 = vmatpush3.msra.mxu1 %v11924_v0  ;;  %10255 = vmatprep.mubr.msk.f32.mxu1 %vm15825_vm11, %v11991_v61 }
0x1939   :  { %10249 = vmatprep.subr.mxu1 %v11991_v61 }
0x193a   :  { %10250 = vmatpush3.msra.mxu1 %v11930_v33 }
0x193b   :  { %10251 = vmatprep.subr.mxu1 %v11991_v61 }
0x193c   :  { %10252 = vmatpush3.msra.mxu1 %v11936_v7 }
0x193d   :  { %10253 = vmatprep.subr.mxu1 %v11991_v61 }
0x193e   :  { %10254 = vmatpush3.msra.mxu1 %v11940_v63 }
0x193f   :  { %10269 = vmatprep.subr.mxu1 %v11991_v61 }
0x19f7   :  { %v1970_v38 = vpop.f32.mrf.mxu1 }
0x19f8   :  { %v1971_v23 = vadd.f32 %v11962_v19, %v1970_v38 }
0x19f9   :  { %v10235_v58 = vpop.f32.mrf.mxu1 }
0x19fa   :  { %1982 = vrot.lane.b32.xlu0 %v1971_v23, %s11329_s28  ;;  %v1974_v51 = vadd.f32 %v1971_v23, %v11796_v31 }
0x19fc   :  { %v9588_v35 = vmul.f32 -1.442695, %v1974_v51 }
0x19fe   :  { %10923 = vpow2.f32 %v9588_v35 }
0x1a0b   :  { %v10924_v10 = vpop.eup %10923 }
0x1a0c   :  { %v1978_v45 = vadd.f32 1.0, %v10924_v10 }
0x1a0e   :  { %10925 = vrcp.f32 %v1978_v45 }
0x1a1b   :  { %v10926_v50 = vpop.eup %10925 }
0x1a1c   :  { %v1992_v57 = vsub.f32 1.0, %v10926_v50  ;;  %v1998_v14 = vmul.f32 %v10926_v50, %v12044_v24 }
0x1a6c   :  { %v1983_v55 = vpop.permute.xlu0 %1982 }
0x1a6d   :  { %v1985_v6 = vmul.f32 %v10926_v50, %v1983_v55 }
0x1a6f   :  { %1987 = vrot.lane.b32.xlu1 %v1985_v6, %s11329_s28 }
0x1ae1   :  { %v1988_v56 = vpop.permute.xlu1 %1987 }
0x1ae2   :  { %v1990_v62 = vadd.f32 %v1988_v56, %v11796_v31 }
0x1ae4   :  { %10927 = vtanh.f32 %v1990_v62 }
0x1af1   :  { %v10928_v32 = vpop.eup %10927 }
0x1af2   :  { %1994 = vrot.lane.b32.xlu0 %v10928_v32, %s11330_s8 }
0x1b64   :  { %v1995_v13 = vpop.permute.xlu0 %1994 }
0x1b65   :  { %v1997_v17 = vmul.f32 %v1995_v13, %v1992_v57 }
0x1b67   :  { %v12066_v20 = vadd.f32 %v1998_v14, %v1997_v17 }
0x1b69   :  { %2002 = vrot.lane.b32.xlu1 %v12066_v20, %s11330_s8 }
0x1bdb   :  { %v2003_v28 = vpop.permute.xlu1 %2002 }
0x1bdc   :  { %10245 = vmatmul.mubr.msk.f32.vlgmr.msra.gmra.mxu0 %vm609_vm3, %v2003_v28 }
0x1bdd   :  { %10259 = vmatpush3.msra.mxu0 %v11924_v0  ;;  %10266 = vmatprep.mubr.msk.f32.mxu0 %vm15825_vm11, %v11991_v61 }
0x1bde   :  { %10260 = vmatprep.subr.mxu0 %v11991_v61 }
0x1bdf   :  { %10261 = vmatpush3.msra.mxu0 %v11930_v33 }
0x1be0   :  { %10262 = vmatprep.subr.mxu0 %v11991_v61 }
0x1be1   :  { %10263 = vmatpush3.msra.mxu0 %v11936_v7 }
0x1be2   :  { %10264 = vmatprep.subr.mxu0 %v11991_v61 }
0x1be3   :  { %10265 = vmatpush3.msra.mxu0 %v11940_v63 }
0x1c9c   :  { %v2072_v31 = vpop.f32.mrf.mxu0 }
0x1c9d   :  { %v2073_v53 = vadd.f32 %v11962_v19, %v2072_v31 }
0x1c9e   :  { %v10246_v49 = vpop.f32.mrf.mxu0 }
0x1c9f   :  { %2084 = vrot.lane.b32.xlu0 %v2073_v53, %s11329_s28  ;;  %v2076_v38 = vadd.f32 %v2073_v53, %v11790_v25 }
0x1ca1   :  { %v9590_v23 = vmul.f32 -1.442695, %v2076_v38 }
0x1ca3   :  { %10929 = vpow2.f32 %v9590_v23 }
0x1cb0   :  { %v10930_v58 = vpop.eup %10929 }
0x1cb1   :  { %v2080_v51 = vadd.f32 1.0, %v10930_v58 }
0x1cb3   :  { %10931 = vrcp.f32 %v2080_v51 }
0x1cc0   :  { %v10932_v35 = vpop.eup %10931 }
0x1cc1   :  { %v2094_v56 = vsub.f32 1.0, %v10932_v35  ;;  %v2100_v32 = vmul.f32 %v10932_v35, %v12066_v20 }
0x1d11   :  { %v2085_v10 = vpop.permute.xlu0 %2084 }
0x1d12   :  { %v2087_v45 = vmul.f32 %v10932_v35, %v2085_v10 }
0x1d14   :  { %2089 = vrot.lane.b32.xlu1 %v2087_v45, %s11329_s28 }
0x1d86   :  { %v2090_v50 = vpop.permute.xlu1 %2089 }
0x1d87   :  { %v2092_v55 = vadd.f32 %v2090_v50, %v11790_v25 }
0x1d89   :  { %10933 = vtanh.f32 %v2092_v55 }
0x1d96   :  { %v10934_v6 = vpop.eup %10933 }
0x1d97   :  { %2096 = vrot.lane.b32.xlu0 %v10934_v6, %s11330_s8 }
0x1e09   :  { %v2097_v62 = vpop.permute.xlu0 %2096 }
0x1e0a   :  { %v2099_v57 = vmul.f32 %v2097_v62, %v2094_v56 }
0x1e0c   :  { %v12087_v13 = vadd.f32 %v2100_v32, %v2099_v57 }
0x1e0e   :  { %2104 = vrot.lane.b32.xlu1 %v12087_v13, %s11330_s8 }
0x1e80   :  { %v2105_v14 = vpop.permute.xlu1 %2104 }
0x1e81   :  { %10256 = vmatmul.mubr.msk.f32.vlgmr.msra.gmra.mxu1 %vm609_vm3, %v2105_v14 }
0x1e82   :  { %10270 = vmatpush3.msra.mxu1 %v11924_v0  ;;  %10277 = vmatprep.mubr.msk.f32.mxu1 %vm15825_vm11, %v11991_v61 }
0x1e83   :  { %10271 = vmatprep.subr.mxu1 %v11991_v61 }
0x1e84   :  { %10272 = vmatpush3.msra.mxu1 %v11930_v33 }
0x1e85   :  { %10273 = vmatprep.subr.mxu1 %v11991_v61 }
0x1e86   :  { %10274 = vmatpush3.msra.mxu1 %v11936_v7 }
0x1e87   :  { %10275 = vmatprep.subr.mxu1 %v11991_v61 }
0x1e88   :  { %10276 = vmatpush3.msra.mxu1 %v11940_v63 }
0x1e89   :  { %10308 = vmatprep.subr.mxu1 %v11991_v61 }
0x1f41   :  { %v2174_v25 = vpop.f32.mrf.mxu1 }
0x1f42   :  { %v2175_v0 = vadd.f32 %v11962_v19, %v2174_v25 }
0x1f43   :  { %v10257_v17 = vpop.f32.mrf.mxu1 }
0x1f44   :  { %2186 = vrot.lane.b32.xlu0 %v2175_v0, %s11329_s28  ;;  %v2178_v28 = vadd.f32 %v2175_v0, %v11784_v18 }
0x1f46   :  { %v9592_v31 = vmul.f32 -1.442695, %v2178_v28 }
0x1f48   :  { %10935 = vpow2.f32 %v9592_v31 }
0x1f55   :  { %v10936_v33 = vpop.eup %10935 }
0x1f56   :  { %v2182_v53 = vadd.f32 1.0, %v10936_v33 }
0x1f58   :  { %10937 = vrcp.f32 %v2182_v53  ;;  %v10988_v53 = vld [vmem:[%s15748_s9] ss:$0 sm:$0xff] }
0x1f65   :  { %v10938_v7 = vpop.eup %10937 }
0x1f66   :  { %v2196_v51 = vsub.f32 1.0, %v10938_v7  ;;  %v2202_v10 = vmul.f32 %v10938_v7, %v12087_v13 }
0x1fb6   :  { %v2187_v49 = vpop.permute.xlu0 %2186 }
0x1fb7   :  { %v2189_v38 = vmul.f32 %v10938_v7, %v2187_v49  ;;  %v1556_v7 = vadd.f32 %v10988_v53, %v12013_v16 }
0x1fb9   :  { %2191 = vrot.lane.b32.xlu1 %v2189_v38, %s11329_s28  ;;  %v1559_v49 = vadd.f32 %v1556_v7, %v11811_v54 }
0x1fbb   :  { %v9579_v38 = vmul.f32 -1.442695, %v1559_v49 }
0x202b   :  { %v2192_v63 = vpop.permute.xlu1 %2191 }
0x202c   :  { %v2194_v23 = vadd.f32 %v2192_v63, %v11784_v18 }
0x202e   :  { %10939 = vtanh.f32 %v2194_v23 }
0x203b   :  { %v10940_v58 = vpop.eup %10939 }
0x203c   :  { %2198 = vrot.lane.b32.xlu0 %v10940_v58, %s11330_s8 }
0x20ae   :  { %v2199_v35 = vpop.permute.xlu0 %2198 }
0x20af   :  { %v2201_v45 = vmul.f32 %v2199_v35, %v2196_v51 }
0x20b1   :  { %v12109_v50 = vadd.f32 %v2202_v10, %v2201_v45 }
0x20b3   :  { %2206 = vrot.lane.b32.xlu1 %v12109_v50, %s11330_s8 }
0x2125   :  { %v2207_v55 = vpop.permute.xlu1 %2206 }
0x2126   :  { %10267 = vmatmul.mubr.msk.f32.vlgmr.msra.gmra.mxu0 %vm609_vm3, %v2207_v55 }
0x21e6   :  { %v2276_v6 = vpop.f32.mrf.mxu0 }
0x21e7   :  { %v2277_v18 = vadd.f32 %v11962_v19, %v2276_v6 }
0x21e8   :  { %v10268_v56 = vpop.f32.mrf.mxu0 }
0x21e9   :  { %2288 = vrot.lane.b32.xlu0 %v2277_v18, %s11329_s28  ;;  %v2280_v62 = vadd.f32 %v2277_v18, %v11779_v12 }
0x21eb   :  { %v9594_v32 = vmul.f32 -1.442695, %v2280_v62 }
0x21ed   :  { %10941 = vpow2.f32 %v9594_v32 }
0x21fa   :  { %v10942_v57 = vpop.eup %10941 }
0x21fb   :  { %v2284_v14 = vadd.f32 1.0, %v10942_v57 }
0x21fd   :  { %10943 = vrcp.f32 %v2284_v14 }
0x220a   :  { %v10944_v25 = vpop.eup %10943 }
0x220b   :  { %v2304_v51 = vmul.f32 %v10944_v25, %v12109_v50 }
0x225b   :  { %v2289_v0 = vpop.permute.xlu0 %2288 }
0x225c   :  { %v2291_v17 = vmul.f32 %v10944_v25, %v2289_v0 }
0x225e   :  { %2293 = vrot.lane.b32.xlu1 %v2291_v17, %s11329_s28 }
0x22d0   :  { %v2294_v28 = vpop.permute.xlu1 %2293 }
0x22d1   :  { %v2296_v31 = vadd.f32 %v2294_v28, %v11779_v12  ;;  %v2298_v12 = vsub.f32 1.0, %v10944_v25 }
0x22d3   :  { %10945 = vtanh.f32 %v2296_v31 }
0x22d4   :  { %10947 = vpow2.f32 %v9579_v38 }
0x22e0   :  { %v10946_v33 = vpop.eup %10945 }
0x22e1   :  { %2300 = vrot.lane.b32.xlu0 %v10946_v33, %s11330_s8  ;;  %v10948_v63 = vpop.eup %10947 }
0x22e2   :  { %v1563_v23 = vadd.f32 1.0, %v10948_v63  ;;  %v3329_v63 = vld [vmem:[%s15751_s12 + $0x30] sm:$0xff] }
0x22e4   :  { %10949 = vrcp.f32 %v1563_v23  ;;  %v3328_v23 = vld [vmem:[%s15751_s12 + $0x28] sm:$0xff] }
0x22e5   :  { %1567 = vrot.lane.b32.xlu0 %v1556_v7, %s11329_s28 }
0x22f1   :  { %v10950_v45 = vpop.eup %10949 }
0x22f2   :  { %v1577_v32 = vsub.f32 1.0, %v10950_v45  ;;  %v1583_v14 = vmul.f32 %v10950_v45, %v11975_v60 }
0x2353   :  { %v2301_v58 = vpop.permute.xlu0 %2300 }
0x2354   :  { %v2303_v35 = vmul.f32 %v2301_v58, %v2298_v12  ;;  %v3327_v12 = vld [vmem:[%s15751_s12 + $0x20] sm:$0xff]  ;;  %v3326_v58 = vld [vmem:[%s15751_s12 + $0x18] sm:$0xff] }
0x2356   :  { %v12127_v10 = vadd.f32 %v2304_v51, %v2303_v35 }
0x2357   :  { %v1568_v55 = vpop.permute.xlu0 %1567 }
0x2358   :  { %v1570_v6 = vmul.f32 %v10950_v45, %v1568_v55  ;;  %2308 = vrot.lane.b32.xlu1 %v12127_v10, %s11330_s8  ;;  %v3325_v45 = vld [vmem:[%s15751_s12 + $0x10] sm:$0xff]  ;;  %v3185_v55 = vld [vmem:[%s15753_s14 + $0x38] sm:$0xff] }
0x2359   :  { %10280 = vmatprep.subr.mxu0 %v3185_v55 }
0x235a   :  { %1572 = vrot.lane.b32.xlu0 %v1570_v6, %s11329_s28  ;;  %v3324_v6 = vld [vmem:[%s15751_s12 + $0x8] sm:$0xff]  ;;  %10281 = vmatpush3.msra.mxu0 %v3185_v55 }
0x23ca   :  { %v2309_v16 = vpop.permute.xlu1 %2308 }
0x23cb   :  { %10278 = vmatmul.mubr.msk.f32.vlgmr.msra.gmra.mxu1 %vm609_vm3, %v2309_v16  ;;  %v3323_v16 = vld [vmem:[%s15751_s12] sm:$0xff] }
0x23cc   :  { %v1573_v18 = vpop.permute.xlu0 %1572  ;;  %10324 = vmatprep.mubr.msk.f32.mxu1 %vm15825_vm11, %v11991_v61 }
0x23cd   :  { %v1575_v56 = vadd.f32 %v1573_v18, %v11811_v54  ;;  %v3183_v18 = vld [vmem:[%s15753_s14 + $0x28] sm:$0xff] }
0x23cf   :  { %10951 = vtanh.f32 %v1575_v56  ;;  %v3182_v56 = vld [vmem:[%s15753_s14 + $0x20] sm:$0xff] }
0x23dc   :  { %v10952_v62 = vpop.eup %10951 }
0x23dd   :  { %1579 = vrot.lane.b32.xlu0 %v10952_v62, %s11330_s8  ;;  %v3181_v62 = vld [vmem:[%s15753_s14 + $0x18] sm:$0xff] }
0x244f   :  { %v1580_v57 = vpop.permute.xlu0 %1579 }
0x2450   :  { %v1582_v25 = vmul.f32 %v1580_v57, %v1577_v32  ;;  %v3180_v57 = vld [vmem:[%s15753_s14 + $0x10] sm:$0xff] }
0x2452   :  { %v1584_v0 = vadd.f32 %v1583_v14, %v1582_v25  ;;  %v3179_v14 = vld [vmem:[%s15753_s14 + $0x8] sm:$0xff]  ;;  %v3178_v25 = vld [vmem:[%s15753_s14] sm:$0xff] }
0x2454   :  { %2423 = vrot.lane.b32.xlu0 %v1584_v0, %s11330_s8  ;;  %v12206_v0 = vcvt.s32.f32 %v11616_v46 }
0x2456   :  { %15944 = vst [vmem:[#allocation37_spill] sm:$0xff] %v12206_v0 }
0x248b   :  { %v2378_v17 = vpop.f32.mrf.mxu1 }
0x248c   :  { %v2379_v28 = vadd.f32 %v11962_v19, %v2378_v17  ;;  %v3330_v19 = vld [vmem:[%s15751_s12 + $0x38] sm:$0xff]  ;;  %v11331_v17 = vmov 1966171168  }
0x248d   :  { %v10279_v31 = vpop.f32.mrf.mxu1  ;;  %10309 = vmatpush3.msra.mxu1 %v3330_v19 }
0x248e   :  { %2390 = vrot.lane.b32.xlu1 %v2379_v28, %s11329_s28  ;;  %v2382_v54 = vadd.f32 %v2379_v28, %v11776_v5  ;;  %10310 = vmatprep.subr.mxu1 %v11991_v61  ;;  %v2430_v28 = vunpack.c.l.s4 %v11331_v17 }
0x248f   :  { %10311 = vmatpush3.msra.mxu1 %v3329_v63 }
0x2490   :  { %v9596_v33 = vmul.f32 -1.442695, %v2382_v54  ;;  %10312 = vmatprep.subr.mxu1 %v11991_v61  ;;  %v2431_v31 = vunpack.c.0.s8 %v2430_v28  ;;  %v2421_v54 = vsel %vm609_vm3, %v11983_v1, %v12022_v48  ;;  %v2417_v48 = vsel %vm609_vm3, %v11900_v22, %v12066_v20 }
0x2491   :  { %10313 = vmatpush3.msra.mxu1 %v3328_v23  ;;  %v2636_v55 = vcombine.high %v2417_v48, %v2417_v48  ;;  %v2415_v20 = vsel %vm609_vm3, %v11877_v30, %v12087_v13 }
0x2492   :  { %10953 = vpow2.f32 %v9596_v33  ;;  %10314 = vmatprep.subr.mxu1 %v11991_v61  ;;  %v12212_v33 = vsub.s32 %v2431_v31, %v11507_v4  ;;  %v2586_v28 = vcombine.high %v2415_v20, %v2415_v20 }
0x2493   :  { %10315 = vmatpush3.msra.mxu1 %v3327_v12 }
0x2494   :  { %10316 = vmatprep.subr.mxu1 %v11991_v61 }
0x2495   :  { %10317 = vmatpush3.msra.mxu1 %v3326_v58 }
0x2496   :  { %10318 = vmatprep.subr.mxu1 %v11991_v61 }
0x2497   :  { %10319 = vmatpush3.msra.mxu1 %v3325_v45 }
0x2498   :  { %10320 = vmatprep.subr.mxu1 %v11991_v61 }
0x2499   :  { %10321 = vmatpush3.msra.mxu1 %v3324_v6 }
0x249a   :  { %10322 = vmatprep.subr.mxu1 %v11991_v61 }
0x249b   :  { %10323 = vmatpush3.msra.mxu1 %v3323_v16 }
0x249c   :  { %10327 = vmatprep.subr.mxu1 %v11991_v61 }
0x249f   :  { %v10954_v53 = vpop.eup %10953 }
0x24a0   :  { %v2386_v7 = vadd.f32 1.0, %v10954_v53  ;;  %v2736_v53 = vcombine.high %v2421_v54, %v2421_v54 }
0x24a2   :  { %10955 = vrcp.f32 %v2386_v7  ;;  %v2743_v7 = vrot.slane %v2421_v54, %v12212_v33 }
0x24a4   :  { %v2751_v63 = vcombine.high %v2743_v7, %v2743_v7  ;;  %v12221_v58 = vrot.slane %v2743_v7, %v12212_v33 }
0x24a6   :  { %v2781_v45 = vcombine.high %v12221_v58, %v12221_v58 }
0x24a8   :  { %v12263_v13 = vrot.slane %v2781_v45, %v11526_v9 }
0x24af   :  { %v12142_v49 = vpop.eup %10955 }
0x24b0   :  { %v2400_v40 = vsub.f32 1.0, %v12142_v49 }
0x24c6   :  { %v12324_v3 = vpop.permute.xlu0 %2423 }
0x2500   :  { %v2391_v60 = vpop.permute.xlu1 %2390 }
0x2501   :  { %v2393_v38 = vmul.f32 %v12142_v49, %v2391_v60  ;;  %v2419_v60 = vsel %vm609_vm3, %v11926_v2, %v12044_v24 }
0x2502   :  { %v2686_v19 = vcombine.high %v2419_v60, %v2419_v60  ;;  %v2693_v23 = vrot.slane %v2419_v60, %v12212_v33 }
0x2503   :  { %2395 = vrot.lane.b32.xlu1 %v2393_v38, %s11329_s28  ;;  %v2750_v38 = vrot.slane %v2736_v53, %v12212_v33 }
0x2504   :  { %v2700_v1 = vrot.slane %v2686_v19, %v12212_v33  ;;  %v2701_v2 = vcombine.high %v2693_v23, %v2693_v23  ;;  %v12240_v16 = vrot.slane %v2693_v23, %v12212_v33  ;;  %v2593_v19 = vrot.slane %v2415_v20, %v12212_v33 }
0x2505   :  { %v2752_v12 = vcombine.high %v2750_v38, %v2750_v38  ;;  %v12231_v24 = vrot.slane %v2750_v38, %v12212_v33 }
0x2506   :  { %v2702_v6 = vcombine.high %v2700_v1, %v2700_v1  ;;  %v12243_v22 = vrot.slane %v2701_v2, %v12212_v33  ;;  %v2731_v54 = vcombine.high %v12240_v16, %v12240_v16  ;;  %v2413_v2 = vsel %vm609_vm3, %v11856_v52, %v12109_v50 }
0x2507   :  { %v2601_v50 = vcombine.high %v2593_v19, %v2593_v19  ;;  %v12343_v30 = vrot.slane %v2593_v19, %v12212_v33 }
0x2508   :  { %v2733_v53 = vcombine.high %v12243_v22, %v12243_v22 }
0x2575   :  { %v2396_v51 = vpop.permute.xlu1 %2395 }
0x2576   :  { %v2398_v35 = vadd.f32 %v2396_v51, %v11776_v5  ;;  %v3184_v5 = vld [vmem:[%s15753_s14 + $0x30] sm:$0xff]  ;;  %v12228_v51 = vrot.slane %v2751_v63, %v12212_v33 }
0x2577   :  { %10282 = vmatprep.subr.mxu0 %v3184_v5 }
0x2578   :  { %10957 = vtanh.f32 %v2398_v35  ;;  %10283 = vmatpush3.msra.mxu0 %v3184_v5  ;;  %v12234_v35 = vrot.slane %v2752_v12, %v12212_v33  ;;  %v2643_v5 = vrot.slane %v2417_v48, %v12212_v33 }
0x2579   :  { %10284 = vmatprep.subr.mxu0 %v3183_v18 }
0x257a   :  { %10285 = vmatpush3.msra.mxu0 %v3183_v18  ;;  %15945 = vst [vmem:[#allocation38_spill] sm:$0xff] %v12234_v35  ;;  %v2783_v18 = vcombine.high %v12228_v51, %v12228_v51  ;;  %v2651_v17 = vcombine.high %v2643_v5, %v2643_v5  ;;  %v12291_v48 = vrot.slane %v2643_v5, %v12212_v33 }
0x257b   :  { %10286 = vmatprep.subr.mxu0 %v3182_v56  ;;  %v12308_v5 = vrot.slane %v2731_v54, %v11526_v9 }
0x257c   :  { %10287 = vmatpush3.msra.mxu0 %v3182_v56  ;;  %v12275_v7 = vrot.slane %v2783_v18, %v11526_v9  ;;  %v2681_v54 = vcombine.high %v12291_v48, %v12291_v48  ;;  %v12346_v56 = vrot.slane %v2601_v50, %v12212_v33 }
0x257d   :  { %10288 = vmatprep.subr.mxu0 %v3181_v62 }
0x257e   :  { %10289 = vmatpush3.msra.mxu0 %v3181_v62  ;;  %v2784_v62 = vcombine.high %v12234_v35, %v12234_v35  ;;  %v12355_v47 = vrot.slane %v2681_v54, %v11526_v9  ;;  %v2631_v54 = vcombine.high %v12343_v30, %v12343_v30  ;;  %v2406_v35 = vmul.f32 %v12142_v49, %v12127_v10 }
0x257f   :  { %10290 = vmatprep.subr.mxu0 %v3180_v57 }
0x2580   :  { %10291 = vmatpush3.msra.mxu0 %v3180_v57  ;;  %v12257_v57 = vrot.slane %v2700_v1, %v12212_v33  ;;  %v12283_v63 = vrot.slane %v2784_v62, %v11526_v9  ;;  %v12311_v62 = vrot.slane %v2733_v53, %v11526_v9  ;;  %v12401_v37 = vrot.slane %v2631_v54, %v11526_v9 }
0x2581   :  { %10292 = vmatprep.subr.mxu0 %v3179_v14 }
0x2582   :  { %10293 = vmatpush3.msra.mxu0 %v3179_v14  ;;  %v2650_v14 = vrot.slane %v2636_v55, %v12212_v33  ;;  %v2732_v12 = vcombine.high %v12257_v57, %v12257_v57  ;;  %v12300_v55 = vrot.slane %v2651_v17, %v12212_v33  ;;  %v2411_v17 = vsel %vm609_vm3, %v11835_v59, %v12127_v10 }
0x2583   :  { %10294 = vmatprep.subr.mxu0 %v3178_v25  ;;  %v2486_v60 = vcombine.high %v2411_v17, %v2411_v17 }
0x2584   :  { %10295 = vmatpush3.msra.mxu0 %v3178_v25  ;;  %v12266_v25 = vrot.slane %v2702_v6, %v12212_v33  ;;  %v2652_v1 = vcombine.high %v2650_v14, %v2650_v14  ;;  %v12297_v45 = vrot.slane %v2650_v14, %v12212_v33  ;;  %v2600_v6 = vrot.slane %v2586_v28, %v12212_v33 }
0x2585   :  { %v10958_v32 = vpop.eup %10957  ;;  %10338 = vmatprep.subr.mxu0 %v11991_v61  ;;  %v2543_v14 = vrot.slane %v2413_v2, %v12212_v33  ;;  %v12327_v53 = vrot.slane %v2732_v12, %v11526_v9  ;;  %v2683_v59 = vcombine.high %v12300_v55, %v12300_v55  ;;  %v2500_v44 = vrot.slane %v2486_v60, %v12212_v33 }
0x2586   :  { %2402 = vrot.lane.b32.xlu1 %v10958_v32, %s11330_s8  ;;  %v2782_v32 = vcombine.high %v12231_v24, %v12231_v24  ;;  %15946 = vst [vmem:[#allocation39_spill] sm:$0xff] %v12266_v25  ;;  %v2734_v20 = vcombine.high %v12266_v25, %v12266_v25  ;;  %v12320_v28 = vrot.slane %v2652_v1, %v12212_v33 }
0x2587   :  { %15949 = vst [vmem:[#allocation42_spill] sm:$0xff] %v12327_v53  ;;  %v2602_v31 = vcombine.high %v2600_v6, %v2600_v6  ;;  %v2551_v38 = vcombine.high %v2543_v14, %v2543_v14  ;;  %v12360_v12 = vrot.slane %v2600_v6, %v12212_v33  ;;  %v12367_v43 = vrot.slane %v2683_v59, %v11526_v9 }
0x2588   :  { %v12286_v23 = vrot.slane %v2782_v32, %v11526_v9  ;;  %v2536_v32 = vcombine.high %v2413_v2, %v2413_v2  ;;  %15948 = vst [vmem:[#allocation41_spill] sm:$0xff] %v12320_v28  ;;  %v2682_v2 = vcombine.high %v12297_v45, %v12297_v45  ;;  %v12336_v1 = vrot.slane %v2734_v20, %v11526_v9 }
0x2589   :  { %v2426_v20 = vsel %vm609_vm3, %v12324_v3, %v11979_v26  ;;  %v2684_v52 = vcombine.high %v12320_v28, %v12320_v28  ;;  %v12363_v50 = vrot.slane %v2602_v31, %v12212_v33  ;;  %v2633_v31 = vcombine.high %v12346_v56, %v12346_v56 }
0x258a   :  { %15947 = vst [vmem:[#allocation40_spill] sm:$0xff] %v12286_v23  ;;  %v2550_v18 = vrot.slane %v2536_v32, %v12212_v33  ;;  %v2493_v32 = vrot.slane %v2411_v17, %v12212_v33  ;;  %v12370_v26 = vrot.slane %v2682_v2, %v11526_v9  ;;  %v2786_v19 = vcombine.high %v2426_v20, %v2426_v20 }
0x258b   :  { %15950 = vst [vmem:[#allocation43_spill] sm:$0xff] %v12363_v50  ;;  %v12380_v17 = vrot.slane %v2543_v14, %v12212_v33  ;;  %v12383_v59 = vrot.slane %v2551_v38, %v12212_v33  ;;  %v2632_v2 = vcombine.high %v12360_v12, %v12360_v12  ;;  %v2793_v42 = vrot.slane %v2426_v20, %v12212_v33 }
0x258c   :  { %v2552_v41 = vcombine.high %v2550_v18, %v2550_v18  ;;  %v12391_v6 = vrot.slane %v2684_v52, %v11526_v9  ;;  %v2634_v0 = vcombine.high %v12363_v50, %v12363_v50  ;;  %v12398_v38 = vrot.slane %v2550_v18, %v12212_v33 }
0x258d   :  { %v2501_v39 = vcombine.high %v2493_v32, %v2493_v32  ;;  %v2502_v20 = vcombine.high %v2500_v44, %v2500_v44  ;;  %v2800_v52 = vrot.slane %v2786_v19, %v12212_v33  ;;  %v12407_v34 = vrot.slane %v2633_v31, %v11526_v9 }
0x258e   :  { %v12410_v29 = vrot.slane %v2552_v41, %v12212_v33  ;;  %v2581_v18 = vcombine.high %v12380_v17, %v12380_v17  ;;  %v2583_v14 = vcombine.high %v12383_v59, %v12383_v59  ;;  %v12419_v60 = vrot.slane %v2632_v2, %v11526_v9 }
0x258f   :  { %v12422_v19 = vrot.slane %v2493_v32, %v12212_v33  ;;  %v2801_v31 = vcombine.high %v2793_v42, %v2793_v42  ;;  %v2582_v41 = vcombine.high %v12398_v38, %v12398_v38  ;;  %v12427_v27 = vrot.slane %v2500_v44, %v12212_v33 }
0x2590   :  { %v12430_v21 = vrot.slane %v2501_v39, %v12212_v33  ;;  %v12433_v15 = vrot.slane %v2634_v0, %v11526_v9  ;;  %v12440_v54 = vrot.slane %v2502_v20, %v12212_v33  ;;  %v2802_v8 = vcombine.high %v2800_v52, %v2800_v52 }
0x2591   :  { %v2584_v44 = vcombine.high %v12410_v29, %v12410_v29  ;;  %v12445_v36 = vrot.slane %v2581_v18, %v11526_v9  ;;  %v12448_v39 = vrot.slane %v2583_v14, %v11526_v9  ;;  %v2531_v2 = vcombine.high %v12422_v19, %v12422_v19 }
0x2592   :  { %v12455_v32 = vrot.slane %v2793_v42, %v12212_v33  ;;  %v12458_v20 = vrot.slane %v2801_v31, %v12212_v33  ;;  %v12464_v14 = vrot.slane %v2582_v41, %v11526_v9  ;;  %v2532_v0 = vcombine.high %v12427_v27, %v12427_v27 }
0x2593   :  { %v2533_v4 = vcombine.high %v12430_v21, %v12430_v21  ;;  %v2534_v42 = vcombine.high %v12440_v54, %v12440_v54  ;;  %v12473_v31 = vrot.slane %v2802_v8, %v12212_v33  ;;  %v12478_v41 = vrot.slane %v2584_v44, %v11526_v9 }
0x2594   :  { %v2838_v25 = vrot.slane %v12422_v19, %v11526_v9  ;;  %v2842_v28 = vrot.slane %v12430_v21, %v11526_v9  ;;  %v12485_v23 = vrot.slane %v2800_v52, %v12212_v33  ;;  %v2846_v50 = vrot.slane %v2531_v2, %v11526_v9 }
0x2595   :  { %15951 = vst [vmem:[#allocation44_spill] sm:$0xff] %v12473_v31  ;;  %v2831_v8 = vcombine.high %v12455_v32, %v12455_v32  ;;  %v2850_v10 = vrot.slane %v2533_v4, %v11526_v9  ;;  %v2854_v49 = vrot.slane %v12427_v27, %v11526_v9  ;;  %v12498_v52 = vrot.slane %v2532_v0, %v11526_v9 }
0x2596   :  { %v2866_v19 = vrot.slane %v2534_v42, %v11526_v9  ;;  %v2834_v4 = vcombine.high %v12473_v31, %v12473_v31 }
0x2597   :  { %v3086_v42 = vrot.slane %v2831_v8, %v11526_v9 }
0x25f8   :  { %v2403_v46 = vpop.permute.xlu1 %2402 }
0x25f9   :  { %v2405_v18 = vmul.f32 %v2403_v46, %v2400_v40  ;;  %v2833_v46 = vcombine.high %v12458_v20, %v12458_v20 }
0x25fb   :  { %v2407_v40 = vadd.f32 %v2406_v35, %v2405_v18  ;;  %v3078_v35 = vrot.slane %v12455_v32, %v11526_v9 }
0x25fd   :  { %v2409_v2 = vsel %vm609_vm3, %v11815_v11, %v2407_v40  ;;  %v3322_v44 = vsel %vm609_vm3, %v12324_v3, %v2407_v40  ;;  %v3082_v11 = vrot.slane %v12458_v20, %v11526_v9  ;;  %v3090_v3 = vrot.slane %v2833_v46, %v11526_v9 }
0x25fe   :  { %v2428_v18 = vcombine.high %v2409_v2, %v2409_v2  ;;  %v2435_v0 = vrot.slane %v2409_v2, %v12212_v33  ;;  %10325 = vmatmul.mubr.msk.f32.vlgmr.msra.gmra.mxu1 %vm15832_vm0, %v3322_v44  ;;  %v12524_v20 = vrot.slane %v2834_v4, %v11526_v9 }
0x25ff   :  { %10335 = vmatprep.mubr.msk.f32.mxu1 %vm15825_vm11, %v11991_v61 }
0x2600   :  { %v2442_v32 = vrot.slane %v2428_v18, %v12212_v33  ;;  %v2443_v27 = vcombine.high %v2435_v0, %v2435_v0  ;;  %v2451_v2 = vrot.slane %v2435_v0, %v12212_v33  ;;  %15952 = vst [vmem:[#allocation45_spill] sm:$0xff] %v12524_v20 }
0x2602   :  { %v2444_v8 = vcombine.high %v2442_v32, %v2442_v32  ;;  %v2458_v46 = vrot.slane %v2442_v32, %v12212_v33  ;;  %v2465_v44 = vrot.slane %v2443_v27, %v12212_v33  ;;  %v2473_v40 = vcombine.high %v2451_v2, %v2451_v2 }
0x2603   :  { %v3116_v61 = vsel %vm3115_vm4, %v2451_v2, %v2838_v25  ;;  %v15953_v32 = vrot.slane %v12380_v17, %v11526_v9  ;;  %v15954_v25 = vrot.slane %v12383_v59, %v11526_v9 }
0x2604   :  { %v2472_v18 = vrot.slane %v2444_v8, %v12212_v33  ;;  %v2474_v0 = vcombine.high %v2458_v46, %v2458_v46  ;;  %v2475_v21 = vcombine.high %v2465_v44, %v2465_v44  ;;  %v3117_v31 = vsel %vm3115_vm4, %v2465_v44, %v2842_v28 }
0x2605   :  { %v3118_v4 = vsel %vm3115_vm4, %v2473_v40, %v2846_v50  ;;  %v3120_v20 = vsel %vm3115_vm4, %v2458_v46, %v2854_v49  ;;  %v3125_v27 = vsel %vm3124_vm5, %v3116_v61, %v15953_v32  ;;  %v3126_v2 = vsel %vm3124_vm5, %v3117_v31, %v15954_v25 }
0x2606   :  { %v2476_v53 = vcombine.high %v2472_v18, %v2472_v18  ;;  %v15955_v8 = vrot.slane %v12343_v30, %v11526_v9  ;;  %v15956_v50 = vrot.slane %v12346_v56, %v11526_v9  ;;  %v3127_v17 = vsel %vm3124_vm5, %v3118_v4, %v12445_v36 }
0x2607   :  { %v15957_v40 = vrot.slane %v12291_v48, %v11526_v9  ;;  %v15958_v31 = vrot.slane %v12300_v55, %v11526_v9  ;;  %v3136_v46 = vsel %vm3133_vm6, %v3127_v17, %v12401_v37  ;;  %v3119_v56 = vsel %vm3115_vm4, %v2475_v21, %v2850_v10 }
0x2608   :  { %v3134_v28 = vsel %vm3133_vm6, %v3125_v27, %v15955_v8  ;;  %v3135_v49 = vsel %vm3133_vm6, %v3126_v2, %v15956_v50  ;;  %v15959_v44 = vrot.slane %v12240_v16, %v11526_v9  ;;  %v15960_v48 = vrot.slane %v12243_v22, %v11526_v9  ;;  %v15972_v8 = vld [vmem:[#allocation43_spill] sm:$0xff]  ;;  %v15974_v50 = vld [vmem:[#allocation45_spill] sm:$0xff] }
0x2609   :  { %v3143_v59 = vsel %vm3142_vm7, %v3134_v28, %v15957_v40  ;;  %v3144_v30 = vsel %vm3142_vm7, %v3135_v49, %v15958_v31  ;;  %v3145_v55 = vsel %vm3142_vm7, %v3136_v46, %v12355_v47  ;;  %v3128_v4 = vsel %vm3124_vm5, %v3119_v56, %v12448_v39  ;;  %v15976_v40 = vld [vmem:[#allocation40_spill] sm:$0xff]  ;;  %v15977_v31 = vld [vmem:[#allocation41_spill] sm:$0xff] }
0x260a   :  { %v3152_v36 = vsel %vm3151_vm8, %v3143_v59, %v15959_v44  ;;  %v3153_v61 = vsel %vm3151_vm8, %v3144_v30, %v15960_v48  ;;  %v15961_v37 = vrot.slane %v12221_v58, %v11526_v9  ;;  %v15962_v16 = vrot.slane %v12228_v51, %v11526_v9  ;;  %v15979_v56 = vld [vmem:[#allocation44_spill] sm:$0xff] }
0x260b   :  { %v3154_v22 = vsel %vm3151_vm8, %v3145_v55, %v12308_v5  ;;  %v3137_v32 = vsel %vm3133_vm6, %v3128_v4, %v12407_v34  ;;  %v15969_v2 = vrot.slane %v12410_v29, %v11526_v9  ;;  %v15973_v29 = vrot.slane %v15972_v8, %v11526_v9  ;;  %v15982_v4 = vld [vmem:[#allocation38_spill] sm:$0xff] }
0x260c   :  { %v3161_v10 = vsel %vm3160_vm9, %v3152_v36, %v15961_v37  ;;  %v3162_v21 = vsel %vm3160_vm9, %v3153_v61, %v15962_v16  ;;  %v3163_v58 = vsel %vm3160_vm9, %v3154_v22, %v12263_v13  ;;  %v3146_v51 = vsel %vm3142_vm7, %v3137_v32, %v12367_v43  ;;  %v15980_v36 = vld [vmem:[#allocation39_spill] sm:$0xff]  ;;  %v3414_v22 = vld [vmem:[#allocation9 + $0x10] sm:$0xff]  ;;  %v3413_v32 = vld [vmem:[#allocation9 + $0x8] sm:$0xff] }
0x260d   :  { %v12587_v47 = vsel %vm3169_vm10, %v3161_v10, %v3078_v35  ;;  %v12590_v39 = vsel %vm3169_vm10, %v3162_v21, %v3082_v11  ;;  %v12599_v5 = vsel %vm3169_vm10, %v3163_v58, %v3086_v42  ;;  %v3155_v34 = vsel %vm3151_vm8, %v3146_v51, %v12311_v62  ;;  %v3415_v21 = vld [vmem:[#allocation9 + $0x18] sm:$0xff]  ;;  %v3412_v58 = vld [vmem:[#allocation9] sm:$0xff] }
0x260e   :  { %10296 = vmatprep.mubr.msk.f32.mxu0 %vm15832_vm0, %v12587_v47  ;;  %v3123_v35 = vsel %vm3115_vm4, %v2476_v53, %v2866_v19  ;;  %v15963_v11 = vrot.slane %v12398_v38, %v11526_v9  ;;  %v3164_v43 = vsel %vm3160_vm9, %v3155_v34, %v12275_v7  ;;  %v15964_v42 = vrot.slane %v12360_v12, %v11526_v9  ;;  %v9606_v51 = vld [vmem:[%s15752_s13] ss:$0 sm:$0xff] }
0x260f   :  { %10297 = vmatmul.mubr.msk.f32.vlgmr.msra.gmra.mxu0 %vm15832_vm0, %v12590_v39  ;;  %v3132_v13 = vsel %vm3124_vm5, %v3123_v35, %v12478_v41  ;;  %v3122_v53 = vsel %vm3115_vm4, %v2474_v0, %v12498_v52  ;;  %v12623_v38 = vsel %vm3169_vm10, %v3164_v43, %v3090_v3  ;;  %v15965_v41 = vrot.slane %v12297_v45, %v11526_v9 }
0x2610   :  { %v3129_v27 = vsel %vm3124_vm5, %v3120_v20, %v15963_v11  ;;  %10299 = vmatprep.mubr.msk.f32.mxu0 %vm15832_vm0, %v12599_v5  ;;  %v3141_v7 = vsel %vm3133_vm6, %v3132_v13, %v12433_v15  ;;  %v3131_v12 = vsel %vm3124_vm5, %v3122_v53, %v12464_v14  ;;  %v15966_v20 = vrot.slane %v12257_v57, %v11526_v9 }
0x2611   :  { %v3138_v62 = vsel %vm3133_vm6, %v3129_v27, %v15964_v42  ;;  %v3150_v52 = vsel %vm3142_vm7, %v3141_v7, %v12391_v6  ;;  %v3140_v0 = vsel %vm3133_vm6, %v3131_v12, %v12419_v60  ;;  %v15967_v15 = vrot.slane %v12440_v54, %v11526_v9  ;;  %10328 = vmatpush3.msra.mxu1 %v3415_v21 }
0x2612   :  { %v3147_v19 = vsel %vm3142_vm7, %v3138_v62, %v15965_v41  ;;  %v3159_v25 = vsel %vm3151_vm8, %v3150_v52, %v12336_v1  ;;  %v15968_v14 = vrot.slane %v12231_v24, %v11526_v9  ;;  %v3149_v57 = vsel %vm3142_vm7, %v3140_v0, %v12370_v26  ;;  %v9597_v52 = vld [vmem:[%s15754_s15] ss:$0 sm:$0xff] }
0x2613   :  { %v3156_v3 = vsel %vm3151_vm8, %v3147_v19, %v15966_v20  ;;  %v3121_v45 = vsel %vm3115_vm4, %v2472_v18, %v15967_v15  ;;  %10300 = vmatmul.mubr.msk.f32.gmra.mxu0 %vm15832_vm0, %v12623_v38  ;;  %v3168_v54 = vsel %vm3160_vm9, %v3159_v25, %v12283_v63  ;;  %v15970_v1 = vrot.slane %v12485_v23, %v11526_v9  ;;  %v15971_v18 = vld [vmem:[#allocation42_spill] sm:$0xff] }
0x2614   :  { %v3165_v6 = vsel %vm3160_vm9, %v3156_v3, %v15968_v14  ;;  %v3130_v60 = vsel %vm3124_vm5, %v3121_v45, %v15969_v2  ;;  %v3158_v26 = vsel %vm3151_vm8, %v3149_v57, %v15971_v18  ;;  %v12675_v49 = vsel %vm3169_vm10, %v3168_v54, %v15974_v50 }
0x2615   :  { %v12665_v24 = vsel %vm3169_vm10, %v3165_v6, %v15970_v1  ;;  %v3139_v28 = vsel %vm3133_vm6, %v3130_v60, %v15973_v29  ;;  %v15975_v63 = vcombine.high %v12485_v23, %v12485_v23  ;;  %v3167_v59 = vsel %vm3160_vm9, %v3158_v26, %v15976_v40  ;;  %10339 = vmatpush3.msra.mxu0 %v12675_v49  ;;  %v12699_v23 = vld [vmem:[%s15762_s23] sm:$0xff] }
0x2616   :  { %10302 = vmatprep.mubr.msk.f32.mxu0 %vm15832_vm0, %v12665_v24  ;;  %v15978_v30 = vrot.slane %v15977_v31, %v11526_v9  ;;  %v3098_v44 = vrot.slane %v15979_v56, %v11526_v9  ;;  %v15981_v48 = vrot.slane %v15980_v36, %v11526_v9  ;;  %10340 = vmatprep.subr.mxu0 %v12699_v23  ;;  %vm3748_vm4 = vcmask 1047559  }
0x2617   :  { %v3102_v17 = vrot.slane %v15975_v63, %v11526_v9  ;;  %v15983_v37 = vrot.slane %v15982_v4, %v11526_v9  ;;  %10329 = vmatprep.subr.mxu1 %v12699_v23  ;;  %vm4038_vm5 = vcmask 64512   ;;  %vm15833_vm6 = vcmask 130048  }
0x2618   :  { %v3148_v46 = vsel %vm3142_vm7, %v3139_v28, %v15978_v30  ;;  %10330 = vmatpush3.msra.mxu1 %v3414_v22 }
0x2619   :  { %v3157_v61 = vsel %vm3151_vm8, %v3148_v46, %v15981_v48  ;;  %v12703_v55 = vsel %vm3169_vm10, %v3167_v59, %v3102_v17  ;;  %10331 = vmatprep.subr.mxu1 %v12699_v23 }
0x261a   :  { %v3166_v10 = vsel %vm3160_vm9, %v3157_v61, %v15983_v37  ;;  %10341 = vmatpush3.msra.mxu0 %v12703_v55  ;;  %10332 = vmatpush3.msra.mxu1 %v3413_v32  ;;  %vm4042_vm9 = vcmask 195584  }
0x261b   :  { %v12711_v16 = vsel %vm3169_vm10, %v3166_v10, %v3098_v44  ;;  %10342 = vmatprep.subr.mxu0 %v12699_v23  ;;  %10333 = vmatprep.subr.mxu1 %v12699_v23  ;;  %vm4045_vm10 = vcmask 326656  }
0x261c   :  { %10303 = vmatmul.mubr.msk.f32.gmra.mxu0 %vm15832_vm0, %v12711_v16  ;;  %10334 = vmatpush3.msra.mxu1 %v3412_v58 }
0x261d   :  { %10343 = vmatpush3.msra.mxu0 %v12711_v16  ;;  %10305 = vmatprep.mubr.msk.f32.mxu0 %vm15832_vm0, %v12703_v55 }
0x261e   :  { %10344 = vmatprep.subr.mxu0 %v12699_v23 }
0x261f   :  { %10345 = vmatpush3.msra.mxu0 %v12665_v24 }
0x2620   :  { %10346 = vmatprep.subr.mxu0 %v12699_v23  ;;  %10306 = vmatmul.mubr.msk.f32.gmra.mxu0 %vm15832_vm0, %v12675_v49 }
0x2621   :  { %10347 = vmatpush3.msra.mxu0 %v12623_v38  ;;  %10354 = vmatprep.mubr.msk.f32.mxu0 %vm15825_vm11, %v12699_v23  ;;  %vm15875_vm11 = vcmask 392192  }
0x2622   :  { %10348 = vmatprep.subr.mxu0 %v12699_v23 }
0x2623   :  { %10349 = vmatpush3.msra.mxu0 %v12599_v5 }
0x2624   :  { %10350 = vmatprep.subr.mxu0 %v12699_v23 }
0x2625   :  { %10351 = vmatpush3.msra.mxu0 %v12590_v39 }
0x2626   :  { %10352 = vmatprep.subr.mxu0 %v12699_v23 }
0x2627   :  { %10353 = vmatpush3.msra.mxu0 %v12587_v47 }
0x2628   :  { %10357 = vmatprep.subr.mxu0 %v12699_v23 }
0x26be   :  { %v3407_v34 = vpop.f32.mrf.mxu1 }
0x26bf   :  { %v3408_v35 = vadd.f32 %v9606_v51, %v3407_v34  ;;  %v12789_v51 = vld [vmem:[%s15756_s17] ss:$0 sm:$0xff] }
0x26c0   :  { %v10326_v11 = vpop.f32.mrf.mxu1  ;;  %15992 = vst [vmem:[#allocation46_spill] sm:$0xff] %v12789_v51 }
0x26c1   :  { %10959 = vtanh.f32 %v3408_v35 }
0x26ce   :  { %v12740_v27 = vpop.eup %10959 }
0x26cf   :  { %10336 = vmatmul.mubr.msk.f32.vlgmr.msra.gmra.mxu1 %vm609_vm3, %v12740_v27  ;;  %v10298_v43 = vpop.f32.mrf.mxu0 }
0x26d0   :  { %4210 = vmatprep.mubr.f32.mxu1 %v12699_v23  ;;  %v12753_v57 = vadd.f32 %v10298_v43, %v9597_v52 }
0x26d1   :  { %v3283_v13 = vpop.f32.mrf.mxu0 }
0x26d2   :  { %15984 = vst [vmem:[#allocation42_spill] sm:$0xff] %v12753_v57  ;;  %v12755_v2 = vadd.f32 %v9597_v52, %v3283_v13 }
0x26d3   :  { %v10301_v42 = vpop.f32.mrf.mxu0 }
0x26d4   :  { %15985 = vst [vmem:[#allocation43_spill] sm:$0xff] %v12755_v2  ;;  %v12757_v60 = vadd.f32 %v10301_v42, %v9597_v52 }
0x26d5   :  { %v3293_v62 = vpop.f32.mrf.mxu0 }
0x26d6   :  { %15986 = vst [vmem:[#allocation45_spill] sm:$0xff] %v12757_v60  ;;  %v12760_v1 = vadd.f32 %v9597_v52, %v3293_v62 }
0x26d8   :  { %15987 = vst [vmem:[#allocation40_spill] sm:$0xff] %v12760_v1 }
0x26dc   :  { %v10304_v53 = vpop.f32.mrf.mxu0 }
0x26dd   :  { %v12771_v46 = vadd.f32 %v10304_v53, %v9597_v52 }
0x26de   :  { %v3303_v20 = vpop.f32.mrf.mxu0 }
0x26df   :  { %v12767_v40 = vadd.f32 %v9597_v52, %v3303_v20  ;;  %15989 = vst [vmem:[#allocation44_spill] sm:$0xff] %v12771_v46 }
0x26e0   :  { %v10307_v18 = vpop.f32.mrf.mxu0 }
0x26e1   :  { %15988 = vst [vmem:[#allocation41_spill] sm:$0xff] %v12767_v40  ;;  %v12778_v37 = vadd.f32 %v10307_v18, %v9597_v52 }
0x26e2   :  { %v3313_v36 = vpop.f32.mrf.mxu0 }
0x26e3   :  { %15990 = vst [vmem:[#allocation39_spill] sm:$0xff] %v12778_v37  ;;  %v12782_v22 = vadd.f32 %v9597_v52, %v3313_v36 }
0x26e5   :  { %15991 = vst [vmem:[#allocation38_spill] sm:$0xff] %v12782_v22 }
0x278f   :  { %v3485_v7 = vpop.f32.mrf.mxu1 }
0x2790   :  { %v3559_v41 = vcombine.high %v3485_v7, %v3485_v7  ;;  %v3566_v19 = vrot.slane %v3485_v7, %v12212_v33 }
0x2791   :  { %v10337_v12 = vpop.f32.mrf.mxu1 }
0x2792   :  { %v3573_v3 = vrot.slane %v3559_v41, %v12212_v33  ;;  %v3574_v0 = vcombine.high %v3566_v19, %v3566_v19  ;;  %v3582_v15 = vrot.slane %v3566_v19, %v12212_v33 }
0x2794   :  { %v3575_v45 = vcombine.high %v3573_v3, %v3573_v3  ;;  %v3589_v25 = vrot.slane %v3573_v3, %v12212_v33  ;;  %v3596_v14 = vrot.slane %v3574_v0, %v12212_v33  ;;  %v3604_v6 = vcombine.high %v3582_v15, %v3582_v15 }
0x2795   :  { %v3611_v54 = vrot.slane %v3582_v15, %v11526_v9 }
0x2796   :  { %v3603_v26 = vrot.slane %v3575_v45, %v12212_v33  ;;  %v3606_v8 = vcombine.high %v3596_v14, %v3596_v14  ;;  %v3615_v29 = vrot.slane %v3596_v14, %v11526_v9  ;;  %v3605_v28 = vcombine.high %v3589_v25, %v3589_v25 }
0x2797   :  { %v3619_v50 = vrot.slane %v3604_v6, %v11526_v9  ;;  %v3627_v63 = vrot.slane %v3589_v25, %v11526_v9  ;;  %v3648_v17 = vadd.f32 %v3611_v54, %v12755_v2 }
0x2798   :  { %v3607_v59 = vcombine.high %v3603_v26, %v3603_v26  ;;  %v3623_v31 = vrot.slane %v3606_v8, %v11526_v9  ;;  %v3631_v30 = vrot.slane %v3603_v26, %v11526_v9  ;;  %v3649_v56 = vadd.f32 %v3615_v29, %v12753_v57  ;;  %v15993_v8 = vld [vmem:[#allocation29_spill] sm:$0xff] }
0x2799   :  { %v3650_v44 = vadd.f32 %v3619_v50, %v12760_v1  ;;  %10961 = vtanh.f32 %v3648_v17  ;;  %v3652_v4 = vadd.f32 %v3627_v63, %v12767_v40  ;;  %v3635_v10 = vrot.slane %v3605_v28, %v11526_v9 }
0x279a   :  { %v3639_v48 = vrot.slane %v3607_v59, %v11526_v9  ;;  %v3651_v61 = vadd.f32 %v3623_v31, %v12757_v60  ;;  %v3653_v21 = vadd.f32 %v3631_v30, %v12771_v46  ;;  %10963 = vtanh.f32 %v3649_v56  ;;  %v15994_v30 = vld [vmem:[#allocation20_spill] sm:$0xff] }
0x279b   :  { %10965 = vtanh.f32 %v3650_v44  ;;  %v3654_v58 = vadd.f32 %v3635_v10, %v12782_v22  ;;  %v3751_v29 = vadd.s32 4294967288, %v15993_v8  ;;  %v3792_v28 = vadd.s32 4294967280, %v15993_v8 }
0x279c   :  { %v3655_v32 = vadd.f32 %v3639_v48, %v12778_v37  ;;  %10967 = vtanh.f32 %v3651_v61  ;;  %v3833_v50 = vadd.s32 4294967272, %v15993_v8  ;;  %v3874_v63 = vadd.s32 4294967264, %v15993_v8 }
0x279d   :  { %10969 = vtanh.f32 %v3652_v4  ;;  %v3915_v17 = vadd.s32 4294967256, %v15993_v8  ;;  %v3956_v59 = vadd.s32 4294967248, %v15993_v8  ;;  %v3997_v31 = vadd.s32 4294967240, %v15993_v8 }
0x279e   :  { %10971 = vtanh.f32 %v3653_v21  ;;  %v12815_v56 = vadd.s32 1, %v15994_v30  ;;  %v12819_v44 = vsub.s32 %v15993_v8, %v15994_v30  ;;  %v12822_v36 = vsub.s32 %v3751_v29, %v15994_v30 }
0x279f   :  { %10973 = vtanh.f32 %v3655_v32  ;;  %v12825_v48 = vsub.s32 %v3792_v28, %v15994_v30  ;;  %v12828_v61 = vsub.s32 %v3833_v50, %v15994_v30  ;;  %v12831_v4 = vsub.s32 %v3874_v63, %v15994_v30 }
0x27a0   :  { %10975 = vtanh.f32 %v3654_v58  ;;  %15995 = vst [vmem:[#allocation29_spill] sm:$0xff] %v12819_v44  ;;  %15996 = vst [vmem:[#allocation20_spill] sm:$0xff] %v12822_v36  ;;  %v12834_v10 = vsub.s32 %v3915_v17, %v15994_v30  ;;  %v12837_v21 = vsub.s32 %v3956_v59, %v15994_v30  ;;  %v12840_v32 = vsub.s32 %v3997_v31, %v15994_v30 }
0x27a1   :  { %15997 = vst [vmem:[#allocation47_spill] sm:$0xff] %v12825_v48  ;;  %15998 = vst [vmem:[#allocation48_spill] sm:$0xff] %v12828_v61  ;;  %v16002_v57 = vmul.u32 8, %v15994_v30 }
0x27a2   :  { %15999 = vst [vmem:[#allocation49_spill] sm:$0xff] %v12834_v10  ;;  %16000 = vst [vmem:[#allocation50_spill] sm:$0xff] %v12837_v21 }
0x27a3   :  { %16001 = vst [vmem:[#allocation51_spill] sm:$0xff] %v12840_v32  ;;  %vm12983_vm7 = vcmp.ge.s32.totalorder %v15993_v8, %v16002_v57 }
0x27a6   :  { %v10962_v34 = vpop.eup %10961 }
0x27a7   :  { %v3664_v35 = vmul.f32 %v10962_v34, %v12789_v51  ;;  %v10964_v11 = vpop.eup %10963 }
0x27a8   :  { %v10966_v43 = vpop.eup %10965  ;;  %v3665_v42 = vmul.f32 %v10964_v11, %v12789_v51 }
0x27a9   :  { %v3672_v13 = vsel %vm609_vm3, %v3664_v35, 0.0  ;;  %v10968_v62 = vpop.eup %10967  ;;  %v3666_v19 = vmul.f32 %v10966_v43, %v12789_v51 }
0x27aa   :  { %3673 = vadd.xlane.f32.xlu1 %v3672_v13  ;;  %v10970_v53 = vpop.eup %10969  ;;  %v3675_v7 = vsel %vm609_vm3, %v3665_v42, 0.0  ;;  %v3667_v41 = vmul.f32 %v10968_v62, %v12789_v51 }
0x27ab   :  { %v10972_v12 = vpop.eup %10971  ;;  %3676 = vadd.xlane.f32.xlu0 %v3675_v7  ;;  %v3678_v0 = vsel %vm609_vm3, %v3666_v19, 0.0  ;;  %v3668_v15 = vmul.f32 %v10970_v53, %v12789_v51 }
0x27ac   :  { %v3681_v52 = vsel %vm609_vm3, %v3667_v41, 0.0  ;;  %v3669_v20 = vmul.f32 %v10972_v12, %v12789_v51  ;;  %v10974_v3 = vpop.eup %10973 }
0x27ad   :  { %v10976_v45 = vpop.eup %10975  ;;  %v3671_v14 = vmul.f32 %v10974_v3, %v12789_v51  ;;  %v3684_v6 = vsel %vm609_vm3, %v3668_v15, 0.0 }
0x27ae   :  { %3682 = vadd.xlane.f32.xlu1 %v3681_v52  ;;  %v3687_v25 = vsel %vm609_vm3, %v3669_v20, 0.0  ;;  %v3670_v54 = vmul.f32 %v10976_v45, %v12789_v51 }
0x27af   :  { %3679 = vadd.xlane.f32.xlu0 %v3678_v0  ;;  %v3693_v18 = vsel %vm609_vm3, %v3671_v14, 0.0 }
0x27b0   :  { %v3690_v26 = vsel %vm609_vm3, %v3670_v54, 0.0 }
0x27b2   :  { %3688 = vadd.xlane.f32.xlu1 %v3687_v25 }
0x27b3   :  { %3685 = vadd.xlane.f32.xlu0 %v3684_v6 }
0x27b6   :  { %3694 = vadd.xlane.f32.xlu1 %v3693_v18 }
0x27b7   :  { %3691 = vadd.xlane.f32.xlu0 %v3690_v26 }
0x2833   :  { %v12842_v58 = vpop.xlane.xlu1 %3673 }
0x2834   :  { %v3707_v11 = vrot.slane %v12842_v58, %v12819_v44  ;;  %v3755_v43 = vrot.slane %v12842_v58, %v12822_v36  ;;  %v3796_v13 = vrot.slane %v12842_v58, %v12825_v48  ;;  %v3837_v42 = vrot.slane %v12842_v58, %v12828_v61  ;;  %v12854_v62 = vpop.xlane.xlu0 %3676 }
0x2835   :  { %v3711_v53 = vrot.slane %v12854_v62, %v12819_v44  ;;  %v3759_v7 = vrot.slane %v12854_v62, %v12822_v36  ;;  %v3800_v41 = vrot.slane %v12854_v62, %v12825_v48  ;;  %v3841_v19 = vrot.slane %v12854_v62, %v12828_v61 }
0x2836   :  { %v3878_v12 = vrot.slane %v12842_v58, %v12831_v4  ;;  %v3882_v3 = vrot.slane %v12854_v62, %v12831_v4 }
0x2837   :  { %v12872_v0 = vpop.xlane.xlu1 %3682  ;;  %v3737_v6 = vsel %vm3736_vm12, %v3711_v53, %v3707_v11  ;;  %v3784_v54 = vsel %vm3736_vm12, %v3759_v7, %v3755_v43  ;;  %v3825_v18 = vsel %vm3736_vm12, %v3800_v41, %v3796_v13  ;;  %v3866_v26 = vsel %vm3736_vm12, %v3841_v19, %v3837_v42 }
0x2838   :  { %v12886_v29 = vpop.xlane.xlu0 %3679  ;;  %v12889_v28 = vsel %vm3736_vm12, %v3882_v3, %v3878_v12  ;;  %v3719_v50 = vrot.slane %v12872_v0, %v12819_v44  ;;  %v3767_v63 = vrot.slane %v12872_v0, %v12822_v36  ;;  %v3808_v17 = vrot.slane %v12872_v0, %v12825_v48 }
0x2839   :  { %v3715_v59 = vrot.slane %v12886_v29, %v12819_v44  ;;  %v3763_v31 = vrot.slane %v12886_v29, %v12822_v36  ;;  %v3804_v11 = vrot.slane %v12886_v29, %v12825_v48  ;;  %v3845_v43 = vrot.slane %v12886_v29, %v12828_v61 }
0x283a   :  { %v3849_v42 = vrot.slane %v12872_v0, %v12828_v61  ;;  %v3890_v53 = vrot.slane %v12872_v0, %v12831_v4  ;;  %v3886_v12 = vrot.slane %v12886_v29, %v12831_v4 }
0x283b   :  { %v12905_v13 = vpop.xlane.xlu1 %3688  ;;  %v3739_v19 = vsel %vm3738_vm13, %v3715_v59, %v3737_v6  ;;  %v3785_v25 = vsel %vm3738_vm13, %v3763_v31, %v3784_v54  ;;  %v3826_v20 = vsel %vm3738_vm13, %v3804_v11, %v3825_v18  ;;  %v3867_v41 = vsel %vm3738_vm13, %v3845_v43, %v3866_v26 }
0x283c   :  { %v12922_v15 = vpop.xlane.xlu0 %3685  ;;  %v3727_v59 = vrot.slane %v12905_v13, %v12819_v44  ;;  %v3775_v7 = vrot.slane %v12905_v13, %v12822_v36  ;;  %v3816_v14 = vrot.slane %v12905_v13, %v12825_v48  ;;  %v3857_v54 = vrot.slane %v12905_v13, %v12828_v61 }
0x283d   :  { %v3723_v3 = vrot.slane %v12922_v15, %v12819_v44  ;;  %v3898_v18 = vrot.slane %v12905_v13, %v12831_v4  ;;  %v3741_v26 = vsel %vm3740_vm14, %v3719_v50, %v3739_v19  ;;  %v3771_v31 = vrot.slane %v12922_v15, %v12822_v36 }
0x283e   :  { %v3786_v43 = vsel %vm3740_vm14, %v3767_v63, %v3785_v25  ;;  %v3812_v45 = vrot.slane %v12922_v15, %v12825_v48  ;;  %v3853_v52 = vrot.slane %v12922_v15, %v12828_v61  ;;  %v3894_v50 = vrot.slane %v12922_v15, %v12831_v4 }
0x283f   :  { %v12944_v11 = vpop.xlane.xlu1 %3694  ;;  %v3743_v6 = vsel %vm3742_vm15, %v3723_v3, %v3741_v26  ;;  %v3787_v34 = vsel %vm3742_vm15, %v3771_v31, %v3786_v43  ;;  %v3935_v63 = vrot.slane %v12922_v15, %v12834_v10  ;;  %v3827_v22 = vsel %vm3740_vm14, %v3808_v17, %v3826_v20 }
0x2840   :  { %v12952_v35 = vpop.xlane.xlu0 %3691  ;;  %v3735_v3 = vrot.slane %v12944_v11, %v12819_v44  ;;  %v3783_v26 = vrot.slane %v12944_v11, %v12822_v36  ;;  %v3745_v51 = vsel %vm3744_vm1, %v3727_v59, %v3743_v6  ;;  %v3788_v37 = vsel %vm3744_vm1, %v3775_v7, %v3787_v34 }
0x2841   :  { %v3731_v19 = vrot.slane %v12952_v35, %v12819_v44  ;;  %v3779_v25 = vrot.slane %v12952_v35, %v12822_v36  ;;  %v3820_v31 = vrot.slane %v12952_v35, %v12825_v48  ;;  %v3861_v43 = vrot.slane %v12952_v35, %v12828_v61 }
0x2842   :  { %v3828_v40 = vsel %vm3742_vm15, %v3812_v45, %v3827_v22  ;;  %v3868_v36 = vsel %vm3740_vm14, %v3849_v42, %v3867_v41  ;;  %v3824_v60 = vrot.slane %v12944_v11, %v12825_v48  ;;  %v16005_v20 = vmul.u32 8, %v12815_v56 }
0x2843   :  { %v3747_v46 = vsel %vm3746_vm2, %v3731_v19, %v3745_v51  ;;  %v3789_v44 = vsel %vm3746_vm2, %v3779_v25, %v3788_v37  ;;  %v3829_v22 = vsel %vm3744_vm1, %v3816_v14, %v3828_v40  ;;  %v3865_v51 = vrot.slane %v12944_v11, %v12828_v61 }
0x2844   :  { %vm12990_vm8 = vcmp.lt.s32.totalorder %v15993_v8, %v16005_v20  ;;  %v3869_v45 = vsel %vm3742_vm15, %v3853_v52, %v3868_v36  ;;  %v3830_v57 = vsel %vm3746_vm2, %v3820_v31, %v3829_v22  ;;  %v3902_v56 = vrot.slane %v12952_v35, %v12831_v4 }
0x2845   :  { %v3870_v30 = vsel %vm3744_vm1, %v3857_v54, %v3869_v45  ;;  %v3908_v8 = vsel %vm3738_vm13, %v3886_v12, %v12889_v28  ;;  %v3749_v17 = vsel %vm3748_vm4, %v3735_v3, %v3747_v46  ;;  %v3790_v40 = vsel %vm3748_vm4, %v3783_v26, %v3789_v44  ;;  %vm3555_vm0 = vmand %vm12983_vm7, %vm12990_vm8 }
0x2846   :  { %v3871_v14 = vsel %vm3746_vm2, %v3861_v43, %v3870_v30  ;;  %v3909_v42 = vsel %vm3740_vm14, %v3890_v53, %v3908_v8  ;;  %v3906_v36 = vrot.slane %v12944_v11, %v12831_v4  ;;  %v3939_v7 = vrot.slane %v12905_v13, %v12834_v10 }
0x2847   :  { %v3910_v52 = vsel %vm3742_vm15, %v3894_v50, %v3909_v42  ;;  %v16008_v28 = vrot.slane %v12842_v58, %v12834_v10  ;;  %v16009_v46 = vrot.slane %v12854_v62, %v12834_v10  ;;  %v3831_v53 = vsel %vm3748_vm4, %v3824_v60, %v3830_v57 }
0x2848   :  { %v3911_v41 = vsel %vm3744_vm1, %v3898_v18, %v3910_v52  ;;  %v3943_v12 = vrot.slane %v12952_v35, %v12834_v10  ;;  %v16010_v6 = vrot.slane %v12886_v29, %v12834_v10  ;;  %v3872_v54 = vsel %vm3748_vm4, %v3865_v51, %v3871_v14 }
0x2849   :  { %v3948_v44 = vsel %vm3736_vm12, %v16009_v46, %v16008_v28  ;;  %v3912_v50 = vsel %vm3746_vm2, %v3902_v56, %v3911_v41  ;;  %v16011_v19 = vrot.slane %v12872_v0, %v12834_v10  ;;  %v3976_v60 = vrot.slane %v12922_v15, %v12837_v21 }
0x284a   :  { %v3949_v59 = vsel %vm3738_vm13, %v16010_v6, %v3948_v44  ;;  %v3947_v18 = vrot.slane %v12944_v11, %v12834_v10  ;;  %v3980_v26 = vrot.slane %v12905_v13, %v12837_v21  ;;  %v16012_v31 = vrot.slane %v12842_v58, %v12837_v21 }
0x284b   :  { %v3950_v25 = vsel %vm3740_vm14, %v16011_v19, %v3949_v59  ;;  %v16013_v43 = vrot.slane %v12854_v62, %v12837_v21  ;;  %v3913_v22 = vsel %vm3748_vm4, %v3906_v36, %v3912_v50  ;;  %v3984_v51 = vrot.slane %v12952_v35, %v12837_v21 }
0x284c   :  { %v3951_v3 = vsel %vm3742_vm15, %v3935_v63, %v3950_v25  ;;  %v3988_v45 = vrot.slane %v12944_v11, %v12837_v21  ;;  %v16014_v63 = vrot.slane %v12886_v29, %v12837_v21  ;;  %v16015_v56 = vrot.slane %v12872_v0, %v12837_v21 }
0x284d   :  { %v3989_v20 = vsel %vm3736_vm12, %v16013_v43, %v16012_v31  ;;  %v3952_v30 = vsel %vm3744_vm1, %v3939_v7, %v3951_v3  ;;  %v4013_v14 = vrot.slane %v12872_v0, %v12840_v32  ;;  %v4017_v42 = vrot.slane %v12922_v15, %v12840_v32 }
0x284e   :  { %v3990_v57 = vsel %vm3738_vm13, %v16014_v63, %v3989_v20  ;;  %v3953_v36 = vsel %vm3746_vm2, %v3943_v12, %v3952_v30  ;;  %v16016_v28 = vrot.slane %v12842_v58, %v12840_v32  ;;  %v16017_v7 = vrot.slane %v12854_v62, %v12840_v32  ;;  %v13123_v30 = vld [vmem:[%s15757_s18 + $0xf0] sm:$0xff] }
0x284f   :  { %v3991_v8 = vsel %vm3740_vm14, %v16015_v56, %v3990_v57  ;;  %v4039_v44 = vsel %vm4038_vm5, %v3749_v17, %v3790_v40  ;;  %v4025_v0 = vrot.slane %v12952_v35, %v12840_v32  ;;  %v16018_v15 = vrot.slane %v12886_v29, %v12840_v32  ;;  %v13118_v57 = vld [vmem:[%s15757_s18 + $0xf8] sm:$0xff]  ;;  %v13128_v56 = vld [vmem:[%s15757_s18 + $0xe8] sm:$0xff] }
0x2850   :  { %v3992_v52 = vsel %vm3742_vm15, %v3976_v60, %v3991_v8  ;;  %v4030_v46 = vsel %vm3736_vm12, %v16017_v7, %v16016_v28  ;;  %v4041_v6 = vsel %vm15833_vm6, %v4039_v44, %v3831_v53  ;;  %v4021_v62 = vrot.slane %v12905_v13, %v12840_v32  ;;  %4146 = vmatprep.subr.mxu1 %v13118_v57  ;;  %v13134_v8 = vld [vmem:[%s15757_s18 + $0xe0] sm:$0xff]  ;;  %v13164_v28 = vld [vmem:[%s15757_s18 + $0xb8] sm:$0xff]  ;;  %v13170_v7 = vld [vmem:[%s15757_s18 + $0xb0] sm:$0xff] }
0x2851   :  { %v3993_v41 = vsel %vm3744_vm1, %v3980_v26, %v3992_v52  ;;  %v4031_v12 = vsel %vm3738_vm13, %v16018_v15, %v4030_v46  ;;  %v4043_v35 = vsel %vm4042_vm9, %v4041_v6, %v3872_v54  ;;  %v3954_v29 = vsel %vm3748_vm4, %v3947_v18, %v3953_v36  ;;  %4147 = vmatpush1.msra.mxu1 %v13123_v30  ;;  %v13152_v36 = vld [vmem:[%s15757_s18 + $0xc8] sm:$0xff]  ;;  %v13158_v52 = vld [vmem:[%s15757_s18 + $0xc0] sm:$0xff]  ;;  %v13212_v6 = vld [vmem:[%s15757_s18 + $0x78] sm:$0xff] }
0x2852   :  { %v3994_v58 = vsel %vm3746_vm2, %v3984_v51, %v3993_v41  ;;  %v4032_v17 = vsel %vm3740_vm14, %v4013_v14, %v4031_v12  ;;  %v4044_v53 = vsel %vm609_vm3, %v4043_v35, %v3913_v22  ;;  %vm15874_vm6 = vcmask 457728   ;;  %v13140_v14 = vld [vmem:[%s15757_s18 + $0xd8] sm:$0xff]  ;;  %4148 = vmatprep.subr.mxu1 %v13128_v56  ;;  %v13176_v46 = vld [vmem:[%s15757_s18 + $0xa8] sm:$0xff]  ;;  %v13182_v44 = vld [vmem:[%s15757_s18 + $0xa0] sm:$0xff]  ;;  %16028 = vst [vmem:[#allocation57_spill] sm:$0xff] %v13212_v6 }
0x2853   :  { %v4033_v40 = vsel %vm3742_vm15, %v4017_v42, %v4032_v17  ;;  %v3995_v37 = vsel %vm3748_vm4, %v3988_v45, %v3994_v58  ;;  %v4029_v34 = vrot.slane %v12944_v11, %v12840_v32  ;;  %v4046_v13 = vsel %vm4045_vm10, %v4044_v53, %v3954_v29  ;;  %v13146_v42 = vld [vmem:[%s15757_s18 + $0xd0] sm:$0xff]  ;;  %4149 = vmatpush1.msra.mxu1 %v13134_v8  ;;  %v13188_v41 = vld [vmem:[%s15757_s18 + $0x98] sm:$0xff]  ;;  %v13200_v15 = vld [vmem:[%s15757_s18 + $0x88] sm:$0xff] }
0x2854   :  { %v4034_v59 = vsel %vm3744_vm1, %v4021_v62, %v4033_v40  ;;  %v11332_v50 = vmov -1e+30   ;;  %v4048_v25 = vsel %vm15875_vm11, %v4046_v13, %v3995_v37  ;;  %vm16020_vm7 = vcmask 523264   ;;  %4150 = vmatprep.subr.mxu1 %v13140_v14  ;;  %16024 = vst [vmem:[#allocation53_spill] sm:$0xff] %v13188_v41  ;;  %16026 = vst [vmem:[#allocation55_spill] sm:$0xff] %v13200_v15  ;;  %v13206_v12 = vld [vmem:[%s15757_s18 + $0x80] sm:$0xff] }
0x2855   :  { %v13101_v19 = vsel %vm3555_vm0, 0.0, %v11332_v50  ;;  %v4035_v54 = vsel %vm3746_vm2, %v4025_v0, %v4034_v59  ;;  %vm16021_vm0 = vmmov %vm16020_vm7  ;;  %4151 = vmatpush1.msra.mxu1 %v13146_v42  ;;  %v13194_v0 = vld [vmem:[%s15757_s18 + $0x90] sm:$0xff]  ;;  %16027 = vst [vmem:[#allocation56_spill] sm:$0xff] %v13206_v12  ;;  %v13224_v62 = vld [vmem:[%s15757_s18 + $0x68] sm:$0xff] }
0x2856   :  { %16019 = vst [vmem:[#allocation52_spill] sm:$0xff] %v13101_v19  ;;  %v4036_v60 = vsel %vm3748_vm4, %v4029_v34, %v4035_v54  ;;  %vm16022_vm8 = vmmov %vm16021_vm0  ;;  %4152 = vmatprep.subr.mxu1 %v13152_v36  ;;  %v13218_v58 = vld [vmem:[%s15757_s18 + $0x70] sm:$0xff]  ;;  %v13230_v17 = vld [vmem:[%s15757_s18 + $0x60] sm:$0xff] }
0x2857   :  { %v4050_v18 = vsel %vm15874_vm6, %v4048_v25, %v4036_v60  ;;  %4153 = vmatpush1.msra.mxu1 %v13158_v52  ;;  %16025 = vst [vmem:[#allocation54_spill] sm:$0xff] %v13194_v0  ;;  %16029 = vst [vmem:[#allocation58_spill] sm:$0xff] %v13218_v58  ;;  %v13236_v35 = vld [vmem:[%s15757_s18 + $0x58] sm:$0xff]  ;;  %v13242_v29 = vld [vmem:[%s15757_s18 + $0x50] sm:$0xff] }
0x2858   :  { %v4051_v3 = vadd.f32 %v4050_v18, %v13101_v19  ;;  %4154 = vmatprep.subr.mxu1 %v13164_v28  ;;  %16030 = vst [vmem:[#allocation59_spill] sm:$0xff] %v13224_v62  ;;  %16031 = vst [vmem:[#allocation60_spill] sm:$0xff] %v13230_v17  ;;  %v13248_v40 = vld [vmem:[%s15757_s18 + $0x48] sm:$0xff]  ;;  %v13254_v53 = vld [vmem:[%s15757_s18 + $0x40] sm:$0xff] }
0x2859   :  { %4155 = vmatpush1.msra.mxu1 %v13170_v7  ;;  %16032 = vst [vmem:[#allocation61_spill] sm:$0xff] %v13236_v35  ;;  %16033 = vst [vmem:[#allocation62_spill] sm:$0xff] %v13242_v29  ;;  %v13260_v37 = vld [vmem:[%s15757_s18 + $0x38] sm:$0xff]  ;;  %v13266_v34 = vld [vmem:[%s15757_s18 + $0x30] sm:$0xff] }
0x285a   :  { %v4052_v26 = vsel %vm16020_vm7, %v4051_v3, -inf  ;;  %vm16023_vm7 = vmmov 0   ;;  %4156 = vmatprep.subr.mxu1 %v13176_v46  ;;  %16034 = vst [vmem:[#allocation63_spill] sm:$0xff] %v13248_v40  ;;  %16035 = vst [vmem:[#allocation64_spill] sm:$0xff] %v13254_v53  ;;  %v13272_v59 = vld [vmem:[%s15757_s18 + $0x28] sm:$0xff]  ;;  %v13278_v13 = vld [vmem:[%s15757_s18 + $0x20] sm:$0xff] }
0x285b   :  { %4053 = vmax.xlane.f32.xlu0 %v4052_v26  ;;  %4157 = vmatpush1.msra.mxu1 %v13182_v44  ;;  %16036 = vst [vmem:[#allocation65_spill] sm:$0xff] %v13260_v37  ;;  %16037 = vst [vmem:[#allocation66_spill] sm:$0xff] %v13266_v34  ;;  %v13284_v50 = vld [vmem:[%s15757_s18 + $0x18] sm:$0xff]  ;;  %v13290_v54 = vld [vmem:[%s15757_s18 + $0x10] sm:$0xff] }
0x285c   :  { %4158 = vmatprep.subr.mxu1 %v13188_v41  ;;  %16038 = vst [vmem:[#allocation67_spill] sm:$0xff] %v13272_v59  ;;  %16039 = vst [vmem:[#allocation68_spill] sm:$0xff] %v13278_v13  ;;  %v13298_v25 = vld [vmem:[%s15757_s18 + $0x8] sm:$0xff]  ;;  %v13303_v60 = vld [vmem:[%s15757_s18] sm:$0xff] }
0x285d   :  { %4159 = vmatpush1.msra.mxu1 %v13194_v0  ;;  %16040 = vst [vmem:[#allocation69_spill] sm:$0xff] %v13284_v50  ;;  %16041 = vst [vmem:[#allocation70_spill] sm:$0xff] %v13290_v54 }
0x285e   :  { %4160 = vmatprep.subr.mxu1 %v13200_v15  ;;  %16042 = vst [vmem:[#allocation71_spill] sm:$0xff] %v13298_v25  ;;  %16043 = vst [vmem:[#allocation72_spill] sm:$0xff] %v13303_v60 }
0x285f   :  { %4161 = vmatpush1.msra.mxu1 %v13206_v12 }
0x2860   :  { %4162 = vmatprep.subr.mxu1 %v13212_v6 }
0x2861   :  { %4163 = vmatpush1.msra.mxu1 %v13218_v58 }
0x2862   :  { %4164 = vmatprep.subr.mxu1 %v13224_v62 }
0x2863   :  { %4165 = vmatpush1.msra.mxu1 %v13230_v17 }
0x2864   :  { %4166 = vmatprep.subr.mxu1 %v13236_v35 }
0x2865   :  { %4167 = vmatpush1.msra.mxu1 %v13242_v29 }
0x2866   :  { %4168 = vmatprep.subr.mxu1 %v13248_v40 }
0x2867   :  { %4169 = vmatpush1.msra.mxu1 %v13254_v53 }
0x2868   :  { %4170 = vmatprep.subr.mxu1 %v13260_v37 }
0x2869   :  { %4171 = vmatpush1.msra.mxu1 %v13266_v34 }
0x286a   :  { %4172 = vmatprep.subr.mxu1 %v13272_v59 }
0x286b   :  { %4173 = vmatpush1.msra.mxu1 %v13278_v13 }
0x286c   :  { %4174 = vmatprep.subr.mxu1 %v13284_v50 }
0x286d   :  { %4175 = vmatpush1.msra.mxu1 %v13290_v54 }
0x286e   :  { %4176 = vmatprep.subr.mxu1 %v13298_v25 }
0x286f   :  { %4177 = vmatpush1.msra.mxu1 %v13303_v60 }
0x28e4   :  { %v4054_v11 = vpop.xlane.xlu0 %4053 }
0x28e5   :  { %v4055_v31 = vsub.f32 %v4051_v3, %v4054_v11 }
0x28e7   :  { %v4056_v43 = vmul.f32 1.442695, %v4055_v31  ;;  %v16044_v31 = vld [vmem:[#allocation31_spill] sm:$0xff] }
0x28e9   :  { %10977 = vpow2.f32 %v4056_v43 }
0x28f6   :  { %v10978_v20 = vpop.eup %10977 }
0x28f7   :  { %v4058_v22 = vsel %vm16021_vm0, %v10978_v20, 0.0  ;;  %vm15873_vm0 = vcmask 785408  }
0x28f8   :  { %4059 = vadd.xlane.f32.xlu1 %v4058_v22 }
0x2909   :  { %4140 = vrot.lane.b32.xlu1 %v12740_v27, %s11330_s8 }
0x2981   :  { %v4060_v51 = vpop.xlane.xlu1 %4059 }
0x2982   :  { %10979 = vrcp.f32 %v4060_v51  ;;  %v13314_v51 = vld [vmem:[#allocation12] ss:$0 sm:$0xff] }
0x2983   :  { %16045 = vst [vmem:[#allocation31_spill] sm:$0xff] %v13314_v51 }
0x2985   :  { %v4141_v11 = vpop.permute.xlu1 %4140 }
0x298f   :  { %v10980_v45 = vpop.eup %10979 }
0x2990   :  { %v4062_v63 = vmul.f32 %v10980_v45, %v10978_v20 }
0x2992   :  { %10355 = vmatmul.mubr.msk.f32.vlgmr.msra.gmra.mxu0 %vm16022_vm8, %v4062_v63 }
0x2993   :  { %10389 = vmatprep.mubr.msk.f32.mxu0 %vm16023_vm7, %v12699_v23 }
0x2a52   :  { %v4132_v18 = vpop.f32.mrf.mxu0 }
0x2a53   :  { %4137 = vrot.lane.b32.xlu0 %v4132_v18, %s11333_s30  ;;  %v13318_v18 = vld [vmem:[#allocation10] ss:$0 sm:$0xff] }
0x2a54   :  { %v10356_v3 = vpop.f32.mrf.mxu0  ;;  %16046 = vst [vmem:[#allocation73_spill] sm:$0xff] %v13318_v18 }
0x2ac5   :  { %v13308_v26 = vpop.permute.xlu0 %4137 }
0x2ac6   :  { %v4143_v43 = vsel %vm609_vm3, %v16044_v31, %v13308_v26 }
0x2ac7   :  { %v4145_v20 = vsel %vm15873_vm0, %v4143_v43, %v4141_v11 }
0x2ac8   :  { %4211 = vmatmul.mubr.f32.vlgmr.msra.gmra.mxu1 %v4145_v20 }
0x2b88   :  { %v4212_v22 = vpop.f32.mrf.mxu1 }
0x2b89   :  { %v4223_v3 = vadd.f32 %v13318_v18, %v4212_v22  ;;  %v13327_v22 = vld [vmem:[%s16047_s6 + $0x78] sm:$0xff] }
0x2b8a   :  { %v4214_v45 = vpop.f32.mrf.mxu1  ;;  %10358 = vmatpush3.msra.mxu0 %v13327_v22  ;;  %v13410_v18 = vld [vmem:[%s16047_s6 + $0x18] sm:$0xff] }
0x2b8b   :  { %v4230_v63 = vadd.f32 %v13314_v51, %v4214_v45  ;;  %10359 = vmatprep.subr.mxu0 %v12699_v23  ;;  %16059 = vst [vmem:[#allocation85_spill] sm:$0xff] %v13410_v18 }
0x2b8d   :  { %4239 = vrot.lane.b32.xlu1 %v4230_v63, %s11329_s28  ;;  %v4231_v19 = vadd.f32 %v4230_v63, %v4223_v3  ;;  %v13368_v63 = vld [vmem:[%s16047_s6 + $0x48] sm:$0xff] }
0x2b8e   :  { %16053 = vst [vmem:[#allocation79_spill] sm:$0xff] %v13368_v63 }
0x2b8f   :  { %v9613_v32 = vmul.f32 -1.442695, %v4231_v19  ;;  %v13353_v19 = vld [vmem:[%s16047_s6 + $0x58] sm:$0xff] }
0x2b90   :  { %16051 = vst [vmem:[#allocation77_spill] sm:$0xff] %v13353_v19 }
0x2b91   :  { %10981 = vpow2.f32 %v9613_v32 }
0x2b9e   :  { %v10982_v21 = vpop.eup %10981 }
0x2b9f   :  { %v4235_v10 = vadd.f32 1.0, %v10982_v21  ;;  %v13346_v21 = vld [vmem:[%s16047_s6 + $0x60] sm:$0xff] }
0x2ba0   :  { %16050 = vst [vmem:[#allocation76_spill] sm:$0xff] %v13346_v21 }
0x2ba1   :  { %10983 = vrcp.f32 %v4235_v10  ;;  %v13332_v10 = vld [vmem:[%s16047_s6 + $0x70] sm:$0xff] }
0x2ba2   :  { %16048 = vst [vmem:[#allocation74_spill] sm:$0xff] %v13332_v10  ;;  %10360 = vmatpush3.msra.mxu0 %v13332_v10 }
0x2ba3   :  { %10361 = vmatprep.subr.mxu0 %v12699_v23 }
0x2bae   :  { %v10984_v11 = vpop.eup %10983 }
0x2bff   :  { %v4240_v43 = vpop.permute.xlu1 %4239 }
0x2c00   :  { %v4242_v20 = vmul.f32 %v10984_v11, %v4240_v43  ;;  %v13382_v43 = vld [vmem:[%s16047_s6 + $0x38] sm:$0xff] }
0x2c01   :  { %16055 = vst [vmem:[#allocation81_spill] sm:$0xff] %v13382_v43 }
0x2c02   :  { %4244 = vrot.lane.b32.xlu0 %v4242_v20, %s11329_s28  ;;  %v13389_v20 = vld [vmem:[%s16047_s6 + $0x30] sm:$0xff] }
0x2c03   :  { %16056 = vst [vmem:[#allocation82_spill] sm:$0xff] %v13389_v20 }
0x2c06   :  { %4255 = vrot.lane.b32.xlu0 %v12740_v27, %s11333_s30  ;;  %v13339_v27 = vld [vmem:[%s16047_s6 + $0x68] sm:$0xff] }
0x2c07   :  { %16049 = vst [vmem:[#allocation75_spill] sm:$0xff] %v13339_v27  ;;  %10362 = vmatpush3.msra.mxu0 %v13339_v27 }
0x2c08   :  { %10363 = vmatprep.subr.mxu0 %v12699_v23 }
0x2c09   :  { %10364 = vmatpush3.msra.mxu0 %v13346_v21 }
0x2c0a   :  { %10365 = vmatprep.subr.mxu0 %v12699_v23 }
0x2c0b   :  { %10366 = vmatpush3.msra.mxu0 %v13353_v19 }
0x2c0c   :  { %10367 = vmatprep.subr.mxu0 %v12699_v23 }
0x2c74   :  { %v4245_v45 = vpop.permute.xlu0 %4244 }
0x2c75   :  { %v4247_v51 = vadd.f32 %v4245_v45, %v4223_v3  ;;  %v13375_v3 = vld [vmem:[%s16047_s6 + $0x40] sm:$0xff]  ;;  %v13396_v45 = vld [vmem:[%s16047_s6 + $0x28] sm:$0xff] }
0x2c76   :  { %16054 = vst [vmem:[#allocation80_spill] sm:$0xff] %v13375_v3  ;;  %16057 = vst [vmem:[#allocation83_spill] sm:$0xff] %v13396_v45 }
0x2c77   :  { %10985 = vtanh.f32 %v4247_v51  ;;  %v13361_v51 = vld [vmem:[%s16047_s6 + $0x50] sm:$0xff] }
0x2c78   :  { %16052 = vst [vmem:[#allocation78_spill] sm:$0xff] %v13361_v51  ;;  %10368 = vmatpush3.msra.mxu0 %v13361_v51 }
0x2c79   :  { %10369 = vmatprep.subr.mxu0 %v12699_v23 }
0x2c7a   :  { %10370 = vmatpush3.msra.mxu0 %v13368_v63 }
0x2c7b   :  { %10371 = vmatprep.subr.mxu0 %v12699_v23 }
0x2c7c   :  { %10372 = vmatpush3.msra.mxu0 %v13375_v3 }
0x2c7d   :  { %10373 = vmatprep.subr.mxu0 %v12699_v23 }
0x2c7e   :  { %10374 = vmatpush3.msra.mxu0 %v13382_v43  ;;  %v4256_v43 = vpop.permute.xlu0 %4255 }
0x2c7f   :  { %10375 = vmatprep.subr.mxu0 %v12699_v23  ;;  %v4258_v3 = vmul.f32 %v10984_v11, %v4256_v43 }
0x2c80   :  { %10376 = vmatpush3.msra.mxu0 %v13389_v20  ;;  %v13417_v20 = vld [vmem:[%s16047_s6 + $0x10] sm:$0xff] }
0x2c81   :  { %10377 = vmatprep.subr.mxu0 %v12699_v23  ;;  %16060 = vst [vmem:[#allocation86_spill] sm:$0xff] %v13417_v20 }
0x2c82   :  { %10378 = vmatpush3.msra.mxu0 %v13396_v45  ;;  %v13426_v45 = vld [vmem:[%s16047_s6 + $0x8] sm:$0xff] }
0x2c83   :  { %10379 = vmatprep.subr.mxu0 %v12699_v23  ;;  %16061 = vst [vmem:[#allocation87_spill] sm:$0xff] %v13426_v45 }
0x2c84   :  { %v10986_v32 = vpop.eup %10985 }
0x2c85   :  { %4251 = vrot.lane.b32.xlu1 %v10986_v32, %s11330_s8  ;;  %v13403_v32 = vld [vmem:[%s16047_s6 + $0x20] sm:$0xff] }
0x2c86   :  { %16058 = vst [vmem:[#allocation84_spill] sm:$0xff] %v13403_v32  ;;  %10380 = vmatpush3.msra.mxu0 %v13403_v32  ;;  %v13431_v32 = vld [vmem:[%s16047_s6] sm:$0xff]  ;;  %s9616_s6 = sld [smem:[#allocation3 + $0x1]] }
0x2c87   :  { %10381 = vmatprep.subr.mxu0 %v12699_v23  ;;  %16062 = vst [vmem:[#allocation88_spill] sm:$0xff] %v13431_v32 }
0x2c88   :  { %10382 = vmatpush3.msra.mxu0 %v13410_v18  ;;  %v4249_v18 = vsub.f32 1.0, %v10984_v11 }
0x2c89   :  { %10383 = vmatprep.subr.mxu0 %v12699_v23 }
0x2c8a   :  { %10384 = vmatpush3.msra.mxu0 %v13417_v20 }
0x2c8b   :  { %10385 = vmatprep.subr.mxu0 %v12699_v23 }
0x2c8c   :  { %10386 = vmatpush3.msra.mxu0 %v13426_v45  ;;  %p9617_p7 = scmp.eq.s32.totalorder %s9616_s6, 0 }
0x2c8d   :  { %10387 = vmatprep.subr.mxu0 %v12699_v23 }
0x2c8e   :  { %10388 = vmatpush3.msra.mxu0 %v13431_v32  ;;  %v13444_v32 = vld [vmem:[#allocation13] ss:$0 sm:$0xff] }
0x2cf7   :  { %v4252_v20 = vpop.permute.xlu1 %4251 }
0x2cf8   :  { %v4254_v63 = vmul.f32 %v4252_v20, %v4249_v18 }
0x2cfa   :  { %v13436_v51 = vadd.f32 %v4258_v3, %v4254_v63 }
0x2cfc   :  { %v10858_v19 = vpack.i.bf16 %v16044_v31, %v13436_v51 }
0x2cfe   :  { %10859 = vrot.lane.b32.xlu1 %v10858_v19, %s11330_s8 }
0x2d70   :  { %v10860_v21 = vpop.permute.xlu1 %10859 }
0x2d71   :  { %v10862_v27 = vunpack.i.h.bf16 %v10860_v21  ;;  %v10861_v10 = vunpack.i.l.bf16 %v10860_v21 }
0x2d73   :  { %v4268_v45 = vsel %vm609_vm3, %v10861_v10, %v13308_v26 }
0x2d74   :  { %v4269_v23 = vsel %vm15873_vm0, %v4268_v45, %v10862_v27 }
0x2d75   :  { %10390 = vmatmul.mubr.f32.vlgmr.msra.gmra.mxu0 %v4269_v23 }
0x2e34   :  { %4352 = sbr.rel (%p9617_p7) target bundleno = 11835 (0x2e3b), region = 125 }
0x2e35   :  { %v4342_v18 = vpop.f32.mrf.mxu0 }
0x2e36   :  { %v4343_v11 = vadd.f32 %v13444_v32, %v4342_v18 }
0x2e37   :  { %v10391_v63 = vpop.f32.mrf.mxu0 }
0x2e38   :  { %9615 = vst [vmem:[%s15762_s23 + $0x8] sm:$0xff] %v4343_v11 }
0x2e39   :  { %v16063_v31 = vld [vmem:[#allocation30_spill] sm:$0xff] }
0x2e3a   :  { %4353 = vst.msk [vmem:[#allocation2] sm:$0xff] %vm609_vm3, %v16063_v31 }
0x2e3b PF:  { %s9618_s14 = sld [smem:[#allocation3 + $0x1]] }
0x2e41   :  { %p9619_p8 = scmp.ne.s32.totalorder %s9618_s14, 0 }
0x2e43   :  { %4358 = sbr.rel (%p9619_p8) target bundleno = 12326 (0x3026), region = 129 }
0x2e48   :  { %vm16064_vm8 = vcmask 523264   ;;  %v11334_v10 = vmov 0.0   ;;  %v16065_v27 = vld [vmem:[#allocation21_spill] sm:$0xff]  ;;  %v16066_v21 = vld [vmem:[#allocation22_spill] sm:$0xff]  ;;  %v16067_v19 = vld [vmem:[#allocation23_spill] sm:$0xff]  ;;  %vm11335_vm0 = vmmov 0  }
0x2e49   :  { %v4359_v26 = vsel %vm16064_vm8, %v4343_v11, -inf  ;;  %10392 = vmatprep.subr.mxu0 %v11334_v10  ;;  %v16068_v3 = vld [vmem:[#allocation24_spill] sm:$0xff]  ;;  %v16069_v43 = vld [vmem:[#allocation25_spill] sm:$0xff]  ;;  %v16070_v20 = vld [vmem:[#allocation26_spill] sm:$0xff]  ;;  %10408 = vmatprep.mubr.msk.f32.mxu0 %vm11335_vm0, %v11334_v10 }
0x2e4a   :  { %4360 = vmax.xlane.f32.xlu0 %v4359_v26  ;;  %10393 = vmatpush3.msra.mxu0 %v16065_v27  ;;  %v16071_v45 = vld [vmem:[#allocation27_spill] sm:$0xff]  ;;  %v16072_v23 = vld [vmem:[#allocation28_spill] sm:$0xff]  ;;  %v16073_v63 = vld [vmem:[#allocation37_spill] sm:$0xff] }
0x2e4b   :  { %10394 = vmatprep.subr.mxu0 %v11334_v10  ;;  %vm16074_vm11 = vmmov %vm16064_vm8 }
0x2e4c   :  { %10395 = vmatpush3.msra.mxu0 %v16066_v21 }
0x2e4d   :  { %10396 = vmatprep.subr.mxu0 %v11334_v10 }
0x2e4e   :  { %10397 = vmatpush3.msra.mxu0 %v16067_v19 }
0x2e4f   :  { %10398 = vmatprep.subr.mxu0 %v11334_v10 }
0x2e50   :  { %10399 = vmatpush3.msra.mxu0 %v16068_v3 }
0x2e51   :  { %10400 = vmatprep.subr.mxu0 %v11334_v10 }
0x2e52   :  { %10401 = vmatpush3.msra.mxu0 %v16069_v43 }
0x2e53   :  { %10402 = vmatprep.subr.mxu0 %v11334_v10 }
0x2e54   :  { %10403 = vmatpush3.msra.mxu0 %v16070_v20 }
0x2e55   :  { %10404 = vmatprep.subr.mxu0 %v11334_v10 }
0x2e56   :  { %10405 = vmatpush3.msra.mxu0 %v16071_v45 }
0x2e57   :  { %10406 = vmatprep.subr.mxu0 %v11334_v10 }
0x2e58   :  { %10407 = vmatpush3.msra.mxu0 %v16072_v23 }
0x2ed3   :  { %v4361_v18 = vpop.xlane.xlu0 %4360 }
0x2ed4   :  { %vm4362_vm7 = vcmp.eq.f32.partialorder %v4343_v11, %v4361_v18 }
0x2ed5   :  { %v4363_v31 = vsel %vm4362_vm7, %v16073_v63, 64.0 }
0x2ed6   :  { %v4364_v26 = vsel %vm16064_vm8, %v4363_v31, inf }
0x2ed7   :  { %4365 = vmin.xlane.f32.xlu0 %v4364_v26 }
0x2f60   :  { %v4366_v27 = vpop.xlane.xlu0 %4365 }
0x2f61   :  { %vm4367_vm6 = vcmp.eq.f32.partialorder %v16073_v63, %v4366_v27 }
0x2f62   :  { %v9620_v21 = vsel %vm4367_vm6, 1.0, %v11334_v10 }
0x2f63   :  { %10409 = vmatmul.mubr.msk.f32.vlgmr.msra.gmra.mxu0 %vm16074_vm11, %v9620_v21 }
0x3023   :  { %v4439_v19 = vpop.f32.mrf.mxu0 }
0x3024   :  { %4443 = vst.msk [vmem:[#allocation2] sm:$0xff] %vm609_vm3, %v4439_v19 }
0x3025   :  { %v10410_v3 = vpop.f32.mrf.mxu0 }
0x3026 PF:  { %v4453_v43 = vrot.slane %v4343_v11, %v12212_v33  ;;  %v4446_v20 = vcombine.high %v4343_v11, %v4343_v11  ;;  %v16075_v45 = vmov 0.0   ;;  %vm16076_vm7 = vmmov 0   ;;  %5028 = vmatprep.subr.mxu1 %v13118_v57  ;;  %s9625_s26 = sld [smem:[#allocation3 + $0x2]] }
0x3027   :  { %10411 = vmatprep.subr.mxu0 %v16075_v45  ;;  %10427 = vmatprep.mubr.msk.f32.mxu0 %vm16076_vm7, %v16075_v45  ;;  %vm16090_vm11 = vcmask 130048   ;;  %vm16091_vm6 = vcmask 392192   ;;  %vm16092_vm0 = vcmask 457728   ;;  %vm16094_vm8 = vcmask 523264  }
0x3028   :  { %10412 = vmatpush3.msra.mxu0 %v12675_v49  ;;  %v4469_v10 = vrot.slane %v4453_v43, %v12212_v33  ;;  %v4461_v23 = vcombine.high %v4453_v43, %v4453_v43  ;;  %v4460_v18 = vrot.slane %v4446_v20, %v12212_v33  ;;  %5029 = vmatpush1.msra.mxu1 %v13123_v30 }
0x3029   :  { %10413 = vmatprep.subr.mxu0 %v16075_v45  ;;  %5030 = vmatprep.subr.mxu1 %v13128_v56 }
0x302a   :  { %10414 = vmatpush3.msra.mxu0 %v12703_v55  ;;  %v4498_v11 = vrot.slane %v4469_v10, %v11526_v9  ;;  %v4491_v63 = vcombine.high %v4469_v10, %v4469_v10  ;;  %v4483_v31 = vrot.slane %v4461_v23, %v12212_v33  ;;  %v4462_v26 = vcombine.high %v4460_v18, %v4460_v18 }
0x302b   :  { %10415 = vmatprep.subr.mxu0 %v16075_v45  ;;  %5031 = vmatpush1.msra.mxu1 %v13134_v8  ;;  %v4476_v3 = vrot.slane %v4460_v18, %v12212_v33 }
0x302c   :  { %10416 = vmatpush3.msra.mxu0 %v12711_v16  ;;  %4527 = vrot.lane.b32.xlu0 %v4498_v11, %s11329_s28  ;;  %v4506_v27 = vrot.slane %v4491_v63, %v11526_v9  ;;  %v4502_v21 = vrot.slane %v4483_v31, %v11526_v9  ;;  %v4493_v19 = vcombine.high %v4483_v31, %v4483_v31  ;;  %p9626_p9 = scmp.eq.s32.totalorder %s9625_s26, 0 }
0x302d   :  { %10417 = vmatprep.subr.mxu0 %v16075_v45  ;;  %5032 = vmatprep.subr.mxu1 %v13140_v14  ;;  %v4490_v20 = vrot.slane %v4462_v26, %v12212_v33  ;;  %v4514_v10 = vrot.slane %v4476_v3, %v11526_v9  ;;  %v4492_v23 = vcombine.high %v4476_v3, %v4476_v3 }
0x302e   :  { %4531 = vrot.lane.b32.xlu1 %v4506_v27, %s11329_s28  ;;  %v4510_v43 = vrot.slane %v4493_v19, %v11526_v9  ;;  %10418 = vmatpush3.msra.mxu0 %v12665_v24 }
0x302f   :  { %10419 = vmatprep.subr.mxu0 %v16075_v45  ;;  %5033 = vmatpush1.msra.mxu1 %v13146_v42  ;;  %v4518_v18 = vrot.slane %v4490_v20, %v11526_v9  ;;  %v4494_v11 = vcombine.high %v4490_v20, %v4490_v20  ;;  %v4522_v63 = vrot.slane %v4492_v23, %v11526_v9  ;;  %v16078_v23 = vld [vmem:[#allocation45_spill] sm:$0xff] }
0x3030   :  { %4529 = vrot.lane.b32.xlu0 %v4502_v21, %s11329_s28  ;;  %10420 = vmatpush3.msra.mxu0 %v12623_v38 }
0x3031   :  { %10421 = vmatprep.subr.mxu0 %v16075_v45  ;;  %5034 = vmatprep.subr.mxu1 %v13152_v36  ;;  %v4526_v31 = vrot.slane %v4494_v11, %v11526_v9 }
0x3032   :  { %4533 = vrot.lane.b32.xlu1 %v4510_v43, %s11329_s28  ;;  %10422 = vmatpush3.msra.mxu0 %v12599_v5  ;;  %v16077_v43 = vld [vmem:[#allocation42_spill] sm:$0xff] }
0x3033   :  { %10423 = vmatprep.subr.mxu0 %v16075_v45  ;;  %5035 = vmatpush1.msra.mxu1 %v13158_v52 }
0x3034   :  { %4535 = vrot.lane.b32.xlu0 %v4514_v10, %s11329_s28  ;;  %10424 = vmatpush3.msra.mxu0 %v12590_v39 }
0x3035   :  { %10425 = vmatprep.subr.mxu0 %v16075_v45  ;;  %5036 = vmatprep.subr.mxu1 %v13164_v28 }
0x3036   :  { %4537 = vrot.lane.b32.xlu1 %v4518_v18, %s11329_s28  ;;  %10426 = vmatpush3.msra.mxu0 %v12587_v47 }
0x3037   :  { %5037 = vmatpush1.msra.mxu1 %v13170_v7  ;;  %5092 = vmatprep.mubr.f32.mxu1 %v16075_v45 }
0x3038   :  { %4539 = vrot.lane.b32.xlu0 %v4522_v63, %s11329_s28  ;;  %5038 = vmatprep.subr.mxu1 %v13176_v46  ;;  %v16079_v63 = vld [vmem:[#allocation41_spill] sm:$0xff] }
0x3039   :  { %5039 = vmatpush1.msra.mxu1 %v13182_v44  ;;  %10430 = vmatprep.subr.mxu0 %v16075_v45 }
0x303a   :  { %4541 = vrot.lane.b32.xlu1 %v4526_v31, %s11329_s28  ;;  %5040 = vmatprep.subr.mxu1 %v13188_v41 }
0x303b   :  { %5041 = vmatpush1.msra.mxu1 %v13194_v0 }
0x303c   :  { %5042 = vmatprep.subr.mxu1 %v13200_v15 }
0x303d   :  { %5043 = vmatpush1.msra.mxu1 %v13206_v12 }
0x303e   :  { %5044 = vmatprep.subr.mxu1 %v13212_v6  ;;  %v16087_v6 = vld [vmem:[#allocation50_spill] sm:$0xff] }
0x303f   :  { %5045 = vmatpush1.msra.mxu1 %v13218_v58 }
0x3040   :  { %5046 = vmatprep.subr.mxu1 %v13224_v62 }
0x3041   :  { %5047 = vmatpush1.msra.mxu1 %v13230_v17 }
0x3042   :  { %5048 = vmatprep.subr.mxu1 %v13236_v35 }
0x3043   :  { %5049 = vmatpush1.msra.mxu1 %v13242_v29 }
0x3044   :  { %5050 = vmatprep.subr.mxu1 %v13248_v40 }
0x3045   :  { %5051 = vmatpush1.msra.mxu1 %v13254_v53 }
0x3046   :  { %5052 = vmatprep.subr.mxu1 %v13260_v37 }
0x3047   :  { %5053 = vmatpush1.msra.mxu1 %v13266_v34 }
0x3048   :  { %5054 = vmatprep.subr.mxu1 %v13272_v59  ;;  %v16086_v59 = vld [vmem:[#allocation49_spill] sm:$0xff] }
0x3049   :  { %5055 = vmatpush1.msra.mxu1 %v13278_v13 }
0x304a   :  { %5056 = vmatprep.subr.mxu1 %v13284_v50 }
0x304b   :  { %5057 = vmatpush1.msra.mxu1 %v13290_v54 }
0x304c   :  { %5058 = vmatprep.subr.mxu1 %v13298_v25  ;;  %v16080_v25 = vld [vmem:[#allocation44_spill] sm:$0xff] }
0x304d   :  { %5059 = vmatpush1.msra.mxu1 %v13303_v60 }
0x309e   :  { %v4528_v26 = vpop.permute.xlu0 %4527 }
0x309f   :  { %v4551_v27 = vadd.f32 %v4528_v26, %v12755_v2 }
0x30a0   :  { %v4532_v21 = vpop.permute.xlu1 %4531 }
0x30a1   :  { %10995 = vtanh.f32 %v4551_v27  ;;  %v4553_v19 = vadd.f32 %v4532_v21, %v12760_v1  ;;  %v16081_v27 = vld [vmem:[#allocation38_spill] sm:$0xff] }
0x30a2   :  { %v4530_v3 = vpop.permute.xlu0 %4529 }
0x30a3   :  { %10997 = vtanh.f32 %v4553_v19  ;;  %v4552_v20 = vadd.f32 %v4530_v3, %v16077_v43  ;;  %v16082_v19 = vld [vmem:[#allocation39_spill] sm:$0xff] }
0x30a4   :  { %v4534_v10 = vpop.permute.xlu1 %4533 }
0x30a5   :  { %10999 = vtanh.f32 %v4552_v20  ;;  %v4554_v18 = vadd.f32 %v4534_v10, %v16078_v23  ;;  %v16083_v20 = vld [vmem:[#allocation46_spill] sm:$0xff] }
0x30a6   :  { %v4536_v11 = vpop.permute.xlu0 %4535 }
0x30a7   :  { %11001 = vtanh.f32 %v4554_v18  ;;  %v4555_v31 = vadd.f32 %v4536_v11, %v16079_v63 }
0x30a8   :  { %v4538_v60 = vpop.permute.xlu1 %4537 }
0x30a9   :  { %11003 = vtanh.f32 %v4555_v31  ;;  %v4556_v26 = vadd.f32 %v4538_v60, %v16080_v25 }
0x30aa   :  { %v4540_v2 = vpop.permute.xlu0 %4539 }
0x30ab   :  { %11005 = vtanh.f32 %v4556_v26  ;;  %v4557_v21 = vadd.f32 %v4540_v2, %v16081_v27 }
0x30ac   :  { %v4542_v1 = vpop.permute.xlu1 %4541 }
0x30ad   :  { %11007 = vtanh.f32 %v4557_v21  ;;  %v4558_v3 = vadd.f32 %v4542_v1, %v16082_v19 }
0x30ae   :  { %v10996_v43 = vpop.eup %10995 }
0x30af   :  { %11009 = vtanh.f32 %v4558_v3  ;;  %v4567_v10 = vmul.f32 %v10996_v43, %v16083_v20 }
0x30b0   :  { %v10998_v23 = vpop.eup %10997 }
0x30b1   :  { %v4575_v18 = vsel %vm609_vm3, %v4567_v10, 0.0  ;;  %v4569_v11 = vmul.f32 %v10998_v23, %v16083_v20 }
0x30b2   :  { %v11000_v63 = vpop.eup %10999  ;;  %4576 = vadd.xlane.f32.xlu0 %v4575_v18 }
0x30b3   :  { %v4581_v25 = vsel %vm609_vm3, %v4569_v11, 0.0  ;;  %v4568_v60 = vmul.f32 %v11000_v63, %v16083_v20 }
0x30b4   :  { %v11002_v2 = vpop.eup %11001 }
0x30b5   :  { %v4578_v31 = vsel %vm609_vm3, %v4568_v60, 0.0  ;;  %v4570_v1 = vmul.f32 %v11002_v2, %v16083_v20 }
0x30b6   :  { %v11004_v26 = vpop.eup %11003  ;;  %4582 = vadd.xlane.f32.xlu0 %v4581_v25  ;;  %4579 = vadd.xlane.f32.xlu1 %v4578_v31 }
0x30b7   :  { %v4584_v27 = vsel %vm609_vm3, %v4570_v1, 0.0  ;;  %v4571_v21 = vmul.f32 %v11004_v26, %v16083_v20  ;;  %v16084_v26 = vld [vmem:[#allocation29_spill] sm:$0xff] }
0x30b8   :  { %v11006_v19 = vpop.eup %11005 }
0x30b9   :  { %v4587_v3 = vsel %vm609_vm3, %v4571_v21, 0.0  ;;  %v4572_v43 = vmul.f32 %v11006_v19, %v16083_v20  ;;  %v16085_v21 = vld [vmem:[#allocation20_spill] sm:$0xff] }
0x30ba   :  { %v11008_v10 = vpop.eup %11007  ;;  %4585 = vadd.xlane.f32.xlu0 %v4584_v27  ;;  %4588 = vadd.xlane.f32.xlu1 %v4587_v3 }
0x30bb   :  { %v4590_v23 = vsel %vm609_vm3, %v4572_v43, 0.0  ;;  %v4573_v18 = vmul.f32 %v11008_v10, %v16083_v20 }
0x30bc   :  { %v11010_v11 = vpop.eup %11009 }
0x30bd   :  { %v4593_v63 = vsel %vm609_vm3, %v4573_v18, 0.0  ;;  %v4574_v25 = vmul.f32 %v11010_v11, %v16083_v20 }
0x30be   :  { %4591 = vadd.xlane.f32.xlu0 %v4590_v23  ;;  %4594 = vadd.xlane.f32.xlu1 %v4593_v63 }
0x30bf   :  { %v4596_v60 = vsel %vm609_vm3, %v4574_v25, 0.0 }
0x30c2   :  { %4597 = vadd.xlane.f32.xlu0 %v4596_v60 }
0x313b   :  { %v13564_v2 = vpop.xlane.xlu0 %4576 }
0x313c   :  { %v4610_v27 = vrot.slane %v13564_v2, %v16084_v26  ;;  %v4650_v19 = vrot.slane %v13564_v2, %v16085_v21  ;;  %v4690_v20 = vrot.slane %v13564_v2, %v12825_v48  ;;  %v4730_v3 = vrot.slane %v13564_v2, %v12828_v61 }
0x313d   :  { %v4770_v60 = vrot.slane %v13564_v2, %v12831_v4 }
0x313f   :  { %v13566_v31 = vpop.xlane.xlu0 %4582  ;;  %v13568_v1 = vpop.xlane.xlu1 %4579 }
0x3140   :  { %v4614_v43 = vrot.slane %v13568_v1, %v16084_v26  ;;  %v4618_v10 = vrot.slane %v13566_v31, %v16084_v26  ;;  %v4654_v23 = vrot.slane %v13568_v1, %v16085_v21  ;;  %v4658_v18 = vrot.slane %v13566_v31, %v16085_v21 }
0x3141   :  { %v4694_v11 = vrot.slane %v13568_v1, %v12825_v48  ;;  %v4698_v63 = vrot.slane %v13566_v31, %v12825_v48  ;;  %v4734_v25 = vrot.slane %v13568_v1, %v12828_v61  ;;  %v4738_v13 = vrot.slane %v13566_v31, %v12828_v61 }
0x3142   :  { %v4639_v54 = vsel %vm3736_vm12, %v4614_v43, %v4610_v27  ;;  %v4679_v50 = vsel %vm3736_vm12, %v4654_v23, %v4650_v19  ;;  %v4774_v41 = vrot.slane %v13568_v1, %v12831_v4 }
0x3143   :  { %v13600_v37 = vpop.xlane.xlu0 %4585  ;;  %v13602_v53 = vpop.xlane.xlu1 %4588  ;;  %v4640_v40 = vsel %vm3738_vm13, %v4618_v10, %v4639_v54  ;;  %v4680_v29 = vsel %vm3738_vm13, %v4658_v18, %v4679_v50  ;;  %v4719_v35 = vsel %vm3736_vm12, %v4694_v11, %v4690_v20  ;;  %v4759_v27 = vsel %vm3736_vm12, %v4734_v25, %v4730_v3 }
0x3144   :  { %v4622_v19 = vrot.slane %v13600_v37, %v16084_v26  ;;  %v4626_v43 = vrot.slane %v13602_v53, %v16084_v26  ;;  %v4662_v23 = vrot.slane %v13600_v37, %v16085_v21  ;;  %v4666_v34 = vrot.slane %v13602_v53, %v16085_v21 }
0x3145   :  { %v4702_v54 = vrot.slane %v13600_v37, %v12825_v48  ;;  %v4706_v50 = vrot.slane %v13602_v53, %v12825_v48  ;;  %v4720_v20 = vsel %vm3738_vm13, %v4698_v63, %v4719_v35  ;;  %v4742_v3 = vrot.slane %v13600_v37, %v12828_v61 }
0x3146   :  { %v4641_v10 = vsel %vm3740_vm14, %v4622_v19, %v4640_v40  ;;  %v4681_v18 = vsel %vm3740_vm14, %v4662_v23, %v4680_v29  ;;  %v4746_v11 = vrot.slane %v13602_v53, %v12828_v61  ;;  %v4760_v25 = vsel %vm3738_vm13, %v4738_v13, %v4759_v27 }
0x3147   :  { %v13628_v17 = vpop.xlane.xlu0 %4591  ;;  %v13630_v62 = vpop.xlane.xlu1 %4594  ;;  %v4642_v58 = vsel %vm3742_vm15, %v4626_v43, %v4641_v10  ;;  %v4721_v35 = vsel %vm3740_vm14, %v4702_v54, %v4720_v20  ;;  %v4761_v63 = vsel %vm3740_vm14, %v4742_v3, %v4760_v25  ;;  %v4850_v40 = vrot.slane %v13564_v2, %v16087_v6 }
0x3148   :  { %v4630_v29 = vrot.slane %v13628_v17, %v16084_v26  ;;  %v4634_v19 = vrot.slane %v13630_v62, %v16084_v26  ;;  %v4670_v13 = vrot.slane %v13628_v17, %v16085_v21  ;;  %v4682_v27 = vsel %vm3742_vm15, %v4666_v34, %v4681_v18 }
0x3149   :  { %v4674_v43 = vrot.slane %v13630_v62, %v16085_v21  ;;  %v4710_v23 = vrot.slane %v13628_v17, %v12825_v48  ;;  %v4714_v54 = vrot.slane %v13630_v62, %v12825_v48  ;;  %v4750_v20 = vrot.slane %v13628_v17, %v12828_v61 }
0x314a   :  { %v4643_v3 = vsel %vm3744_vm1, %v4630_v29, %v4642_v58  ;;  %v4722_v10 = vsel %vm3742_vm15, %v4706_v50, %v4721_v35  ;;  %v4754_v25 = vrot.slane %v13630_v62, %v12828_v61  ;;  %v4762_v34 = vsel %vm3742_vm15, %v4746_v11, %v4761_v63  ;;  %v16088_v35 = vld [vmem:[#allocation51_spill] sm:$0xff] }
0x314b   :  { %v13657_v18 = vpop.xlane.xlu0 %4597  ;;  %v4683_v12 = vsel %vm3744_vm1, %v4670_v13, %v4682_v27  ;;  %v4723_v15 = vsel %vm3744_vm1, %v4710_v23, %v4722_v10  ;;  %v4763_v0 = vsel %vm3744_vm1, %v4750_v20, %v4762_v34  ;;  %v4778_v11 = vrot.slane %v13566_v31, %v12831_v4 }
0x314c   :  { %v4638_v58 = vrot.slane %v13657_v18, %v16084_v26  ;;  %v4678_v50 = vrot.slane %v13657_v18, %v16085_v21  ;;  %v4890_v63 = vrot.slane %v13564_v2, %v16088_v35  ;;  %v4644_v29 = vsel %vm3746_vm2, %v4634_v19, %v4643_v3 }
0x314d   :  { %v4718_v13 = vrot.slane %v13657_v18, %v12825_v48  ;;  %v4758_v27 = vrot.slane %v13657_v18, %v12828_v61  ;;  %v4782_v26 = vrot.slane %v13600_v37, %v12831_v4  ;;  %v4684_v23 = vsel %vm3746_vm2, %v4674_v43, %v4683_v12 }
0x314e   :  { %v4724_v21 = vsel %vm3746_vm2, %v4714_v54, %v4723_v15  ;;  %v4764_v20 = vsel %vm3746_vm2, %v4754_v25, %v4763_v0  ;;  %v4786_v10 = vrot.slane %v13602_v53, %v12831_v4  ;;  %v4645_v19 = vsel %vm3748_vm4, %v4638_v58, %v4644_v29 }
0x314f   :  { %v4685_v3 = vsel %vm3748_vm4, %v4678_v50, %v4684_v23  ;;  %v4790_v34 = vrot.slane %v13628_v17, %v12831_v4  ;;  %v4799_v61 = vsel %vm3736_vm12, %v4774_v41, %v4770_v60  ;;  %v4814_v12 = vrot.slane %v13568_v1, %v16086_v59 }
0x3150   :  { %v4800_v48 = vsel %vm3738_vm13, %v4778_v11, %v4799_v61  ;;  %v4818_v0 = vrot.slane %v13566_v31, %v16086_v59  ;;  %v4822_v15 = vrot.slane %v13600_v37, %v16086_v59  ;;  %v4725_v43 = vsel %vm3748_vm4, %v4718_v13, %v4724_v21 }
0x3151   :  { %v4765_v54 = vsel %vm3748_vm4, %v4758_v27, %v4764_v20  ;;  %v4794_v25 = vrot.slane %v13630_v62, %v12831_v4  ;;  %v4801_v41 = vsel %vm3740_vm14, %v4782_v26, %v4800_v48  ;;  %v4798_v61 = vrot.slane %v13657_v18, %v12831_v4 }
0x3152   :  { %v4802_v60 = vsel %vm3742_vm15, %v4786_v10, %v4801_v41  ;;  %v16089_v58 = vrot.slane %v13564_v2, %v16086_v59  ;;  %v4854_v11 = vrot.slane %v13568_v1, %v16087_v6  ;;  %v4826_v13 = vrot.slane %v13602_v53, %v16086_v59 }
0x3153   :  { %v4803_v29 = vsel %vm3744_vm1, %v4790_v34, %v4802_v60  ;;  %v4858_v27 = vrot.slane %v13566_v31, %v16087_v6  ;;  %v4830_v26 = vrot.slane %v13628_v17, %v16086_v59  ;;  %v4834_v2 = vrot.slane %v13630_v62, %v16086_v59 }
0x3154   :  { %v4839_v50 = vsel %vm3736_vm12, %v4814_v12, %v16089_v58  ;;  %v4862_v21 = vrot.slane %v13600_v37, %v16087_v6  ;;  %v4804_v20 = vsel %vm3746_vm2, %v4794_v25, %v4803_v29  ;;  %v4838_v10 = vrot.slane %v13657_v18, %v16086_v59 }
0x3155   :  { %v4840_v48 = vsel %vm3738_vm13, %v4818_v0, %v4839_v50  ;;  %v4866_v34 = vrot.slane %v13602_v53, %v16087_v6  ;;  %v4870_v12 = vrot.slane %v13628_v17, %v16087_v6  ;;  %v4805_v0 = vsel %vm3748_vm4, %v4798_v61, %v4804_v20 }
0x3156   :  { %v4841_v23 = vsel %vm3740_vm14, %v4822_v15, %v4840_v48  ;;  %v4879_v41 = vsel %vm3736_vm12, %v4854_v11, %v4850_v40  ;;  %v4894_v15 = vrot.slane %v13568_v1, %v16088_v35  ;;  %v4898_v60 = vrot.slane %v13566_v31, %v16088_v35 }
0x3157   :  { %v4842_v25 = vsel %vm3742_vm15, %v4826_v13, %v4841_v23  ;;  %v4874_v59 = vrot.slane %v13630_v62, %v16087_v6  ;;  %v4880_v58 = vsel %vm3738_vm13, %v4858_v27, %v4879_v41  ;;  %v4902_v50 = vrot.slane %v13600_v37, %v16088_v35 }
0x3158   :  { %v4843_v61 = vsel %vm3744_vm1, %v4830_v26, %v4842_v25  ;;  %v4878_v40 = vrot.slane %v13657_v18, %v16087_v6  ;;  %v4881_v1 = vsel %vm3740_vm14, %v4862_v21, %v4880_v58  ;;  %v4906_v31 = vrot.slane %v13602_v53, %v16088_v35 }
0x3159   :  { %v4882_v11 = vsel %vm3742_vm15, %v4866_v34, %v4881_v1  ;;  %v4910_v29 = vrot.slane %v13628_v17, %v16088_v35  ;;  %v4919_v13 = vsel %vm3736_vm12, %v4894_v15, %v4890_v63  ;;  %v4927_v48 = vsel %vm4038_vm5, %v4645_v19, %v4685_v3  ;;  %v16093_v34 = vld [vmem:[#allocation52_spill] sm:$0xff]  ;;  %v16098_v1 = vld [vmem:[#allocation75_spill] sm:$0xff] }
0x315a   :  { %v4883_v37 = vsel %vm3744_vm1, %v4870_v12, %v4882_v11  ;;  %v4914_v27 = vrot.slane %v13630_v62, %v16088_v35  ;;  %v4920_v6 = vsel %vm3738_vm13, %v4898_v60, %v4919_v13  ;;  %v4928_v26 = vsel %vm16090_vm11, %v4927_v48, %v4725_v43  ;;  %vm16095_vm11 = vmmov %vm16094_vm8  ;;  %v16100_v11 = vld [vmem:[#allocation77_spill] sm:$0xff]  ;;  %v16102_v13 = vld [vmem:[#allocation79_spill] sm:$0xff] }
0x315b   :  { %v4844_v53 = vsel %vm3746_vm2, %v4834_v2, %v4843_v61  ;;  %v4918_v23 = vrot.slane %v13657_v18, %v16088_v35  ;;  %v4921_v17 = vsel %vm3740_vm14, %v4902_v50, %v4920_v6  ;;  %v4929_v63 = vsel %vm4042_vm9, %v4928_v26, %v4765_v54  ;;  %v16103_v48 = vld [vmem:[#allocation80_spill] sm:$0xff]  ;;  %v16106_v6 = vld [vmem:[#allocation83_spill] sm:$0xff] }
0x315c   :  { %v4845_v19 = vsel %vm3748_vm4, %v4838_v10, %v4844_v53  ;;  %v4884_v3 = vsel %vm3746_vm2, %v4874_v59, %v4883_v37  ;;  %v4922_v21 = vsel %vm3742_vm15, %v4906_v31, %v4921_v17  ;;  %v4930_v62 = vsel %vm609_vm3, %v4929_v63, %v4805_v0  ;;  %v16099_v31 = vld [vmem:[#allocation76_spill] sm:$0xff]  ;;  %v16104_v37 = vld [vmem:[#allocation81_spill] sm:$0xff]  ;;  %v16110_v17 = vld [vmem:[#allocation87_spill] sm:$0xff] }
0x315d   :  { %v4885_v20 = vsel %vm3748_vm4, %v4878_v40, %v4884_v3  ;;  %v4923_v43 = vsel %vm3744_vm1, %v4910_v29, %v4922_v21  ;;  %v4931_v2 = vsel %vm4045_vm10, %v4930_v62, %v4845_v19  ;;  %v16097_v40 = vld [vmem:[#allocation74_spill] sm:$0xff]  ;;  %v16107_v26 = vld [vmem:[#allocation84_spill] sm:$0xff]  ;;  %v16108_v53 = vld [vmem:[#allocation85_spill] sm:$0xff] }
0x315e   :  { %v4924_v18 = vsel %vm3746_vm2, %v4914_v27, %v4923_v43  ;;  %v4932_v35 = vsel %vm16091_vm6, %v4931_v2, %v4885_v20  ;;  %vm16096_vm6 = vmmov %vm16094_vm8  ;;  %v16101_v29 = vld [vmem:[#allocation78_spill] sm:$0xff]  ;;  %v16111_v63 = vld [vmem:[#allocation88_spill] sm:$0xff] }
0x315f   :  { %v4925_v54 = vsel %vm3748_vm4, %v4918_v23, %v4924_v18  ;;  %v16105_v27 = vld [vmem:[#allocation82_spill] sm:$0xff] }
0x3160   :  { %v4933_v10 = vsel %vm16092_vm0, %v4932_v35, %v4925_v54  ;;  %v16109_v23 = vld [vmem:[#allocation86_spill] sm:$0xff]  ;;  %v16113_v54 = vld [vmem:[#allocation31_spill] sm:$0xff] }
0x3161   :  { %v4934_v12 = vadd.f32 %v4933_v10, %v16093_v34  ;;  %v4444_v21 = vld [vmem:[#allocation2] sm:$0xff] }
0x3163   :  { %v4935_v41 = vsel %vm16094_vm8, %v4934_v12, -inf }
0x3164   :  { %4936 = vmax.xlane.f32.xlu1 %v4935_v41 }
0x31ed   :  { %v4937_v0 = vpop.xlane.xlu1 %4936 }
0x31ee   :  { %v4938_v15 = vsub.f32 %v4934_v12, %v4937_v0 }
0x31f0   :  { %v4939_v60 = vmul.f32 1.442695, %v4938_v15 }
0x31f2   :  { %11011 = vpow2.f32 %v4939_v60 }
0x31ff   :  { %v11012_v25 = vpop.eup %11011 }
0x3200   :  { %v4941_v59 = vsel %vm16095_vm11, %v11012_v25, 0.0 }
0x3201   :  { %4942 = vadd.xlane.f32.xlu0 %v4941_v59 }
0x3217   :  { %5023 = vrot.lane.b32.xlu0 %v13436_v51, %s11329_s28 }
0x328a   :  { %v4943_v58 = vpop.xlane.xlu0 %4942 }
0x328b   :  { %11013 = vrcp.f32 %v4943_v58 }
0x328e   :  { %v5024_v62 = vpop.permute.xlu0 %5023 }
0x3298   :  { %v11014_v50 = vpop.eup %11013 }
0x3299   :  { %v4945_v61 = vmul.f32 %v11014_v50, %v11012_v25 }
0x329b   :  { %10428 = vmatmul.mubr.msk.f32.vlgmr.msra.gmra.mxu0 %vm16096_vm6, %v4945_v61 }
0x329c   :  { %10431 = vmatpush3.msra.mxu0 %v13327_v22  ;;  %10462 = vmatprep.mubr.msk.f32.mxu0 %vm16076_vm7, %v16075_v45  ;;  %vm16112_vm7 = vcmask 785408  }
0x329d   :  { %10432 = vmatprep.subr.mxu0 %v16075_v45  ;;  %vm16115_vm0 = vmmov %vm16112_vm7 }
0x329e   :  { %10433 = vmatpush3.msra.mxu0 %v16097_v40 }
0x329f   :  { %10434 = vmatprep.subr.mxu0 %v16075_v45 }
0x32a0   :  { %10435 = vmatpush3.msra.mxu0 %v16098_v1 }
0x32a1   :  { %10436 = vmatprep.subr.mxu0 %v16075_v45 }
0x32a2   :  { %10437 = vmatpush3.msra.mxu0 %v16099_v31 }
0x32a3   :  { %10438 = vmatprep.subr.mxu0 %v16075_v45 }
0x32a4   :  { %10439 = vmatpush3.msra.mxu0 %v16100_v11 }
0x32a5   :  { %10440 = vmatprep.subr.mxu0 %v16075_v45 }
0x32a6   :  { %10441 = vmatpush3.msra.mxu0 %v16101_v29 }
0x32a7   :  { %10442 = vmatprep.subr.mxu0 %v16075_v45 }
0x32a8   :  { %10443 = vmatpush3.msra.mxu0 %v16102_v13 }
0x32a9   :  { %10444 = vmatprep.subr.mxu0 %v16075_v45 }
0x32aa   :  { %10445 = vmatpush3.msra.mxu0 %v16103_v48 }
0x32ab   :  { %10446 = vmatprep.subr.mxu0 %v16075_v45 }
0x32ac   :  { %10447 = vmatpush3.msra.mxu0 %v16104_v37 }
0x32ad   :  { %10448 = vmatprep.subr.mxu0 %v16075_v45 }
0x32ae   :  { %10449 = vmatpush3.msra.mxu0 %v16105_v27 }
0x32af   :  { %10450 = vmatprep.subr.mxu0 %v16075_v45 }
0x32b0   :  { %10451 = vmatpush3.msra.mxu0 %v16106_v6 }
0x32b1   :  { %10452 = vmatprep.subr.mxu0 %v16075_v45 }
0x32b2   :  { %10453 = vmatpush3.msra.mxu0 %v16107_v26 }
0x32b3   :  { %10454 = vmatprep.subr.mxu0 %v16075_v45 }
0x32b4   :  { %10455 = vmatpush3.msra.mxu0 %v16108_v53 }
0x32b5   :  { %10456 = vmatprep.subr.mxu0 %v16075_v45 }
0x32b6   :  { %10457 = vmatpush3.msra.mxu0 %v16109_v23 }
0x32b7   :  { %10458 = vmatprep.subr.mxu0 %v16075_v45 }
0x32b8   :  { %10459 = vmatpush3.msra.mxu0 %v16110_v17 }
0x32b9   :  { %10460 = vmatprep.subr.mxu0 %v16075_v45  ;;  %v16114_v45 = vld [vmem:[#allocation73_spill] sm:$0xff] }
0x32ba   :  { %10461 = vmatpush3.msra.mxu0 %v16111_v63 }
0x335b   :  { %v5015_v19 = vpop.f32.mrf.mxu0 }
0x335c   :  { %5020 = vrot.lane.b32.xlu1 %v5015_v19, %s11333_s30 }
0x335d   :  { %v10429_v3 = vpop.f32.mrf.mxu0 }
0x33ce   :  { %v5021_v20 = vpop.permute.xlu1 %5020 }
0x33cf   :  { %v5026_v43 = vsel %vm609_vm3, %v4444_v21, %v5021_v20 }
0x33d0   :  { %v5027_v2 = vsel %vm16112_vm7, %v5026_v43, %v5024_v62 }
0x33d1   :  { %5093 = vmatmul.mubr.f32.vlgmr.msra.gmra.mxu1 %v5027_v2 }
0x3491   :  { %v5094_v18 = vpop.f32.mrf.mxu1 }
0x3492   :  { %v5099_v34 = vadd.f32 %v16114_v45, %v5094_v18 }
0x3493   :  { %v5096_v35 = vpop.f32.mrf.mxu1 }
0x3494   :  { %v5100_v10 = vadd.f32 %v16113_v54, %v5096_v35 }
0x3496   :  { %5109 = vrot.lane.b32.xlu1 %v5100_v10, %s11329_s28  ;;  %v5101_v12 = vadd.f32 %v5100_v10, %v5099_v34 }
0x3498   :  { %v9623_v41 = vmul.f32 -1.442695, %v5101_v12 }
0x349a   :  { %11015 = vpow2.f32 %v9623_v41 }
0x34a7   :  { %v11016_v0 = vpop.eup %11015 }
0x34a8   :  { %v5105_v15 = vadd.f32 1.0, %v11016_v0 }
0x34aa   :  { %11017 = vrcp.f32 %v5105_v15 }
0x34b7   :  { %v11018_v60 = vpop.eup %11017 }
0x34b8   :  { %v5119_v40 = vsub.f32 1.0, %v11018_v60  ;;  %v5125_v31 = vmul.f32 %v11018_v60, %v13436_v51 }
0x3508   :  { %v5110_v25 = vpop.permute.xlu1 %5109 }
0x3509   :  { %v5112_v59 = vmul.f32 %v11018_v60, %v5110_v25 }
0x350b   :  { %5114 = vrot.lane.b32.xlu1 %v5112_v59, %s11329_s28 }
0x357d   :  { %v5115_v58 = vpop.permute.xlu1 %5114 }
0x357e   :  { %v5117_v50 = vadd.f32 %v5115_v58, %v5099_v34 }
0x3580   :  { %11019 = vtanh.f32 %v5117_v50 }
0x358d   :  { %v11020_v61 = vpop.eup %11019 }
0x358e   :  { %5121 = vrot.lane.b32.xlu0 %v11020_v61, %s11330_s8 }
0x3600   :  { %v5122_v1 = vpop.permute.xlu0 %5121 }
0x3601   :  { %v5124_v11 = vmul.f32 %v5122_v1, %v5119_v40 }
0x3603   :  { %v13822_v29 = vadd.f32 %v5125_v31, %v5124_v11 }
0x3605   :  { %v10990_v13 = vpack.i.bf16 %v4444_v21, %v13822_v29 }
0x3607   :  { %10991 = vrot.lane.b32.xlu1 %v10990_v13, %s11330_s8 }
0x3679   :  { %v10992_v48 = vpop.permute.xlu1 %10991 }
0x367a   :  { %v10994_v37 = vunpack.i.h.bf16 %v10992_v48  ;;  %v10993_v27 = vunpack.i.l.bf16 %v10992_v48 }
0x367c   :  { %v5135_v6 = vsel %vm609_vm3, %v10993_v27, %v5021_v20 }
0x367d   :  { %v5136_v26 = vsel %vm16115_vm0, %v5135_v6, %v10994_v37 }
0x367e   :  { %10463 = vmatmul.mubr.f32.vlgmr.msra.gmra.mxu0 %v5136_v26 }
0x373d   :  { %5213 = sbr.rel (%p9626_p9) target bundleno = 14148 (0x3744), region = 133 }
0x373e   :  { %v5203_v53 = vpop.f32.mrf.mxu0 }
0x373f   :  { %v5204_v23 = vadd.f32 %v13444_v32, %v5203_v53 }
0x3740   :  { %v10464_v51 = vpop.f32.mrf.mxu0 }
0x3741   :  { %9624 = vst [vmem:[%s15762_s23 + $0x10] sm:$0xff] %v5204_v23 }
0x3742   :  { %v16116_v17 = vld [vmem:[#allocation33_spill] sm:$0xff] }
0x3743   :  { %5214 = vst.msk [vmem:[#allocation2] sm:$0xff] %vm609_vm3, %v16116_v17 }
0x3744 PF:  { %s9627_s13 = sld [smem:[#allocation3 + $0x2]] }
0x374a   :  { %p9628_p10 = scmp.ne.s32.totalorder %s9627_s13, 0 }
0x374c   :  { %5219 = sbr.rel (%p9628_p10) target bundleno = 14639 (0x392f), region = 137 }
0x3751   :  { %vm16117_vm8 = vcmask 523264   ;;  %v11336_v19 = vmov 0.0   ;;  %v16118_v3 = vld [vmem:[#allocation21_spill] sm:$0xff]  ;;  %v16119_v21 = vld [vmem:[#allocation22_spill] sm:$0xff]  ;;  %v16120_v62 = vld [vmem:[#allocation23_spill] sm:$0xff]  ;;  %vm11337_vm7 = vmmov 0  }
0x3752   :  { %v5220_v63 = vsel %vm16117_vm8, %v5204_v23, -inf  ;;  %10465 = vmatprep.subr.mxu0 %v11336_v19  ;;  %v16121_v20 = vld [vmem:[#allocation24_spill] sm:$0xff]  ;;  %v16122_v43 = vld [vmem:[#allocation25_spill] sm:$0xff]  ;;  %v16123_v2 = vld [vmem:[#allocation26_spill] sm:$0xff]  ;;  %10481 = vmatprep.mubr.msk.f32.mxu0 %vm11337_vm7, %v11336_v19 }
0x3753   :  { %5221 = vmax.xlane.f32.xlu0 %v5220_v63  ;;  %10466 = vmatpush3.msra.mxu0 %v16118_v3  ;;  %v16124_v18 = vld [vmem:[#allocation27_spill] sm:$0xff]  ;;  %v16125_v35 = vld [vmem:[#allocation28_spill] sm:$0xff]  ;;  %v16126_v10 = vld [vmem:[#allocation37_spill] sm:$0xff] }
0x3754   :  { %10467 = vmatprep.subr.mxu0 %v11336_v19  ;;  %vm16127_vm6 = vmmov %vm16117_vm8 }
0x3755   :  { %10468 = vmatpush3.msra.mxu0 %v16119_v21  ;;  %vm16128_vm8 = vmmov %vm16127_vm6 }
0x3756   :  { %10469 = vmatprep.subr.mxu0 %v11336_v19 }
0x3757   :  { %10470 = vmatpush3.msra.mxu0 %v16120_v62 }
0x3758   :  { %10471 = vmatprep.subr.mxu0 %v11336_v19 }
0x3759   :  { %10472 = vmatpush3.msra.mxu0 %v16121_v20 }
0x375a   :  { %10473 = vmatprep.subr.mxu0 %v11336_v19 }
0x375b   :  { %10474 = vmatpush3.msra.mxu0 %v16122_v43 }
0x375c   :  { %10475 = vmatprep.subr.mxu0 %v11336_v19 }
0x375d   :  { %10476 = vmatpush3.msra.mxu0 %v16123_v2 }
0x375e   :  { %10477 = vmatprep.subr.mxu0 %v11336_v19 }
0x375f   :  { %10478 = vmatpush3.msra.mxu0 %v16124_v18 }
0x3760   :  { %10479 = vmatprep.subr.mxu0 %v11336_v19 }
0x3761   :  { %10480 = vmatpush3.msra.mxu0 %v16125_v35 }
0x37dc   :  { %v5222_v54 = vpop.xlane.xlu0 %5221 }
0x37dd   :  { %vm5223_vm11 = vcmp.eq.f32.partialorder %v5204_v23, %v5222_v54 }
0x37de   :  { %v5224_v45 = vsel %vm5223_vm11, %v16126_v10, 64.0 }
0x37df   :  { %v5225_v34 = vsel %vm16127_vm6, %v5224_v45, inf }
0x37e0   :  { %5226 = vmin.xlane.f32.xlu0 %v5225_v34 }
0x3869   :  { %v5227_v12 = vpop.xlane.xlu0 %5226 }
0x386a   :  { %vm5228_vm0 = vcmp.eq.f32.partialorder %v16126_v10, %v5227_v12 }
0x386b   :  { %v9629_v41 = vsel %vm5228_vm0, 1.0, %v11336_v19 }
0x386c   :  { %10482 = vmatmul.mubr.msk.f32.vlgmr.msra.gmra.mxu0 %vm16128_vm8, %v9629_v41 }
0x392c   :  { %v5300_v0 = vpop.f32.mrf.mxu0 }
0x392d   :  { %5304 = vst.msk [vmem:[#allocation2] sm:$0xff] %vm609_vm3, %v5300_v0 }
0x392e   :  { %v10483_v15 = vpop.f32.mrf.mxu0 }
0x392f PF:  { %v5314_v60 = vrot.slane %v5204_v23, %v12212_v33  ;;  %v5307_v25 = vcombine.high %v5204_v23, %v5204_v23  ;;  %v16129_v59 = vmov 0.0   ;;  %vm16130_vm11 = vmmov 0   ;;  %5889 = vmatprep.subr.mxu1 %v13118_v57  ;;  %v16131_v3 = vld [vmem:[#allocation53_spill] sm:$0xff]  ;;  %v16132_v21 = vld [vmem:[#allocation54_spill] sm:$0xff]  ;;  %v16133_v62 = vld [vmem:[#allocation55_spill] sm:$0xff]  ;;  %s9634_s29 = sld [smem:[#allocation3 + $0x3]] }
0x3930   :  { %10484 = vmatprep.subr.mxu0 %v16129_v59  ;;  %10500 = vmatprep.mubr.msk.f32.mxu0 %vm16130_vm11, %v16129_v59  ;;  %v16134_v20 = vld [vmem:[#allocation56_spill] sm:$0xff]  ;;  %v16135_v43 = vld [vmem:[#allocation57_spill] sm:$0xff]  ;;  %v16136_v2 = vld [vmem:[#allocation58_spill] sm:$0xff]  ;;  %vm16168_vm6 = vcmask 130048   ;;  %vm16169_vm7 = vcmask 392192   ;;  %vm16170_vm0 = vcmask 457728  }
0x3931   :  { %10485 = vmatpush3.msra.mxu0 %v12675_v49  ;;  %v5330_v58 = vrot.slane %v5314_v60, %v12212_v33  ;;  %v5322_v50 = vcombine.high %v5314_v60, %v5314_v60  ;;  %v5321_v61 = vrot.slane %v5307_v25, %v12212_v33  ;;  %5890 = vmatpush1.msra.mxu1 %v13123_v30  ;;  %v16137_v18 = vld [vmem:[#allocation59_spill] sm:$0xff]  ;;  %v16138_v35 = vld [vmem:[#allocation60_spill] sm:$0xff]  ;;  %v16139_v54 = vld [vmem:[#allocation61_spill] sm:$0xff]  ;;  %vm16172_vm8 = vcmask 523264  }
0x3932   :  { %10486 = vmatprep.subr.mxu0 %v16129_v59  ;;  %5891 = vmatprep.subr.mxu1 %v13128_v56  ;;  %v16140_v10 = vld [vmem:[#allocation62_spill] sm:$0xff]  ;;  %v16141_v45 = vld [vmem:[#allocation63_spill] sm:$0xff]  ;;  %v16142_v34 = vld [vmem:[#allocation64_spill] sm:$0xff] }
0x3933   :  { %10487 = vmatpush3.msra.mxu0 %v12703_v55  ;;  %v5359_v40 = vrot.slane %v5330_v58, %v11526_v9  ;;  %v5352_v1 = vcombine.high %v5330_v58, %v5330_v58  ;;  %v5344_v31 = vrot.slane %v5322_v50, %v12212_v33  ;;  %v5323_v11 = vcombine.high %v5321_v61, %v5321_v61  ;;  %v16143_v12 = vld [vmem:[#allocation65_spill] sm:$0xff]  ;;  %v16144_v41 = vld [vmem:[#allocation66_spill] sm:$0xff]  ;;  %v16145_v0 = vld [vmem:[#allocation67_spill] sm:$0xff] }
0x3934   :  { %10488 = vmatprep.subr.mxu0 %v16129_v59  ;;  %5892 = vmatpush1.msra.mxu1 %v13134_v8  ;;  %v5337_v27 = vrot.slane %v5321_v61, %v12212_v33  ;;  %v16146_v15 = vld [vmem:[#allocation68_spill] sm:$0xff]  ;;  %v16147_v60 = vld [vmem:[#allocation69_spill] sm:$0xff]  ;;  %v16148_v25 = vld [vmem:[#allocation70_spill] sm:$0xff] }
0x3935   :  { %10489 = vmatpush3.msra.mxu0 %v12711_v16  ;;  %5388 = vrot.lane.b32.xlu0 %v5359_v40, %s11329_s28  ;;  %v5367_v13 = vrot.slane %v5352_v1, %v11526_v9  ;;  %v5363_v48 = vrot.slane %v5344_v31, %v11526_v9  ;;  %v5354_v37 = vcombine.high %v5344_v31, %v5344_v31  ;;  %v16149_v58 = vld [vmem:[#allocation71_spill] sm:$0xff]  ;;  %v16150_v50 = vld [vmem:[#allocation72_spill] sm:$0xff]  ;;  %p9635_p11 = scmp.eq.s32.totalorder %s9634_s29, 0 }
0x3936   :  { %10490 = vmatprep.subr.mxu0 %v16129_v59  ;;  %5893 = vmatprep.subr.mxu1 %v13140_v14  ;;  %v5351_v26 = vrot.slane %v5323_v11, %v12212_v33  ;;  %v5375_v53 = vrot.slane %v5337_v27, %v11526_v9  ;;  %v5353_v23 = vcombine.high %v5337_v27, %v5337_v27  ;;  %v16151_v40 = vld [vmem:[#allocation43_spill] sm:$0xff]  ;;  %v16152_v11 = vld [vmem:[#allocation40_spill] sm:$0xff] }
0x3937   :  { %5392 = vrot.lane.b32.xlu1 %v5367_v13, %s11329_s28  ;;  %v5371_v6 = vrot.slane %v5354_v37, %v11526_v9  ;;  %10491 = vmatpush3.msra.mxu0 %v12665_v24  ;;  %v16153_v37 = vld [vmem:[#allocation42_spill] sm:$0xff] }
0x3938   :  { %10492 = vmatprep.subr.mxu0 %v16129_v59  ;;  %5894 = vmatpush1.msra.mxu1 %v13146_v42  ;;  %v5379_v51 = vrot.slane %v5351_v26, %v11526_v9  ;;  %v5355_v17 = vcombine.high %v5351_v26, %v5351_v26  ;;  %v5383_v63 = vrot.slane %v5353_v23, %v11526_v9  ;;  %v16154_v26 = vld [vmem:[#allocation45_spill] sm:$0xff] }
0x3939   :  { %5390 = vrot.lane.b32.xlu0 %v5363_v48, %s11329_s28  ;;  %10493 = vmatpush3.msra.mxu0 %v12623_v38 }
0x393a   :  { %10494 = vmatprep.subr.mxu0 %v16129_v59  ;;  %5895 = vmatprep.subr.mxu1 %v13152_v36  ;;  %v5387_v19 = vrot.slane %v5355_v17, %v11526_v9 }
0x393b   :  { %5394 = vrot.lane.b32.xlu1 %v5371_v6, %s11329_s28  ;;  %10495 = vmatpush3.msra.mxu0 %v12599_v5 }
0x393c   :  { %10496 = vmatprep.subr.mxu0 %v16129_v59  ;;  %5896 = vmatpush1.msra.mxu1 %v13158_v52 }
0x393d   :  { %5396 = vrot.lane.b32.xlu0 %v5375_v53, %s11329_s28  ;;  %10497 = vmatpush3.msra.mxu0 %v12590_v39 }
0x393e   :  { %10498 = vmatprep.subr.mxu0 %v16129_v59  ;;  %5897 = vmatprep.subr.mxu1 %v13164_v28 }
0x393f   :  { %5398 = vrot.lane.b32.xlu1 %v5379_v51, %s11329_s28  ;;  %10499 = vmatpush3.msra.mxu0 %v12587_v47  ;;  %v16155_v51 = vld [vmem:[#allocation41_spill] sm:$0xff] }
0x3940   :  { %5898 = vmatpush1.msra.mxu1 %v13170_v7  ;;  %5953 = vmatprep.mubr.f32.mxu1 %v16129_v59 }
0x3941   :  { %5400 = vrot.lane.b32.xlu0 %v5383_v63, %s11329_s28  ;;  %5899 = vmatprep.subr.mxu1 %v13176_v46 }
0x3942   :  { %5900 = vmatpush1.msra.mxu1 %v13182_v44  ;;  %10503 = vmatprep.subr.mxu0 %v16129_v59 }
0x3943   :  { %5402 = vrot.lane.b32.xlu1 %v5387_v19, %s11329_s28  ;;  %5901 = vmatprep.subr.mxu1 %v16131_v3  ;;  %v16156_v19 = vld [vmem:[#allocation44_spill] sm:$0xff] }
0x3944   :  { %5902 = vmatpush1.msra.mxu1 %v16132_v21 }
0x3945   :  { %5903 = vmatprep.subr.mxu1 %v16133_v62  ;;  %v16157_v62 = vld [vmem:[#allocation38_spill] sm:$0xff] }
0x3946   :  { %5904 = vmatpush1.msra.mxu1 %v16134_v20 }
0x3947   :  { %5905 = vmatprep.subr.mxu1 %v16135_v43 }
0x3948   :  { %5906 = vmatpush1.msra.mxu1 %v16136_v2  ;;  %v16158_v2 = vld [vmem:[#allocation39_spill] sm:$0xff] }
0x3949   :  { %5907 = vmatprep.subr.mxu1 %v16137_v18 }
0x394a   :  { %5908 = vmatpush1.msra.mxu1 %v16138_v35 }
0x394b   :  { %5909 = vmatprep.subr.mxu1 %v16139_v54  ;;  %v16159_v54 = vld [vmem:[#allocation46_spill] sm:$0xff] }
0x394c   :  { %5910 = vmatpush1.msra.mxu1 %v16140_v10 }
0x394d   :  { %5911 = vmatprep.subr.mxu1 %v16141_v45 }
0x394e   :  { %5912 = vmatpush1.msra.mxu1 %v16142_v34 }
0x394f   :  { %5913 = vmatprep.subr.mxu1 %v16143_v12 }
0x3950   :  { %5914 = vmatpush1.msra.mxu1 %v16144_v41 }
0x3951   :  { %5915 = vmatprep.subr.mxu1 %v16145_v0 }
0x3952   :  { %5916 = vmatpush1.msra.mxu1 %v16146_v15 }
0x3953   :  { %5917 = vmatprep.subr.mxu1 %v16147_v60 }
0x3954   :  { %5918 = vmatpush1.msra.mxu1 %v16148_v25 }
0x3955   :  { %5919 = vmatprep.subr.mxu1 %v16149_v58 }
0x3956   :  { %5920 = vmatpush1.msra.mxu1 %v16150_v50 }
0x39a7   :  { %v5389_v61 = vpop.permute.xlu0 %5388 }
0x39a8   :  { %v5412_v1 = vadd.f32 %v5389_v61, %v16151_v40 }
0x39a9   :  { %v5393_v31 = vpop.permute.xlu1 %5392 }
0x39aa   :  { %11026 = vtanh.f32 %v5412_v1  ;;  %v5414_v13 = vadd.f32 %v5393_v31, %v16152_v11 }
0x39ab   :  { %v5391_v48 = vpop.permute.xlu0 %5390 }
0x39ac   :  { %11028 = vtanh.f32 %v5414_v13  ;;  %v5413_v27 = vadd.f32 %v5391_v48, %v16153_v37 }
0x39ad   :  { %v5395_v6 = vpop.permute.xlu1 %5394 }
0x39ae   :  { %11030 = vtanh.f32 %v5413_v27  ;;  %v5415_v53 = vadd.f32 %v5395_v6, %v16154_v26 }
0x39af   :  { %v5397_v23 = vpop.permute.xlu0 %5396 }
0x39b0   :  { %11032 = vtanh.f32 %v5415_v53  ;;  %v5416_v17 = vadd.f32 %v5397_v23, %v16155_v51 }
0x39b1   :  { %v5399_v63 = vpop.permute.xlu1 %5398 }
0x39b2   :  { %11034 = vtanh.f32 %v5416_v17  ;;  %v5417_v3 = vadd.f32 %v5399_v63, %v16156_v19  ;;  %v16160_v63 = vld [vmem:[#allocation29_spill] sm:$0xff] }
0x39b3   :  { %v5401_v21 = vpop.permute.xlu0 %5400 }
0x39b4   :  { %11036 = vtanh.f32 %v5417_v3  ;;  %v5418_v20 = vadd.f32 %v5401_v21, %v16157_v62  ;;  %v16161_v3 = vld [vmem:[#allocation20_spill] sm:$0xff]  ;;  %v16162_v62 = vld [vmem:[#allocation47_spill] sm:$0xff] }
0x39b5   :  { %v5403_v43 = vpop.permute.xlu1 %5402 }
0x39b6   :  { %11038 = vtanh.f32 %v5418_v20  ;;  %v5419_v18 = vadd.f32 %v5403_v43, %v16158_v2  ;;  %v16163_v43 = vld [vmem:[#allocation48_spill] sm:$0xff] }
0x39b7   :  { %v11027_v35 = vpop.eup %11026 }
0x39b8   :  { %11040 = vtanh.f32 %v5419_v18  ;;  %v5428_v10 = vmul.f32 %v11027_v35, %v16159_v54 }
0x39b9   :  { %v11029_v45 = vpop.eup %11028 }
0x39ba   :  { %v5436_v34 = vsel %vm609_vm3, %v5428_v10, 0.0  ;;  %v5430_v12 = vmul.f32 %v11029_v45, %v16159_v54 }
0x39bb   :  { %v11031_v41 = vpop.eup %11030  ;;  %5437 = vadd.xlane.f32.xlu0 %v5436_v34 }
0x39bc   :  { %v5442_v0 = vsel %vm609_vm3, %v5430_v12, 0.0  ;;  %v5429_v15 = vmul.f32 %v11031_v41, %v16159_v54 }
0x39bd   :  { %v11033_v60 = vpop.eup %11032 }
0x39be   :  { %v5439_v25 = vsel %vm609_vm3, %v5429_v15, 0.0  ;;  %v5431_v58 = vmul.f32 %v11033_v60, %v16159_v54 }
0x39bf   :  { %v11035_v50 = vpop.eup %11034  ;;  %5443 = vadd.xlane.f32.xlu0 %v5442_v0  ;;  %5440 = vadd.xlane.f32.xlu1 %v5439_v25  ;;  %v16164_v25 = vld [vmem:[#allocation49_spill] sm:$0xff] }
0x39c0   :  { %v5445_v61 = vsel %vm609_vm3, %v5431_v58, 0.0  ;;  %v5432_v40 = vmul.f32 %v11035_v50, %v16159_v54 }
0x39c1   :  { %v11037_v1 = vpop.eup %11036 }
0x39c2   :  { %v5448_v31 = vsel %vm609_vm3, %v5432_v40, 0.0  ;;  %v5433_v11 = vmul.f32 %v11037_v1, %v16159_v54 }
0x39c3   :  { %v11039_v13 = vpop.eup %11038  ;;  %5446 = vadd.xlane.f32.xlu0 %v5445_v61  ;;  %5449 = vadd.xlane.f32.xlu1 %v5448_v31 }
0x39c4   :  { %v5451_v48 = vsel %vm609_vm3, %v5433_v11, 0.0  ;;  %v5434_v37 = vmul.f32 %v11039_v13, %v16159_v54 }
0x39c5   :  { %v11041_v27 = vpop.eup %11040 }
0x39c6   :  { %v5454_v6 = vsel %vm609_vm3, %v5434_v37, 0.0  ;;  %v5435_v26 = vmul.f32 %v11041_v27, %v16159_v54 }
0x39c7   :  { %5452 = vadd.xlane.f32.xlu0 %v5451_v48  ;;  %5455 = vadd.xlane.f32.xlu1 %v5454_v6 }
0x39c8   :  { %v5457_v53 = vsel %vm609_vm3, %v5435_v26, 0.0 }
0x39cb   :  { %5458 = vadd.xlane.f32.xlu0 %v5457_v53 }
0x3a44   :  { %v13946_v23 = vpop.xlane.xlu0 %5437 }
0x3a45   :  { %v5471_v19 = vrot.slane %v13946_v23, %v16160_v63  ;;  %v5511_v21 = vrot.slane %v13946_v23, %v16161_v3  ;;  %v5551_v20 = vrot.slane %v13946_v23, %v16162_v62  ;;  %v5591_v2 = vrot.slane %v13946_v23, %v16163_v43 }
0x3a46   :  { %v5631_v41 = vrot.slane %v13946_v23, %v12831_v4 }
0x3a48   :  { %v13948_v51 = vpop.xlane.xlu0 %5443  ;;  %v13950_v17 = vpop.xlane.xlu1 %5440 }
0x3a49   :  { %v5475_v18 = vrot.slane %v13950_v17, %v16160_v63  ;;  %v5479_v35 = vrot.slane %v13948_v51, %v16160_v63  ;;  %v5515_v54 = vrot.slane %v13950_v17, %v16161_v3  ;;  %v5519_v10 = vrot.slane %v13948_v51, %v16161_v3 }
0x3a4a   :  { %v5555_v45 = vrot.slane %v13950_v17, %v16162_v62  ;;  %v5559_v34 = vrot.slane %v13948_v51, %v16162_v62  ;;  %v5595_v12 = vrot.slane %v13950_v17, %v16163_v43  ;;  %v5599_v60 = vrot.slane %v13948_v51, %v16163_v43 }
0x3a4b   :  { %v5500_v0 = vsel %vm3736_vm12, %v5475_v18, %v5471_v19  ;;  %v5540_v15 = vsel %vm3736_vm12, %v5515_v54, %v5511_v21  ;;  %v5635_v58 = vrot.slane %v13950_v17, %v12831_v4 }
0x3a4c   :  { %v13982_v50 = vpop.xlane.xlu0 %5446  ;;  %v13984_v61 = vpop.xlane.xlu1 %5449  ;;  %v5501_v40 = vsel %vm3738_vm13, %v5479_v35, %v5500_v0  ;;  %v5541_v1 = vsel %vm3738_vm13, %v5519_v10, %v5540_v15  ;;  %v5580_v31 = vsel %vm3736_vm12, %v5555_v45, %v5551_v20  ;;  %v5620_v11 = vsel %vm3736_vm12, %v5595_v12, %v5591_v2  ;;  %v16165_v12 = vld [vmem:[#allocation50_spill] sm:$0xff] }
0x3a4d   :  { %v5483_v13 = vrot.slane %v13982_v50, %v16160_v63  ;;  %v5487_v48 = vrot.slane %v13984_v61, %v16160_v63  ;;  %v5523_v37 = vrot.slane %v13982_v50, %v16161_v3  ;;  %v5527_v27 = vrot.slane %v13984_v61, %v16161_v3 }
0x3a4e   :  { %v5563_v6 = vrot.slane %v13982_v50, %v16162_v62  ;;  %v5567_v26 = vrot.slane %v13984_v61, %v16162_v62  ;;  %v5581_v53 = vsel %vm3738_vm13, %v5559_v34, %v5580_v31  ;;  %v5603_v19 = vrot.slane %v13982_v50, %v16163_v43 }
0x3a4f   :  { %v5502_v21 = vsel %vm3740_vm14, %v5483_v13, %v5501_v40  ;;  %v5542_v20 = vsel %vm3740_vm14, %v5523_v37, %v5541_v1  ;;  %v5607_v2 = vrot.slane %v13984_v61, %v16163_v43  ;;  %v5621_v18 = vsel %vm3738_vm13, %v5599_v60, %v5620_v11 }
0x3a50   :  { %v14010_v35 = vpop.xlane.xlu0 %5452  ;;  %v14012_v54 = vpop.xlane.xlu1 %5455  ;;  %v5503_v10 = vsel %vm3742_vm15, %v5487_v48, %v5502_v21  ;;  %v5582_v45 = vsel %vm3740_vm14, %v5563_v6, %v5581_v53  ;;  %v5622_v34 = vsel %vm3740_vm14, %v5603_v19, %v5621_v18  ;;  %v5711_v0 = vrot.slane %v13946_v23, %v16165_v12 }
0x3a51   :  { %v5491_v15 = vrot.slane %v14010_v35, %v16160_v63  ;;  %v5495_v40 = vrot.slane %v14012_v54, %v16160_v63  ;;  %v5531_v60 = vrot.slane %v14010_v35, %v16161_v3  ;;  %v5543_v1 = vsel %vm3742_vm15, %v5527_v27, %v5542_v20 }
0x3a52   :  { %v5535_v31 = vrot.slane %v14012_v54, %v16161_v3  ;;  %v5571_v11 = vrot.slane %v14010_v35, %v16162_v62  ;;  %v5575_v13 = vrot.slane %v14012_v54, %v16162_v62  ;;  %v5611_v48 = vrot.slane %v14010_v35, %v16163_v43 }
0x3a53   :  { %v5504_v37 = vsel %vm3744_vm1, %v5491_v15, %v5503_v10  ;;  %v5583_v6 = vsel %vm3742_vm15, %v5567_v26, %v5582_v45  ;;  %v5615_v53 = vrot.slane %v14012_v54, %v16163_v43  ;;  %v5623_v27 = vsel %vm3742_vm15, %v5607_v2, %v5622_v34  ;;  %v16166_v45 = vld [vmem:[#allocation51_spill] sm:$0xff] }
0x3a54   :  { %v14039_v19 = vpop.xlane.xlu0 %5458  ;;  %v5544_v21 = vsel %vm3744_vm1, %v5531_v60, %v5543_v1  ;;  %v5584_v20 = vsel %vm3744_vm1, %v5571_v11, %v5583_v6  ;;  %v5624_v18 = vsel %vm3744_vm1, %v5611_v48, %v5623_v27  ;;  %v5639_v2 = vrot.slane %v13948_v51, %v12831_v4 }
0x3a55   :  { %v5499_v10 = vrot.slane %v14039_v19, %v16160_v63  ;;  %v5539_v26 = vrot.slane %v14039_v19, %v16161_v3  ;;  %v5751_v34 = vrot.slane %v13946_v23, %v16166_v45  ;;  %v5505_v15 = vsel %vm3746_vm2, %v5495_v40, %v5504_v37 }
0x3a56   :  { %v5579_v60 = vrot.slane %v14039_v19, %v16162_v62  ;;  %v5619_v1 = vrot.slane %v14039_v19, %v16163_v43  ;;  %v5643_v63 = vrot.slane %v13982_v50, %v12831_v4  ;;  %v5545_v11 = vsel %vm3746_vm2, %v5535_v31, %v5544_v21 }
0x3a57   :  { %v5585_v3 = vsel %vm3746_vm2, %v5575_v13, %v5584_v20  ;;  %v5625_v48 = vsel %vm3746_vm2, %v5615_v53, %v5624_v18  ;;  %v5647_v6 = vrot.slane %v13984_v61, %v12831_v4  ;;  %v5506_v40 = vsel %vm3748_vm4, %v5499_v10, %v5505_v15 }
0x3a58   :  { %v5546_v37 = vsel %vm3748_vm4, %v5539_v26, %v5545_v11  ;;  %v5651_v62 = vrot.slane %v14010_v35, %v12831_v4  ;;  %v5660_v43 = vsel %vm3736_vm12, %v5635_v58, %v5631_v41  ;;  %v5675_v31 = vrot.slane %v13950_v17, %v16164_v25 }
0x3a59   :  { %v5661_v27 = vsel %vm3738_vm13, %v5639_v2, %v5660_v43  ;;  %v5679_v13 = vrot.slane %v13948_v51, %v16164_v25  ;;  %v5683_v53 = vrot.slane %v13982_v50, %v16164_v25  ;;  %v5586_v21 = vsel %vm3748_vm4, %v5579_v60, %v5585_v3 }
0x3a5a   :  { %v5626_v20 = vsel %vm3748_vm4, %v5619_v1, %v5625_v48  ;;  %v5655_v18 = vrot.slane %v14012_v54, %v12831_v4  ;;  %v5662_v41 = vsel %vm3740_vm14, %v5643_v63, %v5661_v27  ;;  %v5659_v58 = vrot.slane %v14039_v19, %v12831_v4 }
0x3a5b   :  { %v5663_v10 = vsel %vm3742_vm15, %v5647_v6, %v5662_v41  ;;  %v16167_v26 = vrot.slane %v13946_v23, %v16164_v25  ;;  %v5715_v15 = vrot.slane %v13950_v17, %v16165_v12  ;;  %v5687_v1 = vrot.slane %v13984_v61, %v16164_v25 }
0x3a5c   :  { %v5664_v60 = vsel %vm3744_vm1, %v5651_v62, %v5663_v10  ;;  %v5719_v11 = vrot.slane %v13948_v51, %v16165_v12  ;;  %v5691_v3 = vrot.slane %v14010_v35, %v16164_v25  ;;  %v5695_v23 = vrot.slane %v14012_v54, %v16164_v25 }
0x3a5d   :  { %v5700_v2 = vsel %vm3736_vm12, %v5675_v31, %v16167_v26  ;;  %v5723_v6 = vrot.slane %v13982_v50, %v16165_v12  ;;  %v5665_v62 = vsel %vm3746_vm2, %v5655_v18, %v5664_v60  ;;  %v5699_v43 = vrot.slane %v14039_v19, %v16164_v25 }
0x3a5e   :  { %v5701_v63 = vsel %vm3738_vm13, %v5679_v13, %v5700_v2  ;;  %v5727_v27 = vrot.slane %v13984_v61, %v16165_v12  ;;  %v5731_v31 = vrot.slane %v14010_v35, %v16165_v12  ;;  %v5666_v13 = vsel %vm3748_vm4, %v5659_v58, %v5665_v62 }
0x3a5f   :  { %v5702_v48 = vsel %vm3740_vm14, %v5683_v53, %v5701_v63  ;;  %v5740_v41 = vsel %vm3736_vm12, %v5715_v15, %v5711_v0  ;;  %v5755_v53 = vrot.slane %v13950_v17, %v16166_v45  ;;  %v5759_v10 = vrot.slane %v13948_v51, %v16166_v45 }
0x3a60   :  { %v5703_v18 = vsel %vm3742_vm15, %v5687_v1, %v5702_v48  ;;  %v5735_v25 = vrot.slane %v14012_v54, %v16165_v12  ;;  %v5741_v26 = vsel %vm3738_vm13, %v5719_v11, %v5740_v41  ;;  %v5763_v2 = vrot.slane %v13982_v50, %v16166_v45 }
0x3a61   :  { %v5704_v58 = vsel %vm3744_vm1, %v5691_v3, %v5703_v18  ;;  %v5739_v0 = vrot.slane %v14039_v19, %v16165_v12  ;;  %v5742_v17 = vsel %vm3740_vm14, %v5723_v6, %v5741_v26  ;;  %v5767_v51 = vrot.slane %v13984_v61, %v16166_v45 }
0x3a62   :  { %v5743_v15 = vsel %vm3742_vm15, %v5727_v27, %v5742_v17  ;;  %v5771_v60 = vrot.slane %v14010_v35, %v16166_v45  ;;  %v5780_v1 = vsel %vm3736_vm12, %v5755_v53, %v5751_v34  ;;  %v5788_v63 = vsel %vm4038_vm5, %v5506_v40, %v5546_v37  ;;  %v16171_v27 = vld [vmem:[#allocation52_spill] sm:$0xff]  ;;  %v16176_v17 = vld [vmem:[#allocation75_spill] sm:$0xff] }
0x3a63   :  { %v5744_v50 = vsel %vm3744_vm1, %v5731_v31, %v5743_v15  ;;  %v5775_v11 = vrot.slane %v14012_v54, %v16166_v45  ;;  %v5781_v12 = vsel %vm3738_vm13, %v5759_v10, %v5780_v1  ;;  %v5789_v3 = vsel %vm16168_vm6, %v5788_v63, %v5586_v21  ;;  %vm16173_vm6 = vmmov %vm16172_vm8  ;;  %v16178_v15 = vld [vmem:[#allocation77_spill] sm:$0xff]  ;;  %v16180_v1 = vld [vmem:[#allocation79_spill] sm:$0xff] }
0x3a64   :  { %v5705_v61 = vsel %vm3746_vm2, %v5695_v23, %v5704_v58  ;;  %v5779_v48 = vrot.slane %v14039_v19, %v16166_v45  ;;  %v5782_v35 = vsel %vm3740_vm14, %v5763_v2, %v5781_v12  ;;  %v5790_v34 = vsel %vm4042_vm9, %v5789_v3, %v5626_v20  ;;  %v16181_v63 = vld [vmem:[#allocation80_spill] sm:$0xff]  ;;  %v16184_v12 = vld [vmem:[#allocation83_spill] sm:$0xff] }
0x3a65   :  { %v5706_v40 = vsel %vm3748_vm4, %v5699_v43, %v5705_v61  ;;  %v5745_v37 = vsel %vm3746_vm2, %v5735_v25, %v5744_v50  ;;  %v5783_v6 = vsel %vm3742_vm15, %v5767_v51, %v5782_v35  ;;  %v5791_v54 = vsel %vm609_vm3, %v5790_v34, %v5666_v13  ;;  %v16177_v51 = vld [vmem:[#allocation76_spill] sm:$0xff]  ;;  %v16182_v50 = vld [vmem:[#allocation81_spill] sm:$0xff]  ;;  %v16188_v35 = vld [vmem:[#allocation87_spill] sm:$0xff] }
0x3a66   :  { %v5746_v62 = vsel %vm3748_vm4, %v5739_v0, %v5745_v37  ;;  %v5784_v21 = vsel %vm3744_vm1, %v5771_v60, %v5783_v6  ;;  %v5792_v23 = vsel %vm4045_vm10, %v5791_v54, %v5706_v40  ;;  %v16175_v0 = vld [vmem:[#allocation74_spill] sm:$0xff]  ;;  %v16185_v3 = vld [vmem:[#allocation84_spill] sm:$0xff]  ;;  %v16186_v61 = vld [vmem:[#allocation85_spill] sm:$0xff] }
0x3a67   :  { %v5785_v19 = vsel %vm3746_vm2, %v5775_v11, %v5784_v21  ;;  %v5793_v45 = vsel %vm16169_vm7, %v5792_v23, %v5746_v62  ;;  %vm16174_vm7 = vmmov %vm16173_vm6  ;;  %v16179_v60 = vld [vmem:[#allocation78_spill] sm:$0xff]  ;;  %v16189_v34 = vld [vmem:[#allocation88_spill] sm:$0xff] }
0x3a68   :  { %v5786_v20 = vsel %vm3748_vm4, %v5779_v48, %v5785_v19  ;;  %v16183_v11 = vld [vmem:[#allocation82_spill] sm:$0xff] }
0x3a69   :  { %v5794_v43 = vsel %vm16170_vm0, %v5793_v45, %v5786_v20  ;;  %v16187_v48 = vld [vmem:[#allocation86_spill] sm:$0xff]  ;;  %v16191_v20 = vld [vmem:[#allocation31_spill] sm:$0xff] }
0x3a6a   :  { %v5795_v31 = vadd.f32 %v5794_v43, %v16171_v27  ;;  %v5305_v6 = vld [vmem:[#allocation2] sm:$0xff] }
0x3a6c   :  { %v5796_v41 = vsel %vm16172_vm8, %v5795_v31, -inf }
0x3a6d   :  { %5797 = vmax.xlane.f32.xlu1 %v5796_v41 }
0x3af6   :  { %v5798_v13 = vpop.xlane.xlu1 %5797 }
0x3af7   :  { %v5799_v53 = vsub.f32 %v5795_v31, %v5798_v13 }
0x3af9   :  { %v5800_v10 = vmul.f32 1.442695, %v5799_v53 }
0x3afb   :  { %11042 = vpow2.f32 %v5800_v10 }
0x3b08   :  { %v11043_v18 = vpop.eup %11042 }
0x3b09   :  { %v5802_v25 = vsel %vm16173_vm6, %v11043_v18, 0.0 }
0x3b0a   :  { %5803 = vadd.xlane.f32.xlu0 %v5802_v25 }
0x3b20   :  { %5884 = vrot.lane.b32.xlu0 %v13822_v29, %s11329_s28 }
0x3b93   :  { %v5804_v26 = vpop.xlane.xlu0 %5803 }
0x3b94   :  { %11044 = vrcp.f32 %v5804_v26 }
0x3b97   :  { %v5885_v54 = vpop.permute.xlu0 %5884 }
0x3ba1   :  { %v11045_v2 = vpop.eup %11044 }
0x3ba2   :  { %v5806_v58 = vmul.f32 %v11045_v2, %v11043_v18 }
0x3ba4   :  { %10501 = vmatmul.mubr.msk.f32.vlgmr.msra.gmra.mxu0 %vm16174_vm7, %v5806_v58 }
0x3ba5   :  { %10504 = vmatpush3.msra.mxu0 %v13327_v22  ;;  %10535 = vmatprep.mubr.msk.f32.mxu0 %vm16130_vm11, %v16129_v59  ;;  %vm16190_vm11 = vcmask 785408  }
0x3ba6   :  { %10505 = vmatprep.subr.mxu0 %v16129_v59  ;;  %vm16193_vm0 = vmmov %vm16190_vm11 }
0x3ba7   :  { %10506 = vmatpush3.msra.mxu0 %v16175_v0 }
0x3ba8   :  { %10507 = vmatprep.subr.mxu0 %v16129_v59 }
0x3ba9   :  { %10508 = vmatpush3.msra.mxu0 %v16176_v17 }
0x3baa   :  { %10509 = vmatprep.subr.mxu0 %v16129_v59 }
0x3bab   :  { %10510 = vmatpush3.msra.mxu0 %v16177_v51 }
0x3bac   :  { %10511 = vmatprep.subr.mxu0 %v16129_v59 }
0x3bad   :  { %10512 = vmatpush3.msra.mxu0 %v16178_v15 }
0x3bae   :  { %10513 = vmatprep.subr.mxu0 %v16129_v59 }
0x3baf   :  { %10514 = vmatpush3.msra.mxu0 %v16179_v60 }
0x3bb0   :  { %10515 = vmatprep.subr.mxu0 %v16129_v59 }
0x3bb1   :  { %10516 = vmatpush3.msra.mxu0 %v16180_v1 }
0x3bb2   :  { %10517 = vmatprep.subr.mxu0 %v16129_v59 }
0x3bb3   :  { %10518 = vmatpush3.msra.mxu0 %v16181_v63 }
0x3bb4   :  { %10519 = vmatprep.subr.mxu0 %v16129_v59 }
0x3bb5   :  { %10520 = vmatpush3.msra.mxu0 %v16182_v50 }
0x3bb6   :  { %10521 = vmatprep.subr.mxu0 %v16129_v59 }
0x3bb7   :  { %10522 = vmatpush3.msra.mxu0 %v16183_v11 }
0x3bb8   :  { %10523 = vmatprep.subr.mxu0 %v16129_v59 }
0x3bb9   :  { %10524 = vmatpush3.msra.mxu0 %v16184_v12 }
0x3bba   :  { %10525 = vmatprep.subr.mxu0 %v16129_v59 }
0x3bbb   :  { %10526 = vmatpush3.msra.mxu0 %v16185_v3 }
0x3bbc   :  { %10527 = vmatprep.subr.mxu0 %v16129_v59 }
0x3bbd   :  { %10528 = vmatpush3.msra.mxu0 %v16186_v61 }
0x3bbe   :  { %10529 = vmatprep.subr.mxu0 %v16129_v59 }
0x3bbf   :  { %10530 = vmatpush3.msra.mxu0 %v16187_v48 }
0x3bc0   :  { %10531 = vmatprep.subr.mxu0 %v16129_v59 }
0x3bc1   :  { %10532 = vmatpush3.msra.mxu0 %v16188_v35 }
0x3bc2   :  { %10533 = vmatprep.subr.mxu0 %v16129_v59  ;;  %v16192_v59 = vld [vmem:[#allocation73_spill] sm:$0xff] }
0x3bc3   :  { %10534 = vmatpush3.msra.mxu0 %v16189_v34 }
0x3c64   :  { %v5876_v40 = vpop.f32.mrf.mxu0 }
0x3c65   :  { %5881 = vrot.lane.b32.xlu1 %v5876_v40, %s11333_s30 }
0x3c66   :  { %v10502_v37 = vpop.f32.mrf.mxu0 }
0x3cd7   :  { %v5882_v62 = vpop.permute.xlu1 %5881 }
0x3cd8   :  { %v5887_v21 = vsel %vm609_vm3, %v5305_v6, %v5882_v62 }
0x3cd9   :  { %v5888_v23 = vsel %vm16190_vm11, %v5887_v21, %v5885_v54 }
0x3cda   :  { %5954 = vmatmul.mubr.f32.vlgmr.msra.gmra.mxu1 %v5888_v23 }
0x3d9a   :  { %v5955_v19 = vpop.f32.mrf.mxu1 }
0x3d9b   :  { %v5960_v27 = vadd.f32 %v16192_v59, %v5955_v19 }
0x3d9c   :  { %v5957_v45 = vpop.f32.mrf.mxu1 }
0x3d9d   :  { %v5961_v43 = vadd.f32 %v16191_v20, %v5957_v45 }
0x3d9f   :  { %5970 = vrot.lane.b32.xlu1 %v5961_v43, %s11329_s28  ;;  %v5962_v31 = vadd.f32 %v5961_v43, %v5960_v27 }
0x3da1   :  { %v9632_v41 = vmul.f32 -1.442695, %v5962_v31 }
0x3da3   :  { %11046 = vpow2.f32 %v9632_v41 }
0x3db0   :  { %v11047_v13 = vpop.eup %11046 }
0x3db1   :  { %v5966_v53 = vadd.f32 1.0, %v11047_v13 }
0x3db3   :  { %11048 = vrcp.f32 %v5966_v53 }
0x3dc0   :  { %v11049_v10 = vpop.eup %11048 }
0x3dc1   :  { %v5980_v0 = vsub.f32 1.0, %v11049_v10  ;;  %v5986_v51 = vmul.f32 %v11049_v10, %v13822_v29 }
0x3e11   :  { %v5971_v18 = vpop.permute.xlu1 %5970 }
0x3e12   :  { %v5973_v25 = vmul.f32 %v11049_v10, %v5971_v18 }
0x3e14   :  { %5975 = vrot.lane.b32.xlu1 %v5973_v25, %s11329_s28 }
0x3e86   :  { %v5976_v26 = vpop.permute.xlu1 %5975 }
0x3e87   :  { %v5978_v2 = vadd.f32 %v5976_v26, %v5960_v27 }
0x3e89   :  { %11050 = vtanh.f32 %v5978_v2 }
0x3e96   :  { %v11051_v58 = vpop.eup %11050 }
0x3e97   :  { %5982 = vrot.lane.b32.xlu0 %v11051_v58, %s11330_s8 }
0x3f09   :  { %v5983_v17 = vpop.permute.xlu0 %5982 }
0x3f0a   :  { %v5985_v15 = vmul.f32 %v5983_v17, %v5980_v0 }
0x3f0c   :  { %v14204_v60 = vadd.f32 %v5986_v51, %v5985_v15 }
0x3f0e   :  { %v11021_v1 = vpack.i.bf16 %v5305_v6, %v14204_v60 }
0x3f10   :  { %11022 = vrot.lane.b32.xlu1 %v11021_v1, %s11330_s8 }
0x3f82   :  { %v11023_v63 = vpop.permute.xlu1 %11022 }
0x3f83   :  { %v11025_v50 = vunpack.i.h.bf16 %v11023_v63  ;;  %v11024_v11 = vunpack.i.l.bf16 %v11023_v63 }
0x3f85   :  { %v5996_v12 = vsel %vm609_vm3, %v11024_v11, %v5882_v62 }
0x3f86   :  { %v5997_v3 = vsel %vm16193_vm0, %v5996_v12, %v11025_v50 }
0x3f87   :  { %10536 = vmatmul.mubr.f32.vlgmr.msra.gmra.mxu0 %v5997_v3 }
0x4046   :  { %6074 = sbr.rel (%p9635_p11) target bundleno = 16461 (0x404d), region = 141 }
0x4047   :  { %v6064_v61 = vpop.f32.mrf.mxu0 }
0x4048   :  { %v6065_v48 = vadd.f32 %v13444_v32, %v6064_v61 }
0x4049   :  { %v10537_v29 = vpop.f32.mrf.mxu0 }
0x404a   :  { %9633 = vst [vmem:[%s15762_s23 + $0x18] sm:$0xff] %v6065_v48 }
0x404b   :  { %v16194_v35 = vld [vmem:[#allocation32_spill] sm:$0xff] }
0x404c   :  { %6075 = vst.msk [vmem:[#allocation2] sm:$0xff] %vm609_vm3, %v16194_v35 }
0x404d PF:  { %s9636_s17 = sld [smem:[#allocation3 + $0x3]] }
0x4053   :  { %p9637_p12 = scmp.ne.s32.totalorder %s9636_s17, 0 }
0x4055   :  { %6080 = sbr.rel (%p9637_p12) target bundleno = 16952 (0x4238), region = 145 }
0x405a   :  { %vm16195_vm8 = vcmask 523264   ;;  %v11338_v40 = vmov 0.0   ;;  %v16196_v37 = vld [vmem:[#allocation21_spill] sm:$0xff]  ;;  %v16197_v6 = vld [vmem:[#allocation22_spill] sm:$0xff]  ;;  %v16198_v54 = vld [vmem:[#allocation23_spill] sm:$0xff]  ;;  %vm11339_vm11 = vmmov 0  }
0x405b   :  { %v6081_v34 = vsel %vm16195_vm8, %v6065_v48, -inf  ;;  %10538 = vmatprep.subr.mxu0 %v11338_v40  ;;  %v16199_v62 = vld [vmem:[#allocation24_spill] sm:$0xff]  ;;  %v16200_v21 = vld [vmem:[#allocation25_spill] sm:$0xff]  ;;  %v16201_v23 = vld [vmem:[#allocation26_spill] sm:$0xff]  ;;  %10554 = vmatprep.mubr.msk.f32.mxu0 %vm11339_vm11, %v11338_v40 }
0x405c   :  { %6082 = vmax.xlane.f32.xlu0 %v6081_v34  ;;  %10539 = vmatpush3.msra.mxu0 %v16196_v37  ;;  %v16202_v19 = vld [vmem:[#allocation27_spill] sm:$0xff]  ;;  %v16203_v45 = vld [vmem:[#allocation28_spill] sm:$0xff]  ;;  %v16204_v43 = vld [vmem:[#allocation37_spill] sm:$0xff] }
0x405d   :  { %10540 = vmatprep.subr.mxu0 %v11338_v40  ;;  %vm16205_vm7 = vmmov %vm16195_vm8 }
0x405e   :  { %10541 = vmatpush3.msra.mxu0 %v16197_v6  ;;  %vm16206_vm8 = vmmov %vm16205_vm7 }
0x405f   :  { %10542 = vmatprep.subr.mxu0 %v11338_v40 }
0x4060   :  { %10543 = vmatpush3.msra.mxu0 %v16198_v54 }
0x4061   :  { %10544 = vmatprep.subr.mxu0 %v11338_v40 }
0x4062   :  { %10545 = vmatpush3.msra.mxu0 %v16199_v62 }
0x4063   :  { %10546 = vmatprep.subr.mxu0 %v11338_v40 }
0x4064   :  { %10547 = vmatpush3.msra.mxu0 %v16200_v21 }
0x4065   :  { %10548 = vmatprep.subr.mxu0 %v11338_v40 }
0x4066   :  { %10549 = vmatpush3.msra.mxu0 %v16201_v23 }
0x4067   :  { %10550 = vmatprep.subr.mxu0 %v11338_v40 }
0x4068   :  { %10551 = vmatpush3.msra.mxu0 %v16202_v19 }
0x4069   :  { %10552 = vmatprep.subr.mxu0 %v11338_v40 }
0x406a   :  { %10553 = vmatpush3.msra.mxu0 %v16203_v45 }
0x40e5   :  { %v6083_v20 = vpop.xlane.xlu0 %6082 }
0x40e6   :  { %vm6084_vm6 = vcmp.eq.f32.partialorder %v6065_v48, %v6083_v20 }
0x40e7   :  { %v6085_v59 = vsel %vm6084_vm6, %v16204_v43, 64.0 }
0x40e8   :  { %v6086_v27 = vsel %vm16205_vm7, %v6085_v59, inf }
0x40e9   :  { %6087 = vmin.xlane.f32.xlu0 %v6086_v27 }
0x4172   :  { %v6088_v31 = vpop.xlane.xlu0 %6087 }
0x4173   :  { %vm6089_vm0 = vcmp.eq.f32.partialorder %v16204_v43, %v6088_v31 }
0x4174   :  { %v9638_v41 = vsel %vm6089_vm0, 1.0, %v11338_v40 }
0x4175   :  { %10555 = vmatmul.mubr.msk.f32.vlgmr.msra.gmra.mxu0 %vm16206_vm8, %v9638_v41 }
0x4235   :  { %v6161_v13 = vpop.f32.mrf.mxu0 }
0x4236   :  { %6165 = vst.msk [vmem:[#allocation2] sm:$0xff] %vm609_vm3, %v6161_v13 }
0x4237   :  { %v10556_v53 = vpop.f32.mrf.mxu0 }
0x4238 PF:  { %v6175_v10 = vrot.slane %v6065_v48, %v12212_v33  ;;  %v6168_v18 = vcombine.high %v6065_v48, %v6065_v48  ;;  %v16207_v25 = vmov 0.0   ;;  %vm16208_vm6 = vmmov 0   ;;  %6750 = vmatprep.subr.mxu1 %v13118_v57  ;;  %v16209_v37 = vld [vmem:[#allocation53_spill] sm:$0xff]  ;;  %v16210_v6 = vld [vmem:[#allocation54_spill] sm:$0xff]  ;;  %v16211_v54 = vld [vmem:[#allocation55_spill] sm:$0xff]  ;;  %s9643_s3 = sld [smem:[#allocation3 + $0x4]] }
0x4239   :  { %10557 = vmatprep.subr.mxu0 %v16207_v25  ;;  %10573 = vmatprep.mubr.msk.f32.mxu0 %vm16208_vm6, %v16207_v25  ;;  %v16212_v62 = vld [vmem:[#allocation56_spill] sm:$0xff]  ;;  %v16213_v21 = vld [vmem:[#allocation57_spill] sm:$0xff]  ;;  %v16214_v23 = vld [vmem:[#allocation58_spill] sm:$0xff]  ;;  %vm16246_vm7 = vcmask 130048   ;;  %vm16247_vm11 = vcmask 392192   ;;  %vm16248_vm0 = vcmask 457728  }
0x423a   :  { %10558 = vmatpush3.msra.mxu0 %v12675_v49  ;;  %v6191_v26 = vrot.slane %v6175_v10, %v12212_v33  ;;  %v6183_v2 = vcombine.high %v6175_v10, %v6175_v10  ;;  %v6182_v58 = vrot.slane %v6168_v18, %v12212_v33  ;;  %6751 = vmatpush1.msra.mxu1 %v13123_v30  ;;  %v16215_v19 = vld [vmem:[#allocation59_spill] sm:$0xff]  ;;  %v16216_v45 = vld [vmem:[#allocation60_spill] sm:$0xff]  ;;  %v16217_v20 = vld [vmem:[#allocation61_spill] sm:$0xff]  ;;  %vm16250_vm8 = vcmask 523264  }
0x423b   :  { %10559 = vmatprep.subr.mxu0 %v16207_v25  ;;  %6752 = vmatprep.subr.mxu1 %v13128_v56  ;;  %v16218_v43 = vld [vmem:[#allocation62_spill] sm:$0xff]  ;;  %v16219_v59 = vld [vmem:[#allocation63_spill] sm:$0xff]  ;;  %v16220_v27 = vld [vmem:[#allocation64_spill] sm:$0xff] }
0x423c   :  { %10560 = vmatpush3.msra.mxu0 %v12703_v55  ;;  %v6220_v0 = vrot.slane %v6191_v26, %v11526_v9  ;;  %v6213_v17 = vcombine.high %v6191_v26, %v6191_v26  ;;  %v6205_v51 = vrot.slane %v6183_v2, %v12212_v33  ;;  %v6184_v15 = vcombine.high %v6182_v58, %v6182_v58  ;;  %v16221_v31 = vld [vmem:[#allocation65_spill] sm:$0xff]  ;;  %v16222_v41 = vld [vmem:[#allocation66_spill] sm:$0xff]  ;;  %v16223_v13 = vld [vmem:[#allocation67_spill] sm:$0xff] }
0x423d   :  { %10561 = vmatprep.subr.mxu0 %v16207_v25  ;;  %6753 = vmatpush1.msra.mxu1 %v13134_v8  ;;  %v6198_v11 = vrot.slane %v6182_v58, %v12212_v33  ;;  %v16224_v53 = vld [vmem:[#allocation68_spill] sm:$0xff]  ;;  %v16225_v10 = vld [vmem:[#allocation69_spill] sm:$0xff]  ;;  %v16226_v18 = vld [vmem:[#allocation70_spill] sm:$0xff] }
0x423e   :  { %10562 = vmatpush3.msra.mxu0 %v12711_v16  ;;  %6249 = vrot.lane.b32.xlu0 %v6220_v0, %s11329_s28  ;;  %v6228_v1 = vrot.slane %v6213_v17, %v11526_v9  ;;  %v6224_v63 = vrot.slane %v6205_v51, %v11526_v9  ;;  %v6215_v50 = vcombine.high %v6205_v51, %v6205_v51  ;;  %v16227_v26 = vld [vmem:[#allocation71_spill] sm:$0xff]  ;;  %v16228_v2 = vld [vmem:[#allocation72_spill] sm:$0xff]  ;;  %p9644_p13 = scmp.eq.s32.totalorder %s9643_s3, 0 }
0x423f   :  { %10563 = vmatprep.subr.mxu0 %v16207_v25  ;;  %6754 = vmatprep.subr.mxu1 %v13140_v14  ;;  %v6212_v3 = vrot.slane %v6184_v15, %v12212_v33  ;;  %v6236_v61 = vrot.slane %v6198_v11, %v11526_v9  ;;  %v6214_v48 = vcombine.high %v6198_v11, %v6198_v11  ;;  %v16229_v0 = vld [vmem:[#allocation43_spill] sm:$0xff]  ;;  %v16230_v15 = vld [vmem:[#allocation40_spill] sm:$0xff] }
0x4240   :  { %6253 = vrot.lane.b32.xlu1 %v6228_v1, %s11329_s28  ;;  %v6232_v12 = vrot.slane %v6215_v50, %v11526_v9  ;;  %10564 = vmatpush3.msra.mxu0 %v12665_v24  ;;  %v16231_v50 = vld [vmem:[#allocation42_spill] sm:$0xff] }
0x4241   :  { %10565 = vmatprep.subr.mxu0 %v16207_v25  ;;  %6755 = vmatpush1.msra.mxu1 %v13146_v42  ;;  %v6240_v29 = vrot.slane %v6212_v3, %v11526_v9  ;;  %v6216_v35 = vcombine.high %v6212_v3, %v6212_v3  ;;  %v6244_v34 = vrot.slane %v6214_v48, %v11526_v9  ;;  %v16232_v3 = vld [vmem:[#allocation45_spill] sm:$0xff] }
0x4242   :  { %6251 = vrot.lane.b32.xlu0 %v6224_v63, %s11329_s28  ;;  %10566 = vmatpush3.msra.mxu0 %v12623_v38 }
0x4243   :  { %10567 = vmatprep.subr.mxu0 %v16207_v25  ;;  %6756 = vmatprep.subr.mxu1 %v13152_v36  ;;  %v6248_v40 = vrot.slane %v6216_v35, %v11526_v9 }
0x4244   :  { %6255 = vrot.lane.b32.xlu1 %v6232_v12, %s11329_s28  ;;  %10568 = vmatpush3.msra.mxu0 %v12599_v5 }
0x4245   :  { %10569 = vmatprep.subr.mxu0 %v16207_v25  ;;  %6757 = vmatpush1.msra.mxu1 %v13158_v52 }
0x4246   :  { %6257 = vrot.lane.b32.xlu0 %v6236_v61, %s11329_s28  ;;  %10570 = vmatpush3.msra.mxu0 %v12590_v39 }
0x4247   :  { %10571 = vmatprep.subr.mxu0 %v16207_v25  ;;  %6758 = vmatprep.subr.mxu1 %v13164_v28 }
0x4248   :  { %6259 = vrot.lane.b32.xlu1 %v6240_v29, %s11329_s28  ;;  %10572 = vmatpush3.msra.mxu0 %v12587_v47  ;;  %v16233_v29 = vld [vmem:[#allocation41_spill] sm:$0xff] }
0x4249   :  { %6759 = vmatpush1.msra.mxu1 %v13170_v7  ;;  %6814 = vmatprep.mubr.f32.mxu1 %v16207_v25 }
0x424a   :  { %6261 = vrot.lane.b32.xlu0 %v6244_v34, %s11329_s28  ;;  %6760 = vmatprep.subr.mxu1 %v13176_v46 }
0x424b   :  { %6761 = vmatpush1.msra.mxu1 %v13182_v44  ;;  %10576 = vmatprep.subr.mxu0 %v16207_v25 }
0x424c   :  { %6263 = vrot.lane.b32.xlu1 %v6248_v40, %s11329_s28  ;;  %6762 = vmatprep.subr.mxu1 %v16209_v37  ;;  %v16234_v40 = vld [vmem:[#allocation44_spill] sm:$0xff] }
0x424d   :  { %6763 = vmatpush1.msra.mxu1 %v16210_v6 }
0x424e   :  { %6764 = vmatprep.subr.mxu1 %v16211_v54  ;;  %v16235_v54 = vld [vmem:[#allocation38_spill] sm:$0xff] }
0x424f   :  { %6765 = vmatpush1.msra.mxu1 %v16212_v62 }
0x4250   :  { %6766 = vmatprep.subr.mxu1 %v16213_v21 }
0x4251   :  { %6767 = vmatpush1.msra.mxu1 %v16214_v23  ;;  %v16236_v23 = vld [vmem:[#allocation39_spill] sm:$0xff] }
0x4252   :  { %6768 = vmatprep.subr.mxu1 %v16215_v19 }
0x4253   :  { %6769 = vmatpush1.msra.mxu1 %v16216_v45 }
0x4254   :  { %6770 = vmatprep.subr.mxu1 %v16217_v20  ;;  %v16237_v20 = vld [vmem:[#allocation46_spill] sm:$0xff] }
0x4255   :  { %6771 = vmatpush1.msra.mxu1 %v16218_v43 }
0x4256   :  { %6772 = vmatprep.subr.mxu1 %v16219_v59 }
0x4257   :  { %6773 = vmatpush1.msra.mxu1 %v16220_v27 }
0x4258   :  { %6774 = vmatprep.subr.mxu1 %v16221_v31 }
0x4259   :  { %6775 = vmatpush1.msra.mxu1 %v16222_v41 }
0x425a   :  { %6776 = vmatprep.subr.mxu1 %v16223_v13 }
0x425b   :  { %6777 = vmatpush1.msra.mxu1 %v16224_v53 }
0x425c   :  { %6778 = vmatprep.subr.mxu1 %v16225_v10 }
0x425d   :  { %6779 = vmatpush1.msra.mxu1 %v16226_v18 }
0x425e   :  { %6780 = vmatprep.subr.mxu1 %v16227_v26 }
0x425f   :  { %6781 = vmatpush1.msra.mxu1 %v16228_v2 }
0x42b0   :  { %v6250_v58 = vpop.permute.xlu0 %6249 }
0x42b1   :  { %v6273_v17 = vadd.f32 %v6250_v58, %v16229_v0 }
0x42b2   :  { %v6254_v51 = vpop.permute.xlu1 %6253 }
0x42b3   :  { %11057 = vtanh.f32 %v6273_v17  ;;  %v6275_v1 = vadd.f32 %v6254_v51, %v16230_v15 }
0x42b4   :  { %v6252_v63 = vpop.permute.xlu0 %6251 }
0x42b5   :  { %11059 = vtanh.f32 %v6275_v1  ;;  %v6274_v11 = vadd.f32 %v6252_v63, %v16231_v50 }
0x42b6   :  { %v6256_v12 = vpop.permute.xlu1 %6255 }
0x42b7   :  { %11061 = vtanh.f32 %v6274_v11  ;;  %v6276_v61 = vadd.f32 %v6256_v12, %v16232_v3 }
0x42b8   :  { %v6258_v48 = vpop.permute.xlu0 %6257 }
0x42b9   :  { %11063 = vtanh.f32 %v6276_v61  ;;  %v6277_v35 = vadd.f32 %v6258_v48, %v16233_v29 }
0x42ba   :  { %v6260_v34 = vpop.permute.xlu1 %6259 }
0x42bb   :  { %11065 = vtanh.f32 %v6277_v35  ;;  %v6278_v37 = vadd.f32 %v6260_v34, %v16234_v40  ;;  %v16238_v34 = vld [vmem:[#allocation29_spill] sm:$0xff] }
0x42bc   :  { %v6262_v6 = vpop.permute.xlu0 %6261 }
0x42bd   :  { %11067 = vtanh.f32 %v6278_v37  ;;  %v6279_v62 = vadd.f32 %v6262_v6, %v16235_v54  ;;  %v16239_v37 = vld [vmem:[#allocation20_spill] sm:$0xff]  ;;  %v16240_v54 = vld [vmem:[#allocation47_spill] sm:$0xff] }
0x42be   :  { %v6264_v21 = vpop.permute.xlu1 %6263 }
0x42bf   :  { %11069 = vtanh.f32 %v6279_v62  ;;  %v6280_v19 = vadd.f32 %v6264_v21, %v16236_v23  ;;  %v16241_v21 = vld [vmem:[#allocation48_spill] sm:$0xff] }
0x42c0   :  { %v11058_v45 = vpop.eup %11057 }
0x42c1   :  { %11071 = vtanh.f32 %v6280_v19  ;;  %v6289_v43 = vmul.f32 %v11058_v45, %v16237_v20 }
0x42c2   :  { %v11060_v59 = vpop.eup %11059 }
0x42c3   :  { %v6297_v27 = vsel %vm609_vm3, %v6289_v43, 0.0  ;;  %v6291_v31 = vmul.f32 %v11060_v59, %v16237_v20 }
0x42c4   :  { %v11062_v41 = vpop.eup %11061  ;;  %6298 = vadd.xlane.f32.xlu0 %v6297_v27 }
0x42c5   :  { %v6303_v13 = vsel %vm609_vm3, %v6291_v31, 0.0  ;;  %v6290_v53 = vmul.f32 %v11062_v41, %v16237_v20 }
0x42c6   :  { %v11064_v10 = vpop.eup %11063 }
0x42c7   :  { %v6300_v18 = vsel %vm609_vm3, %v6290_v53, 0.0  ;;  %v6292_v26 = vmul.f32 %v11064_v10, %v16237_v20 }
0x42c8   :  { %v11066_v2 = vpop.eup %11065  ;;  %6304 = vadd.xlane.f32.xlu0 %v6303_v13  ;;  %6301 = vadd.xlane.f32.xlu1 %v6300_v18  ;;  %v16242_v18 = vld [vmem:[#allocation49_spill] sm:$0xff] }
0x42c9   :  { %v6306_v58 = vsel %vm609_vm3, %v6292_v26, 0.0  ;;  %v6293_v0 = vmul.f32 %v11066_v2, %v16237_v20 }
0x42ca   :  { %v11068_v17 = vpop.eup %11067 }
0x42cb   :  { %v6309_v51 = vsel %vm609_vm3, %v6293_v0, 0.0  ;;  %v6294_v15 = vmul.f32 %v11068_v17, %v16237_v20 }
0x42cc   :  { %v11070_v1 = vpop.eup %11069  ;;  %6307 = vadd.xlane.f32.xlu0 %v6306_v58  ;;  %6310 = vadd.xlane.f32.xlu1 %v6309_v51 }
0x42cd   :  { %v6312_v63 = vsel %vm609_vm3, %v6294_v15, 0.0  ;;  %v6295_v50 = vmul.f32 %v11070_v1, %v16237_v20 }
0x42ce   :  { %v11072_v11 = vpop.eup %11071 }
0x42cf   :  { %v6315_v12 = vsel %vm609_vm3, %v6295_v50, 0.0  ;;  %v6296_v3 = vmul.f32 %v11072_v11, %v16237_v20 }
0x42d0   :  { %6313 = vadd.xlane.f32.xlu0 %v6312_v63  ;;  %6316 = vadd.xlane.f32.xlu1 %v6315_v12 }
0x42d1   :  { %v6318_v61 = vsel %vm609_vm3, %v6296_v3, 0.0 }
0x42d4   :  { %6319 = vadd.xlane.f32.xlu0 %v6318_v61 }
0x434d   :  { %v14328_v48 = vpop.xlane.xlu0 %6298 }
0x434e   :  { %v6332_v40 = vrot.slane %v14328_v48, %v16238_v34  ;;  %v6372_v6 = vrot.slane %v14328_v48, %v16239_v37  ;;  %v6412_v62 = vrot.slane %v14328_v48, %v16240_v54  ;;  %v6452_v23 = vrot.slane %v14328_v48, %v16241_v21 }
0x434f   :  { %v6492_v41 = vrot.slane %v14328_v48, %v12831_v4 }
0x4351   :  { %v14330_v29 = vpop.xlane.xlu0 %6304  ;;  %v14332_v35 = vpop.xlane.xlu1 %6301 }
0x4352   :  { %v6336_v19 = vrot.slane %v14332_v35, %v16238_v34  ;;  %v6340_v45 = vrot.slane %v14330_v29, %v16238_v34  ;;  %v6376_v20 = vrot.slane %v14332_v35, %v16239_v37  ;;  %v6380_v43 = vrot.slane %v14330_v29, %v16239_v37 }
0x4353   :  { %v6416_v59 = vrot.slane %v14332_v35, %v16240_v54  ;;  %v6420_v27 = vrot.slane %v14330_v29, %v16240_v54  ;;  %v6456_v31 = vrot.slane %v14332_v35, %v16241_v21  ;;  %v6460_v10 = vrot.slane %v14330_v29, %v16241_v21 }
0x4354   :  { %v6361_v13 = vsel %vm3736_vm12, %v6336_v19, %v6332_v40  ;;  %v6401_v53 = vsel %vm3736_vm12, %v6376_v20, %v6372_v6  ;;  %v6496_v26 = vrot.slane %v14332_v35, %v12831_v4 }
0x4355   :  { %v14364_v2 = vpop.xlane.xlu0 %6307  ;;  %v14366_v58 = vpop.xlane.xlu1 %6310  ;;  %v6362_v0 = vsel %vm3738_vm13, %v6340_v45, %v6361_v13  ;;  %v6402_v17 = vsel %vm3738_vm13, %v6380_v43, %v6401_v53  ;;  %v6441_v51 = vsel %vm3736_vm12, %v6416_v59, %v6412_v62  ;;  %v6481_v15 = vsel %vm3736_vm12, %v6456_v31, %v6452_v23  ;;  %v16243_v31 = vld [vmem:[#allocation50_spill] sm:$0xff] }
0x4356   :  { %v6344_v1 = vrot.slane %v14364_v2, %v16238_v34  ;;  %v6348_v63 = vrot.slane %v14366_v58, %v16238_v34  ;;  %v6384_v50 = vrot.slane %v14364_v2, %v16239_v37  ;;  %v6388_v11 = vrot.slane %v14366_v58, %v16239_v37 }
0x4357   :  { %v6424_v12 = vrot.slane %v14364_v2, %v16240_v54  ;;  %v6428_v3 = vrot.slane %v14366_v58, %v16240_v54  ;;  %v6442_v61 = vsel %vm3738_vm13, %v6420_v27, %v6441_v51  ;;  %v6464_v40 = vrot.slane %v14364_v2, %v16241_v21 }
0x4358   :  { %v6363_v6 = vsel %vm3740_vm14, %v6344_v1, %v6362_v0  ;;  %v6403_v62 = vsel %vm3740_vm14, %v6384_v50, %v6402_v17  ;;  %v6468_v23 = vrot.slane %v14366_v58, %v16241_v21  ;;  %v6482_v19 = vsel %vm3738_vm13, %v6460_v10, %v6481_v15 }
0x4359   :  { %v14392_v45 = vpop.xlane.xlu0 %6313  ;;  %v14394_v20 = vpop.xlane.xlu1 %6316  ;;  %v6364_v43 = vsel %vm3742_vm15, %v6348_v63, %v6363_v6  ;;  %v6443_v59 = vsel %vm3740_vm14, %v6424_v12, %v6442_v61  ;;  %v6483_v27 = vsel %vm3740_vm14, %v6464_v40, %v6482_v19  ;;  %v6572_v13 = vrot.slane %v14328_v48, %v16243_v31 }
0x435a   :  { %v6352_v53 = vrot.slane %v14392_v45, %v16238_v34  ;;  %v6356_v0 = vrot.slane %v14394_v20, %v16238_v34  ;;  %v6392_v10 = vrot.slane %v14392_v45, %v16239_v37  ;;  %v6404_v17 = vsel %vm3742_vm15, %v6388_v11, %v6403_v62 }
0x435b   :  { %v6396_v51 = vrot.slane %v14394_v20, %v16239_v37  ;;  %v6432_v15 = vrot.slane %v14392_v45, %v16240_v54  ;;  %v6436_v1 = vrot.slane %v14394_v20, %v16240_v54  ;;  %v6472_v63 = vrot.slane %v14392_v45, %v16241_v21 }
0x435c   :  { %v6365_v50 = vsel %vm3744_vm1, %v6352_v53, %v6364_v43  ;;  %v6444_v12 = vsel %vm3742_vm15, %v6428_v3, %v6443_v59  ;;  %v6476_v61 = vrot.slane %v14394_v20, %v16241_v21  ;;  %v6484_v11 = vsel %vm3742_vm15, %v6468_v23, %v6483_v27  ;;  %v16244_v59 = vld [vmem:[#allocation51_spill] sm:$0xff] }
0x435d   :  { %v14421_v40 = vpop.xlane.xlu0 %6319  ;;  %v6405_v6 = vsel %vm3744_vm1, %v6392_v10, %v6404_v17  ;;  %v6445_v62 = vsel %vm3744_vm1, %v6432_v15, %v6444_v12  ;;  %v6485_v19 = vsel %vm3744_vm1, %v6472_v63, %v6484_v11  ;;  %v6500_v23 = vrot.slane %v14330_v29, %v12831_v4 }
0x435e   :  { %v6360_v43 = vrot.slane %v14421_v40, %v16238_v34  ;;  %v6400_v3 = vrot.slane %v14421_v40, %v16239_v37  ;;  %v6612_v27 = vrot.slane %v14328_v48, %v16244_v59  ;;  %v6366_v53 = vsel %vm3746_vm2, %v6356_v0, %v6365_v50 }
0x435f   :  { %v6440_v10 = vrot.slane %v14421_v40, %v16240_v54  ;;  %v6480_v17 = vrot.slane %v14421_v40, %v16241_v21  ;;  %v6504_v34 = vrot.slane %v14364_v2, %v12831_v4  ;;  %v6406_v15 = vsel %vm3746_vm2, %v6396_v51, %v6405_v6 }
0x4360   :  { %v6446_v37 = vsel %vm3746_vm2, %v6436_v1, %v6445_v62  ;;  %v6486_v63 = vsel %vm3746_vm2, %v6476_v61, %v6485_v19  ;;  %v6508_v12 = vrot.slane %v14366_v58, %v12831_v4  ;;  %v6367_v0 = vsel %vm3748_vm4, %v6360_v43, %v6366_v53 }
0x4361   :  { %v6407_v50 = vsel %vm3748_vm4, %v6400_v3, %v6406_v15  ;;  %v6512_v54 = vrot.slane %v14392_v45, %v12831_v4  ;;  %v6521_v21 = vsel %vm3736_vm12, %v6496_v26, %v6492_v41  ;;  %v6536_v51 = vrot.slane %v14332_v35, %v16242_v18 }
0x4362   :  { %v6522_v11 = vsel %vm3738_vm13, %v6500_v23, %v6521_v21  ;;  %v6540_v1 = vrot.slane %v14330_v29, %v16242_v18  ;;  %v6544_v61 = vrot.slane %v14364_v2, %v16242_v18  ;;  %v6447_v6 = vsel %vm3748_vm4, %v6440_v10, %v6446_v37 }
0x4363   :  { %v6487_v62 = vsel %vm3748_vm4, %v6480_v17, %v6486_v63  ;;  %v6516_v19 = vrot.slane %v14394_v20, %v12831_v4  ;;  %v6523_v41 = vsel %vm3740_vm14, %v6504_v34, %v6522_v11  ;;  %v6520_v26 = vrot.slane %v14421_v40, %v12831_v4 }
0x4364   :  { %v6524_v43 = vsel %vm3742_vm15, %v6508_v12, %v6523_v41  ;;  %v16245_v3 = vrot.slane %v14328_v48, %v16242_v18  ;;  %v6576_v53 = vrot.slane %v14332_v35, %v16243_v31  ;;  %v6548_v17 = vrot.slane %v14366_v58, %v16242_v18 }
0x4365   :  { %v6525_v10 = vsel %vm3744_vm1, %v6512_v54, %v6524_v43  ;;  %v6580_v15 = vrot.slane %v14330_v29, %v16243_v31  ;;  %v6552_v37 = vrot.slane %v14392_v45, %v16242_v18  ;;  %v6556_v48 = vrot.slane %v14394_v20, %v16242_v18 }
0x4366   :  { %v6561_v23 = vsel %vm3736_vm12, %v6536_v51, %v16245_v3  ;;  %v6584_v12 = vrot.slane %v14364_v2, %v16243_v31  ;;  %v6526_v54 = vsel %vm3746_vm2, %v6516_v19, %v6525_v10  ;;  %v6560_v21 = vrot.slane %v14421_v40, %v16242_v18 }
0x4367   :  { %v6562_v34 = vsel %vm3738_vm13, %v6540_v1, %v6561_v23  ;;  %v6588_v11 = vrot.slane %v14366_v58, %v16243_v31  ;;  %v6592_v51 = vrot.slane %v14392_v45, %v16243_v31  ;;  %v6527_v1 = vsel %vm3748_vm4, %v6520_v26, %v6526_v54 }
0x4368   :  { %v6563_v63 = vsel %vm3740_vm14, %v6544_v61, %v6562_v34  ;;  %v6601_v41 = vsel %vm3736_vm12, %v6576_v53, %v6572_v13  ;;  %v6616_v61 = vrot.slane %v14332_v35, %v16244_v59  ;;  %v6620_v43 = vrot.slane %v14330_v29, %v16244_v59 }
0x4369   :  { %v6564_v19 = vsel %vm3742_vm15, %v6548_v17, %v6563_v63  ;;  %v6596_v18 = vrot.slane %v14394_v20, %v16243_v31  ;;  %v6602_v3 = vsel %vm3738_vm13, %v6580_v15, %v6601_v41  ;;  %v6624_v23 = vrot.slane %v14364_v2, %v16244_v59 }
0x436a   :  { %v6565_v26 = vsel %vm3744_vm1, %v6552_v37, %v6564_v19  ;;  %v6600_v13 = vrot.slane %v14421_v40, %v16243_v31  ;;  %v6603_v35 = vsel %vm3740_vm14, %v6584_v12, %v6602_v3  ;;  %v6628_v29 = vrot.slane %v14366_v58, %v16244_v59 }
0x436b   :  { %v6604_v53 = vsel %vm3742_vm15, %v6588_v11, %v6603_v35  ;;  %v6632_v10 = vrot.slane %v14392_v45, %v16244_v59  ;;  %v6641_v17 = vsel %vm3736_vm12, %v6616_v61, %v6612_v27  ;;  %v6649_v34 = vsel %vm4038_vm5, %v6367_v0, %v6407_v50  ;;  %v16249_v11 = vld [vmem:[#allocation52_spill] sm:$0xff]  ;;  %v16254_v35 = vld [vmem:[#allocation75_spill] sm:$0xff] }
0x436c   :  { %v6605_v2 = vsel %vm3744_vm1, %v6592_v51, %v6604_v53  ;;  %v6636_v15 = vrot.slane %v14394_v20, %v16244_v59  ;;  %v6642_v31 = vsel %vm3738_vm13, %v6620_v43, %v6641_v17  ;;  %v6650_v37 = vsel %vm16246_vm7, %v6649_v34, %v6447_v6  ;;  %vm16251_vm7 = vmmov %vm16250_vm8  ;;  %v16256_v53 = vld [vmem:[#allocation77_spill] sm:$0xff]  ;;  %v16258_v17 = vld [vmem:[#allocation79_spill] sm:$0xff] }
0x436d   :  { %v6566_v58 = vsel %vm3746_vm2, %v6556_v48, %v6565_v26  ;;  %v6640_v63 = vrot.slane %v14421_v40, %v16244_v59  ;;  %v6643_v45 = vsel %vm3740_vm14, %v6624_v23, %v6642_v31  ;;  %v6651_v27 = vsel %vm4042_vm9, %v6650_v37, %v6487_v62  ;;  %v16259_v34 = vld [vmem:[#allocation80_spill] sm:$0xff]  ;;  %v16262_v31 = vld [vmem:[#allocation83_spill] sm:$0xff] }
0x436e   :  { %v6567_v0 = vsel %vm3748_vm4, %v6560_v21, %v6566_v58  ;;  %v6606_v50 = vsel %vm3746_vm2, %v6596_v18, %v6605_v2  ;;  %v6644_v12 = vsel %vm3742_vm15, %v6628_v29, %v6643_v45  ;;  %v6652_v20 = vsel %vm609_vm3, %v6651_v27, %v6527_v1  ;;  %v16255_v29 = vld [vmem:[#allocation76_spill] sm:$0xff]  ;;  %v16260_v2 = vld [vmem:[#allocation81_spill] sm:$0xff]  ;;  %v16266_v45 = vld [vmem:[#allocation87_spill] sm:$0xff] }
0x436f   :  { %v6607_v54 = vsel %vm3748_vm4, %v6600_v13, %v6606_v50  ;;  %v6645_v6 = vsel %vm3744_vm1, %v6632_v10, %v6644_v12  ;;  %v6653_v48 = vsel %vm4045_vm10, %v6652_v20, %v6567_v0  ;;  %v16253_v13 = vld [vmem:[#allocation74_spill] sm:$0xff]  ;;  %v16263_v37 = vld [vmem:[#allocation84_spill] sm:$0xff]  ;;  %v16264_v58 = vld [vmem:[#allocation85_spill] sm:$0xff] }
0x4370   :  { %v6646_v40 = vsel %vm3746_vm2, %v6636_v15, %v6645_v6  ;;  %v6654_v59 = vsel %vm16247_vm11, %v6653_v48, %v6607_v54  ;;  %vm16252_vm11 = vmmov %vm16251_vm7  ;;  %v16257_v10 = vld [vmem:[#allocation78_spill] sm:$0xff]  ;;  %v16267_v27 = vld [vmem:[#allocation88_spill] sm:$0xff] }
0x4371   :  { %v6647_v62 = vsel %vm3748_vm4, %v6640_v63, %v6646_v40  ;;  %v16261_v15 = vld [vmem:[#allocation82_spill] sm:$0xff] }
0x4372   :  { %v6655_v21 = vsel %vm16248_vm0, %v6654_v59, %v6647_v62  ;;  %v16265_v63 = vld [vmem:[#allocation86_spill] sm:$0xff]  ;;  %v16269_v62 = vld [vmem:[#allocation31_spill] sm:$0xff] }
0x4373   :  { %v6656_v51 = vadd.f32 %v6655_v21, %v16249_v11  ;;  %v6166_v12 = vld [vmem:[#allocation2] sm:$0xff] }
0x4375   :  { %v6657_v41 = vsel %vm16250_vm8, %v6656_v51, -inf }
0x4376   :  { %6658 = vmax.xlane.f32.xlu1 %v6657_v41 }
0x43ff   :  { %v6659_v1 = vpop.xlane.xlu1 %6658 }
0x4400   :  { %v6660_v61 = vsub.f32 %v6656_v51, %v6659_v1 }
0x4402   :  { %v6661_v43 = vmul.f32 1.442695, %v6660_v61 }
0x4404   :  { %11073 = vpow2.f32 %v6661_v43 }
0x4411   :  { %v11074_v19 = vpop.eup %11073 }
0x4412   :  { %v6663_v18 = vsel %vm16251_vm7, %v11074_v19, 0.0 }
0x4413   :  { %6664 = vadd.xlane.f32.xlu0 %v6663_v18 }
0x4429   :  { %6745 = vrot.lane.b32.xlu0 %v14204_v60, %s11329_s28 }
0x449c   :  { %v6665_v3 = vpop.xlane.xlu0 %6664 }
0x449d   :  { %11075 = vrcp.f32 %v6665_v3 }
0x44a0   :  { %v6746_v20 = vpop.permute.xlu0 %6745 }
0x44aa   :  { %v11076_v23 = vpop.eup %11075 }
0x44ab   :  { %v6667_v26 = vmul.f32 %v11076_v23, %v11074_v19 }
0x44ad   :  { %10574 = vmatmul.mubr.msk.f32.vlgmr.msra.gmra.mxu0 %vm16252_vm11, %v6667_v26 }
0x44ae   :  { %10577 = vmatpush3.msra.mxu0 %v13327_v22  ;;  %10608 = vmatprep.mubr.msk.f32.mxu0 %vm16208_vm6, %v16207_v25  ;;  %vm16268_vm6 = vcmask 785408  }
0x44af   :  { %10578 = vmatprep.subr.mxu0 %v16207_v25  ;;  %vm16271_vm0 = vmmov %vm16268_vm6 }
0x44b0   :  { %10579 = vmatpush3.msra.mxu0 %v16253_v13 }
0x44b1   :  { %10580 = vmatprep.subr.mxu0 %v16207_v25 }
0x44b2   :  { %10581 = vmatpush3.msra.mxu0 %v16254_v35 }
0x44b3   :  { %10582 = vmatprep.subr.mxu0 %v16207_v25 }
0x44b4   :  { %10583 = vmatpush3.msra.mxu0 %v16255_v29 }
0x44b5   :  { %10584 = vmatprep.subr.mxu0 %v16207_v25 }
0x44b6   :  { %10585 = vmatpush3.msra.mxu0 %v16256_v53 }
0x44b7   :  { %10586 = vmatprep.subr.mxu0 %v16207_v25 }
0x44b8   :  { %10587 = vmatpush3.msra.mxu0 %v16257_v10 }
0x44b9   :  { %10588 = vmatprep.subr.mxu0 %v16207_v25 }
0x44ba   :  { %10589 = vmatpush3.msra.mxu0 %v16258_v17 }
0x44bb   :  { %10590 = vmatprep.subr.mxu0 %v16207_v25 }
0x44bc   :  { %10591 = vmatpush3.msra.mxu0 %v16259_v34 }
0x44bd   :  { %10592 = vmatprep.subr.mxu0 %v16207_v25 }
0x44be   :  { %10593 = vmatpush3.msra.mxu0 %v16260_v2 }
0x44bf   :  { %10594 = vmatprep.subr.mxu0 %v16207_v25 }
0x44c0   :  { %10595 = vmatpush3.msra.mxu0 %v16261_v15 }
0x44c1   :  { %10596 = vmatprep.subr.mxu0 %v16207_v25 }
0x44c2   :  { %10597 = vmatpush3.msra.mxu0 %v16262_v31 }
0x44c3   :  { %10598 = vmatprep.subr.mxu0 %v16207_v25 }
0x44c4   :  { %10599 = vmatpush3.msra.mxu0 %v16263_v37 }
0x44c5   :  { %10600 = vmatprep.subr.mxu0 %v16207_v25 }
0x44c6   :  { %10601 = vmatpush3.msra.mxu0 %v16264_v58 }
0x44c7   :  { %10602 = vmatprep.subr.mxu0 %v16207_v25 }
0x44c8   :  { %10603 = vmatpush3.msra.mxu0 %v16265_v63 }
0x44c9   :  { %10604 = vmatprep.subr.mxu0 %v16207_v25 }
0x44ca   :  { %10605 = vmatpush3.msra.mxu0 %v16266_v45 }
0x44cb   :  { %10606 = vmatprep.subr.mxu0 %v16207_v25  ;;  %v16270_v25 = vld [vmem:[#allocation73_spill] sm:$0xff] }
0x44cc   :  { %10607 = vmatpush3.msra.mxu0 %v16267_v27 }
0x456d   :  { %v6737_v0 = vpop.f32.mrf.mxu0 }
0x456e   :  { %6742 = vrot.lane.b32.xlu1 %v6737_v0, %s11333_s30 }
0x456f   :  { %v10575_v50 = vpop.f32.mrf.mxu0 }
0x45e0   :  { %v6743_v54 = vpop.permute.xlu1 %6742 }
0x45e1   :  { %v6748_v6 = vsel %vm609_vm3, %v6166_v12, %v6743_v54 }
0x45e2   :  { %v6749_v48 = vsel %vm16268_vm6, %v6748_v6, %v6746_v20 }
0x45e3   :  { %6815 = vmatmul.mubr.f32.vlgmr.msra.gmra.mxu1 %v6749_v48 }
0x46a3   :  { %v6816_v40 = vpop.f32.mrf.mxu1 }
0x46a4   :  { %v6821_v11 = vadd.f32 %v16270_v25, %v6816_v40 }
0x46a5   :  { %v6818_v59 = vpop.f32.mrf.mxu1 }
0x46a6   :  { %v6822_v21 = vadd.f32 %v16269_v62, %v6818_v59 }
0x46a8   :  { %6831 = vrot.lane.b32.xlu1 %v6822_v21, %s11329_s28  ;;  %v6823_v51 = vadd.f32 %v6822_v21, %v6821_v11 }
0x46aa   :  { %v9641_v41 = vmul.f32 -1.442695, %v6823_v51 }
0x46ac   :  { %11077 = vpow2.f32 %v9641_v41 }
0x46b9   :  { %v11078_v1 = vpop.eup %11077 }
0x46ba   :  { %v6827_v61 = vadd.f32 1.0, %v11078_v1 }
0x46bc   :  { %11079 = vrcp.f32 %v6827_v61 }
0x46c9   :  { %v11080_v43 = vpop.eup %11079 }
0x46ca   :  { %v6841_v13 = vsub.f32 1.0, %v11080_v43  ;;  %v6847_v29 = vmul.f32 %v11080_v43, %v14204_v60 }
0x471a   :  { %v6832_v19 = vpop.permute.xlu1 %6831 }
0x471b   :  { %v6834_v18 = vmul.f32 %v11080_v43, %v6832_v19 }
0x471d   :  { %6836 = vrot.lane.b32.xlu1 %v6834_v18, %s11329_s28 }
0x478f   :  { %v6837_v3 = vpop.permute.xlu1 %6836 }
0x4790   :  { %v6839_v23 = vadd.f32 %v6837_v3, %v6821_v11 }
0x4792   :  { %11081 = vtanh.f32 %v6839_v23 }
0x479f   :  { %v11082_v26 = vpop.eup %11081 }
0x47a0   :  { %6843 = vrot.lane.b32.xlu0 %v11082_v26, %s11330_s8 }
0x4812   :  { %v6844_v35 = vpop.permute.xlu0 %6843 }
0x4813   :  { %v6846_v53 = vmul.f32 %v6844_v35, %v6841_v13 }
0x4815   :  { %v14586_v10 = vadd.f32 %v6847_v29, %v6846_v53 }
0x4817   :  { %v11052_v17 = vpack.i.bf16 %v6166_v12, %v14586_v10 }
0x4819   :  { %11053 = vrot.lane.b32.xlu1 %v11052_v17, %s11330_s8 }
0x488b   :  { %v11054_v34 = vpop.permute.xlu1 %11053 }
0x488c   :  { %v11056_v2 = vunpack.i.h.bf16 %v11054_v34  ;;  %v11055_v15 = vunpack.i.l.bf16 %v11054_v34 }
0x488e   :  { %v6857_v31 = vsel %vm609_vm3, %v11055_v15, %v6743_v54 }
0x488f   :  { %v6858_v37 = vsel %vm16271_vm0, %v6857_v31, %v11056_v2 }
0x4890   :  { %10609 = vmatmul.mubr.f32.vlgmr.msra.gmra.mxu0 %v6858_v37 }
0x494f   :  { %6935 = sbr.rel (%p9644_p13) target bundleno = 18774 (0x4956), region = 149 }
0x4950   :  { %v6925_v58 = vpop.f32.mrf.mxu0 }
0x4951   :  { %v6926_v63 = vadd.f32 %v13444_v32, %v6925_v58 }
0x4952   :  { %v10610_v60 = vpop.f32.mrf.mxu0 }
0x4953   :  { %9642 = vst [vmem:[%s15762_s23 + $0x20] sm:$0xff] %v6926_v63 }
0x4954   :  { %v16272_v45 = vld [vmem:[#allocation35_spill] sm:$0xff] }
0x4955   :  { %6936 = vst.msk [vmem:[#allocation2] sm:$0xff] %vm609_vm3, %v16272_v45 }
0x4956 PF:  { %s9645_s0 = sld [smem:[#allocation3 + $0x4]] }
0x495c   :  { %p9646_p0 = scmp.ne.s32.totalorder %s9645_s0, 0 }
0x495e   :  { %6941 = sbr.rel (%p9646_p0) target bundleno = 19265 (0x4b41), region = 153 }
0x4963   :  { %vm16273_vm8 = vcmask 523264   ;;  %v11340_v0 = vmov 0.0   ;;  %v16274_v50 = vld [vmem:[#allocation21_spill] sm:$0xff]  ;;  %v16275_v12 = vld [vmem:[#allocation22_spill] sm:$0xff]  ;;  %v16276_v20 = vld [vmem:[#allocation23_spill] sm:$0xff]  ;;  %vm11341_vm6 = vmmov 0  }
0x4964   :  { %v6942_v27 = vsel %vm16273_vm8, %v6926_v63, -inf  ;;  %10611 = vmatprep.subr.mxu0 %v11340_v0  ;;  %v16277_v54 = vld [vmem:[#allocation24_spill] sm:$0xff]  ;;  %v16278_v6 = vld [vmem:[#allocation25_spill] sm:$0xff]  ;;  %v16279_v48 = vld [vmem:[#allocation26_spill] sm:$0xff]  ;;  %10627 = vmatprep.mubr.msk.f32.mxu0 %vm11341_vm6, %v11340_v0 }
0x4965   :  { %6943 = vmax.xlane.f32.xlu0 %v6942_v27  ;;  %10612 = vmatpush3.msra.mxu0 %v16274_v50  ;;  %v16280_v40 = vld [vmem:[#allocation27_spill] sm:$0xff]  ;;  %v16281_v59 = vld [vmem:[#allocation28_spill] sm:$0xff]  ;;  %v16282_v21 = vld [vmem:[#allocation37_spill] sm:$0xff] }
0x4966   :  { %10613 = vmatprep.subr.mxu0 %v11340_v0  ;;  %vm16283_vm11 = vmmov %vm16273_vm8 }
0x4967   :  { %10614 = vmatpush3.msra.mxu0 %v16275_v12 }
0x4968   :  { %10615 = vmatprep.subr.mxu0 %v11340_v0 }
0x4969   :  { %10616 = vmatpush3.msra.mxu0 %v16276_v20 }
0x496a   :  { %10617 = vmatprep.subr.mxu0 %v11340_v0 }
0x496b   :  { %10618 = vmatpush3.msra.mxu0 %v16277_v54 }
0x496c   :  { %10619 = vmatprep.subr.mxu0 %v11340_v0 }
0x496d   :  { %10620 = vmatpush3.msra.mxu0 %v16278_v6 }
0x496e   :  { %10621 = vmatprep.subr.mxu0 %v11340_v0 }
0x496f   :  { %10622 = vmatpush3.msra.mxu0 %v16279_v48 }
0x4970   :  { %10623 = vmatprep.subr.mxu0 %v11340_v0 }
0x4971   :  { %10624 = vmatpush3.msra.mxu0 %v16280_v40 }
0x4972   :  { %10625 = vmatprep.subr.mxu0 %v11340_v0 }
0x4973   :  { %10626 = vmatpush3.msra.mxu0 %v16281_v59 }
0x49ee   :  { %v6944_v62 = vpop.xlane.xlu0 %6943 }
0x49ef   :  { %vm6945_vm7 = vcmp.eq.f32.partialorder %v6926_v63, %v6944_v62 }
0x49f0   :  { %v6946_v25 = vsel %vm6945_vm7, %v16282_v21, 64.0 }
0x49f1   :  { %v6947_v11 = vsel %vm16283_vm11, %v6946_v25, inf }
0x49f2   :  { %6948 = vmin.xlane.f32.xlu0 %v6947_v11 }
0x4a7b   :  { %v6949_v51 = vpop.xlane.xlu0 %6948 }
0x4a7c   :  { %vm6950_vm0 = vcmp.eq.f32.partialorder %v16282_v21, %v6949_v51 }
0x4a7d   :  { %v9647_v41 = vsel %vm6950_vm0, 1.0, %v11340_v0 }
0x4a7e   :  { %10628 = vmatmul.mubr.msk.f32.vlgmr.msra.gmra.mxu0 %vm16273_vm8, %v9647_v41 }
0x4b3e   :  { %v7022_v1 = vpop.f32.mrf.mxu0 }
0x4b3f   :  { %7026 = vst.msk [vmem:[#allocation2] sm:$0xff] %vm609_vm3, %v7022_v1 }
0x4b40   :  { %v10629_v61 = vpop.f32.mrf.mxu0 }
0x4b41 PF:  { %v7036_v43 = vrot.slane %v6926_v63, %v12212_v33  ;;  %v7029_v19 = vcombine.high %v6926_v63, %v6926_v63  ;;  %v16284_v18 = vmov 0.0   ;;  %vm16285_vm7 = vmmov 0   ;;  %7611 = vmatprep.subr.mxu1 %v13118_v57  ;;  %v16286_v50 = vld [vmem:[#allocation53_spill] sm:$0xff]  ;;  %v16287_v12 = vld [vmem:[#allocation54_spill] sm:$0xff]  ;;  %v16288_v20 = vld [vmem:[#allocation55_spill] sm:$0xff]  ;;  %s9652_s11 = sld [smem:[#allocation3 + $0x5]] }
0x4b42   :  { %10630 = vmatprep.subr.mxu0 %v16284_v18  ;;  %10646 = vmatprep.mubr.msk.f32.mxu0 %vm16285_vm7, %v16284_v18  ;;  %v16289_v54 = vld [vmem:[#allocation56_spill] sm:$0xff]  ;;  %v16290_v6 = vld [vmem:[#allocation57_spill] sm:$0xff]  ;;  %v16291_v48 = vld [vmem:[#allocation58_spill] sm:$0xff]  ;;  %vm16323_vm11 = vcmask 130048   ;;  %vm16324_vm6 = vcmask 392192   ;;  %vm16325_vm0 = vcmask 457728  }
0x4b43   :  { %10631 = vmatpush3.msra.mxu0 %v12675_v49  ;;  %v7052_v3 = vrot.slane %v7036_v43, %v12212_v33  ;;  %v7044_v23 = vcombine.high %v7036_v43, %v7036_v43  ;;  %v7043_v26 = vrot.slane %v7029_v19, %v12212_v33  ;;  %7612 = vmatpush1.msra.mxu1 %v13123_v30  ;;  %v16292_v40 = vld [vmem:[#allocation59_spill] sm:$0xff]  ;;  %v16293_v59 = vld [vmem:[#allocation60_spill] sm:$0xff]  ;;  %v16294_v62 = vld [vmem:[#allocation61_spill] sm:$0xff]  ;;  %vm16327_vm8 = vcmask 523264  }
0x4b44   :  { %10632 = vmatprep.subr.mxu0 %v16284_v18  ;;  %7613 = vmatprep.subr.mxu1 %v13128_v56  ;;  %v16295_v21 = vld [vmem:[#allocation62_spill] sm:$0xff]  ;;  %v16296_v25 = vld [vmem:[#allocation63_spill] sm:$0xff]  ;;  %v16297_v11 = vld [vmem:[#allocation64_spill] sm:$0xff] }
0x4b45   :  { %10633 = vmatpush3.msra.mxu0 %v12703_v55  ;;  %v7081_v13 = vrot.slane %v7052_v3, %v11526_v9  ;;  %v7074_v35 = vcombine.high %v7052_v3, %v7052_v3  ;;  %v7066_v29 = vrot.slane %v7044_v23, %v12212_v33  ;;  %v7045_v53 = vcombine.high %v7043_v26, %v7043_v26  ;;  %v16298_v51 = vld [vmem:[#allocation65_spill] sm:$0xff]  ;;  %v16299_v41 = vld [vmem:[#allocation66_spill] sm:$0xff]  ;;  %v16300_v1 = vld [vmem:[#allocation67_spill] sm:$0xff] }
0x4b46   :  { %10634 = vmatprep.subr.mxu0 %v16284_v18  ;;  %7614 = vmatpush1.msra.mxu1 %v13134_v8  ;;  %v7059_v15 = vrot.slane %v7043_v26, %v12212_v33  ;;  %v16301_v61 = vld [vmem:[#allocation68_spill] sm:$0xff]  ;;  %v16302_v43 = vld [vmem:[#allocation69_spill] sm:$0xff]  ;;  %v16303_v19 = vld [vmem:[#allocation70_spill] sm:$0xff] }
0x4b47   :  { %10635 = vmatpush3.msra.mxu0 %v12711_v16  ;;  %7110 = vrot.lane.b32.xlu0 %v7081_v13, %s11329_s28  ;;  %v7089_v17 = vrot.slane %v7074_v35, %v11526_v9  ;;  %v7085_v34 = vrot.slane %v7066_v29, %v11526_v9  ;;  %v7076_v2 = vcombine.high %v7066_v29, %v7066_v29  ;;  %v16304_v3 = vld [vmem:[#allocation71_spill] sm:$0xff]  ;;  %v16305_v23 = vld [vmem:[#allocation72_spill] sm:$0xff]  ;;  %p9653_p1 = scmp.eq.s32.totalorder %s9652_s11, 0 }
0x4b48   :  { %10636 = vmatprep.subr.mxu0 %v16284_v18  ;;  %7615 = vmatprep.subr.mxu1 %v13140_v14  ;;  %v7073_v37 = vrot.slane %v7045_v53, %v12212_v33  ;;  %v7097_v58 = vrot.slane %v7059_v15, %v11526_v9  ;;  %v7075_v63 = vcombine.high %v7059_v15, %v7059_v15  ;;  %v16306_v13 = vld [vmem:[#allocation43_spill] sm:$0xff]  ;;  %v16307_v53 = vld [vmem:[#allocation40_spill] sm:$0xff] }
0x4b49   :  { %7114 = vrot.lane.b32.xlu1 %v7089_v17, %s11329_s28  ;;  %v7093_v31 = vrot.slane %v7076_v2, %v11526_v9  ;;  %10637 = vmatpush3.msra.mxu0 %v12665_v24  ;;  %v16308_v2 = vld [vmem:[#allocation42_spill] sm:$0xff] }
0x4b4a   :  { %10638 = vmatprep.subr.mxu0 %v16284_v18  ;;  %7616 = vmatpush1.msra.mxu1 %v13146_v42  ;;  %v7101_v60 = vrot.slane %v7073_v37, %v11526_v9  ;;  %v7077_v45 = vcombine.high %v7073_v37, %v7073_v37  ;;  %v7105_v27 = vrot.slane %v7075_v63, %v11526_v9  ;;  %v16309_v37 = vld [vmem:[#allocation45_spill] sm:$0xff] }
0x4b4b   :  { %7112 = vrot.lane.b32.xlu0 %v7085_v34, %s11329_s28  ;;  %10639 = vmatpush3.msra.mxu0 %v12623_v38 }
0x4b4c   :  { %10640 = vmatprep.subr.mxu0 %v16284_v18  ;;  %7617 = vmatprep.subr.mxu1 %v13152_v36  ;;  %v7109_v0 = vrot.slane %v7077_v45, %v11526_v9 }
0x4b4d   :  { %7116 = vrot.lane.b32.xlu1 %v7093_v31, %s11329_s28  ;;  %10641 = vmatpush3.msra.mxu0 %v12599_v5 }
0x4b4e   :  { %10642 = vmatprep.subr.mxu0 %v16284_v18  ;;  %7618 = vmatpush1.msra.mxu1 %v13158_v52 }
0x4b4f   :  { %7118 = vrot.lane.b32.xlu0 %v7097_v58, %s11329_s28  ;;  %10643 = vmatpush3.msra.mxu0 %v12590_v39 }
0x4b50   :  { %10644 = vmatprep.subr.mxu0 %v16284_v18  ;;  %7619 = vmatprep.subr.mxu1 %v13164_v28 }
0x4b51   :  { %7120 = vrot.lane.b32.xlu1 %v7101_v60, %s11329_s28  ;;  %10645 = vmatpush3.msra.mxu0 %v12587_v47  ;;  %v16310_v60 = vld [vmem:[#allocation41_spill] sm:$0xff] }
0x4b52   :  { %7620 = vmatpush1.msra.mxu1 %v13170_v7  ;;  %7675 = vmatprep.mubr.f32.mxu1 %v16284_v18 }
0x4b53   :  { %7122 = vrot.lane.b32.xlu0 %v7105_v27, %s11329_s28  ;;  %7621 = vmatprep.subr.mxu1 %v13176_v46 }
0x4b54   :  { %7622 = vmatpush1.msra.mxu1 %v13182_v44  ;;  %10649 = vmatprep.subr.mxu0 %v16284_v18 }
0x4b55   :  { %7124 = vrot.lane.b32.xlu1 %v7109_v0, %s11329_s28  ;;  %7623 = vmatprep.subr.mxu1 %v16286_v50  ;;  %v16311_v0 = vld [vmem:[#allocation44_spill] sm:$0xff] }
0x4b56   :  { %7624 = vmatpush1.msra.mxu1 %v16287_v12 }
0x4b57   :  { %7625 = vmatprep.subr.mxu1 %v16288_v20  ;;  %v16312_v20 = vld [vmem:[#allocation38_spill] sm:$0xff] }
0x4b58   :  { %7626 = vmatpush1.msra.mxu1 %v16289_v54 }
0x4b59   :  { %7627 = vmatprep.subr.mxu1 %v16290_v6 }
0x4b5a   :  { %7628 = vmatpush1.msra.mxu1 %v16291_v48  ;;  %v16313_v48 = vld [vmem:[#allocation39_spill] sm:$0xff] }
0x4b5b   :  { %7629 = vmatprep.subr.mxu1 %v16292_v40 }
0x4b5c   :  { %7630 = vmatpush1.msra.mxu1 %v16293_v59 }
0x4b5d   :  { %7631 = vmatprep.subr.mxu1 %v16294_v62  ;;  %v16314_v62 = vld [vmem:[#allocation46_spill] sm:$0xff] }
0x4b5e   :  { %7632 = vmatpush1.msra.mxu1 %v16295_v21 }
0x4b5f   :  { %7633 = vmatprep.subr.mxu1 %v16296_v25 }
0x4b60   :  { %7634 = vmatpush1.msra.mxu1 %v16297_v11 }
0x4b61   :  { %7635 = vmatprep.subr.mxu1 %v16298_v51 }
0x4b62   :  { %7636 = vmatpush1.msra.mxu1 %v16299_v41 }
0x4b63   :  { %7637 = vmatprep.subr.mxu1 %v16300_v1 }
0x4b64   :  { %7638 = vmatpush1.msra.mxu1 %v16301_v61 }
0x4b65   :  { %7639 = vmatprep.subr.mxu1 %v16302_v43 }
0x4b66   :  { %7640 = vmatpush1.msra.mxu1 %v16303_v19 }
0x4b67   :  { %7641 = vmatprep.subr.mxu1 %v16304_v3 }
0x4b68   :  { %7642 = vmatpush1.msra.mxu1 %v16305_v23 }
0x4bb9   :  { %v7111_v26 = vpop.permute.xlu0 %7110 }
0x4bba   :  { %v7134_v35 = vadd.f32 %v7111_v26, %v16306_v13 }
0x4bbb   :  { %v7115_v29 = vpop.permute.xlu1 %7114 }
0x4bbc   :  { %11088 = vtanh.f32 %v7134_v35  ;;  %v7136_v17 = vadd.f32 %v7115_v29, %v16307_v53 }
0x4bbd   :  { %v7113_v34 = vpop.permute.xlu0 %7112 }
0x4bbe   :  { %11090 = vtanh.f32 %v7136_v17  ;;  %v7135_v15 = vadd.f32 %v7113_v34, %v16308_v2 }
0x4bbf   :  { %v7117_v31 = vpop.permute.xlu1 %7116 }
0x4bc0   :  { %11092 = vtanh.f32 %v7135_v15  ;;  %v7137_v58 = vadd.f32 %v7117_v31, %v16309_v37 }
0x4bc1   :  { %v7119_v63 = vpop.permute.xlu0 %7118 }
0x4bc2   :  { %11094 = vtanh.f32 %v7137_v58  ;;  %v7138_v45 = vadd.f32 %v7119_v63, %v16310_v60 }
0x4bc3   :  { %v7121_v27 = vpop.permute.xlu1 %7120 }
0x4bc4   :  { %11096 = vtanh.f32 %v7138_v45  ;;  %v7139_v50 = vadd.f32 %v7121_v27, %v16311_v0  ;;  %v16315_v27 = vld [vmem:[#allocation29_spill] sm:$0xff] }
0x4bc5   :  { %v7123_v12 = vpop.permute.xlu0 %7122 }
0x4bc6   :  { %11098 = vtanh.f32 %v7139_v50  ;;  %v7140_v54 = vadd.f32 %v7123_v12, %v16312_v20  ;;  %v16316_v50 = vld [vmem:[#allocation20_spill] sm:$0xff]  ;;  %v16317_v20 = vld [vmem:[#allocation47_spill] sm:$0xff] }
0x4bc7   :  { %v7125_v6 = vpop.permute.xlu1 %7124 }
0x4bc8   :  { %11100 = vtanh.f32 %v7140_v54  ;;  %v7141_v40 = vadd.f32 %v7125_v6, %v16313_v48  ;;  %v16318_v6 = vld [vmem:[#allocation48_spill] sm:$0xff] }
0x4bc9   :  { %v11089_v59 = vpop.eup %11088 }
0x4bca   :  { %11102 = vtanh.f32 %v7141_v40  ;;  %v7150_v21 = vmul.f32 %v11089_v59, %v16314_v62 }
0x4bcb   :  { %v11091_v25 = vpop.eup %11090 }
0x4bcc   :  { %v7158_v11 = vsel %vm609_vm3, %v7150_v21, 0.0  ;;  %v7152_v51 = vmul.f32 %v11091_v25, %v16314_v62 }
0x4bcd   :  { %v11093_v41 = vpop.eup %11092  ;;  %7159 = vadd.xlane.f32.xlu0 %v7158_v11 }
0x4bce   :  { %v7164_v1 = vsel %vm609_vm3, %v7152_v51, 0.0  ;;  %v7151_v61 = vmul.f32 %v11093_v41, %v16314_v62 }
0x4bcf   :  { %v11095_v43 = vpop.eup %11094 }
0x4bd0   :  { %v7161_v19 = vsel %vm609_vm3, %v7151_v61, 0.0  ;;  %v7153_v3 = vmul.f32 %v11095_v43, %v16314_v62 }
0x4bd1   :  { %v11097_v23 = vpop.eup %11096  ;;  %7165 = vadd.xlane.f32.xlu0 %v7164_v1  ;;  %7162 = vadd.xlane.f32.xlu1 %v7161_v19  ;;  %v16319_v19 = vld [vmem:[#allocation49_spill] sm:$0xff] }
0x4bd2   :  { %v7167_v26 = vsel %vm609_vm3, %v7153_v3, 0.0  ;;  %v7154_v13 = vmul.f32 %v11097_v23, %v16314_v62 }
0x4bd3   :  { %v11099_v35 = vpop.eup %11098 }
0x4bd4   :  { %v7170_v29 = vsel %vm609_vm3, %v7154_v13, 0.0  ;;  %v7155_v53 = vmul.f32 %v11099_v35, %v16314_v62 }
0x4bd5   :  { %v11101_v17 = vpop.eup %11100  ;;  %7168 = vadd.xlane.f32.xlu0 %v7167_v26  ;;  %7171 = vadd.xlane.f32.xlu1 %v7170_v29 }
0x4bd6   :  { %v7173_v34 = vsel %vm609_vm3, %v7155_v53, 0.0  ;;  %v7156_v2 = vmul.f32 %v11101_v17, %v16314_v62 }
0x4bd7   :  { %v11103_v15 = vpop.eup %11102 }
0x4bd8   :  { %v7176_v31 = vsel %vm609_vm3, %v7156_v2, 0.0  ;;  %v7157_v37 = vmul.f32 %v11103_v15, %v16314_v62 }
0x4bd9   :  { %7174 = vadd.xlane.f32.xlu0 %v7173_v34  ;;  %7177 = vadd.xlane.f32.xlu1 %v7176_v31 }
0x4bda   :  { %v7179_v58 = vsel %vm609_vm3, %v7157_v37, 0.0 }
0x4bdd   :  { %7180 = vadd.xlane.f32.xlu0 %v7179_v58 }
0x4c56   :  { %v14710_v63 = vpop.xlane.xlu0 %7159 }
0x4c57   :  { %v7193_v0 = vrot.slane %v14710_v63, %v16315_v27  ;;  %v7233_v12 = vrot.slane %v14710_v63, %v16316_v50  ;;  %v7273_v54 = vrot.slane %v14710_v63, %v16317_v20  ;;  %v7313_v48 = vrot.slane %v14710_v63, %v16318_v6 }
0x4c58   :  { %v7353_v41 = vrot.slane %v14710_v63, %v12831_v4 }
0x4c5a   :  { %v14712_v60 = vpop.xlane.xlu0 %7165  ;;  %v14714_v45 = vpop.xlane.xlu1 %7162 }
0x4c5b   :  { %v7197_v40 = vrot.slane %v14714_v45, %v16315_v27  ;;  %v7201_v59 = vrot.slane %v14712_v60, %v16315_v27  ;;  %v7237_v62 = vrot.slane %v14714_v45, %v16316_v50  ;;  %v7241_v21 = vrot.slane %v14712_v60, %v16316_v50 }
0x4c5c   :  { %v7277_v25 = vrot.slane %v14714_v45, %v16317_v20  ;;  %v7281_v11 = vrot.slane %v14712_v60, %v16317_v20  ;;  %v7317_v51 = vrot.slane %v14714_v45, %v16318_v6  ;;  %v7321_v43 = vrot.slane %v14712_v60, %v16318_v6 }
0x4c5d   :  { %v7222_v1 = vsel %vm3736_vm12, %v7197_v40, %v7193_v0  ;;  %v7262_v61 = vsel %vm3736_vm12, %v7237_v62, %v7233_v12  ;;  %v7357_v3 = vrot.slane %v14714_v45, %v12831_v4 }
0x4c5e   :  { %v14746_v23 = vpop.xlane.xlu0 %7168  ;;  %v14748_v26 = vpop.xlane.xlu1 %7171  ;;  %v7223_v13 = vsel %vm3738_vm13, %v7201_v59, %v7222_v1  ;;  %v7263_v35 = vsel %vm3738_vm13, %v7241_v21, %v7262_v61  ;;  %v7302_v29 = vsel %vm3736_vm12, %v7277_v25, %v7273_v54  ;;  %v7342_v53 = vsel %vm3736_vm12, %v7317_v51, %v7313_v48  ;;  %v16320_v51 = vld [vmem:[#allocation50_spill] sm:$0xff] }
0x4c5f   :  { %v7205_v17 = vrot.slane %v14746_v23, %v16315_v27  ;;  %v7209_v34 = vrot.slane %v14748_v26, %v16315_v27  ;;  %v7245_v2 = vrot.slane %v14746_v23, %v16316_v50  ;;  %v7249_v15 = vrot.slane %v14748_v26, %v16316_v50 }
0x4c60   :  { %v7285_v31 = vrot.slane %v14746_v23, %v16317_v20  ;;  %v7289_v37 = vrot.slane %v14748_v26, %v16317_v20  ;;  %v7303_v58 = vsel %vm3738_vm13, %v7281_v11, %v7302_v29  ;;  %v7325_v0 = vrot.slane %v14746_v23, %v16318_v6 }
0x4c61   :  { %v7224_v12 = vsel %vm3740_vm14, %v7205_v17, %v7223_v13  ;;  %v7264_v54 = vsel %vm3740_vm14, %v7245_v2, %v7263_v35  ;;  %v7329_v48 = vrot.slane %v14748_v26, %v16318_v6  ;;  %v7343_v40 = vsel %vm3738_vm13, %v7321_v43, %v7342_v53 }
0x4c62   :  { %v14774_v59 = vpop.xlane.xlu0 %7174  ;;  %v14776_v62 = vpop.xlane.xlu1 %7177  ;;  %v7225_v21 = vsel %vm3742_vm15, %v7209_v34, %v7224_v12  ;;  %v7304_v25 = vsel %vm3740_vm14, %v7285_v31, %v7303_v58  ;;  %v7344_v11 = vsel %vm3740_vm14, %v7325_v0, %v7343_v40  ;;  %v7433_v1 = vrot.slane %v14710_v63, %v16320_v51 }
0x4c63   :  { %v7213_v61 = vrot.slane %v14774_v59, %v16315_v27  ;;  %v7217_v13 = vrot.slane %v14776_v62, %v16315_v27  ;;  %v7253_v43 = vrot.slane %v14774_v59, %v16316_v50  ;;  %v7265_v35 = vsel %vm3742_vm15, %v7249_v15, %v7264_v54 }
0x4c64   :  { %v7257_v29 = vrot.slane %v14776_v62, %v16316_v50  ;;  %v7293_v53 = vrot.slane %v14774_v59, %v16317_v20  ;;  %v7297_v17 = vrot.slane %v14776_v62, %v16317_v20  ;;  %v7333_v34 = vrot.slane %v14774_v59, %v16318_v6 }
0x4c65   :  { %v7226_v2 = vsel %vm3744_vm1, %v7213_v61, %v7225_v21  ;;  %v7305_v31 = vsel %vm3742_vm15, %v7289_v37, %v7304_v25  ;;  %v7337_v58 = vrot.slane %v14776_v62, %v16318_v6  ;;  %v7345_v15 = vsel %vm3742_vm15, %v7329_v48, %v7344_v11  ;;  %v16321_v25 = vld [vmem:[#allocation51_spill] sm:$0xff] }
0x4c66   :  { %v14803_v0 = vpop.xlane.xlu0 %7180  ;;  %v7266_v12 = vsel %vm3744_vm1, %v7253_v43, %v7265_v35  ;;  %v7306_v54 = vsel %vm3744_vm1, %v7293_v53, %v7305_v31  ;;  %v7346_v40 = vsel %vm3744_vm1, %v7333_v34, %v7345_v15  ;;  %v7361_v48 = vrot.slane %v14712_v60, %v12831_v4 }
0x4c67   :  { %v7221_v21 = vrot.slane %v14803_v0, %v16315_v27  ;;  %v7261_v37 = vrot.slane %v14803_v0, %v16316_v50  ;;  %v7473_v11 = vrot.slane %v14710_v63, %v16321_v25  ;;  %v7227_v61 = vsel %vm3746_vm2, %v7217_v13, %v7226_v2 }
0x4c68   :  { %v7301_v43 = vrot.slane %v14803_v0, %v16317_v20  ;;  %v7341_v35 = vrot.slane %v14803_v0, %v16318_v6  ;;  %v7365_v27 = vrot.slane %v14746_v23, %v12831_v4  ;;  %v7267_v53 = vsel %vm3746_vm2, %v7257_v29, %v7266_v12 }
0x4c69   :  { %v7307_v50 = vsel %vm3746_vm2, %v7297_v17, %v7306_v54  ;;  %v7347_v34 = vsel %vm3746_vm2, %v7337_v58, %v7346_v40  ;;  %v7369_v31 = vrot.slane %v14748_v26, %v12831_v4  ;;  %v7228_v13 = vsel %vm3748_vm4, %v7221_v21, %v7227_v61 }
0x4c6a   :  { %v7268_v2 = vsel %vm3748_vm4, %v7261_v37, %v7267_v53  ;;  %v7373_v20 = vrot.slane %v14774_v59, %v12831_v4  ;;  %v7382_v6 = vsel %vm3736_vm12, %v7357_v3, %v7353_v41  ;;  %v7397_v29 = vrot.slane %v14714_v45, %v16319_v19 }
0x4c6b   :  { %v7383_v15 = vsel %vm3738_vm13, %v7361_v48, %v7382_v6  ;;  %v7401_v17 = vrot.slane %v14712_v60, %v16319_v19  ;;  %v7405_v58 = vrot.slane %v14746_v23, %v16319_v19  ;;  %v7308_v12 = vsel %vm3748_vm4, %v7301_v43, %v7307_v50 }
0x4c6c   :  { %v7348_v54 = vsel %vm3748_vm4, %v7341_v35, %v7347_v34  ;;  %v7377_v40 = vrot.slane %v14776_v62, %v12831_v4  ;;  %v7384_v41 = vsel %vm3740_vm14, %v7365_v27, %v7383_v15  ;;  %v7381_v3 = vrot.slane %v14803_v0, %v12831_v4 }
0x4c6d   :  { %v7385_v21 = vsel %vm3742_vm15, %v7369_v31, %v7384_v41  ;;  %v16322_v37 = vrot.slane %v14710_v63, %v16319_v19  ;;  %v7437_v61 = vrot.slane %v14714_v45, %v16320_v51  ;;  %v7409_v35 = vrot.slane %v14748_v26, %v16319_v19 }
0x4c6e   :  { %v7386_v43 = vsel %vm3744_vm1, %v7373_v20, %v7385_v21  ;;  %v7441_v53 = vrot.slane %v14712_v60, %v16320_v51  ;;  %v7413_v50 = vrot.slane %v14774_v59, %v16319_v19  ;;  %v7417_v63 = vrot.slane %v14776_v62, %v16319_v19 }
0x4c6f   :  { %v7422_v48 = vsel %vm3736_vm12, %v7397_v29, %v16322_v37  ;;  %v7445_v31 = vrot.slane %v14746_v23, %v16320_v51  ;;  %v7387_v20 = vsel %vm3746_vm2, %v7377_v40, %v7386_v43  ;;  %v7421_v6 = vrot.slane %v14803_v0, %v16319_v19 }
0x4c70   :  { %v7423_v27 = vsel %vm3738_vm13, %v7401_v17, %v7422_v48  ;;  %v7449_v15 = vrot.slane %v14748_v26, %v16320_v51  ;;  %v7453_v29 = vrot.slane %v14774_v59, %v16320_v51  ;;  %v7388_v17 = vsel %vm3748_vm4, %v7381_v3, %v7387_v20 }
0x4c71   :  { %v7424_v34 = vsel %vm3740_vm14, %v7405_v58, %v7423_v27  ;;  %v7462_v41 = vsel %vm3736_vm12, %v7437_v61, %v7433_v1  ;;  %v7477_v58 = vrot.slane %v14714_v45, %v16321_v25  ;;  %v7481_v21 = vrot.slane %v14712_v60, %v16321_v25 }
0x4c72   :  { %v7425_v40 = vsel %vm3742_vm15, %v7409_v35, %v7424_v34  ;;  %v7457_v19 = vrot.slane %v14776_v62, %v16320_v51  ;;  %v7463_v37 = vsel %vm3738_vm13, %v7441_v53, %v7462_v41  ;;  %v7485_v48 = vrot.slane %v14746_v23, %v16321_v25 }
0x4c73   :  { %v7426_v3 = vsel %vm3744_vm1, %v7413_v50, %v7425_v40  ;;  %v7461_v1 = vrot.slane %v14803_v0, %v16320_v51  ;;  %v7464_v45 = vsel %vm3740_vm14, %v7445_v31, %v7463_v37  ;;  %v7489_v60 = vrot.slane %v14748_v26, %v16321_v25 }
0x4c74   :  { %v7465_v61 = vsel %vm3742_vm15, %v7449_v15, %v7464_v45  ;;  %v7493_v43 = vrot.slane %v14774_v59, %v16321_v25  ;;  %v7502_v35 = vsel %vm3736_vm12, %v7477_v58, %v7473_v11  ;;  %v7510_v27 = vsel %vm4038_vm5, %v7228_v13, %v7268_v2  ;;  %v16326_v15 = vld [vmem:[#allocation52_spill] sm:$0xff]  ;;  %v16331_v45 = vld [vmem:[#allocation75_spill] sm:$0xff] }
0x4c75   :  { %v7466_v23 = vsel %vm3744_vm1, %v7453_v29, %v7465_v61  ;;  %v7497_v53 = vrot.slane %v14776_v62, %v16321_v25  ;;  %v7503_v51 = vsel %vm3738_vm13, %v7481_v21, %v7502_v35  ;;  %v7511_v50 = vsel %vm16323_vm11, %v7510_v27, %v7308_v12  ;;  %vm16328_vm11 = vmmov %vm16327_vm8  ;;  %v16333_v61 = vld [vmem:[#allocation77_spill] sm:$0xff]  ;;  %v16335_v35 = vld [vmem:[#allocation79_spill] sm:$0xff] }
0x4c76   :  { %v7427_v26 = vsel %vm3746_vm2, %v7417_v63, %v7426_v3  ;;  %v7501_v34 = vrot.slane %v14803_v0, %v16321_v25  ;;  %v7504_v59 = vsel %vm3740_vm14, %v7485_v48, %v7503_v51  ;;  %v7512_v11 = vsel %vm4042_vm9, %v7511_v50, %v7348_v54  ;;  %v16336_v27 = vld [vmem:[#allocation80_spill] sm:$0xff]  ;;  %v16339_v51 = vld [vmem:[#allocation83_spill] sm:$0xff] }
0x4c77   :  { %v7428_v13 = vsel %vm3748_vm4, %v7421_v6, %v7427_v26  ;;  %v7467_v2 = vsel %vm3746_vm2, %v7457_v19, %v7466_v23  ;;  %v7505_v31 = vsel %vm3742_vm15, %v7489_v60, %v7504_v59  ;;  %v7513_v62 = vsel %vm609_vm3, %v7512_v11, %v7388_v17  ;;  %v16332_v60 = vld [vmem:[#allocation76_spill] sm:$0xff]  ;;  %v16337_v23 = vld [vmem:[#allocation81_spill] sm:$0xff]  ;;  %v16343_v59 = vld [vmem:[#allocation87_spill] sm:$0xff] }
0x4c78   :  { %v7468_v20 = vsel %vm3748_vm4, %v7461_v1, %v7467_v2  ;;  %v7506_v12 = vsel %vm3744_vm1, %v7493_v43, %v7505_v31  ;;  %v7514_v63 = vsel %vm4045_vm10, %v7513_v62, %v7428_v13  ;;  %v16330_v1 = vld [vmem:[#allocation74_spill] sm:$0xff]  ;;  %v16340_v50 = vld [vmem:[#allocation84_spill] sm:$0xff]  ;;  %v16341_v26 = vld [vmem:[#allocation85_spill] sm:$0xff] }
0x4c79   :  { %v7507_v0 = vsel %vm3746_vm2, %v7497_v53, %v7506_v12  ;;  %v7515_v25 = vsel %vm16324_vm6, %v7514_v63, %v7468_v20  ;;  %vm16329_vm6 = vmmov %vm16327_vm8  ;;  %v16334_v43 = vld [vmem:[#allocation78_spill] sm:$0xff]  ;;  %v16344_v11 = vld [vmem:[#allocation88_spill] sm:$0xff] }
0x4c7a   :  { %v7508_v54 = vsel %vm3748_vm4, %v7501_v34, %v7507_v0  ;;  %v16338_v53 = vld [vmem:[#allocation82_spill] sm:$0xff] }
0x4c7b   :  { %v7516_v6 = vsel %vm16325_vm0, %v7515_v25, %v7508_v54  ;;  %v16342_v34 = vld [vmem:[#allocation86_spill] sm:$0xff]  ;;  %v16346_v54 = vld [vmem:[#allocation31_spill] sm:$0xff] }
0x4c7c   :  { %v7517_v29 = vadd.f32 %v7516_v6, %v16326_v15  ;;  %v7027_v31 = vld [vmem:[#allocation2] sm:$0xff] }
0x4c7e   :  { %v7518_v41 = vsel %vm16327_vm8, %v7517_v29, -inf }
0x4c7f   :  { %7519 = vmax.xlane.f32.xlu1 %v7518_v41 }
0x4d08   :  { %v7520_v17 = vpop.xlane.xlu1 %7519 }
0x4d09   :  { %v7521_v58 = vsub.f32 %v7517_v29, %v7520_v17 }
0x4d0b   :  { %v7522_v21 = vmul.f32 1.442695, %v7521_v58 }
0x4d0d   :  { %11104 = vpow2.f32 %v7522_v21 }
0x4d1a   :  { %v11105_v40 = vpop.eup %11104 }
0x4d1b   :  { %v7524_v19 = vsel %vm16328_vm11, %v11105_v40, 0.0 }
0x4d1c   :  { %7525 = vadd.xlane.f32.xlu0 %v7524_v19 }
0x4d32   :  { %7606 = vrot.lane.b32.xlu0 %v14586_v10, %s11329_s28 }
0x4da5   :  { %v7526_v37 = vpop.xlane.xlu0 %7525 }
0x4da6   :  { %11106 = vrcp.f32 %v7526_v37 }
0x4da9   :  { %v7607_v62 = vpop.permute.xlu0 %7606 }
0x4db3   :  { %v11107_v48 = vpop.eup %11106 }
0x4db4   :  { %v7528_v3 = vmul.f32 %v11107_v48, %v11105_v40 }
0x4db6   :  { %10647 = vmatmul.mubr.msk.f32.vlgmr.msra.gmra.mxu0 %vm16329_vm6, %v7528_v3 }
0x4db7   :  { %10650 = vmatpush3.msra.mxu0 %v13327_v22  ;;  %10681 = vmatprep.mubr.msk.f32.mxu0 %vm16285_vm7, %v16284_v18  ;;  %vm16345_vm7 = vcmask 785408  }
0x4db8   :  { %10651 = vmatprep.subr.mxu0 %v16284_v18  ;;  %vm16348_vm0 = vmmov %vm16345_vm7 }
0x4db9   :  { %10652 = vmatpush3.msra.mxu0 %v16330_v1 }
0x4dba   :  { %10653 = vmatprep.subr.mxu0 %v16284_v18 }
0x4dbb   :  { %10654 = vmatpush3.msra.mxu0 %v16331_v45 }
0x4dbc   :  { %10655 = vmatprep.subr.mxu0 %v16284_v18 }
0x4dbd   :  { %10656 = vmatpush3.msra.mxu0 %v16332_v60 }
0x4dbe   :  { %10657 = vmatprep.subr.mxu0 %v16284_v18 }
0x4dbf   :  { %10658 = vmatpush3.msra.mxu0 %v16333_v61 }
0x4dc0   :  { %10659 = vmatprep.subr.mxu0 %v16284_v18 }
0x4dc1   :  { %10660 = vmatpush3.msra.mxu0 %v16334_v43 }
0x4dc2   :  { %10661 = vmatprep.subr.mxu0 %v16284_v18 }
0x4dc3   :  { %10662 = vmatpush3.msra.mxu0 %v16335_v35 }
0x4dc4   :  { %10663 = vmatprep.subr.mxu0 %v16284_v18 }
0x4dc5   :  { %10664 = vmatpush3.msra.mxu0 %v16336_v27 }
0x4dc6   :  { %10665 = vmatprep.subr.mxu0 %v16284_v18 }
0x4dc7   :  { %10666 = vmatpush3.msra.mxu0 %v16337_v23 }
0x4dc8   :  { %10667 = vmatprep.subr.mxu0 %v16284_v18 }
0x4dc9   :  { %10668 = vmatpush3.msra.mxu0 %v16338_v53 }
0x4dca   :  { %10669 = vmatprep.subr.mxu0 %v16284_v18 }
0x4dcb   :  { %10670 = vmatpush3.msra.mxu0 %v16339_v51 }
0x4dcc   :  { %10671 = vmatprep.subr.mxu0 %v16284_v18 }
0x4dcd   :  { %10672 = vmatpush3.msra.mxu0 %v16340_v50 }
0x4dce   :  { %10673 = vmatprep.subr.mxu0 %v16284_v18 }
0x4dcf   :  { %10674 = vmatpush3.msra.mxu0 %v16341_v26 }
0x4dd0   :  { %10675 = vmatprep.subr.mxu0 %v16284_v18 }
0x4dd1   :  { %10676 = vmatpush3.msra.mxu0 %v16342_v34 }
0x4dd2   :  { %10677 = vmatprep.subr.mxu0 %v16284_v18 }
0x4dd3   :  { %10678 = vmatpush3.msra.mxu0 %v16343_v59 }
0x4dd4   :  { %10679 = vmatprep.subr.mxu0 %v16284_v18  ;;  %v16347_v18 = vld [vmem:[#allocation73_spill] sm:$0xff] }
0x4dd5   :  { %10680 = vmatpush3.msra.mxu0 %v16344_v11 }
0x4e76   :  { %v7598_v13 = vpop.f32.mrf.mxu0 }
0x4e77   :  { %7603 = vrot.lane.b32.xlu1 %v7598_v13, %s11333_s30 }
0x4e78   :  { %v10648_v2 = vpop.f32.mrf.mxu0 }
0x4ee9   :  { %v7604_v20 = vpop.permute.xlu1 %7603 }
0x4eea   :  { %v7609_v12 = vsel %vm609_vm3, %v7027_v31, %v7604_v20 }
0x4eeb   :  { %v7610_v63 = vsel %vm16345_vm7, %v7609_v12, %v7607_v62 }
0x4eec   :  { %7676 = vmatmul.mubr.f32.vlgmr.msra.gmra.mxu1 %v7610_v63 }
0x4fac   :  { %v7677_v0 = vpop.f32.mrf.mxu1 }
0x4fad   :  { %v7682_v15 = vadd.f32 %v16347_v18, %v7677_v0 }
0x4fae   :  { %v7679_v25 = vpop.f32.mrf.mxu1 }
0x4faf   :  { %v7683_v6 = vadd.f32 %v16346_v54, %v7679_v25 }
0x4fb1   :  { %7692 = vrot.lane.b32.xlu1 %v7683_v6, %s11329_s28  ;;  %v7684_v29 = vadd.f32 %v7683_v6, %v7682_v15 }
0x4fb3   :  { %v9650_v41 = vmul.f32 -1.442695, %v7684_v29 }
0x4fb5   :  { %11108 = vpow2.f32 %v9650_v41 }
0x4fc2   :  { %v11109_v17 = vpop.eup %11108 }
0x4fc3   :  { %v7688_v58 = vadd.f32 1.0, %v11109_v17 }
0x4fc5   :  { %11110 = vrcp.f32 %v7688_v58 }
0x4fd2   :  { %v11111_v21 = vpop.eup %11110 }
0x4fd3   :  { %v7702_v1 = vsub.f32 1.0, %v11111_v21  ;;  %v7708_v60 = vmul.f32 %v11111_v21, %v14586_v10 }
0x5023   :  { %v7693_v40 = vpop.permute.xlu1 %7692 }
0x5024   :  { %v7695_v19 = vmul.f32 %v11111_v21, %v7693_v40 }
0x5026   :  { %7697 = vrot.lane.b32.xlu1 %v7695_v19, %s11329_s28 }
0x5098   :  { %v7698_v37 = vpop.permute.xlu1 %7697 }
0x5099   :  { %v7700_v48 = vadd.f32 %v7698_v37, %v7682_v15 }
0x509b   :  { %11112 = vtanh.f32 %v7700_v48 }
0x50a8   :  { %v11113_v3 = vpop.eup %11112 }
0x50a9   :  { %7704 = vrot.lane.b32.xlu0 %v11113_v3, %s11330_s8 }
0x511b   :  { %v7705_v45 = vpop.permute.xlu0 %7704 }
0x511c   :  { %v7707_v61 = vmul.f32 %v7705_v45, %v7702_v1 }
0x511e   :  { %v14968_v43 = vadd.f32 %v7708_v60, %v7707_v61 }
0x5120   :  { %v11083_v35 = vpack.i.bf16 %v7027_v31, %v14968_v43 }
0x5122   :  { %11084 = vrot.lane.b32.xlu1 %v11083_v35, %s11330_s8 }
0x5194   :  { %v11085_v27 = vpop.permute.xlu1 %11084 }
0x5195   :  { %v11087_v23 = vunpack.i.h.bf16 %v11085_v27  ;;  %v11086_v53 = vunpack.i.l.bf16 %v11085_v27 }
0x5197   :  { %v7718_v51 = vsel %vm609_vm3, %v11086_v53, %v7604_v20 }
0x5198   :  { %v7719_v50 = vsel %vm16348_vm0, %v7718_v51, %v11087_v23 }
0x5199   :  { %10682 = vmatmul.mubr.f32.vlgmr.msra.gmra.mxu0 %v7719_v50 }
0x5258   :  { %7796 = sbr.rel (%p9653_p1) target bundleno = 21087 (0x525f), region = 157 }
0x5259   :  { %v7786_v26 = vpop.f32.mrf.mxu0 }
0x525a   :  { %v7787_v34 = vadd.f32 %v13444_v32, %v7786_v26 }
0x525b   :  { %v10683_v10 = vpop.f32.mrf.mxu0 }
0x525c   :  { %9651 = vst [vmem:[%s15762_s23 + $0x28] sm:$0xff] %v7787_v34 }
0x525d   :  { %v16349_v59 = vld [vmem:[#allocation34_spill] sm:$0xff] }
0x525e   :  { %7797 = vst.msk [vmem:[#allocation2] sm:$0xff] %vm609_vm3, %v16349_v59 }
0x525f PF:  { %s9654_s5 = sld [smem:[#allocation3 + $0x5]] }
0x5265   :  { %p9655_p2 = scmp.ne.s32.totalorder %s9654_s5, 0 }
0x5267   :  { %7802 = sbr.rel (%p9655_p2) target bundleno = 21578 (0x544a), region = 161 }
0x526c   :  { %vm16350_vm8 = vcmask 523264   ;;  %v11342_v13 = vmov 0.0   ;;  %v16351_v2 = vld [vmem:[#allocation21_spill] sm:$0xff]  ;;  %v16352_v31 = vld [vmem:[#allocation22_spill] sm:$0xff]  ;;  %v16353_v62 = vld [vmem:[#allocation23_spill] sm:$0xff]  ;;  %vm11343_vm7 = vmmov 0  }
0x526d   :  { %v7803_v11 = vsel %vm16350_vm8, %v7787_v34, -inf  ;;  %10684 = vmatprep.subr.mxu0 %v11342_v13  ;;  %v16354_v20 = vld [vmem:[#allocation24_spill] sm:$0xff]  ;;  %v16355_v12 = vld [vmem:[#allocation25_spill] sm:$0xff]  ;;  %v16356_v63 = vld [vmem:[#allocation26_spill] sm:$0xff]  ;;  %10700 = vmatprep.mubr.msk.f32.mxu0 %vm11343_vm7, %v11342_v13 }
0x526e   :  { %7804 = vmax.xlane.f32.xlu0 %v7803_v11  ;;  %10685 = vmatpush3.msra.mxu0 %v16351_v2  ;;  %v16357_v0 = vld [vmem:[#allocation27_spill] sm:$0xff]  ;;  %v16358_v25 = vld [vmem:[#allocation28_spill] sm:$0xff]  ;;  %v16359_v6 = vld [vmem:[#allocation37_spill] sm:$0xff] }
0x526f   :  { %10686 = vmatprep.subr.mxu0 %v11342_v13  ;;  %vm16360_vm6 = vmmov %vm16350_vm8 }
0x5270   :  { %10687 = vmatpush3.msra.mxu0 %v16352_v31  ;;  %vm16361_vm8 = vmmov %vm16360_vm6 }
0x5271   :  { %10688 = vmatprep.subr.mxu0 %v11342_v13 }
0x5272   :  { %10689 = vmatpush3.msra.mxu0 %v16353_v62 }
0x5273   :  { %10690 = vmatprep.subr.mxu0 %v11342_v13 }
0x5274   :  { %10691 = vmatpush3.msra.mxu0 %v16354_v20 }
0x5275   :  { %10692 = vmatprep.subr.mxu0 %v11342_v13 }
0x5276   :  { %10693 = vmatpush3.msra.mxu0 %v16355_v12 }
0x5277   :  { %10694 = vmatprep.subr.mxu0 %v11342_v13 }
0x5278   :  { %10695 = vmatpush3.msra.mxu0 %v16356_v63 }
0x5279   :  { %10696 = vmatprep.subr.mxu0 %v11342_v13 }
0x527a   :  { %10697 = vmatpush3.msra.mxu0 %v16357_v0 }
0x527b   :  { %10698 = vmatprep.subr.mxu0 %v11342_v13 }
0x527c   :  { %10699 = vmatpush3.msra.mxu0 %v16358_v25 }
0x52f7   :  { %v7805_v54 = vpop.xlane.xlu0 %7804 }
0x52f8   :  { %vm7806_vm11 = vcmp.eq.f32.partialorder %v7787_v34, %v7805_v54 }
0x52f9   :  { %v7807_v18 = vsel %vm7806_vm11, %v16359_v6, 64.0 }
0x52fa   :  { %v7808_v15 = vsel %vm16360_vm6, %v7807_v18, inf }
0x52fb   :  { %7809 = vmin.xlane.f32.xlu0 %v7808_v15 }
0x5384   :  { %v7810_v29 = vpop.xlane.xlu0 %7809 }
0x5385   :  { %vm7811_vm0 = vcmp.eq.f32.partialorder %v16359_v6, %v7810_v29 }
0x5386   :  { %v9656_v41 = vsel %vm7811_vm0, 1.0, %v11342_v13 }
0x5387   :  { %10701 = vmatmul.mubr.msk.f32.vlgmr.msra.gmra.mxu0 %vm16361_vm8, %v9656_v41 }
0x5447   :  { %v7883_v17 = vpop.f32.mrf.mxu0 }
0x5448   :  { %7887 = vst.msk [vmem:[#allocation2] sm:$0xff] %vm609_vm3, %v7883_v17 }
0x5449   :  { %v10702_v58 = vpop.f32.mrf.mxu0 }
0x544a PF:  { %v7897_v21 = vrot.slane %v7787_v34, %v12212_v33  ;;  %v7890_v40 = vcombine.high %v7787_v34, %v7787_v34  ;;  %v16362_v19 = vmov 0.0   ;;  %vm16363_vm11 = vmmov 0   ;;  %8472 = vmatprep.subr.mxu1 %v13118_v57  ;;  %v16364_v2 = vld [vmem:[#allocation53_spill] sm:$0xff]  ;;  %v16365_v31 = vld [vmem:[#allocation54_spill] sm:$0xff]  ;;  %v16366_v62 = vld [vmem:[#allocation55_spill] sm:$0xff]  ;;  %s9661_s9 = sld [smem:[#allocation3 + $0x6]] }
0x544b   :  { %10703 = vmatprep.subr.mxu0 %v16362_v19  ;;  %10719 = vmatprep.mubr.msk.f32.mxu0 %vm16363_vm11, %v16362_v19  ;;  %v16367_v20 = vld [vmem:[#allocation56_spill] sm:$0xff]  ;;  %v16368_v12 = vld [vmem:[#allocation57_spill] sm:$0xff]  ;;  %v16369_v63 = vld [vmem:[#allocation58_spill] sm:$0xff]  ;;  %vm16401_vm6 = vcmask 130048   ;;  %vm16402_vm7 = vcmask 392192   ;;  %vm16403_vm0 = vcmask 457728  }
0x544c   :  { %10704 = vmatpush3.msra.mxu0 %v12675_v49  ;;  %v7913_v37 = vrot.slane %v7897_v21, %v12212_v33  ;;  %v7905_v48 = vcombine.high %v7897_v21, %v7897_v21  ;;  %v7904_v3 = vrot.slane %v7890_v40, %v12212_v33  ;;  %8473 = vmatpush1.msra.mxu1 %v13123_v30  ;;  %v16370_v0 = vld [vmem:[#allocation59_spill] sm:$0xff]  ;;  %v16371_v25 = vld [vmem:[#allocation60_spill] sm:$0xff]  ;;  %v16372_v54 = vld [vmem:[#allocation61_spill] sm:$0xff]  ;;  %vm16405_vm8 = vcmask 523264  }
0x544d   :  { %10705 = vmatprep.subr.mxu0 %v16362_v19  ;;  %8474 = vmatprep.subr.mxu1 %v13128_v56  ;;  %v16373_v6 = vld [vmem:[#allocation62_spill] sm:$0xff]  ;;  %v16374_v18 = vld [vmem:[#allocation63_spill] sm:$0xff]  ;;  %v16375_v15 = vld [vmem:[#allocation64_spill] sm:$0xff] }
0x544e   :  { %10706 = vmatpush3.msra.mxu0 %v12703_v55  ;;  %v7942_v1 = vrot.slane %v7913_v37, %v11526_v9  ;;  %v7935_v45 = vcombine.high %v7913_v37, %v7913_v37  ;;  %v7927_v60 = vrot.slane %v7905_v48, %v12212_v33  ;;  %v7906_v61 = vcombine.high %v7904_v3, %v7904_v3  ;;  %v16376_v29 = vld [vmem:[#allocation65_spill] sm:$0xff]  ;;  %v16377_v41 = vld [vmem:[#allocation66_spill] sm:$0xff]  ;;  %v16378_v17 = vld [vmem:[#allocation67_spill] sm:$0xff] }
0x544f   :  { %10707 = vmatprep.subr.mxu0 %v16362_v19  ;;  %8475 = vmatpush1.msra.mxu1 %v13134_v8  ;;  %v7920_v53 = vrot.slane %v7904_v3, %v12212_v33  ;;  %v16379_v58 = vld [vmem:[#allocation68_spill] sm:$0xff]  ;;  %v16380_v21 = vld [vmem:[#allocation69_spill] sm:$0xff]  ;;  %v16381_v40 = vld [vmem:[#allocation70_spill] sm:$0xff] }
0x5450   :  { %10708 = vmatpush3.msra.mxu0 %v12711_v16  ;;  %7971 = vrot.lane.b32.xlu0 %v7942_v1, %s11329_s28  ;;  %v7950_v35 = vrot.slane %v7935_v45, %v11526_v9  ;;  %v7946_v27 = vrot.slane %v7927_v60, %v11526_v9  ;;  %v7937_v23 = vcombine.high %v7927_v60, %v7927_v60  ;;  %v16382_v37 = vld [vmem:[#allocation71_spill] sm:$0xff]  ;;  %v16383_v48 = vld [vmem:[#allocation72_spill] sm:$0xff]  ;;  %p9662_p3 = scmp.eq.s32.totalorder %s9661_s9, 0 }
0x5451   :  { %10709 = vmatprep.subr.mxu0 %v16362_v19  ;;  %8476 = vmatprep.subr.mxu1 %v13140_v14  ;;  %v7934_v50 = vrot.slane %v7906_v61, %v12212_v33  ;;  %v7958_v26 = vrot.slane %v7920_v53, %v11526_v9  ;;  %v7936_v34 = vcombine.high %v7920_v53, %v7920_v53  ;;  %v16384_v1 = vld [vmem:[#allocation43_spill] sm:$0xff]  ;;  %v16385_v61 = vld [vmem:[#allocation40_spill] sm:$0xff] }
0x5452   :  { %7975 = vrot.lane.b32.xlu1 %v7950_v35, %s11329_s28  ;;  %v7954_v51 = vrot.slane %v7937_v23, %v11526_v9  ;;  %10710 = vmatpush3.msra.mxu0 %v12665_v24  ;;  %v16386_v23 = vld [vmem:[#allocation42_spill] sm:$0xff] }
0x5453   :  { %10711 = vmatprep.subr.mxu0 %v16362_v19  ;;  %8477 = vmatpush1.msra.mxu1 %v13146_v42  ;;  %v7962_v10 = vrot.slane %v7934_v50, %v11526_v9  ;;  %v7938_v59 = vcombine.high %v7934_v50, %v7934_v50  ;;  %v7966_v11 = vrot.slane %v7936_v34, %v11526_v9  ;;  %v16387_v50 = vld [vmem:[#allocation45_spill] sm:$0xff] }
0x5454   :  { %7973 = vrot.lane.b32.xlu0 %v7946_v27, %s11329_s28  ;;  %10712 = vmatpush3.msra.mxu0 %v12623_v38 }
0x5455   :  { %10713 = vmatprep.subr.mxu0 %v16362_v19  ;;  %8478 = vmatprep.subr.mxu1 %v13152_v36  ;;  %v7970_v13 = vrot.slane %v7938_v59, %v11526_v9 }
0x5456   :  { %7977 = vrot.lane.b32.xlu1 %v7954_v51, %s11329_s28  ;;  %10714 = vmatpush3.msra.mxu0 %v12599_v5 }
0x5457   :  { %10715 = vmatprep.subr.mxu0 %v16362_v19  ;;  %8479 = vmatpush1.msra.mxu1 %v13158_v52 }
0x5458   :  { %7979 = vrot.lane.b32.xlu0 %v7958_v26, %s11329_s28  ;;  %10716 = vmatpush3.msra.mxu0 %v12590_v39 }
0x5459   :  { %10717 = vmatprep.subr.mxu0 %v16362_v19  ;;  %8480 = vmatprep.subr.mxu1 %v13164_v28 }
0x545a   :  { %7981 = vrot.lane.b32.xlu1 %v7962_v10, %s11329_s28  ;;  %10718 = vmatpush3.msra.mxu0 %v12587_v47  ;;  %v16388_v10 = vld [vmem:[#allocation41_spill] sm:$0xff] }
0x545b   :  { %8481 = vmatpush1.msra.mxu1 %v13170_v7  ;;  %8536 = vmatprep.mubr.f32.mxu1 %v16362_v19 }
0x545c   :  { %7983 = vrot.lane.b32.xlu0 %v7966_v11, %s11329_s28  ;;  %8482 = vmatprep.subr.mxu1 %v13176_v46 }
0x545d   :  { %8483 = vmatpush1.msra.mxu1 %v13182_v44  ;;  %10722 = vmatprep.subr.mxu0 %v16362_v19 }
0x545e   :  { %7985 = vrot.lane.b32.xlu1 %v7970_v13, %s11329_s28  ;;  %8484 = vmatprep.subr.mxu1 %v16364_v2  ;;  %v16389_v13 = vld [vmem:[#allocation44_spill] sm:$0xff] }
0x545f   :  { %8485 = vmatpush1.msra.mxu1 %v16365_v31 }
0x5460   :  { %8486 = vmatprep.subr.mxu1 %v16366_v62  ;;  %v16390_v62 = vld [vmem:[#allocation38_spill] sm:$0xff] }
0x5461   :  { %8487 = vmatpush1.msra.mxu1 %v16367_v20 }
0x5462   :  { %8488 = vmatprep.subr.mxu1 %v16368_v12 }
0x5463   :  { %8489 = vmatpush1.msra.mxu1 %v16369_v63  ;;  %v16391_v63 = vld [vmem:[#allocation39_spill] sm:$0xff] }
0x5464   :  { %8490 = vmatprep.subr.mxu1 %v16370_v0 }
0x5465   :  { %8491 = vmatpush1.msra.mxu1 %v16371_v25 }
0x5466   :  { %8492 = vmatprep.subr.mxu1 %v16372_v54  ;;  %v16392_v54 = vld [vmem:[#allocation46_spill] sm:$0xff] }
0x5467   :  { %8493 = vmatpush1.msra.mxu1 %v16373_v6 }
0x5468   :  { %8494 = vmatprep.subr.mxu1 %v16374_v18 }
0x5469   :  { %8495 = vmatpush1.msra.mxu1 %v16375_v15 }
0x546a   :  { %8496 = vmatprep.subr.mxu1 %v16376_v29 }
0x546b   :  { %8497 = vmatpush1.msra.mxu1 %v16377_v41 }
0x546c   :  { %8498 = vmatprep.subr.mxu1 %v16378_v17 }
0x546d   :  { %8499 = vmatpush1.msra.mxu1 %v16379_v58 }
0x546e   :  { %8500 = vmatprep.subr.mxu1 %v16380_v21 }
0x546f   :  { %8501 = vmatpush1.msra.mxu1 %v16381_v40 }
0x5470   :  { %8502 = vmatprep.subr.mxu1 %v16382_v37 }
0x5471   :  { %8503 = vmatpush1.msra.mxu1 %v16383_v48 }
0x54c2   :  { %v7972_v3 = vpop.permute.xlu0 %7971 }
0x54c3   :  { %v7995_v45 = vadd.f32 %v7972_v3, %v16384_v1 }
0x54c4   :  { %v7976_v60 = vpop.permute.xlu1 %7975 }
0x54c5   :  { %11119 = vtanh.f32 %v7995_v45  ;;  %v7997_v35 = vadd.f32 %v7976_v60, %v16385_v61 }
0x54c6   :  { %v7974_v27 = vpop.permute.xlu0 %7973 }
0x54c7   :  { %11121 = vtanh.f32 %v7997_v35  ;;  %v7996_v53 = vadd.f32 %v7974_v27, %v16386_v23 }
0x54c8   :  { %v7978_v51 = vpop.permute.xlu1 %7977 }
0x54c9   :  { %11123 = vtanh.f32 %v7996_v53  ;;  %v7998_v26 = vadd.f32 %v7978_v51, %v16387_v50 }
0x54ca   :  { %v7980_v34 = vpop.permute.xlu0 %7979 }
0x54cb   :  { %11125 = vtanh.f32 %v7998_v26  ;;  %v7999_v59 = vadd.f32 %v7980_v34, %v16388_v10 }
0x54cc   :  { %v7982_v11 = vpop.permute.xlu1 %7981 }
0x54cd   :  { %11127 = vtanh.f32 %v7999_v59  ;;  %v8000_v2 = vadd.f32 %v7982_v11, %v16389_v13  ;;  %v16393_v11 = vld [vmem:[#allocation29_spill] sm:$0xff] }
0x54ce   :  { %v7984_v31 = vpop.permute.xlu0 %7983 }
0x54cf   :  { %11129 = vtanh.f32 %v8000_v2  ;;  %v8001_v20 = vadd.f32 %v7984_v31, %v16390_v62  ;;  %v16394_v2 = vld [vmem:[#allocation20_spill] sm:$0xff]  ;;  %v16395_v62 = vld [vmem:[#allocation47_spill] sm:$0xff] }
0x54d0   :  { %v7986_v12 = vpop.permute.xlu1 %7985 }
0x54d1   :  { %11131 = vtanh.f32 %v8001_v20  ;;  %v8002_v0 = vadd.f32 %v7986_v12, %v16391_v63  ;;  %v16396_v12 = vld [vmem:[#allocation48_spill] sm:$0xff] }
0x54d2   :  { %v11120_v25 = vpop.eup %11119 }
0x54d3   :  { %11133 = vtanh.f32 %v8002_v0  ;;  %v8011_v6 = vmul.f32 %v11120_v25, %v16392_v54 }
0x54d4   :  { %v11122_v18 = vpop.eup %11121 }
0x54d5   :  { %v8019_v15 = vsel %vm609_vm3, %v8011_v6, 0.0  ;;  %v8013_v29 = vmul.f32 %v11122_v18, %v16392_v54 }
0x54d6   :  { %v11124_v41 = vpop.eup %11123  ;;  %8020 = vadd.xlane.f32.xlu0 %v8019_v15 }
0x54d7   :  { %v8025_v17 = vsel %vm609_vm3, %v8013_v29, 0.0  ;;  %v8012_v58 = vmul.f32 %v11124_v41, %v16392_v54 }
0x54d8   :  { %v11126_v21 = vpop.eup %11125 }
0x54d9   :  { %v8022_v40 = vsel %vm609_vm3, %v8012_v58, 0.0  ;;  %v8014_v37 = vmul.f32 %v11126_v21, %v16392_v54 }
0x54da   :  { %v11128_v48 = vpop.eup %11127  ;;  %8026 = vadd.xlane.f32.xlu0 %v8025_v17  ;;  %8023 = vadd.xlane.f32.xlu1 %v8022_v40  ;;  %v16397_v40 = vld [vmem:[#allocation49_spill] sm:$0xff] }
0x54db   :  { %v8028_v3 = vsel %vm609_vm3, %v8014_v37, 0.0  ;;  %v8015_v1 = vmul.f32 %v11128_v48, %v16392_v54 }
0x54dc   :  { %v11130_v45 = vpop.eup %11129 }
0x54dd   :  { %v8031_v60 = vsel %vm609_vm3, %v8015_v1, 0.0  ;;  %v8016_v61 = vmul.f32 %v11130_v45, %v16392_v54 }
0x54de   :  { %v11132_v35 = vpop.eup %11131  ;;  %8029 = vadd.xlane.f32.xlu0 %v8028_v3  ;;  %8032 = vadd.xlane.f32.xlu1 %v8031_v60 }
0x54df   :  { %v8034_v27 = vsel %vm609_vm3, %v8016_v61, 0.0  ;;  %v8017_v23 = vmul.f32 %v11132_v35, %v16392_v54 }
0x54e0   :  { %v11134_v53 = vpop.eup %11133 }
0x54e1   :  { %v8037_v51 = vsel %vm609_vm3, %v8017_v23, 0.0  ;;  %v8018_v50 = vmul.f32 %v11134_v53, %v16392_v54 }
0x54e2   :  { %8035 = vadd.xlane.f32.xlu0 %v8034_v27  ;;  %8038 = vadd.xlane.f32.xlu1 %v8037_v51 }
0x54e3   :  { %v8040_v26 = vsel %vm609_vm3, %v8018_v50, 0.0 }
0x54e6   :  { %8041 = vadd.xlane.f32.xlu0 %v8040_v26 }
0x555f   :  { %v15092_v34 = vpop.xlane.xlu0 %8020 }
0x5560   :  { %v8054_v13 = vrot.slane %v15092_v34, %v16393_v11  ;;  %v8094_v31 = vrot.slane %v15092_v34, %v16394_v2  ;;  %v8134_v20 = vrot.slane %v15092_v34, %v16395_v62  ;;  %v8174_v63 = vrot.slane %v15092_v34, %v16396_v12 }
0x5561   :  { %v8214_v41 = vrot.slane %v15092_v34, %v12831_v4 }
0x5563   :  { %v15094_v10 = vpop.xlane.xlu0 %8026  ;;  %v15096_v59 = vpop.xlane.xlu1 %8023 }
0x5564   :  { %v8058_v0 = vrot.slane %v15096_v59, %v16393_v11  ;;  %v8062_v25 = vrot.slane %v15094_v10, %v16393_v11  ;;  %v8098_v54 = vrot.slane %v15096_v59, %v16394_v2  ;;  %v8102_v6 = vrot.slane %v15094_v10, %v16394_v2 }
0x5565   :  { %v8138_v18 = vrot.slane %v15096_v59, %v16395_v62  ;;  %v8142_v15 = vrot.slane %v15094_v10, %v16395_v62  ;;  %v8178_v29 = vrot.slane %v15096_v59, %v16396_v12  ;;  %v8182_v21 = vrot.slane %v15094_v10, %v16396_v12 }
0x5566   :  { %v8083_v17 = vsel %vm3736_vm12, %v8058_v0, %v8054_v13  ;;  %v8123_v58 = vsel %vm3736_vm12, %v8098_v54, %v8094_v31  ;;  %v8218_v37 = vrot.slane %v15096_v59, %v12831_v4 }
0x5567   :  { %v15128_v48 = vpop.xlane.xlu0 %8029  ;;  %v15130_v3 = vpop.xlane.xlu1 %8032  ;;  %v8084_v1 = vsel %vm3738_vm13, %v8062_v25, %v8083_v17  ;;  %v8124_v45 = vsel %vm3738_vm13, %v8102_v6, %v8123_v58  ;;  %v8163_v60 = vsel %vm3736_vm12, %v8138_v18, %v8134_v20  ;;  %v8203_v61 = vsel %vm3736_vm12, %v8178_v29, %v8174_v63  ;;  %v16398_v29 = vld [vmem:[#allocation50_spill] sm:$0xff] }
0x5568   :  { %v8066_v35 = vrot.slane %v15128_v48, %v16393_v11  ;;  %v8070_v27 = vrot.slane %v15130_v3, %v16393_v11  ;;  %v8106_v23 = vrot.slane %v15128_v48, %v16394_v2  ;;  %v8110_v53 = vrot.slane %v15130_v3, %v16394_v2 }
0x5569   :  { %v8146_v51 = vrot.slane %v15128_v48, %v16395_v62  ;;  %v8150_v50 = vrot.slane %v15130_v3, %v16395_v62  ;;  %v8164_v26 = vsel %vm3738_vm13, %v8142_v15, %v8163_v60  ;;  %v8186_v13 = vrot.slane %v15128_v48, %v16396_v12 }
0x556a   :  { %v8085_v31 = vsel %vm3740_vm14, %v8066_v35, %v8084_v1  ;;  %v8125_v20 = vsel %vm3740_vm14, %v8106_v23, %v8124_v45  ;;  %v8190_v63 = vrot.slane %v15130_v3, %v16396_v12  ;;  %v8204_v0 = vsel %vm3738_vm13, %v8182_v21, %v8203_v61 }
0x556b   :  { %v15156_v25 = vpop.xlane.xlu0 %8035  ;;  %v15158_v54 = vpop.xlane.xlu1 %8038  ;;  %v8086_v6 = vsel %vm3742_vm15, %v8070_v27, %v8085_v31  ;;  %v8165_v18 = vsel %vm3740_vm14, %v8146_v51, %v8164_v26  ;;  %v8205_v15 = vsel %vm3740_vm14, %v8186_v13, %v8204_v0  ;;  %v8294_v17 = vrot.slane %v15092_v34, %v16398_v29 }
0x556c   :  { %v8074_v58 = vrot.slane %v15156_v25, %v16393_v11  ;;  %v8078_v1 = vrot.slane %v15158_v54, %v16393_v11  ;;  %v8114_v21 = vrot.slane %v15156_v25, %v16394_v2  ;;  %v8126_v45 = vsel %vm3742_vm15, %v8110_v53, %v8125_v20 }
0x556d   :  { %v8118_v60 = vrot.slane %v15158_v54, %v16394_v2  ;;  %v8154_v61 = vrot.slane %v15156_v25, %v16395_v62  ;;  %v8158_v35 = vrot.slane %v15158_v54, %v16395_v62  ;;  %v8194_v27 = vrot.slane %v15156_v25, %v16396_v12 }
0x556e   :  { %v8087_v23 = vsel %vm3744_vm1, %v8074_v58, %v8086_v6  ;;  %v8166_v51 = vsel %vm3742_vm15, %v8150_v50, %v8165_v18  ;;  %v8198_v26 = vrot.slane %v15158_v54, %v16396_v12  ;;  %v8206_v53 = vsel %vm3742_vm15, %v8190_v63, %v8205_v15  ;;  %v16399_v18 = vld [vmem:[#allocation51_spill] sm:$0xff] }
0x556f   :  { %v15185_v13 = vpop.xlane.xlu0 %8041  ;;  %v8127_v31 = vsel %vm3744_vm1, %v8114_v21, %v8126_v45  ;;  %v8167_v20 = vsel %vm3744_vm1, %v8154_v61, %v8166_v51  ;;  %v8207_v0 = vsel %vm3744_vm1, %v8194_v27, %v8206_v53  ;;  %v8222_v63 = vrot.slane %v15094_v10, %v12831_v4 }
0x5570   :  { %v8082_v6 = vrot.slane %v15185_v13, %v16393_v11  ;;  %v8122_v50 = vrot.slane %v15185_v13, %v16394_v2  ;;  %v8334_v15 = vrot.slane %v15092_v34, %v16399_v18  ;;  %v8088_v58 = vsel %vm3746_vm2, %v8078_v1, %v8087_v23 }
0x5571   :  { %v8162_v21 = vrot.slane %v15185_v13, %v16395_v62  ;;  %v8202_v45 = vrot.slane %v15185_v13, %v16396_v12  ;;  %v8226_v11 = vrot.slane %v15128_v48, %v12831_v4  ;;  %v8128_v61 = vsel %vm3746_vm2, %v8118_v60, %v8127_v31 }
0x5572   :  { %v8168_v2 = vsel %vm3746_vm2, %v8158_v35, %v8167_v20  ;;  %v8208_v27 = vsel %vm3746_vm2, %v8198_v26, %v8207_v0  ;;  %v8230_v51 = vrot.slane %v15130_v3, %v12831_v4  ;;  %v8089_v1 = vsel %vm3748_vm4, %v8082_v6, %v8088_v58 }
0x5573   :  { %v8129_v23 = vsel %vm3748_vm4, %v8122_v50, %v8128_v61  ;;  %v8234_v62 = vrot.slane %v15156_v25, %v12831_v4  ;;  %v8243_v12 = vsel %vm3736_vm12, %v8218_v37, %v8214_v41  ;;  %v8258_v60 = vrot.slane %v15096_v59, %v16397_v40 }
0x5574   :  { %v8244_v53 = vsel %vm3738_vm13, %v8222_v63, %v8243_v12  ;;  %v8262_v35 = vrot.slane %v15094_v10, %v16397_v40  ;;  %v8266_v26 = vrot.slane %v15128_v48, %v16397_v40  ;;  %v8169_v31 = vsel %vm3748_vm4, %v8162_v21, %v8168_v2 }
0x5575   :  { %v8209_v20 = vsel %vm3748_vm4, %v8202_v45, %v8208_v27  ;;  %v8238_v0 = vrot.slane %v15158_v54, %v12831_v4  ;;  %v8245_v41 = vsel %vm3740_vm14, %v8226_v11, %v8244_v53  ;;  %v8242_v37 = vrot.slane %v15185_v13, %v12831_v4 }
0x5576   :  { %v8246_v6 = vsel %vm3742_vm15, %v8230_v51, %v8245_v41  ;;  %v16400_v50 = vrot.slane %v15092_v34, %v16397_v40  ;;  %v8298_v58 = vrot.slane %v15096_v59, %v16398_v29  ;;  %v8270_v45 = vrot.slane %v15130_v3, %v16397_v40 }
0x5577   :  { %v8247_v21 = vsel %vm3744_vm1, %v8234_v62, %v8246_v6  ;;  %v8302_v61 = vrot.slane %v15094_v10, %v16398_v29  ;;  %v8274_v2 = vrot.slane %v15156_v25, %v16397_v40  ;;  %v8278_v34 = vrot.slane %v15158_v54, %v16397_v40 }
0x5578   :  { %v8283_v63 = vsel %vm3736_vm12, %v8258_v60, %v16400_v50  ;;  %v8306_v51 = vrot.slane %v15128_v48, %v16398_v29  ;;  %v8248_v62 = vsel %vm3746_vm2, %v8238_v0, %v8247_v21  ;;  %v8282_v12 = vrot.slane %v15185_v13, %v16397_v40 }
0x5579   :  { %v8284_v11 = vsel %vm3738_vm13, %v8262_v35, %v8283_v63  ;;  %v8310_v53 = vrot.slane %v15130_v3, %v16398_v29  ;;  %v8314_v60 = vrot.slane %v15156_v25, %v16398_v29  ;;  %v8249_v35 = vsel %vm3748_vm4, %v8242_v37, %v8248_v62 }
0x557a   :  { %v8285_v27 = vsel %vm3740_vm14, %v8266_v26, %v8284_v11  ;;  %v8323_v41 = vsel %vm3736_vm12, %v8298_v58, %v8294_v17  ;;  %v8338_v26 = vrot.slane %v15096_v59, %v16399_v18  ;;  %v8342_v6 = vrot.slane %v15094_v10, %v16399_v18 }
0x557b   :  { %v8286_v0 = vsel %vm3742_vm15, %v8270_v45, %v8285_v27  ;;  %v8318_v40 = vrot.slane %v15158_v54, %v16398_v29  ;;  %v8324_v50 = vsel %vm3738_vm13, %v8302_v61, %v8323_v41  ;;  %v8346_v63 = vrot.slane %v15128_v48, %v16399_v18 }
0x557c   :  { %v8287_v37 = vsel %vm3744_vm1, %v8274_v2, %v8286_v0  ;;  %v8322_v17 = vrot.slane %v15185_v13, %v16398_v29  ;;  %v8325_v59 = vsel %vm3740_vm14, %v8306_v51, %v8324_v50  ;;  %v8350_v10 = vrot.slane %v15130_v3, %v16399_v18 }
0x557d   :  { %v8326_v58 = vsel %vm3742_vm15, %v8310_v53, %v8325_v59  ;;  %v8354_v21 = vrot.slane %v15156_v25, %v16399_v18  ;;  %v8363_v45 = vsel %vm3736_vm12, %v8338_v26, %v8334_v15  ;;  %v8371_v11 = vsel %vm4038_vm5, %v8089_v1, %v8129_v23  ;;  %v16404_v53 = vld [vmem:[#allocation52_spill] sm:$0xff]  ;;  %v16409_v59 = vld [vmem:[#allocation75_spill] sm:$0xff] }
0x557e   :  { %v8327_v48 = vsel %vm3744_vm1, %v8314_v60, %v8326_v58  ;;  %v8358_v61 = vrot.slane %v15158_v54, %v16399_v18  ;;  %v8364_v29 = vsel %vm3738_vm13, %v8342_v6, %v8363_v45  ;;  %v8372_v2 = vsel %vm16401_vm6, %v8371_v11, %v8169_v31  ;;  %vm16406_vm6 = vmmov %vm16405_vm8  ;;  %v16411_v58 = vld [vmem:[#allocation77_spill] sm:$0xff]  ;;  %v16413_v45 = vld [vmem:[#allocation79_spill] sm:$0xff] }
0x557f   :  { %v8288_v3 = vsel %vm3746_vm2, %v8278_v34, %v8287_v37  ;;  %v8362_v27 = vrot.slane %v15185_v13, %v16399_v18  ;;  %v8365_v25 = vsel %vm3740_vm14, %v8346_v63, %v8364_v29  ;;  %v8373_v15 = vsel %vm4042_vm9, %v8372_v2, %v8209_v20  ;;  %v16414_v11 = vld [vmem:[#allocation80_spill] sm:$0xff]  ;;  %v16417_v29 = vld [vmem:[#allocation83_spill] sm:$0xff] }
0x5580   :  { %v8289_v1 = vsel %vm3748_vm4, %v8282_v12, %v8288_v3  ;;  %v8328_v23 = vsel %vm3746_vm2, %v8318_v40, %v8327_v48  ;;  %v8366_v51 = vsel %vm3742_vm15, %v8350_v10, %v8365_v25  ;;  %v8374_v54 = vsel %vm609_vm3, %v8373_v15, %v8249_v35  ;;  %v16410_v10 = vld [vmem:[#allocation76_spill] sm:$0xff]  ;;  %v16415_v48 = vld [vmem:[#allocation81_spill] sm:$0xff]  ;;  %v16421_v25 = vld [vmem:[#allocation87_spill] sm:$0xff] }
0x5581   :  { %v8329_v62 = vsel %vm3748_vm4, %v8322_v17, %v8328_v23  ;;  %v8367_v31 = vsel %vm3744_vm1, %v8354_v21, %v8366_v51  ;;  %v8375_v34 = vsel %vm4045_vm10, %v8374_v54, %v8289_v1  ;;  %v16408_v17 = vld [vmem:[#allocation74_spill] sm:$0xff]  ;;  %v16418_v2 = vld [vmem:[#allocation84_spill] sm:$0xff]  ;;  %v16419_v3 = vld [vmem:[#allocation85_spill] sm:$0xff] }
0x5582   :  { %v8368_v13 = vsel %vm3746_vm2, %v8358_v61, %v8367_v31  ;;  %v8376_v18 = vsel %vm16402_vm7, %v8375_v34, %v8329_v62  ;;  %vm16407_vm7 = vmmov %vm16406_vm6  ;;  %v16412_v21 = vld [vmem:[#allocation78_spill] sm:$0xff]  ;;  %v16422_v15 = vld [vmem:[#allocation88_spill] sm:$0xff] }
0x5583   :  { %v8369_v20 = vsel %vm3748_vm4, %v8362_v27, %v8368_v13  ;;  %v16416_v61 = vld [vmem:[#allocation82_spill] sm:$0xff] }
0x5584   :  { %v8377_v12 = vsel %vm16403_vm0, %v8376_v18, %v8369_v20  ;;  %v16420_v27 = vld [vmem:[#allocation86_spill] sm:$0xff]  ;;  %v16424_v20 = vld [vmem:[#allocation31_spill] sm:$0xff] }
0x5585   :  { %v8378_v60 = vadd.f32 %v8377_v12, %v16404_v53  ;;  %v7888_v51 = vld [vmem:[#allocation2] sm:$0xff] }
0x5587   :  { %v8379_v41 = vsel %vm16405_vm8, %v8378_v60, -inf }
0x5588   :  { %8380 = vmax.xlane.f32.xlu1 %v8379_v41 }
0x5611   :  { %v8381_v35 = vpop.xlane.xlu1 %8380 }
0x5612   :  { %v8382_v26 = vsub.f32 %v8378_v60, %v8381_v35 }
0x5614   :  { %v8383_v6 = vmul.f32 1.442695, %v8382_v26 }
0x5616   :  { %11135 = vpow2.f32 %v8383_v6 }
0x5623   :  { %v11136_v0 = vpop.eup %11135 }
0x5624   :  { %v8385_v40 = vsel %vm16406_vm6, %v11136_v0, 0.0 }
0x5625   :  { %8386 = vadd.xlane.f32.xlu0 %v8385_v40 }
0x563b   :  { %8467 = vrot.lane.b32.xlu0 %v14968_v43, %s11329_s28 }
0x56ae   :  { %v8387_v50 = vpop.xlane.xlu0 %8386 }
0x56af   :  { %11137 = vrcp.f32 %v8387_v50 }
0x56b2   :  { %v8468_v54 = vpop.permute.xlu0 %8467 }
0x56bc   :  { %v11138_v63 = vpop.eup %11137 }
0x56bd   :  { %v8389_v37 = vmul.f32 %v11138_v63, %v11136_v0 }
0x56bf   :  { %10720 = vmatmul.mubr.msk.f32.vlgmr.msra.gmra.mxu0 %vm16407_vm7, %v8389_v37 }
0x56c0   :  { %10723 = vmatpush3.msra.mxu0 %v13327_v22  ;;  %10754 = vmatprep.mubr.msk.f32.mxu0 %vm16363_vm11, %v16362_v19  ;;  %vm16423_vm11 = vcmask 785408  }
0x56c1   :  { %10724 = vmatprep.subr.mxu0 %v16362_v19  ;;  %vm16426_vm0 = vmmov %vm16423_vm11 }
0x56c2   :  { %10725 = vmatpush3.msra.mxu0 %v16408_v17 }
0x56c3   :  { %10726 = vmatprep.subr.mxu0 %v16362_v19 }
0x56c4   :  { %10727 = vmatpush3.msra.mxu0 %v16409_v59 }
0x56c5   :  { %10728 = vmatprep.subr.mxu0 %v16362_v19 }
0x56c6   :  { %10729 = vmatpush3.msra.mxu0 %v16410_v10 }
0x56c7   :  { %10730 = vmatprep.subr.mxu0 %v16362_v19 }
0x56c8   :  { %10731 = vmatpush3.msra.mxu0 %v16411_v58 }
0x56c9   :  { %10732 = vmatprep.subr.mxu0 %v16362_v19 }
0x56ca   :  { %10733 = vmatpush3.msra.mxu0 %v16412_v21 }
0x56cb   :  { %10734 = vmatprep.subr.mxu0 %v16362_v19 }
0x56cc   :  { %10735 = vmatpush3.msra.mxu0 %v16413_v45 }
0x56cd   :  { %10736 = vmatprep.subr.mxu0 %v16362_v19 }
0x56ce   :  { %10737 = vmatpush3.msra.mxu0 %v16414_v11 }
0x56cf   :  { %10738 = vmatprep.subr.mxu0 %v16362_v19 }
0x56d0   :  { %10739 = vmatpush3.msra.mxu0 %v16415_v48 }
0x56d1   :  { %10740 = vmatprep.subr.mxu0 %v16362_v19 }
0x56d2   :  { %10741 = vmatpush3.msra.mxu0 %v16416_v61 }
0x56d3   :  { %10742 = vmatprep.subr.mxu0 %v16362_v19 }
0x56d4   :  { %10743 = vmatpush3.msra.mxu0 %v16417_v29 }
0x56d5   :  { %10744 = vmatprep.subr.mxu0 %v16362_v19 }
0x56d6   :  { %10745 = vmatpush3.msra.mxu0 %v16418_v2 }
0x56d7   :  { %10746 = vmatprep.subr.mxu0 %v16362_v19 }
0x56d8   :  { %10747 = vmatpush3.msra.mxu0 %v16419_v3 }
0x56d9   :  { %10748 = vmatprep.subr.mxu0 %v16362_v19 }
0x56da   :  { %10749 = vmatpush3.msra.mxu0 %v16420_v27 }
0x56db   :  { %10750 = vmatprep.subr.mxu0 %v16362_v19 }
0x56dc   :  { %10751 = vmatpush3.msra.mxu0 %v16421_v25 }
0x56dd   :  { %10752 = vmatprep.subr.mxu0 %v16362_v19  ;;  %v16425_v19 = vld [vmem:[#allocation73_spill] sm:$0xff] }
0x56de   :  { %10753 = vmatpush3.msra.mxu0 %v16422_v15 }
0x577f   :  { %v8459_v1 = vpop.f32.mrf.mxu0 }
0x5780   :  { %8464 = vrot.lane.b32.xlu1 %v8459_v1, %s11333_s30 }
0x5781   :  { %v10721_v23 = vpop.f32.mrf.mxu0 }
0x57f2   :  { %v8465_v62 = vpop.permute.xlu1 %8464 }
0x57f3   :  { %v8470_v31 = vsel %vm609_vm3, %v7888_v51, %v8465_v62 }
0x57f4   :  { %v8471_v34 = vsel %vm16423_vm11, %v8470_v31, %v8468_v54 }
0x57f5   :  { %8537 = vmatmul.mubr.f32.vlgmr.msra.gmra.mxu1 %v8471_v34 }
0x58b5   :  { %v8538_v13 = vpop.f32.mrf.mxu1 }
0x58b6   :  { %v8543_v53 = vadd.f32 %v16425_v19, %v8538_v13 }
0x58b7   :  { %v8540_v18 = vpop.f32.mrf.mxu1 }
0x58b8   :  { %v8544_v12 = vadd.f32 %v16424_v20, %v8540_v18 }
0x58ba   :  { %8553 = vrot.lane.b32.xlu1 %v8544_v12, %s11329_s28  ;;  %v8545_v60 = vadd.f32 %v8544_v12, %v8543_v53 }
0x58bc   :  { %v9659_v41 = vmul.f32 -1.442695, %v8545_v60 }
0x58be   :  { %11139 = vpow2.f32 %v9659_v41 }
0x58cb   :  { %v11140_v35 = vpop.eup %11139 }
0x58cc   :  { %v8549_v26 = vadd.f32 1.0, %v11140_v35 }
0x58ce   :  { %11141 = vrcp.f32 %v8549_v26 }
0x58db   :  { %v11142_v6 = vpop.eup %11141 }
0x58dc   :  { %v8563_v17 = vsub.f32 1.0, %v11142_v6  ;;  %v8569_v10 = vmul.f32 %v11142_v6, %v14968_v43 }
0x592c   :  { %v8554_v0 = vpop.permute.xlu1 %8553 }
0x592d   :  { %v8556_v40 = vmul.f32 %v11142_v6, %v8554_v0 }
0x592f   :  { %8558 = vrot.lane.b32.xlu1 %v8556_v40, %s11329_s28 }
0x59a1   :  { %v8559_v50 = vpop.permute.xlu1 %8558 }
0x59a2   :  { %v8561_v63 = vadd.f32 %v8559_v50, %v8543_v53 }
0x59a4   :  { %11143 = vtanh.f32 %v8561_v63 }
0x59b1   :  { %v11144_v37 = vpop.eup %11143 }
0x59b2   :  { %8565 = vrot.lane.b32.xlu0 %v11144_v37, %s11330_s8 }
0x5a24   :  { %v8566_v59 = vpop.permute.xlu0 %8565 }
0x5a25   :  { %v8568_v58 = vmul.f32 %v8566_v59, %v8563_v17 }
0x5a27   :  { %v15350_v21 = vadd.f32 %v8569_v10, %v8568_v58 }
0x5a29   :  { %v11114_v45 = vpack.i.bf16 %v7888_v51, %v15350_v21 }
0x5a2b   :  { %11115 = vrot.lane.b32.xlu1 %v11114_v45, %s11330_s8 }
0x5a9d   :  { %v11116_v11 = vpop.permute.xlu1 %11115 }
0x5a9e   :  { %v11118_v48 = vunpack.i.h.bf16 %v11116_v11  ;;  %v11117_v61 = vunpack.i.l.bf16 %v11116_v11 }
0x5aa0   :  { %v8579_v29 = vsel %vm609_vm3, %v11117_v61, %v8465_v62 }
0x5aa1   :  { %v8580_v2 = vsel %vm16426_vm0, %v8579_v29, %v11118_v48 }
0x5aa2   :  { %10755 = vmatmul.mubr.f32.vlgmr.msra.gmra.mxu0 %v8580_v2 }
0x5b61   :  { %8657 = sbr.rel (%p9662_p3) target bundleno = 23400 (0x5b68), region = 165 }
0x5b62   :  { %v8647_v3 = vpop.f32.mrf.mxu0 }
0x5b63   :  { %v8648_v27 = vadd.f32 %v13444_v32, %v8647_v3 }
0x5b64   :  { %v10756_v43 = vpop.f32.mrf.mxu0 }
0x5b65   :  { %9660 = vst [vmem:[%s15762_s23 + $0x30] sm:$0xff] %v8648_v27 }
0x5b66   :  { %v16427_v25 = vld [vmem:[#allocation36_spill] sm:$0xff] }
0x5b67   :  { %8658 = vst.msk [vmem:[#allocation2] sm:$0xff] %vm609_vm3, %v16427_v25 }
0x5b68 PF:  { %s9663_s12 = sld [smem:[#allocation3 + $0x6]] }
0x5b6e   :  { %p9664_p4 = scmp.ne.s32.totalorder %s9663_s12, 0 }
0x5b70   :  { %8663 = sbr.rel (%p9664_p4) target bundleno = 23891 (0x5d53), region = 169 }
0x5b75   :  { %vm16428_vm8 = vcmask 523264   ;;  %v11344_v1 = vmov 0.0   ;;  %v16429_v23 = vld [vmem:[#allocation21_spill] sm:$0xff]  ;;  %v16430_v51 = vld [vmem:[#allocation22_spill] sm:$0xff]  ;;  %v16431_v54 = vld [vmem:[#allocation23_spill] sm:$0xff]  ;;  %vm11345_vm11 = vmmov 0  }
0x5b76   :  { %v8664_v15 = vsel %vm16428_vm8, %v8648_v27, -inf  ;;  %10757 = vmatprep.subr.mxu0 %v11344_v1  ;;  %v16432_v62 = vld [vmem:[#allocation24_spill] sm:$0xff]  ;;  %v16433_v31 = vld [vmem:[#allocation25_spill] sm:$0xff]  ;;  %v16434_v34 = vld [vmem:[#allocation26_spill] sm:$0xff]  ;;  %10773 = vmatprep.mubr.msk.f32.mxu0 %vm11345_vm11, %v11344_v1 }
0x5b77   :  { %8665 = vmax.xlane.f32.xlu0 %v8664_v15  ;;  %10758 = vmatpush3.msra.mxu0 %v16429_v23  ;;  %v16435_v13 = vld [vmem:[#allocation27_spill] sm:$0xff]  ;;  %v16436_v18 = vld [vmem:[#allocation28_spill] sm:$0xff]  ;;  %v16437_v12 = vld [vmem:[#allocation37_spill] sm:$0xff] }
0x5b78   :  { %10759 = vmatprep.subr.mxu0 %v11344_v1  ;;  %vm16438_vm7 = vmmov %vm16428_vm8 }
0x5b79   :  { %10760 = vmatpush3.msra.mxu0 %v16430_v51  ;;  %vm16439_vm8 = vmmov %vm16438_vm7 }
0x5b7a   :  { %10761 = vmatprep.subr.mxu0 %v11344_v1 }
0x5b7b   :  { %10762 = vmatpush3.msra.mxu0 %v16431_v54 }
0x5b7c   :  { %10763 = vmatprep.subr.mxu0 %v11344_v1 }
0x5b7d   :  { %10764 = vmatpush3.msra.mxu0 %v16432_v62 }
0x5b7e   :  { %10765 = vmatprep.subr.mxu0 %v11344_v1 }
0x5b7f   :  { %10766 = vmatpush3.msra.mxu0 %v16433_v31 }
0x5b80   :  { %10767 = vmatprep.subr.mxu0 %v11344_v1 }
0x5b81   :  { %10768 = vmatpush3.msra.mxu0 %v16434_v34 }
0x5b82   :  { %10769 = vmatprep.subr.mxu0 %v11344_v1 }
0x5b83   :  { %10770 = vmatpush3.msra.mxu0 %v16435_v13 }
0x5b84   :  { %10771 = vmatprep.subr.mxu0 %v11344_v1 }
0x5b85   :  { %10772 = vmatpush3.msra.mxu0 %v16436_v18 }
0x5c00   :  { %v8666_v20 = vpop.xlane.xlu0 %8665 }
0x5c01   :  { %vm8667_vm6 = vcmp.eq.f32.partialorder %v8648_v27, %v8666_v20 }
0x5c02   :  { %v8668_v19 = vsel %vm8667_vm6, %v16437_v12, 64.0 }
0x5c03   :  { %v8669_v53 = vsel %vm16438_vm7, %v8668_v19, inf }
0x5c04   :  { %8670 = vmin.xlane.f32.xlu0 %v8669_v53 }
0x5c8d   :  { %v8671_v60 = vpop.xlane.xlu0 %8670 }
0x5c8e   :  { %vm8672_vm0 = vcmp.eq.f32.partialorder %v16437_v12, %v8671_v60 }
0x5c8f   :  { %v9665_v41 = vsel %vm8672_vm0, 1.0, %v11344_v1 }
0x5c90   :  { %10774 = vmatmul.mubr.msk.f32.vlgmr.msra.gmra.mxu0 %vm16439_vm8, %v9665_v41 }
0x5d50   :  { %v8744_v35 = vpop.f32.mrf.mxu0 }
0x5d51   :  { %8748 = vst.msk [vmem:[#allocation2] sm:$0xff] %vm609_vm3, %v8744_v35 }
0x5d52   :  { %v10775_v26 = vpop.f32.mrf.mxu0 }
0x5d53 PF:  { %v8758_v6 = vrot.slane %v8648_v27, %v12212_v33  ;;  %v8751_v0 = vcombine.high %v8648_v27, %v8648_v27  ;;  %v16440_v40 = vmov 0.0   ;;  %vm16441_vm6 = vmmov 0   ;;  %9333 = vmatprep.subr.mxu1 %v13118_v57  ;;  %v16453_v11 = vld [vmem:[#allocation64_spill] sm:$0xff]  ;;  %v16454_v48 = vld [vmem:[#allocation65_spill] sm:$0xff]  ;;  %v16455_v61 = vld [vmem:[#allocation66_spill] sm:$0xff] }
0x5d54   :  { %10776 = vmatprep.subr.mxu0 %v16440_v40  ;;  %10792 = vmatprep.mubr.msk.f32.mxu0 %vm16441_vm6, %v16440_v40  ;;  %v16456_v29 = vld [vmem:[#allocation67_spill] sm:$0xff]  ;;  %v16457_v2 = vld [vmem:[#allocation68_spill] sm:$0xff]  ;;  %v16458_v3 = vld [vmem:[#allocation69_spill] sm:$0xff]  ;;  %vm16478_vm7 = vcmask 130048  }
0x5d55   :  { %10777 = vmatpush3.msra.mxu0 %v12675_v49  ;;  %v8774_v50 = vrot.slane %v8758_v6, %v12212_v33  ;;  %v8766_v63 = vcombine.high %v8758_v6, %v8758_v6  ;;  %v8765_v37 = vrot.slane %v8751_v0, %v12212_v33  ;;  %9334 = vmatpush1.msra.mxu1 %v13123_v30  ;;  %v16459_v27 = vld [vmem:[#allocation70_spill] sm:$0xff]  ;;  %v16460_v43 = vld [vmem:[#allocation71_spill] sm:$0xff]  ;;  %v16461_v25 = vld [vmem:[#allocation72_spill] sm:$0xff] }
0x5d56   :  { %10778 = vmatprep.subr.mxu0 %v16440_v40  ;;  %9335 = vmatprep.subr.mxu1 %v13128_v56  ;;  %v16462_v1 = vld [vmem:[#allocation43_spill] sm:$0xff]  ;;  %v16463_v54 = vld [vmem:[#allocation40_spill] sm:$0xff]  ;;  %v16464_v34 = vld [vmem:[#allocation42_spill] sm:$0xff] }
0x5d57   :  { %10779 = vmatpush3.msra.mxu0 %v12703_v55  ;;  %v8803_v17 = vrot.slane %v8774_v50, %v11526_v9  ;;  %v8796_v59 = vcombine.high %v8774_v50, %v8774_v50  ;;  %v8788_v49 = vrot.slane %v8766_v63, %v12212_v33  ;;  %v8767_v57 = vcombine.high %v8765_v37, %v8765_v37  ;;  %v16465_v20 = vld [vmem:[#allocation45_spill] sm:$0xff]  ;;  %v16467_v35 = vld [vmem:[#allocation44_spill] sm:$0xff]  ;;  %v16468_v0 = vld [vmem:[#allocation38_spill] sm:$0xff] }
0x5d58   :  { %10780 = vmatprep.subr.mxu0 %v16440_v40  ;;  %9336 = vmatpush1.msra.mxu1 %v13134_v8  ;;  %v8781_v56 = vrot.slane %v8765_v37, %v12212_v33  ;;  %v16466_v53 = vld [vmem:[#allocation41_spill] sm:$0xff]  ;;  %v16469_v37 = vld [vmem:[#allocation39_spill] sm:$0xff] }
0x5d59   :  { %10781 = vmatpush3.msra.mxu0 %v12711_v16  ;;  %8832 = vrot.lane.b32.xlu0 %v8803_v17, %s11329_s28  ;;  %v8811_v30 = vrot.slane %v8796_v59, %v11526_v9  ;;  %v8807_v55 = vrot.slane %v8788_v49, %v11526_v9  ;;  %v8798_v10 = vcombine.high %v8788_v49, %v8788_v49  ;;  %v16470_v49 = vld [vmem:[#allocation46_spill] sm:$0xff] }
0x5d5a   :  { %10782 = vmatprep.subr.mxu0 %v16440_v40  ;;  %9337 = vmatprep.subr.mxu1 %v13140_v14  ;;  %v8795_v16 = vrot.slane %v8767_v57, %v12212_v33  ;;  %v8819_v8 = vrot.slane %v8781_v56, %v11526_v9  ;;  %v8797_v45 = vcombine.high %v8781_v56, %v8781_v56 }
0x5d5b   :  { %8836 = vrot.lane.b32.xlu1 %v8811_v30, %s11329_s28  ;;  %v8815_v58 = vrot.slane %v8798_v10, %v11526_v9  ;;  %10783 = vmatpush3.msra.mxu0 %v12665_v24 }
0x5d5c   :  { %10784 = vmatprep.subr.mxu0 %v16440_v40  ;;  %9338 = vmatpush1.msra.mxu1 %v13146_v42  ;;  %v8823_v33 = vrot.slane %v8795_v16, %v11526_v9  ;;  %v8799_v24 = vcombine.high %v8795_v16, %v8795_v16  ;;  %v8827_v14 = vrot.slane %v8797_v45, %v11526_v9  ;;  %v16446_v42 = vld [vmem:[#allocation57_spill] sm:$0xff] }
0x5d5d   :  { %8834 = vrot.lane.b32.xlu0 %v8807_v55, %s11329_s28  ;;  %10785 = vmatpush3.msra.mxu0 %v12623_v38 }
0x5d5e   :  { %10786 = vmatprep.subr.mxu0 %v16440_v40  ;;  %9339 = vmatprep.subr.mxu1 %v13152_v36  ;;  %v8831_v38 = vrot.slane %v8799_v24, %v11526_v9  ;;  %v16444_v9 = vld [vmem:[#allocation55_spill] sm:$0xff]  ;;  %v16447_v36 = vld [vmem:[#allocation58_spill] sm:$0xff] }
0x5d5f   :  { %8838 = vrot.lane.b32.xlu1 %v8815_v58, %s11329_s28  ;;  %10787 = vmatpush3.msra.mxu0 %v12599_v5  ;;  %v16443_v5 = vld [vmem:[#allocation54_spill] sm:$0xff] }
0x5d60   :  { %10788 = vmatprep.subr.mxu0 %v16440_v40  ;;  %9340 = vmatpush1.msra.mxu1 %v13158_v52  ;;  %v16448_v52 = vld [vmem:[#allocation59_spill] sm:$0xff] }
0x5d61   :  { %8840 = vrot.lane.b32.xlu0 %v8819_v8, %s11329_s28  ;;  %10789 = vmatpush3.msra.mxu0 %v12590_v39  ;;  %v16442_v39 = vld [vmem:[#allocation53_spill] sm:$0xff] }
0x5d62   :  { %10790 = vmatprep.subr.mxu0 %v16440_v40  ;;  %9341 = vmatprep.subr.mxu1 %v13164_v28  ;;  %v16449_v28 = vld [vmem:[#allocation60_spill] sm:$0xff] }
0x5d63   :  { %8842 = vrot.lane.b32.xlu1 %v8823_v33, %s11329_s28  ;;  %10791 = vmatpush3.msra.mxu0 %v12587_v47  ;;  %v16445_v47 = vld [vmem:[#allocation56_spill] sm:$0xff] }
0x5d64   :  { %9342 = vmatpush1.msra.mxu1 %v13170_v7  ;;  %9397 = vmatprep.mubr.f32.mxu1 %v16440_v40  ;;  %v16450_v7 = vld [vmem:[#allocation61_spill] sm:$0xff] }
0x5d65   :  { %8844 = vrot.lane.b32.xlu0 %v8827_v14, %s11329_s28  ;;  %9343 = vmatprep.subr.mxu1 %v13176_v46  ;;  %v16451_v46 = vld [vmem:[#allocation62_spill] sm:$0xff] }
0x5d66   :  { %9344 = vmatpush1.msra.mxu1 %v13182_v44  ;;  %10795 = vmatprep.subr.mxu0 %v16440_v40  ;;  %v16452_v44 = vld [vmem:[#allocation63_spill] sm:$0xff] }
0x5d67   :  { %8846 = vrot.lane.b32.xlu1 %v8831_v38, %s11329_s28  ;;  %9345 = vmatprep.subr.mxu1 %v16442_v39 }
0x5d68   :  { %9346 = vmatpush1.msra.mxu1 %v16443_v5 }
0x5d69   :  { %9347 = vmatprep.subr.mxu1 %v16444_v9 }
0x5d6a   :  { %9348 = vmatpush1.msra.mxu1 %v16445_v47 }
0x5d6b   :  { %9349 = vmatprep.subr.mxu1 %v16446_v42 }
0x5d6c   :  { %9350 = vmatpush1.msra.mxu1 %v16447_v36 }
0x5d6d   :  { %9351 = vmatprep.subr.mxu1 %v16448_v52 }
0x5d6e   :  { %9352 = vmatpush1.msra.mxu1 %v16449_v28 }
0x5d6f   :  { %9353 = vmatprep.subr.mxu1 %v16450_v7 }
0x5d70   :  { %9354 = vmatpush1.msra.mxu1 %v16451_v46 }
0x5d71   :  { %9355 = vmatprep.subr.mxu1 %v16452_v44 }
0x5d72   :  { %9356 = vmatpush1.msra.mxu1 %v16453_v11 }
0x5d73   :  { %9357 = vmatprep.subr.mxu1 %v16454_v48 }
0x5d74   :  { %9358 = vmatpush1.msra.mxu1 %v16455_v61  ;;  %v16471_v61 = vld [vmem:[#allocation29_spill] sm:$0xff] }
0x5d75   :  { %9359 = vmatprep.subr.mxu1 %v16456_v29 }
0x5d76   :  { %9360 = vmatpush1.msra.mxu1 %v16457_v2  ;;  %v16472_v2 = vld [vmem:[#allocation20_spill] sm:$0xff] }
0x5d77   :  { %9361 = vmatprep.subr.mxu1 %v16458_v3 }
0x5d78   :  { %9362 = vmatpush1.msra.mxu1 %v16459_v27  ;;  %v16473_v27 = vld [vmem:[#allocation47_spill] sm:$0xff] }
0x5d79   :  { %9363 = vmatprep.subr.mxu1 %v16460_v43 }
0x5d7a   :  { %9364 = vmatpush1.msra.mxu1 %v16461_v25  ;;  %v16474_v25 = vld [vmem:[#allocation48_spill] sm:$0xff] }
0x5dcb   :  { %v8833_v15 = vpop.permute.xlu0 %8832 }
0x5dcc   :  { %v8856_v23 = vadd.f32 %v8833_v15, %v16462_v1 }
0x5dcd   :  { %v8837_v51 = vpop.permute.xlu1 %8836 }
0x5dce   :  { %11150 = vtanh.f32 %v8856_v23  ;;  %v8858_v62 = vadd.f32 %v8837_v51, %v16463_v54 }
0x5dcf   :  { %v8835_v31 = vpop.permute.xlu0 %8834 }
0x5dd0   :  { %11152 = vtanh.f32 %v8858_v62  ;;  %v8857_v13 = vadd.f32 %v8835_v31, %v16464_v34 }
0x5dd1   :  { %v8839_v18 = vpop.permute.xlu1 %8838 }
0x5dd2   :  { %11154 = vtanh.f32 %v8857_v13  ;;  %v8859_v12 = vadd.f32 %v8839_v18, %v16465_v20 }
0x5dd3   :  { %v8841_v19 = vpop.permute.xlu0 %8840 }
0x5dd4   :  { %11156 = vtanh.f32 %v8859_v12  ;;  %v8860_v60 = vadd.f32 %v8841_v19, %v16466_v53  ;;  %v16475_v19 = vld [vmem:[#allocation49_spill] sm:$0xff] }
0x5dd5   :  { %v8843_v41 = vpop.permute.xlu1 %8842 }
0x5dd6   :  { %11158 = vtanh.f32 %v8860_v60  ;;  %v8861_v26 = vadd.f32 %v8843_v41, %v16467_v35 }
0x5dd7   :  { %v8845_v6 = vpop.permute.xlu0 %8844 }
0x5dd8   :  { %11160 = vtanh.f32 %v8861_v26  ;;  %v8862_v50 = vadd.f32 %v8845_v6, %v16468_v0 }
0x5dd9   :  { %v8847_v63 = vpop.permute.xlu1 %8846 }
0x5dda   :  { %11162 = vtanh.f32 %v8862_v50  ;;  %v8863_v17 = vadd.f32 %v8847_v63, %v16469_v37 }
0x5ddb   :  { %v11151_v59 = vpop.eup %11150 }
0x5ddc   :  { %11164 = vtanh.f32 %v8863_v17  ;;  %v8872_v57 = vmul.f32 %v11151_v59, %v16470_v49 }
0x5ddd   :  { %v11153_v30 = vpop.eup %11152 }
0x5dde   :  { %v8880_v55 = vsel %vm609_vm3, %v8872_v57, 0.0  ;;  %v8874_v10 = vmul.f32 %v11153_v30, %v16470_v49 }
0x5ddf   :  { %v11155_v56 = vpop.eup %11154  ;;  %8881 = vadd.xlane.f32.xlu0 %v8880_v55 }
0x5de0   :  { %v8886_v58 = vsel %vm609_vm3, %v8874_v10, 0.0  ;;  %v8873_v16 = vmul.f32 %v11155_v56, %v16470_v49 }
0x5de1   :  { %v11157_v8 = vpop.eup %11156 }
0x5de2   :  { %v8883_v45 = vsel %vm609_vm3, %v8873_v16, 0.0  ;;  %v8875_v33 = vmul.f32 %v11157_v8, %v16470_v49 }
0x5de3   :  { %v11159_v24 = vpop.eup %11158  ;;  %8887 = vadd.xlane.f32.xlu0 %v8886_v58  ;;  %8884 = vadd.xlane.f32.xlu1 %v8883_v45 }
0x5de4   :  { %v8889_v14 = vsel %vm609_vm3, %v8875_v33, 0.0  ;;  %v8876_v38 = vmul.f32 %v11159_v24, %v16470_v49 }
0x5de5   :  { %v11161_v39 = vpop.eup %11160 }
0x5de6   :  { %v8892_v5 = vsel %vm609_vm3, %v8876_v38, 0.0  ;;  %v8877_v9 = vmul.f32 %v11161_v39, %v16470_v49 }
0x5de7   :  { %v11163_v47 = vpop.eup %11162  ;;  %8890 = vadd.xlane.f32.xlu0 %v8889_v14  ;;  %8893 = vadd.xlane.f32.xlu1 %v8892_v5  ;;  %v16476_v14 = vld [vmem:[#allocation50_spill] sm:$0xff] }
0x5de8   :  { %v8895_v42 = vsel %vm609_vm3, %v8877_v9, 0.0  ;;  %v8878_v36 = vmul.f32 %v11163_v47, %v16470_v49 }
0x5de9   :  { %v11165_v52 = vpop.eup %11164 }
0x5dea   :  { %v8898_v28 = vsel %vm609_vm3, %v8878_v36, 0.0  ;;  %v8879_v7 = vmul.f32 %v11165_v52, %v16470_v49 }
0x5deb   :  { %8896 = vadd.xlane.f32.xlu0 %v8895_v42  ;;  %8899 = vadd.xlane.f32.xlu1 %v8898_v28 }
0x5dec   :  { %v8901_v46 = vsel %vm609_vm3, %v8879_v7, 0.0 }
0x5def   :  { %8902 = vadd.xlane.f32.xlu0 %v8901_v46 }
0x5e68   :  { %v15474_v44 = vpop.xlane.xlu0 %8881 }
0x5e69   :  { %v8915_v29 = vrot.slane %v15474_v44, %v16471_v61  ;;  %v8955_v3 = vrot.slane %v15474_v44, %v16472_v2  ;;  %v8995_v43 = vrot.slane %v15474_v44, %v16473_v27  ;;  %v9035_v15 = vrot.slane %v15474_v44, %v16474_v25 }
0x5e6a   :  { %v9075_v13 = vrot.slane %v15474_v44, %v12831_v4  ;;  %v9115_v53 = vrot.slane %v15474_v44, %v16475_v19  ;;  %v9155_v38 = vrot.slane %v15474_v44, %v16476_v14 }
0x5e6c   :  { %v15476_v11 = vpop.xlane.xlu0 %8887  ;;  %v15478_v48 = vpop.xlane.xlu1 %8884 }
0x5e6d   :  { %v8919_v1 = vrot.slane %v15478_v48, %v16471_v61  ;;  %v8923_v23 = vrot.slane %v15476_v11, %v16471_v61  ;;  %v8959_v51 = vrot.slane %v15478_v48, %v16472_v2  ;;  %v8963_v54 = vrot.slane %v15476_v11, %v16472_v2 }
0x5e6e   :  { %v8999_v62 = vrot.slane %v15478_v48, %v16473_v27  ;;  %v9003_v31 = vrot.slane %v15476_v11, %v16473_v27  ;;  %v9039_v34 = vrot.slane %v15478_v48, %v16474_v25  ;;  %v9043_v12 = vrot.slane %v15476_v11, %v16474_v25 }
0x5e6f   :  { %v8944_v18 = vsel %vm3736_vm12, %v8919_v1, %v8915_v29  ;;  %v8984_v20 = vsel %vm3736_vm12, %v8959_v51, %v8955_v3  ;;  %v9079_v51 = vrot.slane %v15478_v48, %v12831_v4 }
0x5e70   :  { %v15510_v60 = vpop.xlane.xlu0 %8890  ;;  %v15512_v41 = vpop.xlane.xlu1 %8893  ;;  %v8945_v35 = vsel %vm3738_vm13, %v8923_v23, %v8944_v18  ;;  %v8985_v26 = vsel %vm3738_vm13, %v8963_v54, %v8984_v20  ;;  %v9024_v6 = vsel %vm3736_vm12, %v8999_v62, %v8995_v43  ;;  %v9064_v0 = vsel %vm3736_vm12, %v9039_v34, %v9035_v15  ;;  %v16477_v34 = vld [vmem:[#allocation51_spill] sm:$0xff] }
0x5e71   :  { %v8927_v50 = vrot.slane %v15510_v60, %v16471_v61  ;;  %v8931_v63 = vrot.slane %v15512_v41, %v16471_v61  ;;  %v8967_v37 = vrot.slane %v15510_v60, %v16472_v2  ;;  %v8971_v17 = vrot.slane %v15512_v41, %v16472_v2 }
0x5e72   :  { %v9007_v59 = vrot.slane %v15510_v60, %v16473_v27  ;;  %v9011_v49 = vrot.slane %v15512_v41, %v16473_v27  ;;  %v9025_v57 = vsel %vm3738_vm13, %v9003_v31, %v9024_v6  ;;  %v9047_v30 = vrot.slane %v15510_v60, %v16474_v25 }
0x5e73   :  { %v8946_v55 = vsel %vm3740_vm14, %v8927_v50, %v8945_v35  ;;  %v8986_v10 = vsel %vm3740_vm14, %v8967_v37, %v8985_v26  ;;  %v9051_v56 = vrot.slane %v15512_v41, %v16474_v25  ;;  %v9065_v58 = vsel %vm3738_vm13, %v9043_v12, %v9064_v0 }
0x5e74   :  { %v15538_v16 = vpop.xlane.xlu0 %8896  ;;  %v15540_v8 = vpop.xlane.xlu1 %8899  ;;  %v8947_v45 = vsel %vm3742_vm15, %v8931_v63, %v8946_v55  ;;  %v9026_v33 = vsel %vm3740_vm14, %v9007_v59, %v9025_v57  ;;  %v9066_v24 = vsel %vm3740_vm14, %v9047_v30, %v9065_v58  ;;  %v8987_v47 = vsel %vm3742_vm15, %v8971_v17, %v8986_v10 }
0x5e75   :  { %v8935_v39 = vrot.slane %v15538_v16, %v16471_v61  ;;  %v8939_v5 = vrot.slane %v15540_v8, %v16471_v61  ;;  %v8975_v9 = vrot.slane %v15538_v16, %v16472_v2  ;;  %v8979_v42 = vrot.slane %v15540_v8, %v16472_v2 }
0x5e76   :  { %v9015_v36 = vrot.slane %v15538_v16, %v16473_v27  ;;  %v9019_v52 = vrot.slane %v15540_v8, %v16473_v27  ;;  %v9055_v28 = vrot.slane %v15538_v16, %v16474_v25  ;;  %v9027_v46 = vsel %vm3742_vm15, %v9011_v49, %v9026_v33 }
0x5e77   :  { %v8948_v7 = vsel %vm3744_vm1, %v8935_v39, %v8947_v45  ;;  %v9059_v29 = vrot.slane %v15540_v8, %v16474_v25  ;;  %v9067_v3 = vsel %vm3742_vm15, %v9051_v56, %v9066_v24  ;;  %v8988_v15 = vsel %vm3744_vm1, %v8975_v9, %v8987_v47 }
0x5e78   :  { %v15567_v43 = vpop.xlane.xlu0 %8902  ;;  %v9028_v1 = vsel %vm3744_vm1, %v9015_v36, %v9027_v46  ;;  %v9068_v23 = vsel %vm3744_vm1, %v9055_v28, %v9067_v3  ;;  %v9083_v31 = vrot.slane %v15476_v11, %v12831_v4  ;;  %v9195_v18 = vrot.slane %v15474_v44, %v16477_v34 }
0x5e79   :  { %v8943_v54 = vrot.slane %v15567_v43, %v16471_v61  ;;  %v8983_v62 = vrot.slane %v15567_v43, %v16472_v2  ;;  %v8949_v20 = vsel %vm3746_vm2, %v8939_v5, %v8948_v7  ;;  %v9023_v12 = vrot.slane %v15567_v43, %v16473_v27 }
0x5e7a   :  { %v9063_v35 = vrot.slane %v15567_v43, %v16474_v25  ;;  %v9087_v61 = vrot.slane %v15510_v60, %v12831_v4  ;;  %v8989_v26 = vsel %vm3746_vm2, %v8979_v42, %v8988_v15  ;;  %v9029_v2 = vsel %vm3746_vm2, %v9019_v52, %v9028_v1 }
0x5e7b   :  { %v9069_v6 = vsel %vm3746_vm2, %v9059_v29, %v9068_v23  ;;  %v9091_v0 = vrot.slane %v15512_v41, %v12831_v4  ;;  %v8950_v50 = vsel %vm3748_vm4, %v8943_v54, %v8949_v20  ;;  %v8990_v63 = vsel %vm3748_vm4, %v8983_v62, %v8989_v26 }
0x5e7c   :  { %v9095_v27 = vrot.slane %v15538_v16, %v12831_v4  ;;  %v9104_v25 = vsel %vm3736_vm12, %v9079_v51, %v9075_v13  ;;  %v9119_v17 = vrot.slane %v15478_v48, %v16475_v19  ;;  %v9123_v59 = vrot.slane %v15476_v11, %v16475_v19 }
0x5e7d   :  { %v9105_v37 = vsel %vm3738_vm13, %v9083_v31, %v9104_v25  ;;  %v9127_v49 = vrot.slane %v15510_v60, %v16475_v19  ;;  %v9030_v57 = vsel %vm3748_vm4, %v9023_v12, %v9029_v2  ;;  %v9070_v30 = vsel %vm3748_vm4, %v9063_v35, %v9069_v6  ;;  %v16481_v25 = vld [vmem:[#allocation52_spill] sm:$0xff] }
0x5e7e   :  { %v9099_v55 = vrot.slane %v15540_v8, %v12831_v4  ;;  %v9106_v13 = vsel %vm3740_vm14, %v9087_v61, %v9105_v37  ;;  %v9103_v10 = vrot.slane %v15567_v43, %v12831_v4  ;;  %v9144_v58 = vsel %vm3736_vm12, %v9119_v17, %v9115_v53 }
0x5e7f   :  { %v9107_v56 = vsel %vm3742_vm15, %v9091_v0, %v9106_v13  ;;  %v9159_v45 = vrot.slane %v15478_v48, %v16476_v14  ;;  %v9131_v24 = vrot.slane %v15512_v41, %v16475_v19  ;;  %v9145_v39 = vsel %vm3738_vm13, %v9123_v59, %v9144_v58  ;;  %v16485_v58 = vld [vmem:[#allocation74_spill] sm:$0xff] }
0x5e80   :  { %v9108_v33 = vsel %vm3744_vm1, %v9095_v27, %v9107_v56  ;;  %v9163_v4 = vrot.slane %v15476_v11, %v16476_v14  ;;  %v9135_v5 = vrot.slane %v15538_v16, %v16475_v19  ;;  %v9139_v44 = vrot.slane %v15540_v8, %v16475_v19 }
0x5e81   :  { %v9146_v53 = vsel %vm3740_vm14, %v9127_v49, %v9145_v39  ;;  %v9167_v9 = vrot.slane %v15510_v60, %v16476_v14  ;;  %v9109_v47 = vsel %vm3746_vm2, %v9099_v55, %v9108_v33  ;;  %v9143_v42 = vrot.slane %v15567_v43, %v16475_v19  ;;  %v16487_v33 = vld [vmem:[#allocation76_spill] sm:$0xff]  ;;  %v16490_v39 = vld [vmem:[#allocation79_spill] sm:$0xff] }
0x5e82   :  { %v9171_v36 = vrot.slane %v15512_v41, %v16476_v14  ;;  %v9175_v52 = vrot.slane %v15538_v16, %v16476_v14  ;;  %v9110_v28 = vsel %vm3748_vm4, %v9103_v10, %v9109_v47  ;;  %v9184_v7 = vsel %vm3736_vm12, %v9159_v45, %v9155_v38  ;;  %v16486_v45 = vld [vmem:[#allocation75_spill] sm:$0xff]  ;;  %v16496_v47 = vld [vmem:[#allocation85_spill] sm:$0xff] }
0x5e83   :  { %v9199_v46 = vrot.slane %v15478_v48, %v16477_v34  ;;  %v9203_v29 = vrot.slane %v15476_v11, %v16477_v34  ;;  %v9147_v3 = vsel %vm3742_vm15, %v9131_v24, %v9146_v53  ;;  %v9179_v19 = vrot.slane %v15540_v8, %v16476_v14  ;;  %v16488_v24 = vld [vmem:[#allocation77_spill] sm:$0xff]  ;;  %v16494_v53 = vld [vmem:[#allocation83_spill] sm:$0xff] }
0x5e84   :  { %v9185_v15 = vsel %vm3738_vm13, %v9163_v4, %v9184_v7  ;;  %v9207_v1 = vrot.slane %v15510_v60, %v16477_v34  ;;  %v9148_v23 = vsel %vm3744_vm1, %v9135_v5, %v9147_v3  ;;  %v9183_v38 = vrot.slane %v15567_v43, %v16476_v14  ;;  %v16491_v4 = vld [vmem:[#allocation80_spill] sm:$0xff]  ;;  %v16492_v5 = vld [vmem:[#allocation81_spill] sm:$0xff] }
0x5e85   :  { %v9186_v48 = vsel %vm3740_vm14, %v9167_v9, %v9185_v15  ;;  %v9211_v11 = vrot.slane %v15512_v41, %v16477_v34  ;;  %v9215_v54 = vrot.slane %v15538_v16, %v16477_v34  ;;  %v9224_v62 = vsel %vm3736_vm12, %v9199_v46, %v9195_v18  ;;  %v16495_v9 = vld [vmem:[#allocation84_spill] sm:$0xff]  ;;  %v8749_v46 = vld [vmem:[#allocation2] sm:$0xff] }
0x5e86   :  { %v9187_v51 = vsel %vm3742_vm15, %v9171_v36, %v9186_v48  ;;  %v9232_v31 = vsel %vm4038_vm5, %v8950_v50, %v8990_v63  ;;  %v9219_v20 = vrot.slane %v15540_v8, %v16477_v34  ;;  %v9225_v14 = vsel %vm3738_vm13, %v9203_v29, %v9224_v62  ;;  %v16498_v36 = vld [vmem:[#allocation87_spill] sm:$0xff] }
0x5e87   :  { %v9188_v60 = vsel %vm3744_vm1, %v9175_v52, %v9187_v51  ;;  %v9233_v12 = vsel %vm16478_vm7, %v9232_v31, %v9030_v57  ;;  %v9149_v41 = vsel %vm3746_vm2, %v9139_v44, %v9148_v23  ;;  %v9223_v35 = vrot.slane %v15567_v43, %v16477_v34  ;;  %v16493_v44 = vld [vmem:[#allocation82_spill] sm:$0xff]  ;;  %v16499_v52 = vld [vmem:[#allocation88_spill] sm:$0xff] }
0x5e88   :  { %v9226_v16 = vsel %vm3740_vm14, %v9207_v1, %v9225_v14  ;;  %v9234_v18 = vsel %vm4042_vm9, %v9233_v12, %v9070_v30  ;;  %v9150_v61 = vsel %vm3748_vm4, %v9143_v42, %v9149_v41  ;;  %v9189_v26 = vsel %vm3746_vm2, %v9179_v19, %v9188_v60  ;;  %v16497_v42 = vld [vmem:[#allocation86_spill] sm:$0xff] }
0x5e89   :  { %v9227_v2 = vsel %vm3742_vm15, %v9211_v11, %v9226_v16  ;;  %v9235_v8 = vsel %vm609_vm3, %v9234_v18, %v9110_v28  ;;  %v9190_v6 = vsel %vm3748_vm4, %v9183_v38, %v9189_v26  ;;  %vm16479_vm12 = vcmask 392192   ;;  %v16501_v38 = vld [vmem:[#allocation31_spill] sm:$0xff] }
0x5e8a   :  { %v9228_v0 = vsel %vm3744_vm1, %v9215_v54, %v9227_v2  ;;  %v9236_v50 = vsel %vm4045_vm10, %v9235_v8, %v9150_v61  ;;  %vm16480_vm13 = vcmask 457728   ;;  %vm16482_vm14 = vcmask 523264  }
0x5e8b   :  { %v9229_v43 = vsel %vm3746_vm2, %v9219_v20, %v9228_v0  ;;  %v9237_v34 = vsel %vm16479_vm12, %v9236_v50, %v9190_v6  ;;  %vm16483_vm15 = vmmov %vm16482_vm14  ;;  %vm16500_vm2 = vcmask 785408  }
0x5e8c   :  { %v9230_v63 = vsel %vm3748_vm4, %v9223_v35, %v9229_v43  ;;  %vm16484_vm1 = vmmov %vm16482_vm14 }
0x5e8d   :  { %v9238_v27 = vsel %vm16480_vm13, %v9237_v34, %v9230_v63  ;;  %vm16503_vm4 = vmmov %vm16500_vm2 }
0x5e8e   :  { %v9239_v37 = vadd.f32 %v9238_v27, %v16481_v25 }
0x5e90   :  { %v9240_v17 = vsel %vm16482_vm14, %v9239_v37, -inf }
0x5e91   :  { %9241 = vmax.xlane.f32.xlu1 %v9240_v17 }
0x5f1a   :  { %v9242_v59 = vpop.xlane.xlu1 %9241 }
0x5f1b   :  { %v9243_v49 = vsub.f32 %v9239_v37, %v9242_v59 }
0x5f1d   :  { %v9244_v57 = vmul.f32 1.442695, %v9243_v49 }
0x5f1f   :  { %11166 = vpow2.f32 %v9244_v57 }
0x5f2c   :  { %v11167_v30 = vpop.eup %11166 }
0x5f2d   :  { %v9246_v55 = vsel %vm16483_vm15, %v11167_v30, 0.0 }
0x5f2e   :  { %9247 = vadd.xlane.f32.xlu0 %v9246_v55 }
0x5f44   :  { %9328 = vrot.lane.b32.xlu0 %v15350_v21, %s11329_s28 }
0x5fb7   :  { %v9248_v13 = vpop.xlane.xlu0 %9247 }
0x5fb8   :  { %11168 = vrcp.f32 %v9248_v13 }
0x5fbb   :  { %v9329_v29 = vpop.permute.xlu0 %9328 }
0x5fc5   :  { %v11169_v10 = vpop.eup %11168 }
0x5fc6   :  { %v9250_v56 = vmul.f32 %v11169_v10, %v11167_v30 }
0x5fc8   :  { %10793 = vmatmul.mubr.msk.f32.vlgmr.msra.gmra.mxu0 %vm16484_vm1, %v9250_v56 }
0x5fc9   :  { %10796 = vmatpush3.msra.mxu0 %v13327_v22  ;;  %10827 = vmatprep.mubr.msk.f32.mxu0 %vm16441_vm6, %v16440_v40  ;;  %v16489_v22 = vld [vmem:[#allocation78_spill] sm:$0xff] }
0x5fca   :  { %10797 = vmatprep.subr.mxu0 %v16440_v40 }
0x5fcb   :  { %10798 = vmatpush3.msra.mxu0 %v16485_v58 }
0x5fcc   :  { %10799 = vmatprep.subr.mxu0 %v16440_v40 }
0x5fcd   :  { %10800 = vmatpush3.msra.mxu0 %v16486_v45 }
0x5fce   :  { %10801 = vmatprep.subr.mxu0 %v16440_v40 }
0x5fcf   :  { %10802 = vmatpush3.msra.mxu0 %v16487_v33 }
0x5fd0   :  { %10803 = vmatprep.subr.mxu0 %v16440_v40 }
0x5fd1   :  { %10804 = vmatpush3.msra.mxu0 %v16488_v24 }
0x5fd2   :  { %10805 = vmatprep.subr.mxu0 %v16440_v40 }
0x5fd3   :  { %10806 = vmatpush3.msra.mxu0 %v16489_v22 }
0x5fd4   :  { %10807 = vmatprep.subr.mxu0 %v16440_v40 }
0x5fd5   :  { %10808 = vmatpush3.msra.mxu0 %v16490_v39 }
0x5fd6   :  { %10809 = vmatprep.subr.mxu0 %v16440_v40 }
0x5fd7   :  { %10810 = vmatpush3.msra.mxu0 %v16491_v4 }
0x5fd8   :  { %10811 = vmatprep.subr.mxu0 %v16440_v40 }
0x5fd9   :  { %10812 = vmatpush3.msra.mxu0 %v16492_v5 }
0x5fda   :  { %10813 = vmatprep.subr.mxu0 %v16440_v40 }
0x5fdb   :  { %10814 = vmatpush3.msra.mxu0 %v16493_v44 }
0x5fdc   :  { %10815 = vmatprep.subr.mxu0 %v16440_v40 }
0x5fdd   :  { %10816 = vmatpush3.msra.mxu0 %v16494_v53 }
0x5fde   :  { %10817 = vmatprep.subr.mxu0 %v16440_v40 }
0x5fdf   :  { %10818 = vmatpush3.msra.mxu0 %v16495_v9 }
0x5fe0   :  { %10819 = vmatprep.subr.mxu0 %v16440_v40 }
0x5fe1   :  { %10820 = vmatpush3.msra.mxu0 %v16496_v47 }
0x5fe2   :  { %10821 = vmatprep.subr.mxu0 %v16440_v40 }
0x5fe3   :  { %10822 = vmatpush3.msra.mxu0 %v16497_v42 }
0x5fe4   :  { %10823 = vmatprep.subr.mxu0 %v16440_v40 }
0x5fe5   :  { %10824 = vmatpush3.msra.mxu0 %v16498_v36 }
0x5fe6   :  { %10825 = vmatprep.subr.mxu0 %v16440_v40  ;;  %v16502_v40 = vld [vmem:[#allocation73_spill] sm:$0xff] }
0x5fe7   :  { %10826 = vmatpush3.msra.mxu0 %v16499_v52 }
0x6088   :  { %v9320_v28 = vpop.f32.mrf.mxu0 }
0x6089   :  { %9325 = vrot.lane.b32.xlu1 %v9320_v28, %s11333_s30 }
0x608a   :  { %v10794_v7 = vpop.f32.mrf.mxu0 }
0x60fb   :  { %v9326_v3 = vpop.permute.xlu1 %9325 }
0x60fc   :  { %v9331_v19 = vsel %vm609_vm3, %v8749_v46, %v9326_v3 }
0x60fd   :  { %v9332_v15 = vsel %vm16500_vm2, %v9331_v19, %v9329_v29 }
0x60fe   :  { %9398 = vmatmul.mubr.f32.vlgmr.msra.gmra.mxu1 %v9332_v15 }
0x61be   :  { %v9399_v1 = vpop.f32.mrf.mxu1 }
0x61bf   :  { %v9404_v11 = vadd.f32 %v16502_v40, %v9399_v1 }
0x61c0   :  { %v9401_v23 = vpop.f32.mrf.mxu1 }
0x61c1   :  { %v9405_v48 = vadd.f32 %v16501_v38, %v9401_v23 }
0x61c3   :  { %9414 = vrot.lane.b32.xlu1 %v9405_v48, %s11329_s28  ;;  %v9406_v51 = vadd.f32 %v9405_v48, %v9404_v11 }
0x61c5   :  { %v9668_v54 = vmul.f32 -1.442695, %v9406_v51 }
0x61c7   :  { %11170 = vpow2.f32 %v9668_v54 }
0x61d4   :  { %v11171_v62 = vpop.eup %11170 }
0x61d5   :  { %v9410_v31 = vadd.f32 1.0, %v11171_v62 }
0x61d7   :  { %11172 = vrcp.f32 %v9410_v31 }
0x61e4   :  { %v11173_v60 = vpop.eup %11172 }
0x61e5   :  { %v9424_v16 = vsub.f32 1.0, %v11173_v60  ;;  %v9430_v61 = vmul.f32 %v11173_v60, %v15350_v21 }
0x6235   :  { %v9415_v20 = vpop.permute.xlu1 %9414 }
0x6236   :  { %v9417_v14 = vmul.f32 %v11173_v60, %v9415_v20 }
0x6238   :  { %9419 = vrot.lane.b32.xlu1 %v9417_v14, %s11329_s28 }
0x62aa   :  { %v9420_v12 = vpop.permute.xlu1 %9419 }
0x62ab   :  { %v9422_v41 = vadd.f32 %v9420_v12, %v9404_v11 }
0x62ad   :  { %11174 = vtanh.f32 %v9422_v41 }
0x62ba   :  { %v11175_v35 = vpop.eup %11174 }
0x62bb   :  { %9426 = vrot.lane.b32.xlu0 %v11175_v35, %s11330_s8 }
0x632d   :  { %v9427_v18 = vpop.permute.xlu0 %9426 }
0x632e   :  { %v9429_v26 = vmul.f32 %v9427_v18, %v9424_v16 }
0x6330   :  { %v9431_v2 = vadd.f32 %v9430_v61, %v9429_v26 }
0x6332   :  { %v11145_v8 = vpack.i.bf16 %v8749_v46, %v9431_v2 }
0x6334   :  { %11146 = vrot.lane.b32.xlu1 %v11145_v8, %s11330_s8 }
0x63a6   :  { %v11147_v6 = vpop.permute.xlu1 %11146 }
0x63a7   :  { %v11149_v0 = vunpack.i.h.bf16 %v11147_v6  ;;  %v11148_v50 = vunpack.i.l.bf16 %v11147_v6 }
0x63a9   :  { %v9440_v43 = vsel %vm609_vm3, %v11148_v50, %v9326_v3 }
0x63aa   :  { %v9441_v34 = vsel %vm16503_vm4, %v9440_v43, %v11149_v0 }
0x63ab   :  { %10828 = vmatmul.mubr.f32.vlgmr.msra.gmra.mxu0 %v9441_v34 }
0x646b   :  { %v9508_v63 = vpop.f32.mrf.mxu0 }
0x646c   :  { %v9509_v27 = vadd.f32 %v13444_v32, %v9508_v63 }
0x646d   :  { %v10829_v25 = vpop.f32.mrf.mxu0 }
0x646e   :  { %9669 = vst [vmem:[%s15762_s23 + $0x38] sm:$0xff] %v9509_v27 }
0x646f   :  { %9518 = vsyncpa [#allocation4], 1 }
0x6470   :  { %9519 = vsyncpa [#allocation8], 1 }
0x6471   :  { %9520 = vsyncpa [#allocation11], 1 }
0x6472   :  { %9521 = vsyncpa [#allocation14], 1 }
0x6473   :  { %9522 = vsyncpa [#allocation5], 1 }

</bundles_post_ra>
